<compile_context>
chip_gen: v6e
topology: v6e:2x2x1
jax: 0.10.0
libtpu: 0.0.40
codegen_flags: <defaults>
</compile_context>

<pallas_src>
import functools

import jax
import jax.numpy as jnp
from jax.experimental import pallas as pl
from jax.experimental.pallas import tpu as pltpu


def _round_up(x, m):
    return ((x + m - 1) // m) * m


def _residual_layer_kernel(x_ref, w_ref, b_ref, o_ref, buf_ref, *,
                           kernel_size, dilations, pad_l_buf, pad_r_buf,
                           negative_slope):
    x = x_ref[0].astype(jnp.float32)                       # (T, C)
    t, c = x.shape

    # Zero the left/right halo rows of the padded scratch once per grid step
    # (the interior gets overwritten every layer, halos only ever hold zeros).
    if pad_l_buf > 0:
        buf_ref[0:pad_l_buf, :] = jnp.zeros((pad_l_buf, c), jnp.float32)
    if pad_r_buf > 0:
        buf_ref[pad_l_buf + t:pad_l_buf + t + pad_r_buf, :] = jnp.zeros(
            (pad_r_buf, c), jnp.float32)

    y = x
    for l, d in enumerate(dilations):
        pad_l = ((kernel_size - 1) * d) // 2               # centered "same" pad
        # LeakyReLU(0.2) before the conv (VPU)
        a = jnp.where(y > 0, y, negative_slope * y)
        buf_ref[pad_l_buf:pad_l_buf + t, :] = a            # aligned interior write
        acc = jnp.zeros((t, c), jnp.float32)
        for k in range(kernel_size):                       # K shifted MXU matmuls
            off = pad_l_buf - pad_l + k * d                # static offset
            acc = acc + jnp.dot(
                buf_ref[off:off + t, :], w_ref[l, k],
                preferred_element_type=jnp.float32,
                precision=jax.lax.Precision.HIGHEST)
        y = acc + b_ref[l]                                 # (1, C) bias broadcast
    o_ref[0] = (y + x).astype(o_ref.dtype)                 # residual add


def residual_layer(x, weights, biases, *, kernel_size, dilations,
                   negative_slope=0.2):
    """ResidualLayer.forward.

    x:          [B, dim, T]   (PyTorch Conv1d layout)
    weights[i]: [dim, dim, K] (PyTorch Conv1d weight, one per dilation)
    biases[i]:  [dim]
    """
    f32 = jnp.float32
    B, C, T = x.shape
    L = len(dilations)
    K = kernel_size

    x_tc = jnp.transpose(x, (0, 2, 1)).astype(f32)         # [B, T, C] channels-last
    # [C_out, C_in, K] -> [K, C_in, C_out]; stack layers -> [L, K, C_in, C_out]
    w = jnp.stack([jnp.transpose(wl.astype(f32), (2, 1, 0)) for wl in weights])
    b = jnp.stack([bl.astype(f32) for bl in biases]).reshape(L, 1, C)

    pads = [(K - 1) * d for d in dilations]
    pad_l_max = max(p // 2 for p in pads)
    pad_r_max = max(p - p // 2 for p in pads)
    pad_l_buf = _round_up(pad_l_max, 8)    # keep scratch writes sublane-aligned
    pad_r_buf = _round_up(pad_r_max, 8)

    kernel = functools.partial(
        _residual_layer_kernel, kernel_size=K, dilations=tuple(dilations),
        pad_l_buf=pad_l_buf, pad_r_buf=pad_r_buf,
        negative_slope=float(negative_slope))

    out = pl.pallas_call(
        kernel,
        out_shape=jax.ShapeDtypeStruct((B, T, C), f32),
        grid_spec=pltpu.PrefetchScalarGridSpec(
            num_scalar_prefetch=0,
            grid=(B,),
            in_specs=[pl.BlockSpec((1, T, C), lambda bi: (bi, 0, 0)),
                      pl.BlockSpec((L, K, C, C), lambda bi: (0, 0, 0, 0)),
                      pl.BlockSpec((L, 1, C), lambda bi: (0, 0, 0))],
            out_specs=pl.BlockSpec((1, T, C), lambda bi: (bi, 0, 0)),
            scratch_shapes=[pltpu.VMEM((pad_l_buf + T + pad_r_buf, C), f32)]),
        compiler_params=pltpu.CompilerParams(
            dimension_semantics=("parallel",)),
    )(x_tc, w, b)

    return jnp.transpose(out, (0, 2, 1)).astype(x.dtype)   # back to [B, dim, T]


def _reference(x, weights, biases, *, kernel_size, dilations,
               negative_slope=0.2):
    """Pure-JAX reference matching ResidualLayer.forward (identity norm)."""
    y = x.astype(jnp.float32)
    x0 = y
    for wl, bl, d in zip(weights, biases, dilations):
        a = jnp.where(y > 0, y, negative_slope * y)
        full = (kernel_size - 1) * d
        pad_l, pad_r = full // 2, full - full // 2
        y = jax.lax.conv_general_dilated(
            a, wl.astype(jnp.float32), window_strides=(1,),
            padding=[(pad_l, pad_r)], rhs_dilation=(d,),
            dimension_numbers=("NCH", "OIH", "NCH"),
            precision=jax.lax.Precision.HIGHEST)
        y = y + bl.astype(jnp.float32)[None, :, None]
    return y + x0


if __name__ == "__main__":
    B, DIM, T = 2, 128, 64
    K = 3
    DILATIONS = (1, 3, 9)

    key = jax.random.PRNGKey(0)
    keys = jax.random.split(key, 1 + 2 * len(DILATIONS))
    x = jax.random.normal(keys[0], (B, DIM, T), jnp.float32)

    weights, biases = [], []
    bound = 1.0 / (DIM * K) ** 0.5          # PyTorch Conv1d default init range
    for i in range(len(DILATIONS)):
        weights.append(jax.random.uniform(
            keys[1 + 2 * i], (DIM, DIM, K), minval=-bound, maxval=bound,
            dtype=jnp.float32))
        biases.append(jax.random.uniform(
            keys[2 + 2 * i], (DIM,), minval=-bound, maxval=bound,
            dtype=jnp.float32))

    out = residual_layer(x, weights, biases, kernel_size=K,
                         dilations=DILATIONS)
    out = jax.block_until_ready(out)

    ref = jax.block_until_ready(
        _reference(x, weights, biases, kernel_size=K, dilations=DILATIONS))

    assert out.shape == (B, DIM, T)
    max_err = float(jnp.max(jnp.abs(out - ref)))
    assert max_err < 1e-3, f"max abs error {max_err}"
    print("KERNEL_OK")
</pallas_src>

<mosaic_0001>
module attributes {stable_mosaic.version = 11 : i64} {
  func.func @_residual_layer_kernel(%arg0: i32, %arg1: memref<1x64x128xf32, #tpu.memory_space<vmem>>, %arg2: memref<3x3x128x128xf32, #tpu.memory_space<vmem>>, %arg3: memref<3x1x128xf32, #tpu.memory_space<vmem>>, %arg4: memref<1x64x128xf32, #tpu.memory_space<vmem>>, %arg5: memref<96x128xf32, #tpu.memory_space<vmem>>) attributes {dimension_semantics = [#tpu.dimension_semantics<parallel>], iteration_bounds = array<i64: 2>, scalar_prefetch = 0 : i64, scratch_operands = 1 : i64, tpu.core_type = #tpu.core_type<tc>, window_params = [{transform_indices = @transform_0, window_bounds = array<i64: 1, 64, 128>}, {pipeline_mode = #tpu.pipeline_mode<synchronous>, transform_indices = @transform_1, window_bounds = array<i64: 3, 3, 128, 128>}, {pipeline_mode = #tpu.pipeline_mode<synchronous>, transform_indices = @transform_2, window_bounds = array<i64: 3, 1, 128>}, {transform_indices = @transform_3, window_bounds = array<i64: 1, 64, 128>}]} {
    %c0 = arith.constant 0 : index
    %c0_0 = arith.constant 0 : index
    %c0_1 = arith.constant 0 : index
    %0 = vector.load %arg1[%c0, %c0_0, %c0_1] : memref<1x64x128xf32, #tpu.memory_space<vmem>>, vector<1x64x128xf32>
    %1 = vector.shape_cast %0 : vector<1x64x128xf32> to vector<64x128xf32>
    %cst = arith.constant 0.000000e+00 : f32
    %2 = vector.broadcast %cst : f32 to vector<16x128xf32>
    %c0_2 = arith.constant 0 : index
    %c0_3 = arith.constant 0 : index
    %3 = vector.load %arg5[%c0_2, %c0_3] : memref<96x128xf32, #tpu.memory_space<vmem>>, vector<16x128xf32>
    tpu.vector_store %arg5[%c0_2, %c0_3], %2 {strides = array<i32>} : memref<96x128xf32, #tpu.memory_space<vmem>>, vector<16x128xf32>,
    %cst_4 = arith.constant 0.000000e+00 : f32
    %4 = vector.broadcast %cst_4 : f32 to vector<16x128xf32>
    %c80 = arith.constant 80 : index
    %c0_5 = arith.constant 0 : index
    %5 = vector.load %arg5[%c80, %c0_5] : memref<96x128xf32, #tpu.memory_space<vmem>>, vector<16x128xf32>
    tpu.vector_store %arg5[%c80, %c0_5], %4 {strides = array<i32>} : memref<96x128xf32, #tpu.memory_space<vmem>>, vector<16x128xf32>,
    %cst_6 = arith.constant 0.000000e+00 : f32
    %6 = vector.broadcast %cst_6 : f32 to vector<64x128xf32>
    %7 = arith.cmpf ogt, %1, %6 : vector<64x128xf32>
    %cst_7 = arith.constant 2.000000e-01 : f32
    %8 = vector.broadcast %cst_7 : f32 to vector<64x128xf32>
    %9 = arith.mulf %8, %1 : vector<64x128xf32>
    %10 = arith.select %7, %1, %9 : vector<64x128xi1>, vector<64x128xf32>
    %c16 = arith.constant 16 : index
    %c0_8 = arith.constant 0 : index
    %11 = vector.load %arg5[%c16, %c0_8] : memref<96x128xf32, #tpu.memory_space<vmem>>, vector<64x128xf32>
    tpu.vector_store %arg5[%c16, %c0_8], %10 {strides = array<i32>} : memref<96x128xf32, #tpu.memory_space<vmem>>, vector<64x128xf32>,
    %cst_9 = arith.constant 0.000000e+00 : f32
    %12 = vector.broadcast %cst_9 : f32 to vector<64x128xf32>
    %c15 = arith.constant 15 : index
    %c0_10 = arith.constant 0 : index
    %13 = vector.load %arg5[%c15, %c0_10] : memref<96x128xf32, #tpu.memory_space<vmem>>, vector<64x128xf32>
    %c0_11 = arith.constant 0 : index
    %c0_12 = arith.constant 0 : index
    %c0_13 = arith.constant 0 : index
    %c0_14 = arith.constant 0 : index
    %14 = vector.load %arg2[%c0_11, %c0_12, %c0_13, %c0_14] : memref<3x3x128x128xf32, #tpu.memory_space<vmem>>, vector<1x1x128x128xf32>
    %15 = vector.shape_cast %14 : vector<1x1x128x128xf32> to vector<128x128xf32>
    %cst_15 = arith.constant dense<0.000000e+00> : vector<64x128xf32>
    %16 = tpu.matmul %13, %15, %cst_15 {dimension_numbers = #tpu.dot_dimension_numbers<[1], [0], [0], [1], [0, 0, 1, 1], [], []>, precision = #tpu.contract_precision<fp32>} : vector<64x128xf32>, vector<128x128xf32>, vector<64x128xf32> -> vector<64x128xf32>
    %17 = arith.addf %12, %16 : vector<64x128xf32>
    %c16_16 = arith.constant 16 : index
    %c0_17 = arith.constant 0 : index
    %18 = vector.load %arg5[%c16_16, %c0_17] : memref<96x128xf32, #tpu.memory_space<vmem>>, vector<64x128xf32>
    %c0_18 = arith.constant 0 : index
    %c1 = arith.constant 1 : index
    %c0_19 = arith.constant 0 : index
    %c0_20 = arith.constant 0 : index
    %19 = vector.load %arg2[%c0_18, %c1, %c0_19, %c0_20] : memref<3x3x128x128xf32, #tpu.memory_space<vmem>>, vector<1x1x128x128xf32>
    %20 = vector.shape_cast %19 : vector<1x1x128x128xf32> to vector<128x128xf32>
    %cst_21 = arith.constant dense<0.000000e+00> : vector<64x128xf32>
    %21 = tpu.matmul %18, %20, %cst_21 {dimension_numbers = #tpu.dot_dimension_numbers<[1], [0], [0], [1], [0, 0, 1, 1], [], []>, precision = #tpu.contract_precision<fp32>} : vector<64x128xf32>, vector<128x128xf32>, vector<64x128xf32> -> vector<64x128xf32>
    %22 = arith.addf %17, %21 : vector<64x128xf32>
    %c17 = arith.constant 17 : index
    %c0_22 = arith.constant 0 : index
    %23 = vector.load %arg5[%c17, %c0_22] : memref<96x128xf32, #tpu.memory_space<vmem>>, vector<64x128xf32>
    %c0_23 = arith.constant 0 : index
    %c2 = arith.constant 2 : index
    %c0_24 = arith.constant 0 : index
    %c0_25 = arith.constant 0 : index
    %24 = vector.load %arg2[%c0_23, %c2, %c0_24, %c0_25] : memref<3x3x128x128xf32, #tpu.memory_space<vmem>>, vector<1x1x128x128xf32>
    %25 = vector.shape_cast %24 : vector<1x1x128x128xf32> to vector<128x128xf32>
    %cst_26 = arith.constant dense<0.000000e+00> : vector<64x128xf32>
    %26 = tpu.matmul %23, %25, %cst_26 {dimension_numbers = #tpu.dot_dimension_numbers<[1], [0], [0], [1], [0, 0, 1, 1], [], []>, precision = #tpu.contract_precision<fp32>} : vector<64x128xf32>, vector<128x128xf32>, vector<64x128xf32> -> vector<64x128xf32>
    %27 = arith.addf %22, %26 : vector<64x128xf32>
    %c0_27 = arith.constant 0 : index
    %c0_28 = arith.constant 0 : index
    %c0_29 = arith.constant 0 : index
    %28 = vector.load %arg3[%c0_27, %c0_28, %c0_29] : memref<3x1x128xf32, #tpu.memory_space<vmem>>, vector<1x1x128xf32>
    %29 = vector.shape_cast %28 : vector<1x1x128xf32> to vector<1x128xf32>
    %30 = vector.broadcast %29 : vector<1x128xf32> to vector<64x128xf32>
    %31 = arith.addf %27, %30 : vector<64x128xf32>
    %cst_30 = arith.constant 0.000000e+00 : f32
    %32 = vector.broadcast %cst_30 : f32 to vector<64x128xf32>
    %33 = arith.cmpf ogt, %31, %32 : vector<64x128xf32>
    %cst_31 = arith.constant 2.000000e-01 : f32
    %34 = vector.broadcast %cst_31 : f32 to vector<64x128xf32>
    %35 = arith.mulf %34, %31 : vector<64x128xf32>
    %36 = arith.select %33, %31, %35 : vector<64x128xi1>, vector<64x128xf32>
    %c16_32 = arith.constant 16 : index
    %c0_33 = arith.constant 0 : index
    %37 = vector.load %arg5[%c16_32, %c0_33] : memref<96x128xf32, #tpu.memory_space<vmem>>, vector<64x128xf32>
    tpu.vector_store %arg5[%c16_32, %c0_33], %36 {strides = array<i32>} : memref<96x128xf32, #tpu.memory_space<vmem>>, vector<64x128xf32>,
    %cst_34 = arith.constant 0.000000e+00 : f32
    %38 = vector.broadcast %cst_34 : f32 to vector<64x128xf32>
    %c13 = arith.constant 13 : index
    %c0_35 = arith.constant 0 : index
    %39 = vector.load %arg5[%c13, %c0_35] : memref<96x128xf32, #tpu.memory_space<vmem>>, vector<64x128xf32>
    %c1_36 = arith.constant 1 : index
    %c0_37 = arith.constant 0 : index
    %c0_38 = arith.constant 0 : index
    %c0_39 = arith.constant 0 : index
    %40 = vector.load %arg2[%c1_36, %c0_37, %c0_38, %c0_39] : memref<3x3x128x128xf32, #tpu.memory_space<vmem>>, vector<1x1x128x128xf32>
    %41 = vector.shape_cast %40 : vector<1x1x128x128xf32> to vector<128x128xf32>
    %cst_40 = arith.constant dense<0.000000e+00> : vector<64x128xf32>
    %42 = tpu.matmul %39, %41, %cst_40 {dimension_numbers = #tpu.dot_dimension_numbers<[1], [0], [0], [1], [0, 0, 1, 1], [], []>, precision = #tpu.contract_precision<fp32>} : vector<64x128xf32>, vector<128x128xf32>, vector<64x128xf32> -> vector<64x128xf32>
    %43 = arith.addf %38, %42 : vector<64x128xf32>
    %c16_41 = arith.constant 16 : index
    %c0_42 = arith.constant 0 : index
    %44 = vector.load %arg5[%c16_41, %c0_42] : memref<96x128xf32, #tpu.memory_space<vmem>>, vector<64x128xf32>
    %c1_43 = arith.constant 1 : index
    %c1_44 = arith.constant 1 : index
    %c0_45 = arith.constant 0 : index
    %c0_46 = arith.constant 0 : index
    %45 = vector.load %arg2[%c1_43, %c1_44, %c0_45, %c0_46] : memref<3x3x128x128xf32, #tpu.memory_space<vmem>>, vector<1x1x128x128xf32>
    %46 = vector.shape_cast %45 : vector<1x1x128x128xf32> to vector<128x128xf32>
    %cst_47 = arith.constant dense<0.000000e+00> : vector<64x128xf32>
    %47 = tpu.matmul %44, %46, %cst_47 {dimension_numbers = #tpu.dot_dimension_numbers<[1], [0], [0], [1], [0, 0, 1, 1], [], []>, precision = #tpu.contract_precision<fp32>} : vector<64x128xf32>, vector<128x128xf32>, vector<64x128xf32> -> vector<64x128xf32>
    %48 = arith.addf %43, %47 : vector<64x128xf32>
    %c19 = arith.constant 19 : index
    %c0_48 = arith.constant 0 : index
    %49 = vector.load %arg5[%c19, %c0_48] : memref<96x128xf32, #tpu.memory_space<vmem>>, vector<64x128xf32>
    %c1_49 = arith.constant 1 : index
    %c2_50 = arith.constant 2 : index
    %c0_51 = arith.constant 0 : index
    %c0_52 = arith.constant 0 : index
    %50 = vector.load %arg2[%c1_49, %c2_50, %c0_51, %c0_52] : memref<3x3x128x128xf32, #tpu.memory_space<vmem>>, vector<1x1x128x128xf32>
    %51 = vector.shape_cast %50 : vector<1x1x128x128xf32> to vector<128x128xf32>
    %cst_53 = arith.constant dense<0.000000e+00> : vector<64x128xf32>
    %52 = tpu.matmul %49, %51, %cst_53 {dimension_numbers = #tpu.dot_dimension_numbers<[1], [0], [0], [1], [0, 0, 1, 1], [], []>, precision = #tpu.contract_precision<fp32>} : vector<64x128xf32>, vector<128x128xf32>, vector<64x128xf32> -> vector<64x128xf32>
    %53 = arith.addf %48, %52 : vector<64x128xf32>
    %c1_54 = arith.constant 1 : index
    %c0_55 = arith.constant 0 : index
    %c0_56 = arith.constant 0 : index
    %54 = vector.load %arg3[%c1_54, %c0_55, %c0_56] : memref<3x1x128xf32, #tpu.memory_space<vmem>>, vector<1x1x128xf32>
    %55 = vector.shape_cast %54 : vector<1x1x128xf32> to vector<1x128xf32>
    %56 = vector.broadcast %55 : vector<1x128xf32> to vector<64x128xf32>
    %57 = arith.addf %53, %56 : vector<64x128xf32>
    %cst_57 = arith.constant 0.000000e+00 : f32
    %58 = vector.broadcast %cst_57 : f32 to vector<64x128xf32>
    %59 = arith.cmpf ogt, %57, %58 : vector<64x128xf32>
    %cst_58 = arith.constant 2.000000e-01 : f32
    %60 = vector.broadcast %cst_58 : f32 to vector<64x128xf32>
    %61 = arith.mulf %60, %57 : vector<64x128xf32>
    %62 = arith.select %59, %57, %61 : vector<64x128xi1>, vector<64x128xf32>
    %c16_59 = arith.constant 16 : index
    %c0_60 = arith.constant 0 : index
    %63 = vector.load %arg5[%c16_59, %c0_60] : memref<96x128xf32, #tpu.memory_space<vmem>>, vector<64x128xf32>
    tpu.vector_store %arg5[%c16_59, %c0_60], %62 {strides = array<i32>} : memref<96x128xf32, #tpu.memory_space<vmem>>, vector<64x128xf32>,
    %cst_61 = arith.constant 0.000000e+00 : f32
    %64 = vector.broadcast %cst_61 : f32 to vector<64x128xf32>
    %c7 = arith.constant 7 : index
    %c0_62 = arith.constant 0 : index
    %65 = vector.load %arg5[%c7, %c0_62] : memref<96x128xf32, #tpu.memory_space<vmem>>, vector<64x128xf32>
    %c2_63 = arith.constant 2 : index
    %c0_64 = arith.constant 0 : index
    %c0_65 = arith.constant 0 : index
    %c0_66 = arith.constant 0 : index
    %66 = vector.load %arg2[%c2_63, %c0_64, %c0_65, %c0_66] : memref<3x3x128x128xf32, #tpu.memory_space<vmem>>, vector<1x1x128x128xf32>
    %67 = vector.shape_cast %66 : vector<1x1x128x128xf32> to vector<128x128xf32>
    %cst_67 = arith.constant dense<0.000000e+00> : vector<64x128xf32>
    %68 = tpu.matmul %65, %67, %cst_67 {dimension_numbers = #tpu.dot_dimension_numbers<[1], [0], [0], [1], [0, 0, 1, 1], [], []>, precision = #tpu.contract_precision<fp32>} : vector<64x128xf32>, vector<128x128xf32>, vector<64x128xf32> -> vector<64x128xf32>
    %69 = arith.addf %64, %68 : vector<64x128xf32>
    %c16_68 = arith.constant 16 : index
    %c0_69 = arith.constant 0 : index
    %70 = vector.load %arg5[%c16_68, %c0_69] : memref<96x128xf32, #tpu.memory_space<vmem>>, vector<64x128xf32>
    %c2_70 = arith.constant 2 : index
    %c1_71 = arith.constant 1 : index
    %c0_72 = arith.constant 0 : index
    %c0_73 = arith.constant 0 : index
    %71 = vector.load %arg2[%c2_70, %c1_71, %c0_72, %c0_73] : memref<3x3x128x128xf32, #tpu.memory_space<vmem>>, vector<1x1x128x128xf32>
    %72 = vector.shape_cast %71 : vector<1x1x128x128xf32> to vector<128x128xf32>
    %cst_74 = arith.constant dense<0.000000e+00> : vector<64x128xf32>
    %73 = tpu.matmul %70, %72, %cst_74 {dimension_numbers = #tpu.dot_dimension_numbers<[1], [0], [0], [1], [0, 0, 1, 1], [], []>, precision = #tpu.contract_precision<fp32>} : vector<64x128xf32>, vector<128x128xf32>, vector<64x128xf32> -> vector<64x128xf32>
    %74 = arith.addf %69, %73 : vector<64x128xf32>
    %c25 = arith.constant 25 : index
    %c0_75 = arith.constant 0 : index
    %75 = vector.load %arg5[%c25, %c0_75] : memref<96x128xf32, #tpu.memory_space<vmem>>, vector<64x128xf32>
    %c2_76 = arith.constant 2 : index
    %c2_77 = arith.constant 2 : index
    %c0_78 = arith.constant 0 : index
    %c0_79 = arith.constant 0 : index
    %76 = vector.load %arg2[%c2_76, %c2_77, %c0_78, %c0_79] : memref<3x3x128x128xf32, #tpu.memory_space<vmem>>, vector<1x1x128x128xf32>
    %77 = vector.shape_cast %76 : vector<1x1x128x128xf32> to vector<128x128xf32>
    %cst_80 = arith.constant dense<0.000000e+00> : vector<64x128xf32>
    %78 = tpu.matmul %75, %77, %cst_80 {dimension_numbers = #tpu.dot_dimension_numbers<[1], [0], [0], [1], [0, 0, 1, 1], [], []>, precision = #tpu.contract_precision<fp32>} : vector<64x128xf32>, vector<128x128xf32>, vector<64x128xf32> -> vector<64x128xf32>
    %79 = arith.addf %74, %78 : vector<64x128xf32>
    %c2_81 = arith.constant 2 : index
    %c0_82 = arith.constant 0 : index
    %c0_83 = arith.constant 0 : index
    %80 = vector.load %arg3[%c2_81, %c0_82, %c0_83] : memref<3x1x128xf32, #tpu.memory_space<vmem>>, vector<1x1x128xf32>
    %81 = vector.shape_cast %80 : vector<1x1x128xf32> to vector<1x128xf32>
    %82 = vector.broadcast %81 : vector<1x128xf32> to vector<64x128xf32>
    %83 = arith.addf %79, %82 : vector<64x128xf32>
    %84 = arith.addf %83, %1 : vector<64x128xf32>
    %c0_84 = arith.constant 0 : index
    %c0_85 = arith.constant 0 : index
    %c0_86 = arith.constant 0 : index
    %85 = vector.load %arg4[%c0_84, %c0_85, %c0_86] : memref<1x64x128xf32, #tpu.memory_space<vmem>>, vector<1x64x128xf32>
    %86 = vector.shape_cast %85 : vector<1x64x128xf32> to vector<64x128xf32>
    %87 = vector.shape_cast %84 : vector<64x128xf32> to vector<1x64x128xf32>
    tpu.vector_store %arg4[%c0_84, %c0_85, %c0_86], %87 {strides = array<i32>} : memref<1x64x128xf32, #tpu.memory_space<vmem>>, vector<1x64x128xf32>,
    return
  }
  func.func @transform_0(%arg0: i32) -> (i32, i32, i32) {
    %c0_i32 = arith.constant 0 : i32
    %c0_i32_0 = arith.constant 0 : i32
    %c0_i32_1 = arith.constant 0 : i32
    return %arg0, %c0_i32, %c0_i32_0 : i32, i32, i32
  }
  func.func @transform_1(%arg0: i32) -> (i32, i32, i32, i32) {
    %c0_i32 = arith.constant 0 : i32
    %c0_i32_0 = arith.constant 0 : i32
    %c0_i32_1 = arith.constant 0 : i32
    %c0_i32_2 = arith.constant 0 : i32
    %c0_i32_3 = arith.constant 0 : i32
    return %c0_i32, %c0_i32_0, %c0_i32_1, %c0_i32_2 : i32, i32, i32, i32
  }
  func.func @transform_2(%arg0: i32) -> (i32, i32, i32) {
    %c0_i32 = arith.constant 0 : i32
    %c0_i32_0 = arith.constant 0 : i32
    %c0_i32_1 = arith.constant 0 : i32
    %c0_i32_2 = arith.constant 0 : i32
    return %c0_i32, %c0_i32_0, %c0_i32_1 : i32, i32, i32
  }
  func.func @transform_3(%arg0: i32) -> (i32, i32, i32) {
    %c0_i32 = arith.constant 0 : i32
    %c0_i32_0 = arith.constant 0 : i32
    %c0_i32_1 = arith.constant 0 : i32
    return %arg0, %c0_i32, %c0_i32_0 : i32, i32, i32
  }
}

</mosaic_0001>

<bundles_post_ra>
// kernel: tpu_custom_call.1
= control target key start
LH: loop header
LB: loop body
LE: loop exit
PB: predicated region body
PF: predicated region fallthrough
CT: control target
= control target key end

     0   :  { %8 = vsyncpa [#allocation4], 0  ;;  %s18199_s0 = inlined_call_operand.hbm [shape: f32[2,64,128], index: 0, kind: input, shape index: {}]   ;;  %s18200_s1 = inlined_call_operand.hbm [shape: f32[3,3,128,128], index: 1, kind: input, shape index: {}]   ;;  %s18201_s2 = inlined_call_operand.vmem [shape: f32[3,1,128], index: 2, kind: input, shape index: {}]   ;;  %s18202_s3 = inlined_call_operand.hbm [shape: f32[2,64,128], index: 3, kind: output, shape index: {}]  }
   0x1   :  { %10 = vsyncpa [#allocation4 + $0x1], 0 }
   0x2   :  { %11 = vsyncpa [#allocation7], 0 }
   0x3   :  { %12 = vsyncpa [#allocation5], 0 }
   0x4   :  { %14 = vsyncpa [#allocation5 + $0x1], 0  ;;  %s13115_s12 = smov 0   ;;  %s13117_s13 = smov 0  }
   0x5   :  { %s13119_s14 = smov 0   ;;  %s13121_s15 = smov 0  }
   0x6 LB: > { %s13136_s16 = sadd.s32 4294967295, %s13085_s15   ;;  %s9198_s17 = sadd.s32 4294967294, %s13085_s15   ;;  %s13085_s15 = sphi %s13121_s15, %s19222_s15   ;;  %s13081_s14 = sphi %s13119_s14, %s19221_s14   ;;  %s13077_s13 = sphi %s13117_s13, %s19220_s13   ;;  %s13073_s12 = sphi %s13115_s12, %s19219_s12  }
   0x7   : > { %p40_p0 = scmp.ne.s32.totalorder %s13077_s13, %s13073_s12  ;;  %p18203_p1 = scmp.eq.s32.totalorder %s13136_s16, 0 }
   0x8   : > { %p112_p3 = scmp.eq.s32.totalorder %s9198_s17, 1  ;;  %p9199_p5 = scmp.ge.s32.totalorder %s13085_s15, 1 }
   0x9   : > { %p13145_p4 = por %p18203_p1, %p40_p0  ;;  %p119_p7 = scmp.lt.s32.totalorder %s13085_s15, 3 }
   0xa   : > { %p13150_p6 = por %p112_p3, %p40_p0  ;;  %s13087_s21 = smov [#allocation6]  }
   0xb   : > { %s18572_s18 = scalar_select %p13145_p4, 1, 0 }
   0xc   : > { %s18573_s19 = scalar_select %p13150_p6, 1, 0 }
   0xd   : > { %p13155_p8 = pnand %p9199_p5, %p119_p7  ;;  %s131_s22 = sshll.u32 %s13087_s21, 4  ;;  %s132_s22 = int_to_ptr.vmem [resolvable:$true] %s131_s22 }
   0xe   : > { %s13169_s24 = sadd.s32 1, %s13085_s15   ;;  %s27_s25 = sadd.s32 1, %s13081_s14 }
   0xf   : > { %s18574_s20 = scalar_select %p13155_p8, 1, 0 }
  0x10   : > { %p12901_p9 = pneg %p13155_p8  ;;  %s24_s26 = ssub.s32 %s13085_s15, %s13169_s24 }
  0x11   : > { %s12974_s27 = scalar_lea.vmem %s132_s22, 18432  ;;  %p12982_p5 = scmp.lt.s32.totalorder %s132_s22, %s132_s22 }
  0x12   : > { %p13164_p11 = pnand %p12901_p9, %p18203_p1  ;;  %p12975_p13 = scmp.ne.s32.totalorder %s132_s22, %s12974_s27 }
  0x13   : > { %p12983_p7 = scmp.lt.s32.totalorder %s12974_s27, %s12974_s27 }
  0x14   : > { %p12965_p12 = pneg %p13164_p11 }
  0x15   : > { %p12984_p10 = por %p12983_p7, %p12982_p5 }
  0x16   : > { %p12977_p0 = pnand %p12975_p13, %p12965_p12 }
  0x18   : > { %p12978_p3 = pneg %p12977_p0 }
  0x1a   : > { %p12985_p2 = pnand %p12984_p10, %p12978_p3 }
  0x1c   : > { %12988 = shalt.err (!%p12985_p2)
}
  0x1d   : > { %s13088_s28 = smov 128   ;;  %s13089_s29 = smov 8  }
  0x1e   : > { %12904 = dma.hbm_to_vmem [thread:$0]  (!%p13164_p11), %s18200_s1, 18432, %s132_s22, [#allocation7], %s13088_s28, %s13088_s28, %s13089_s29  }
  0x1f   : > { %p25_p2 = scmp.eq.s32.totalorder %s24_s26, 0  ;;  %p34_p9 = scmp.ne.s32.totalorder %s13081_s14, %s13077_s13 }
  0x20   : > { %p35_p10 = scmp.eq.s32.totalorder %s13085_s15, 0  ;;  %p12914_p12 = scmp.lt.s32.totalorder %s13085_s15, 2 }
  0x21   : > { %s13189_s5 = scalar_select %p25_p2, %s13081_s14, %s27_s25  }
  0x22   : > { %p36_p13 = por %p35_p10, %p34_p9  ;;  %p18576_p0 = scmp.eq.s32.totalorder %s13136_s16, 1 }
  0x23   : > { %s148_s7 = sand.u32 1, %s13081_s14   ;;  %s9219_s8 = sshll.u32 %s13085_s15, 10 }
  0x24   : > { %p13193_p3 = por %p18576_p0, %p34_p9  ;;  %s9202_s9 = sshll.u32 %s148_s7, 6 }
  0x25   : > { %s13202_s17 = scalar_lea.hbm %s18199_s0, %s9219_s8  ;;  %s152_s21 = scalar_lea.vmem [#allocation3], %s9202_s9 }
  0x26   : > { %s18577_s6 = scalar_select %p13193_p3, 1, 0 }
  0x27   : > { %s159_s22 = sshll.u32 %s152_s21, 4  ;;  %p13204_p11 = pnand %p12914_p12, %p36_p13  ;;  %s13208_s22 = int_to_ptr.vmem [resolvable:$true] %s159_s22 }
  0x28   : > { %s13210_s25 = scalar_lea.sflag [#allocation4], %s148_s7  ;;  %s12989_s26 = scalar_lea.hbm %s13202_s17, 1024 }
  0x29   : > { %p12990_p5 = scmp.ne.s32.totalorder %s13202_s17, %s12989_s26  ;;  %p12991_p7 = pneg %p13204_p11 }
  0x2a   : > { %s12994_s4 = scalar_lea.hbm %s18199_s0, 2048  ;;  %p12995_p10 = scmp.lt.s32.totalorder %s13202_s17, %s18199_s0 }
  0x2b   : > { %p12992_p2 = pnand %p12991_p7, %p12990_p5  ;;  %p12996_p12 = scmp.lt.s32.totalorder %s12994_s4, %s12989_s26 }
  0x2d   : > { %p12993_p9 = pneg %p12992_p2  ;;  %p12997_p13 = por %p12996_p12, %p12995_p10 }
  0x2f   : > { %p12998_p0 = pnand %p12997_p13, %p12993_p9 }
  0x31   : > { %13001 = shalt.err (!%p12998_p0)
}
  0x32   : > { %s13002_s7 = scalar_lea.vmem %s13208_s22, 1024  ;;  %s13090_s10 = smov [#allocation3]  }
  0x33   : > { %p13003_p1 = scmp.ne.s32.totalorder %s13208_s22, %s13002_s7  ;;  %s13007_s11 = sshll.u32 %s13090_s10, 4  ;;  %s13008_s11 = int_to_ptr.vmem [resolvable:$false] %s13007_s11 }
  0x34   : > { %s13009_s21 = scalar_lea.vmem %s13008_s11, 2048  ;;  %p13010_p2 = scmp.lt.s32.totalorder %s13208_s22, %s13008_s11 }
  0x35   : > { %p13005_p6 = pnand %p13003_p1, %p12991_p7  ;;  %p13011_p3 = scmp.lt.s32.totalorder %s13009_s21, %s13002_s7 }
  0x37   : > { %p13006_p5 = pneg %p13005_p6  ;;  %p13012_p4 = por %p13011_p3, %p13010_p2 }
  0x39   : > { %p13013_p8 = pnand %p13012_p4, %p13006_p5 }
  0x3b   : > { %13016 = shalt.err (!%p13013_p8)
}
  0x3c   : > { %12908 = dma.hbm_to_vmem [thread:$0]  (!%p13204_p11), %s13202_s17, 1024, %s13208_s22, %s13210_s25, %s13088_s28, %s13088_s28, %s13089_s29  }
  0x3d   : > { %p18579_p1 = scmp.ne.s32.totalorder %s18574_s20, 0 }
  0x3f   : > { %171 = sbr.rel (%p18579_p1) target bundleno = 1739 (0x6cb), region = 32 }
  0x44   : > { %s13237_s26 = sand.u32 1, %s13077_s13   ;;  %p18580_p4 = scmp.ne.s32.totalorder %s18572_s18, 0 }
  0x45   : > { %s9206_s27 = sshll.u32 %s13237_s26, 6  ;;  %s174_s30 = scalar_lea.sflag [#allocation4], %s13237_s26 }
  0x46   : > { %s13243_s23 = scalar_lea.vmem [#allocation3], %s9206_s27 }
  0x47   : > { %13060 = dma.done.wait (%p18580_p4), %s174_s30, 1024  }
  0x48   : > { %13062 = vsyncadd (%p18580_p4), %s174_s30, 4294966272  ;;  %p18581_p6 = scmp.eq.s32.totalorder %s13136_s16, 0 }
  0x4a   : > { %13064 = dma.done.wait (%p18581_p6), [#allocation7], 18432   ;;  %p18582_p8 = pmov %p18581_p6 }
  0x4b   : > { %v296_v0 = vld [vmem:[#allocation6 + $0xf8] sm:$0xff]  ;;  %v295_v1 = vld [vmem:[#allocation6 + $0xf0] sm:$0xff]  ;;  %v294_v2 = vld [vmem:[#allocation6 + $0xe8] sm:$0xff]  ;;  %s18121_s25 = scalar_lea.vmem [#allocation8], %s9206_s27  ;;  %s9220_s4 = sshll.u32 %s13136_s16, 10 }
  0x4c   : > { %13066 = vsyncadd (%p18582_p8), [#allocation7], 4294948864  ;;  %v13253_v3 = vand.u32 4294901760, %v296_v0  ;;  %v13255_v4 = vand.u32 4294901760, %v295_v1  ;;  %v13257_v5 = vand.u32 4294901760, %v294_v2  ;;  %v293_v6 = vld [vmem:[#allocation6 + $0xe0] sm:$0xff]  ;;  %s18151_s10 = scalar_lea.hbm %s18202_s3, %s9220_s4 }
  0x4d   : > { %v292_v7 = vld [vmem:[#allocation6 + $0xd8] sm:$0xff]  ;;  %v291_v8 = vld [vmem:[#allocation6 + $0xd0] sm:$0xff]  ;;  %v13259_v9 = vand.u32 4294901760, %v293_v6  ;;  %v290_v12 = vld [vmem:[#allocation6 + $0xc8] sm:$0xff]  ;;  %s9115_s8 = sshll.u32 %s18121_s25, 4  ;;  %s9102_s16 = scalar_lea.sflag [#allocation5], %s13237_s26  ;;  %s18153_s8 = int_to_ptr.vmem [resolvable:$true] %s9115_s8 }
  0x4e   : > { %v13261_v10 = vand.u32 4294901760, %v292_v7  ;;  %v13263_v11 = vand.u32 4294901760, %v291_v8  ;;  %v289_v13 = vld [vmem:[#allocation6 + $0xc0] sm:$0xff]  ;;  %10517 = vmatprep.subr.mxu0 %v13253_v3  ;;  %v13267_v14 = vsub.f32 %v296_v0, %v13253_v3  ;;  %v13270_v15 = vsub.f32 %v295_v1, %v13255_v4  ;;  %v288_v18 = vld [vmem:[#allocation6 + $0xb8] sm:$0xff]  ;;  %v287_v25 = vld [vmem:[#allocation6 + $0xb0] sm:$0xff]  ;;  %s13017_s11 = scalar_lea.vmem %s18153_s8, 1024 }
  0x4f   : > { %v13272_v16 = vand.u32 4294901760, %v290_v12  ;;  %v13275_v17 = vsub.f32 %v294_v2, %v13257_v5  ;;  %10518 = vmatpush3.msra.mxu0 %v13253_v3  ;;  %v13279_v19 = vsub.f32 %v293_v6, %v13259_v9  ;;  %v13294_v24 = vand.u32 4294901760, %v289_v13  ;;  %v286_v30 = vld [vmem:[#allocation6 + $0xa8] sm:$0xff]  ;;  %v285_v41 = vld [vmem:[#allocation6 + $0xa0] sm:$0xff]  ;;  %v284_v43 = vld [vmem:[#allocation6 + $0x98] sm:$0xff]  ;;  %p13018_p3 = scmp.ne.s32.totalorder %s18153_s8, %s13017_s11  ;;  %p19216_p11 = scmp.ne.s32.totalorder %s18577_s6, 0 }
  0x50   : > { %v13282_v20 = vsub.f32 %v292_v7, %v13261_v10  ;;  %10519 = vmatprep.subr.mxu0 %v13255_v4  ;;  %v13286_v21 = vand.u32 4294901760, %v13267_v14  ;;  %v13289_v22 = vand.u32 4294901760, %v13270_v15  ;;  %v13300_v27 = vand.u32 4294901760, %v288_v18  ;;  %v204_v48 = vld [vmem:[%s13243_s23] sm:$0xff]  ;;  %v205_v57 = vld [vmem:[%s13243_s23 + $0x8] sm:$0xff]  ;;  %v283_v60 = vld [vmem:[#allocation6 + $0x90] sm:$0xff] }
  0x51   : > { %v13292_v23 = vand.u32 4294901760, %v13275_v17  ;;  %10520 = vmatpush3.msra.mxu0 %v13255_v4  ;;  %v13298_v26 = vand.u32 4294901760, %v13279_v19  ;;  %v13306_v29 = vsub.f32 %v291_v8, %v13263_v11  ;;  %v13316_v34 = vsub.f32 %v290_v12, %v13272_v16  ;;  %v282_v1 = vld [vmem:[#allocation6 + $0x88] sm:$0xff]  ;;  %v13374_v2 = vld [vmem:[#allocation6 + $0x80] sm:$0xff]  ;;  %p13019_p7 = pnand %p13018_p3, %p19216_p11  ;;  %s13092_s21 = smov [#allocation8]  }
  0x52   : > { %v13303_v28 = vand.u32 4294901760, %v13282_v20  ;;  %10521 = vmatprep.subr.mxu0 %v13257_v5  ;;  %v462_v31 = vsub.f32 %v13267_v14, %v13286_v21  ;;  %v469_v32 = vsub.f32 %v13270_v15, %v13289_v22  ;;  %v13319_v35 = vand.u32 4294901760, %v287_v25  ;;  %s13021_s27 = sshll.u32 %s13092_s21, 4  ;;  %s13022_s27 = int_to_ptr.vmem [resolvable:$false] %s13021_s27 }
  0x53   : > { %v476_v33 = vsub.f32 %v13275_v17, %v13292_v23  ;;  %10522 = vmatpush3.msra.mxu0 %v13257_v5  ;;  %v13322_v36 = vand.u32 4294901760, %v13306_v29  ;;  %v483_v39 = vsub.f32 %v13279_v19, %v13298_v26  ;;  %v13327_v40 = vand.u32 4294901760, %v286_v30  ;;  %p13020_p9 = pneg %p13019_p7  ;;  %s13023_s30 = scalar_lea.vmem %s13022_s27, 2048 }
  0x54   : > { %18583 = vst [vmem:[#allocation12_spill] sm:$0xff] %v13303_v28  ;;  %10523 = vmatprep.subr.mxu0 %v13259_v9  ;;  %v463_v37 = vand.u32 4294901760, %v462_v31  ;;  %v470_v38 = vand.u32 4294901760, %v469_v32  ;;  %v13331_v42 = vsub.f32 %v289_v13, %v13294_v24  ;;  %v490_v45 = vsub.f32 %v13282_v20, %v13303_v28  ;;  %p13024_p10 = scmp.lt.s32.totalorder %s18153_s8, %s13022_s27  ;;  %p13025_p12 = scmp.lt.s32.totalorder %s13023_s30, %s13017_s11 }
  0x55   : > { %18584 = vst [vmem:[#allocation13_spill] sm:$0xff] %v13322_v36  ;;  %10524 = vmatpush3.msra.mxu0 %v13259_v9  ;;  %v477_v44 = vand.u32 4294901760, %v476_v33  ;;  %v13337_v46 = vand.u32 4294901760, %v13316_v34  ;;  %v13340_v47 = vsub.f32 %v288_v18, %v13300_v27  ;;  %v497_v49 = vsub.f32 %v13306_v29, %v13322_v36 }
  0x56   : > { %10525 = vmatprep.subr.mxu0 %v13261_v10  ;;  %10561 = vmatprep.subr.mxu1 %v463_v37  ;;  %v13346_v50 = vand.u32 4294901760, %v285_v41  ;;  %v13349_v51 = vand.u32 4294901760, %v13331_v42  ;;  %v13352_v52 = vsub.f32 %v287_v25, %v13319_v35  ;;  %v484_v53 = vand.u32 4294901760, %v483_v39  ;;  %p13026_p13 = por %p13025_p12, %p13024_p10 }
  0x57   : > { %18585 = vst [vmem:[#allocation14_spill] sm:$0xff] %v13337_v46  ;;  %10526 = vmatpush3.msra.mxu0 %v13261_v10  ;;  %10562 = vmatpush3.msra.mxu1 %v463_v37  ;;  %v13355_v54 = vand.u32 4294901760, %v284_v43  ;;  %v13358_v55 = vsub.f32 %v286_v30, %v13327_v40  ;;  %v13362_v56 = vand.u32 4294901760, %v13340_v47  ;;  %vm216_vm0 = vcmp.gt.f32.partialorder %v204_v48, 0.0  ;;  %v206_v37 = vld [vmem:[%s13243_s23 + $0x10] sm:$0xff] }
  0x58   : > { %18586 = vst [vmem:[#allocation15_spill] sm:$0xff] %v13349_v51  ;;  %10527 = vmatprep.subr.mxu0 %v13263_v11  ;;  %10563 = vmatprep.subr.mxu1 %v470_v38  ;;  %v491_v58 = vand.u32 4294901760, %v490_v45  ;;  %v504_v59 = vsub.f32 %v13316_v34, %v13337_v46  ;;  %v224_v61 = vmul.f32 0.2, %v204_v48  ;;  %v498_v62 = vand.u32 4294901760, %v497_v49  ;;  %p13027_p0 = pnand %p13026_p13, %p13020_p9 }
  0x59   : > { %10528 = vmatpush3.msra.mxu0 %v13263_v11  ;;  %10564 = vmatpush3.msra.mxu1 %v470_v38  ;;  %18587 = vst [vmem:[#allocation16_spill] sm:$0xff] %v13362_v56  ;;  %v511_v63 = vsub.f32 %v13331_v42, %v13349_v51  ;;  %v13372_v0 = vand.u32 4294901760, %v13352_v52  ;;  %v13377_v6 = vsub.f32 %v285_v41, %v13346_v50  ;;  %v13381_v7 = vand.u32 4294901760, %v13358_v55 }
  0x5a   : > { %10529 = vmatprep.subr.mxu0 %v13272_v16  ;;  %10565 = vmatprep.subr.mxu1 %v477_v44  ;;  %v232_v8 = vsel %vm216_vm0, %v204_v48, %v224_v61  ;;  %v13385_v12 = vsub.f32 %v284_v43, %v13355_v54  ;;  %vm217_vm1 = vcmp.gt.f32.partialorder %v205_v57, 0.0  ;;  %v518_v13 = vsub.f32 %v13340_v47, %v13362_v56 }
  0x5b   : > { %10530 = vmatpush3.msra.mxu0 %v13272_v16  ;;  %10566 = vmatpush3.msra.mxu1 %v477_v44  ;;  %18588 = vst [vmem:[#allocation17_spill] sm:$0xff] %v13372_v0  ;;  %18589 = vst [vmem:[#allocation18_spill] sm:$0xff] %v13381_v7  ;;  %v13390_v18 = vand.u32 4294901760, %v283_v60  ;;  %v13392_v25 = vand.u32 4294901760, %v232_v8  ;;  %v225_v30 = vmul.f32 0.2, %v205_v57  ;;  %v525_v39 = vsub.f32 %v13352_v52, %v13372_v0 }
  0x5c   : > { %10531 = vmatprep.subr.mxu0 %v13294_v24  ;;  %10567 = vmatprep.subr.mxu1 %v484_v53  ;;  %240 = vst [vmem:[#allocation2 + $0x10] sm:$0xff] %v232_v8  ;;  %v505_v31 = vand.u32 4294901760, %v504_v59  ;;  %v13395_v32 = vand.u32 4294901760, %v282_v1  ;;  %v13398_v33 = vand.u32 4294901760, %v13374_v2  ;;  %v512_v38 = vand.u32 4294901760, %v511_v63  ;;  %v207_v44 = vld [vmem:[%s13243_s23 + $0x18] sm:$0xff] }
  0x5d   : > { %10532 = vmatpush3.msra.mxu0 %v13294_v24  ;;  %10568 = vmatpush3.msra.mxu1 %v484_v53  ;;  %v13405_v41 = vsub.f32 %v232_v8, %v13392_v25  ;;  %v233_v43 = vsel %vm217_vm1, %v205_v57, %v225_v30  ;;  %v532_v45 = vsub.f32 %v13358_v55, %v13381_v7  ;;  %v13413_v48 = vand.u32 4294901760, %v13377_v6 }
  0x5e   : > { %10533 = vmatprep.subr.mxu0 %v13300_v27  ;;  %10569 = vmatprep.subr.mxu1 %v491_v58  ;;  %v13416_v49 = vand.u32 4294901760, %v13385_v12  ;;  %241 = vst [vmem:[#allocation2 + $0x18] sm:$0xff] %v233_v43  ;;  %v13418_v53 = vand.u32 4294901760, %v233_v43  ;;  %v519_v57 = vand.u32 4294901760, %v518_v13  ;;  %vm218_vm2 = vcmp.gt.f32.partialorder %v206_v37, 0.0 }
  0x5f   : > { %10534 = vmatpush3.msra.mxu0 %v13300_v27  ;;  %10570 = vmatpush3.msra.mxu1 %v491_v58  ;;  %18590 = vst [vmem:[#allocation19_spill] sm:$0xff] %v13413_v48  ;;  %v13422_v58 = vsub.f32 %v283_v60, %v13390_v18  ;;  %v226_v59 = vmul.f32 0.2, %v206_v37  ;;  %v13430_v8 = vsub.f32 %v282_v1, %v13395_v32  ;;  %vm219_vm3 = vcmp.gt.f32.partialorder %v207_v44, 0.0 }
  0x60   : > { %10535 = vmatprep.subr.mxu0 %v13319_v35  ;;  %10571 = vmatprep.subr.mxu1 %v498_v62  ;;  %18591 = vst [vmem:[#allocation20_spill] sm:$0xff] %v13416_v49  ;;  %v13427_v63 = vsub.f32 %v233_v43, %v13418_v53  ;;  %v526_v60 = vand.u32 4294901760, %v525_v39  ;;  %v227_v30 = vmul.f32 0.2, %v207_v44  ;;  %v533_v61 = vand.u32 4294901760, %v532_v45  ;;  %v210_v39 = vld [vmem:[%s13243_s23 + $0x30] sm:$0xff] }
  0x61   : > { %10536 = vmatpush3.msra.mxu0 %v13319_v35  ;;  %10572 = vmatpush3.msra.mxu1 %v498_v62  ;;  %v208_v62 = vld [vmem:[%s13243_s23 + $0x20] sm:$0xff]  ;;  %v13434_v13 = vsel %vm218_vm2, %v206_v37, %v226_v59  ;;  %v539_v43 = vsub.f32 %v13377_v6, %v13413_v48  ;;  %v546_v1 = vsub.f32 %v13385_v12, %v13416_v49  ;;  %v13447_v37 = vand.u32 4294901760, %v13422_v58 }
  0x62   : > { %10537 = vmatprep.subr.mxu0 %v13327_v40  ;;  %10573 = vmatprep.subr.mxu1 %v505_v31  ;;  %242 = vst [vmem:[#allocation2 + $0x20] sm:$0xff] %v13434_v13  ;;  %v13451_v45 = vsub.f32 %v13374_v2, %v13398_v33  ;;  %v13454_v59 = vsel %vm219_vm3, %v207_v44, %v227_v30  ;;  %vm220_vm4 = vcmp.gt.f32.partialorder %v208_v62, 0.0  ;;  %v18592_v7 = vand.u32 4294901760, %v13405_v41  ;;  %v211_v44 = vld [vmem:[%s13243_s23 + $0x38] sm:$0xff] }
  0x63   : > { %10538 = vmatpush3.msra.mxu0 %v13327_v40  ;;  %10574 = vmatpush3.msra.mxu1 %v505_v31  ;;  %v209_v31 = vld [vmem:[%s13243_s23 + $0x28] sm:$0xff]  ;;  %v13464_v0 = vand.u32 4294901760, %v13430_v8  ;;  %243 = vst [vmem:[#allocation2 + $0x28] sm:$0xff] %v13454_v59  ;;  %v228_v2 = vmul.f32 0.2, %v208_v62  ;;  %vm222_vm6 = vcmp.gt.f32.partialorder %v210_v39, 0.0  ;;  %v553_v51 = vsub.f32 %v13422_v58, %v13447_v37 }
  0x64   : > { %10539 = vmatprep.subr.mxu0 %v13346_v50  ;;  %10575 = vmatprep.subr.mxu1 %v512_v38  ;;  %v381_v49 = vsub.f32 %v13405_v41, %v18592_v7  ;;  %vm221_vm5 = vcmp.gt.f32.partialorder %v209_v31, 0.0  ;;  %v229_v30 = vmul.f32 0.2, %v209_v31  ;;  %v230_v56 = vmul.f32 0.2, %v210_v39 }
  0x65   : > { %10540 = vmatpush3.msra.mxu0 %v13346_v50  ;;  %10576 = vmatpush3.msra.mxu1 %v512_v38  ;;  %v18593_v38 = vand.u32 4294901760, %v13427_v63  ;;  %v540_v7 = vand.u32 4294901760, %v539_v43  ;;  %v13475_v46 = vand.u32 4294901760, %v13451_v45  ;;  %v547_v43 = vand.u32 4294901760, %v546_v1 }
  0x66   : > { %10541 = vmatprep.subr.mxu0 %v13355_v54  ;;  %10577 = vmatprep.subr.mxu1 %v519_v57  ;;  %v13477_v36 = vsel %vm222_vm6, %v210_v39, %v230_v56  ;;  %v382_v28 = vand.u32 4294901760, %v381_v49  ;;  %vm223_vm7 = vcmp.gt.f32.partialorder %v211_v44, 0.0  ;;  %v554_v56 = vand.u32 4294901760, %v553_v51 }
  0x67   : > { %v391_v48 = vsub.f32 %v13427_v63, %v18593_v38  ;;  %10542 = vmatpush3.msra.mxu0 %v13355_v54  ;;  %10578 = vmatpush3.msra.mxu1 %v519_v57  ;;  %v236_v38 = vsel %vm220_vm4, %v208_v62, %v228_v2  ;;  %v237_v57 = vsel %vm221_vm5, %v209_v31, %v229_v30  ;;  %v231_v2 = vmul.f32 0.2, %v211_v44 }
  0x68   : > { %10543 = vmatprep.subr.mxu0 %v13390_v18  ;;  %10579 = vmatprep.subr.mxu1 %v526_v60  ;;  %244 = vst [vmem:[#allocation2 + $0x30] sm:$0xff] %v236_v38  ;;  %245 = vst [vmem:[#allocation2 + $0x38] sm:$0xff] %v237_v57  ;;  %v567_v49 = vsub.f32 %v13451_v45, %v13475_v46  ;;  %v13494_v31 = vand.u32 4294901760, %v13454_v59  ;;  %v13508_v39 = vand.u32 4294901760, %v236_v38 }
  0x69   : > { %10544 = vmatpush3.msra.mxu0 %v13390_v18  ;;  %10580 = vmatpush3.msra.mxu1 %v526_v60  ;;  %246 = vst [vmem:[#allocation2 + $0x40] sm:$0xff] %v13477_v36  ;;  %v392_v62 = vand.u32 4294901760, %v391_v48  ;;  %v560_v60 = vsub.f32 %v13430_v8, %v13464_v0  ;;  %v239_v1 = vsel %vm223_vm7, %v211_v44, %v231_v2 }
  0x6a   : > { %10545 = vmatprep.subr.mxu0 %v13395_v32  ;;  %10581 = vmatprep.subr.mxu1 %v533_v61  ;;  %247 = vst [vmem:[#allocation2 + $0x48] sm:$0xff] %v239_v1  ;;  %v568_v51 = vand.u32 4294901760, %v567_v49  ;;  %v13538_v30 = vand.u32 4294901760, %v239_v1 }
  0x6b   : > { %10546 = vmatpush3.msra.mxu0 %v13395_v32  ;;  %10582 = vmatpush3.msra.mxu1 %v533_v61  ;;  %v561_v48 = vand.u32 4294901760, %v560_v60  ;;  %v13490_v61 = vand.u32 4294901760, %v13434_v13 }
  0x6c   : > { %10547 = vmatprep.subr.mxu0 %v13398_v33  ;;  %10583 = vmatprep.subr.mxu1 %v540_v7 }
  0x6d   : > { %10548 = vmatpush3.msra.mxu0 %v13398_v33  ;;  %10584 = vmatpush3.msra.mxu1 %v540_v7 }
  0x6e   : > { %10549 = vmatprep.mubr.f32.mxu0 %v382_v28  ;;  %10585 = vmatprep.subr.mxu1 %v547_v43  ;;  %v13501_v28 = vsub.f32 %v13434_v13, %v13490_v61 }
  0x6f   : > { %10605 = vmatprep.subr.mxu0 %v13267_v14  ;;  %10550 = vmatmul.mubr.f32.vlgmr.msra.gmra.mxu0 %v392_v62  ;;  %v13558_v62 = vsub.f32 %v239_v1, %v13538_v30 }
  0x70   : > { %10586 = vmatpush3.msra.mxu1 %v547_v43  ;;  %10606 = vmatpush3.msra.mxu0 %v13267_v14  ;;  %v13506_v14 = vsub.f32 %v13454_v59, %v13494_v31  ;;  %v13521_v59 = vsub.f32 %v236_v38, %v13508_v39 }
  0x71   : > { %10587 = vmatprep.subr.mxu1 %v554_v56  ;;  %10607 = vmatprep.subr.mxu0 %v13270_v15 }
  0x72   : > { %10588 = vmatpush3.msra.mxu1 %v554_v56  ;;  %10608 = vmatpush3.msra.mxu0 %v13270_v15  ;;  %v13511_v15 = vand.u32 4294901760, %v237_v57  ;;  %v410_v13 = vand.u32 4294901760, %v13506_v14  ;;  %v420_v38 = vand.u32 4294901760, %v13521_v59  ;;  %v450_v56 = vand.u32 4294901760, %v13558_v62 }
  0x73   : > { %10589 = vmatprep.subr.mxu1 %v561_v48  ;;  %10609 = vmatprep.subr.mxu0 %v13275_v17 }
  0x74   : > { %10590 = vmatpush3.msra.mxu1 %v561_v48  ;;  %10610 = vmatpush3.msra.mxu0 %v13275_v17  ;;  %v400_v17 = vand.u32 4294901760, %v13501_v28  ;;  %v13526_v44 = vsub.f32 %v237_v57, %v13511_v15  ;;  %v411_v7 = vsub.f32 %v13506_v14, %v410_v13 }
  0x75   : > { %10591 = vmatprep.subr.mxu1 %v568_v51  ;;  %10611 = vmatprep.subr.mxu0 %v13279_v19 }
  0x76   : > { %10592 = vmatpush3.msra.mxu1 %v568_v51  ;;  %10593 = vmatprep.mubr.f32.mxu1 %v13392_v25  ;;  %v412_v60 = vand.u32 4294901760, %v411_v7 }
  0x77   : > { %10612 = vmatpush3.msra.mxu0 %v13279_v19  ;;  %10594 = vmatmul.mubr.f32.vlgmr.msra.gmra.mxu1 %v13418_v53  ;;  %v13531_v19 = vand.u32 4294901760, %v13477_v36 }
  0x78   : > { %10613 = vmatprep.subr.mxu0 %v13282_v20  ;;  %10649 = vmatprep.subr.mxu1 %v13253_v3 }
  0x79   : > { %10614 = vmatpush3.msra.mxu0 %v13282_v20  ;;  %10650 = vmatpush3.msra.mxu1 %v13253_v3  ;;  %v401_v20 = vsub.f32 %v13501_v28, %v400_v17  ;;  %v13553_v57 = vsub.f32 %v13477_v36, %v13531_v19  ;;  %v421_v36 = vsub.f32 %v13521_v59, %v420_v38 }
  0x7a   : > { %10615 = vmatprep.subr.mxu0 %v13306_v29  ;;  %10651 = vmatprep.subr.mxu1 %v13255_v4 }
  0x7b   : > { %10616 = vmatpush3.msra.mxu0 %v13306_v29  ;;  %10652 = vmatpush3.msra.mxu1 %v13255_v4  ;;  %v430_v29 = vand.u32 4294901760, %v13526_v44  ;;  %v402_v43 = vand.u32 4294901760, %v401_v20  ;;  %v440_v2 = vand.u32 4294901760, %v13553_v57 }
  0x7c   : > { %10617 = vmatprep.subr.mxu0 %v13316_v34  ;;  %10653 = vmatprep.subr.mxu1 %v13257_v5 }
  0x7d   : > { %10618 = vmatpush3.msra.mxu0 %v13316_v34  ;;  %10654 = vmatpush3.msra.mxu1 %v13257_v5  ;;  %v13091_v34 = vmov 0.0   ;;  %v441_v1 = vsub.f32 %v13553_v57, %v440_v2 }
  0x7e   : > { %10619 = vmatprep.subr.mxu0 %v13331_v42  ;;  %10655 = vmatprep.subr.mxu1 %v13259_v9  ;;  %213 = vst [vmem:[#allocation2 + $0x8] sm:$0xff] %v13091_v34  ;;  %212 = vst [vmem:[#allocation2] sm:$0xff] %v13091_v34 }
  0x7f   : > { %10620 = vmatpush3.msra.mxu0 %v13331_v42  ;;  %10656 = vmatpush3.msra.mxu1 %v13259_v9  ;;  %214 = vst [vmem:[#allocation2 + $0x50] sm:$0xff] %v13091_v34  ;;  %215 = vst [vmem:[#allocation2 + $0x58] sm:$0xff] %v13091_v34  ;;  %v431_v42 = vsub.f32 %v13526_v44, %v430_v29  ;;  %v262_v34 = vld [vmem:[#allocation6 + $0x30] sm:$0xff] }
  0x80   : > { %10621 = vmatprep.subr.mxu0 %v13340_v47  ;;  %10657 = vmatprep.subr.mxu1 %v13261_v10 }
  0x81   : > { %10622 = vmatpush3.msra.mxu0 %v13340_v47  ;;  %10658 = vmatpush3.msra.mxu1 %v13261_v10  ;;  %v422_v47 = vand.u32 4294901760, %v421_v36  ;;  %v432_v49 = vand.u32 4294901760, %v431_v42  ;;  %v261_v42 = vld [vmem:[#allocation6 + $0x28] sm:$0xff] }
  0x82   : > { %10623 = vmatprep.subr.mxu0 %v13352_v52  ;;  %10659 = vmatprep.subr.mxu1 %v13263_v11 }
  0x83   : > { %10552 = vmatprep.mubr.f32.mxu0 %v402_v43  ;;  %10624 = vmatpush3.msra.mxu0 %v13352_v52  ;;  %v451_v52 = vsub.f32 %v13558_v62, %v450_v56 }
  0x84   : > { %10660 = vmatpush3.msra.mxu1 %v13263_v11  ;;  %10553 = vmatmul.mubr.f32.gmra.mxu0 %v412_v60 }
  0x85   : > { %10625 = vmatprep.subr.mxu0 %v13358_v55  ;;  %10661 = vmatprep.subr.mxu1 %v13272_v16  ;;  %v452_v48 = vand.u32 4294901760, %v451_v52  ;;  %v260_v52 = vld [vmem:[#allocation6 + $0x20] sm:$0xff] }
  0x86   : > { %10626 = vmatpush3.msra.mxu0 %v13358_v55  ;;  %10662 = vmatpush3.msra.mxu1 %v13272_v16  ;;  %v442_v55 = vand.u32 4294901760, %v441_v1 }
  0x87   : > { %10627 = vmatprep.subr.mxu0 %v13377_v6  ;;  %10663 = vmatprep.subr.mxu1 %v13294_v24 }
  0x88   : > { %10555 = vmatprep.mubr.f32.mxu0 %v422_v47  ;;  %10628 = vmatpush3.msra.mxu0 %v13377_v6  ;;  %v18596_v6 = vld [vmem:[#allocation12_spill] sm:$0xff] }
  0x89   : > { %10664 = vmatpush3.msra.mxu1 %v13294_v24  ;;  %10556 = vmatmul.mubr.f32.gmra.mxu0 %v432_v49 }
  0x8a   : > { %10596 = vmatprep.mubr.f32.mxu1 %v13490_v61  ;;  %10629 = vmatprep.subr.mxu0 %v13385_v12 }
  0x8b   : > { %10665 = vmatprep.subr.mxu1 %v13300_v27  ;;  %10597 = vmatmul.mubr.f32.gmra.mxu1 %v13494_v31 }
  0x8c   : > { %10630 = vmatpush3.msra.mxu0 %v13385_v12  ;;  %10666 = vmatpush3.msra.mxu1 %v13300_v27  ;;  %v18603_v12 = vld [vmem:[#allocation19_spill] sm:$0xff] }
  0x8d   : > { %10631 = vmatprep.subr.mxu0 %v13422_v58  ;;  %10667 = vmatprep.subr.mxu1 %v13319_v35 }
  0x8e   : > { %10558 = vmatprep.mubr.f32.mxu0 %v442_v55  ;;  %10632 = vmatpush3.msra.mxu0 %v13422_v58 }
  0x8f   : > { %10668 = vmatpush3.msra.mxu1 %v13319_v35  ;;  %10559 = vmatmul.mubr.f32.gmra.mxu0 %v452_v48  ;;  %v13805_v48 = vand.u32 4294901760, %v261_v42 }
  0x90   : > { %10599 = vmatprep.mubr.f32.mxu1 %v13508_v39  ;;  %10633 = vmatprep.subr.mxu0 %v13430_v8 }
  0x91   : > { %10669 = vmatprep.subr.mxu1 %v13327_v40  ;;  %10600 = vmatmul.mubr.f32.gmra.mxu1 %v13511_v15 }
  0x92   : > { %10634 = vmatpush3.msra.mxu0 %v13430_v8  ;;  %10670 = vmatpush3.msra.mxu1 %v13327_v40 }
  0x93   : > { %10635 = vmatprep.subr.mxu0 %v13451_v45  ;;  %10671 = vmatprep.subr.mxu1 %v13346_v50 }
  0x94   : > { %10636 = vmatpush3.msra.mxu0 %v13451_v45  ;;  %10637 = vmatprep.mubr.f32.mxu0 %v13405_v41 }
  0x95   : > { %10672 = vmatpush3.msra.mxu1 %v13346_v50  ;;  %10602 = vmatprep.mubr.f32.mxu1 %v13531_v19 }
  0x96   : > { %10638 = vmatmul.mubr.f32.vlgmr.msra.gmra.mxu0 %v13427_v63  ;;  %10673 = vmatprep.subr.mxu1 %v13355_v54 }
  0x97   : > { %10693 = vmatprep.subr.mxu0 %v13286_v21  ;;  %10603 = vmatmul.mubr.f32.gmra.mxu1 %v13538_v30 }
  0x98   : > { %10674 = vmatpush3.msra.mxu1 %v13355_v54  ;;  %10694 = vmatpush3.msra.mxu0 %v13286_v21  ;;  %v18594_v21 = vand.u32 4294901760, %v13405_v41  ;;  %v18604_v41 = vld [vmem:[#allocation20_spill] sm:$0xff] }
  0x99   : > { %10675 = vmatprep.subr.mxu1 %v13390_v18  ;;  %10695 = vmatprep.subr.mxu0 %v13289_v22 }
  0x9a   : > { %10640 = vmatprep.mubr.f32.mxu0 %v13501_v28  ;;  %10676 = vmatpush3.msra.mxu1 %v13390_v18  ;;  %v265_v28 = vld [vmem:[#allocation6 + $0x48] sm:$0xff] }
  0x9b   : > { %10696 = vmatpush3.msra.mxu0 %v13289_v22  ;;  %10677 = vmatprep.subr.mxu1 %v13395_v32  ;;  %v18595_v22 = vand.u32 4294901760, %v13427_v63 }
  0x9c   : > { %10641 = vmatmul.mubr.f32.gmra.mxu0 %v13506_v14  ;;  %10697 = vmatprep.subr.mxu0 %v13292_v23 }
  0x9d   : > { %10678 = vmatpush3.msra.mxu1 %v13395_v32  ;;  %10698 = vmatpush3.msra.mxu0 %v13292_v23  ;;  %v18597_v23 = vld [vmem:[#allocation13_spill] sm:$0xff] }
  0x9e   : > { %10679 = vmatprep.subr.mxu1 %v13398_v33  ;;  %10699 = vmatprep.subr.mxu0 %v13298_v26 }
  0x9f   : > { %10643 = vmatprep.mubr.f32.mxu0 %v13521_v59  ;;  %10680 = vmatpush3.msra.mxu1 %v13398_v33  ;;  %v13753_v59 = vand.u32 4294901760, %v265_v28 }
  0xa0   : > { %10681 = vmatprep.mubr.f32.mxu1 %v18594_v21  ;;  %10700 = vmatpush3.msra.mxu0 %v13298_v26  ;;  %v18598_v26 = vld [vmem:[#allocation14_spill] sm:$0xff] }
  0xa1   : > { %10644 = vmatmul.mubr.f32.gmra.mxu0 %v13526_v44  ;;  %10682 = vmatmul.mubr.f32.vlgmr.msra.gmra.mxu1 %v18595_v22  ;;  %v264_v44 = vld [vmem:[#allocation6 + $0x40] sm:$0xff]  ;;  %v13780_v60 = vsub.f32 %v265_v28, %v13753_v59  ;;  %v248_v22 = vld [vmem:[#allocation2 + $0xf] sm:$0xff] }
  0xa2   : > { %10701 = vmatprep.subr.mxu0 %v18596_v6  ;;  %10737 = vmatprep.subr.mxu1 %v13253_v3  ;;  %v257_v28 = vld [vmem:[#allocation6 + $0x8] sm:$0xff] }
  0xa3   : > { %10702 = vmatpush3.msra.mxu0 %v18596_v6  ;;  %10738 = vmatpush3.msra.mxu1 %v13253_v3  ;;  %v18599_v3 = vld [vmem:[#allocation15_spill] sm:$0xff]  ;;  %v13802_v1 = vand.u32 4294901760, %v13780_v60 }
  0xa4   : > { %10703 = vmatprep.subr.mxu0 %v18597_v23  ;;  %10739 = vmatprep.subr.mxu1 %v13255_v4  ;;  %v249_v6 = vld [vmem:[#allocation2 + $0x17] sm:$0xff] }
  0xa5   : > { %10646 = vmatprep.mubr.f32.mxu0 %v13553_v57  ;;  %10684 = vmatprep.mubr.f32.mxu1 %v400_v17 }
  0xa6   : > { %10704 = vmatpush3.msra.mxu0 %v18597_v23  ;;  %10740 = vmatpush3.msra.mxu1 %v13255_v4  ;;  %v18600_v4 = vld [vmem:[#allocation16_spill] sm:$0xff]  ;;  %v13815_v23 = vand.u32 4294901760, %v260_v52 }
  0xa7   : > { %10647 = vmatmul.mubr.f32.gmra.mxu0 %v13558_v62  ;;  %10685 = vmatmul.mubr.f32.gmra.mxu1 %v410_v13  ;;  %v13772_v62 = vand.u32 4294901760, %v264_v44  ;;  %18609 = vst [vmem:[#allocation16_spill] sm:$0xff] %v13802_v1 }
  0xa8   : > { %10705 = vmatprep.subr.mxu0 %v18598_v26  ;;  %10741 = vmatprep.subr.mxu1 %v13257_v5 }
  0xa9   : > { %10706 = vmatpush3.msra.mxu0 %v18598_v26  ;;  %10742 = vmatpush3.msra.mxu1 %v13257_v5  ;;  %v18601_v5 = vld [vmem:[#allocation17_spill] sm:$0xff]  ;;  %v13795_v47 = vsub.f32 %v264_v44, %v13772_v62 }
  0xaa   : > { %10707 = vmatprep.subr.mxu0 %v18599_v3  ;;  %10743 = vmatprep.subr.mxu1 %v13259_v9 }
  0xab   : > { %10687 = vmatprep.mubr.f32.mxu1 %v420_v38  ;;  %10708 = vmatpush3.msra.mxu0 %v18599_v3  ;;  %v13818_v26 = vand.u32 4294901760, %v13795_v47  ;;  %v259_v3 = vld [vmem:[#allocation6 + $0x18] sm:$0xff] }
  0xac   : > { %10744 = vmatpush3.msra.mxu1 %v13259_v9  ;;  %10709 = vmatprep.subr.mxu0 %v18600_v4  ;;  %v18602_v9 = vld [vmem:[#allocation18_spill] sm:$0xff] }
  0xad   : > { %10688 = vmatmul.mubr.f32.gmra.mxu1 %v430_v29  ;;  %10745 = vmatprep.subr.mxu1 %v13261_v10  ;;  %18610 = vst [vmem:[#allocation17_spill] sm:$0xff] %v13818_v26 }
  0xae   : > { %10710 = vmatpush3.msra.mxu0 %v18600_v4  ;;  %10746 = vmatpush3.msra.mxu1 %v13261_v10  ;;  %v271_v10 = vld [vmem:[#allocation6 + $0x78] sm:$0xff] }
  0xaf   : > { %10711 = vmatprep.subr.mxu0 %v18601_v5  ;;  %10747 = vmatprep.subr.mxu1 %v13263_v11  ;;  %v13686_v58 = vand.u32 4294901760, %v271_v10 }
  0xb0   : > { %10690 = vmatprep.mubr.f32.mxu1 %v440_v2  ;;  %10712 = vmatpush3.msra.mxu0 %v18601_v5  ;;  %v1446_v5 = vsub.f32 %v13780_v60, %v13802_v1  ;;  %v254_v1 = vld [vmem:[#allocation2 + $0x3f] sm:$0xff] }
  0xb1   : > { %10748 = vmatpush3.msra.mxu1 %v13263_v11  ;;  %10713 = vmatprep.subr.mxu0 %v18602_v9  ;;  %v270_v11 = vld [vmem:[#allocation6 + $0x70] sm:$0xff]  ;;  %v13699_v63 = vsub.f32 %v271_v10, %v13686_v58 }
  0xb2   : > { %10691 = vmatmul.mubr.f32.gmra.mxu1 %v450_v56  ;;  %10749 = vmatprep.subr.mxu1 %v13272_v16  ;;  %v13792_v56 = vand.u32 4294901760, %v262_v34 }
  0xb3   : > { %10714 = vmatpush3.msra.mxu0 %v18602_v9  ;;  %10750 = vmatpush3.msra.mxu1 %v13272_v16  ;;  %v13692_v16 = vand.u32 4294901760, %v270_v11  ;;  %v13826_v9 = vand.u32 4294901760, %v248_v22 }
  0xb4   : > { %10715 = vmatprep.subr.mxu0 %v18603_v12  ;;  %10751 = vmatprep.subr.mxu1 %v13294_v24  ;;  %v13821_v4 = vsub.f32 %v262_v34, %v13792_v56  ;;  %v256_v34 = vld [vmem:[#allocation6] sm:$0xff] }
  0xb5   : > { %10716 = vmatpush3.msra.mxu0 %v18603_v12  ;;  %10752 = vmatpush3.msra.mxu1 %v13294_v24  ;;  %v269_v24 = vld [vmem:[#allocation6 + $0x68] sm:$0xff]  ;;  %v258_v12 = vld [vmem:[#allocation6 + $0x10] sm:$0xff] }
  0xb6   : > { %10717 = vmatprep.subr.mxu0 %v18604_v41  ;;  %10753 = vmatprep.subr.mxu1 %v13300_v27  ;;  %v13705_v8 = vand.u32 4294901760, %v269_v24  ;;  %v13851_v44 = vand.u32 4294901760, %v258_v12 }
  0xb7   : > { %10718 = vmatpush3.msra.mxu0 %v18604_v41  ;;  %10754 = vmatpush3.msra.mxu1 %v13300_v27  ;;  %v268_v27 = vld [vmem:[#allocation6 + $0x60] sm:$0xff]  ;;  %v13835_v41 = vand.u32 4294901760, %v249_v6 }
  0xb8   : > { %10719 = vmatprep.subr.mxu0 %v13447_v37  ;;  %10755 = vmatprep.subr.mxu1 %v13319_v35 }
  0xb9   : > { %10720 = vmatpush3.msra.mxu0 %v13447_v37  ;;  %10756 = vmatpush3.msra.mxu1 %v13319_v35  ;;  %v13708_v35 = vsub.f32 %v270_v11, %v13692_v16  ;;  %v13717_v37 = vand.u32 4294901760, %v13699_v63  ;;  %v13833_v11 = vsub.f32 %v261_v42, %v13805_v48  ;;  %v13868_v42 = vand.u32 4294901760, %v257_v28 }
  0xba   : > { %10721 = vmatprep.subr.mxu0 %v13464_v0  ;;  %10757 = vmatprep.subr.mxu1 %v13327_v40 }
  0xbb   : > { %10722 = vmatpush3.msra.mxu0 %v13464_v0  ;;  %10758 = vmatpush3.msra.mxu1 %v13327_v40  ;;  %v13714_v0 = vand.u32 4294901760, %v268_v27  ;;  %v267_v40 = vld [vmem:[#allocation6 + $0x58] sm:$0xff]  ;;  %v13724_v45 = vand.u32 4294901760, %v13708_v35  ;;  %18614 = vst [vmem:[#allocation21_spill] sm:$0xff] %v13868_v42 }
  0xbc   : > { %10723 = vmatprep.subr.mxu0 %v13475_v46  ;;  %10759 = vmatprep.subr.mxu1 %v13346_v50  ;;  %v13731_v51 = vand.u32 4294901760, %v267_v40 }
  0xbd   : > { %10724 = vmatpush3.msra.mxu0 %v13475_v46  ;;  %10725 = vmatprep.mubr.f32.mxu0 %v13392_v25  ;;  %v266_v46 = vld [vmem:[#allocation6 + $0x50] sm:$0xff]  ;;  %v13738_v14 = vsub.f32 %v268_v27, %v13714_v0  ;;  %v13839_v27 = vand.u32 4294901760, %v259_v3 }
  0xbe   : > { %10760 = vmatpush3.msra.mxu1 %v13346_v50  ;;  %10726 = vmatmul.mubr.f32.vlgmr.msra.gmra.mxu0 %v13418_v53  ;;  %v13727_v50 = vsub.f32 %v269_v24, %v13705_v8  ;;  %v13742_v17 = vand.u32 4294901760, %v266_v46  ;;  %v13756_v20 = vsub.f32 %v267_v40, %v13731_v51  ;;  %v250_v40 = vld [vmem:[#allocation2 + $0x1f] sm:$0xff] }
  0xbf   : > { %10761 = vmatprep.subr.mxu1 %v13355_v54  ;;  %10781 = vmatprep.subr.mxu0 %v13686_v58  ;;  %v13761_v38 = vand.u32 4294901760, %v13738_v14 }
  0xc0   : > { %10762 = vmatpush3.msra.mxu1 %v13355_v54  ;;  %10782 = vmatpush3.msra.mxu0 %v13686_v58  ;;  %v1404_v54 = vsub.f32 %v13699_v63, %v13717_v37  ;;  %v13749_v13 = vand.u32 4294901760, %v13727_v50  ;;  %v13766_v29 = vsub.f32 %v266_v46, %v13742_v17  ;;  %v1453_v46 = vsub.f32 %v13795_v47, %v13818_v26  ;;  %v255_v26 = vld [vmem:[#allocation2 + $0x47] sm:$0xff] }
  0xc1   : > { %10763 = vmatprep.subr.mxu1 %v13390_v18  ;;  %10783 = vmatprep.subr.mxu0 %v13692_v16  ;;  %18606 = vst [vmem:[#allocation13_spill] sm:$0xff] %v13761_v38 }
  0xc2   : > { %10728 = vmatprep.mubr.f32.mxu0 %v13490_v61  ;;  %10764 = vmatpush3.msra.mxu1 %v13390_v18  ;;  %v1411_v18 = vsub.f32 %v13708_v35, %v13724_v45  ;;  %18605 = vst [vmem:[#allocation12_spill] sm:$0xff] %v13749_v13  ;;  %v1405_v7 = vand.u32 4294901760, %v1404_v54  ;;  %v1418_v43 = vsub.f32 %v13727_v50, %v13749_v13  ;;  %v13845_v54 = vand.u32 4294901760, %v13821_v4 }
  0xc3   : > { %10784 = vmatpush3.msra.mxu0 %v13692_v16  ;;  %10765 = vmatprep.subr.mxu1 %v13395_v32 }
  0xc4   : > { %10729 = vmatmul.mubr.f32.gmra.mxu0 %v13494_v31  ;;  %10785 = vmatprep.subr.mxu0 %v13705_v8  ;;  %v1412_v57 = vand.u32 4294901760, %v1411_v18  ;;  %v1419_v2 = vand.u32 4294901760, %v1418_v43  ;;  %18612 = vst [vmem:[#allocation19_spill] sm:$0xff] %v13845_v54  ;;  %v13848_v18 = vsub.f32 %v260_v52, %v13815_v23  ;;  %v13860_v43 = vand.u32 4294901760, %v13833_v11 }
  0xc5   : > { %10766 = vmatpush3.msra.mxu1 %v13395_v32  ;;  %10786 = vmatpush3.msra.mxu0 %v13705_v8  ;;  %v263_v32 = vld [vmem:[#allocation6 + $0x38] sm:$0xff]  ;;  %v1467_v52 = vsub.f32 %v13821_v4, %v13845_v54 }
  0xc6   : > { %10767 = vmatprep.subr.mxu1 %v13398_v33  ;;  %10787 = vmatprep.subr.mxu0 %v13714_v0  ;;  %v13785_v36 = vand.u32 4294901760, %v263_v32  ;;  %18613 = vst [vmem:[#allocation20_spill] sm:$0xff] %v13860_v43  ;;  %v253_v54 = vld [vmem:[#allocation2 + $0x37] sm:$0xff] }
  0xc7   : > { %10731 = vmatprep.mubr.f32.mxu0 %v13508_v39  ;;  %10768 = vmatpush3.msra.mxu1 %v13398_v33  ;;  %v13777_v33 = vand.u32 4294901760, %v13756_v20 }
  0xc8   : > { %10769 = vmatprep.mubr.f32.mxu1 %v13392_v25  ;;  %10788 = vmatpush3.msra.mxu0 %v13714_v0  ;;  %v1425_v25 = vsub.f32 %v13738_v14, %v13761_v38  ;;  %v13808_v21 = vsub.f32 %v263_v32, %v13785_v36  ;;  %v251_v32 = vld [vmem:[#allocation2 + $0x27] sm:$0xff]  ;;  %v13945_v38 = vand.u32 4294901760, %v254_v1 }
  0xc9   : > { %10732 = vmatmul.mubr.f32.gmra.mxu0 %v13511_v15  ;;  %10770 = vmatmul.mubr.f32.vlgmr.msra.gmra.mxu1 %v13418_v53  ;;  %18607 = vst [vmem:[#allocation14_spill] sm:$0xff] %v13777_v33  ;;  %v13789_v53 = vand.u32 4294901760, %v13766_v29  ;;  %v1432_v49 = vsub.f32 %v13756_v20, %v13777_v33 }
  0xca   : > { %10789 = vmatprep.subr.mxu0 %v13731_v51  ;;  %10825 = vmatprep.subr.mxu1 %v1405_v7  ;;  %v1426_v55 = vand.u32 4294901760, %v1425_v25  ;;  %v13830_v10 = vand.u32 4294901760, %v13808_v21  ;;  %v13865_v25 = vand.u32 4294901760, %v250_v40 }
  0xcb   : > { %10790 = vmatpush3.msra.mxu0 %v13731_v51  ;;  %10826 = vmatpush3.msra.mxu1 %v1405_v7  ;;  %18608 = vst [vmem:[#allocation15_spill] sm:$0xff] %v13789_v53  ;;  %v13854_v7 = vsub.f32 %v248_v22, %v13826_v9  ;;  %v13880_v22 = vand.u32 4294901760, %v251_v32 }
  0xcc   : > { %10791 = vmatprep.subr.mxu0 %v13742_v17  ;;  %10827 = vmatprep.subr.mxu1 %v1412_v57  ;;  %18611 = vst [vmem:[#allocation18_spill] sm:$0xff] %v13830_v10 }
  0xcd   : > { %10734 = vmatprep.mubr.f32.mxu0 %v13531_v19  ;;  %10772 = vmatprep.mubr.f32.mxu1 %v13490_v61  ;;  %v1439_v61 = vsub.f32 %v13766_v29, %v13789_v53 }
  0xce   : > { %10792 = vmatpush3.msra.mxu0 %v13742_v17  ;;  %10828 = vmatpush3.msra.mxu1 %v1412_v57  ;;  %v1460_v57 = vsub.f32 %v13808_v21, %v13830_v10  ;;  %v13918_v10 = vand.u32 4294901760, %v253_v54 }
  0xcf   : > { %10735 = vmatmul.mubr.f32.gmra.mxu0 %v13538_v30  ;;  %10773 = vmatmul.mubr.f32.gmra.mxu1 %v13494_v31  ;;  %v1433_v31 = vand.u32 4294901760, %v1432_v49  ;;  %v1440_v24 = vand.u32 4294901760, %v1439_v61  ;;  %v1454_v49 = vand.u32 4294901760, %v1453_v46  ;;  %v252_v61 = vld [vmem:[#allocation2 + $0x2f] sm:$0xff]  ;;  %v13909_v46 = vsub.f32 %v251_v32, %v13880_v22 }
  0xd0   : > { %10793 = vmatprep.subr.mxu0 %v13753_v59  ;;  %10829 = vmatprep.subr.mxu1 %v1419_v2  ;;  %v13943_v33 = vsub.f32 %v253_v54, %v13918_v10 }
  0xd1   : > { %10794 = vmatpush3.msra.mxu0 %v13753_v59  ;;  %10830 = vmatpush3.msra.mxu1 %v1419_v2  ;;  %v13871_v2 = vsub.f32 %v259_v3, %v13839_v27 }
  0xd2   : > { %10795 = vmatprep.subr.mxu0 %v13772_v62  ;;  %10831 = vmatprep.subr.mxu1 %v1426_v55 }
  0xd3   : > { %10775 = vmatprep.mubr.f32.mxu1 %v13508_v39  ;;  %10796 = vmatpush3.msra.mxu0 %v13772_v62  ;;  %v1447_v39 = vand.u32 4294901760, %v1446_v5  ;;  %v1474_v5 = vsub.f32 %v13833_v11, %v13860_v43  ;;  %v13898_v3 = vand.u32 4294901760, %v13871_v2 }
  0xd4   : > { %10832 = vmatpush3.msra.mxu1 %v1426_v55  ;;  %10797 = vmatprep.subr.mxu0 %v13785_v36  ;;  %v13878_v55 = vand.u32 4294901760, %v13848_v18 }
  0xd5   : > { %10776 = vmatmul.mubr.f32.gmra.mxu1 %v13511_v15  ;;  %10833 = vmatprep.subr.mxu1 %v1433_v31  ;;  %v13863_v15 = vsub.f32 %v249_v6, %v13835_v41  ;;  %v13883_v6 = vand.u32 4294901760, %v256_v34  ;;  %18617 = vst [vmem:[#allocation24_spill] sm:$0xff] %v13898_v3 }
  0xd6   : > { %10798 = vmatpush3.msra.mxu0 %v13785_v36  ;;  %10834 = vmatpush3.msra.mxu1 %v1433_v31  ;;  %18615 = vst [vmem:[#allocation22_spill] sm:$0xff] %v13878_v55  ;;  %v1461_v31 = vand.u32 4294901760, %v1460_v57  ;;  %v1468_v57 = vand.u32 4294901760, %v1467_v52  ;;  %v1475_v52 = vand.u32 4294901760, %v1474_v5 }
  0xd7   : > { %10799 = vmatprep.subr.mxu0 %v13792_v56  ;;  %10835 = vmatprep.subr.mxu1 %v1440_v24 }
  0xd8   : > { %10778 = vmatprep.mubr.f32.mxu1 %v13531_v19  ;;  %10800 = vmatpush3.msra.mxu0 %v13792_v56  ;;  %v13887_v19 = vsub.f32 %v258_v12, %v13851_v44  ;;  %v13901_v12 = vsub.f32 %v257_v28, %v13868_v42 }
  0xd9   : > { %10836 = vmatpush3.msra.mxu1 %v1440_v24  ;;  %10801 = vmatprep.subr.mxu0 %v13805_v48  ;;  %v13894_v24 = vsub.f32 %v250_v40, %v13865_v25  ;;  %v1481_v40 = vsub.f32 %v13848_v18, %v13878_v55  ;;  %v18620_v55 = vand.u32 4294901760, %v13863_v15 }
  0xda   : > { %10779 = vmatmul.mubr.f32.gmra.mxu1 %v13538_v30  ;;  %10837 = vmatprep.subr.mxu1 %v1447_v39  ;;  %v13903_v30 = vand.u32 4294901760, %v252_v61  ;;  %v13916_v43 = vand.u32 4294901760, %v13887_v19  ;;  %v13932_v53 = vand.u32 4294901760, %v13901_v12 }
  0xdb   : > { %18616 = vst [vmem:[#allocation23_spill] sm:$0xff] %v13894_v24  ;;  %10802 = vmatpush3.msra.mxu0 %v13805_v48  ;;  %10838 = vmatpush3.msra.mxu1 %v1447_v39  ;;  %v18618_v39 = vand.u32 4294901760, %v13854_v7  ;;  %v1333_v32 = vsub.f32 %v13863_v15, %v18620_v55  ;;  %v1482_v55 = vand.u32 4294901760, %v1481_v40  ;;  %v18622_v40 = vand.u32 4294901760, %v13894_v24 }
  0xdc   : > { %10803 = vmatprep.subr.mxu0 %v13815_v23  ;;  %10839 = vmatprep.subr.mxu1 %v1454_v49  ;;  %18619 = vst [vmem:[#allocation25_spill] sm:$0xff] %v13916_v43  ;;  %18621 = vst [vmem:[#allocation26_spill] sm:$0xff] %v13932_v53  ;;  %v13935_v5 = vsub.f32 %v252_v61, %v13903_v30  ;;  %v1502_v54 = vsub.f32 %v13901_v12, %v13932_v53 }
  0xdd   : > { %10804 = vmatpush3.msra.mxu0 %v13815_v23  ;;  %10840 = vmatpush3.msra.mxu1 %v1454_v49  ;;  %v1323_v28 = vsub.f32 %v13854_v7, %v18618_v39  ;;  %v13926_v49 = vsub.f32 %v256_v34, %v13883_v6  ;;  %v1488_v39 = vsub.f32 %v13871_v2, %v13898_v3  ;;  %v1334_v61 = vand.u32 4294901760, %v1333_v32 }
  0xde   : > { %10805 = vmatprep.subr.mxu0 %v13839_v27  ;;  %10841 = vmatprep.subr.mxu1 %v1461_v31  ;;  %v1495_v3 = vsub.f32 %v13887_v19, %v13916_v43  ;;  %v1343_v34 = vsub.f32 %v13894_v24, %v18622_v40  ;;  %v13958_v43 = vand.u32 4294901760, %v255_v26  ;;  %v18623_v32 = vand.u32 4294901760, %v13909_v46 }
  0xdf   : > { %10806 = vmatpush3.msra.mxu0 %v13839_v27  ;;  %10842 = vmatpush3.msra.mxu1 %v1461_v31  ;;  %v1324_v31 = vand.u32 4294901760, %v1323_v28  ;;  %v13952_v13 = vand.u32 4294901760, %v13926_v49  ;;  %v1503_v24 = vand.u32 4294901760, %v1502_v54 }
  0xe0   : > { %10807 = vmatprep.subr.mxu0 %v13851_v44  ;;  %10843 = vmatprep.subr.mxu1 %v1468_v57  ;;  %v1353_v40 = vsub.f32 %v13909_v46, %v18623_v32  ;;  %v1344_v28 = vand.u32 4294901760, %v1343_v34  ;;  %v18624_v32 = vand.u32 4294901760, %v13935_v5 }
  0xe1   : > { %10808 = vmatpush3.msra.mxu0 %v13851_v44  ;;  %10844 = vmatpush3.msra.mxu1 %v1468_v57  ;;  %v1489_v57 = vand.u32 4294901760, %v1488_v39  ;;  %v13967_v39 = vsub.f32 %v254_v1, %v13945_v38  ;;  %v1509_v53 = vsub.f32 %v13926_v49, %v13952_v13 }
  0xe2   : > { %10809 = vmatprep.subr.mxu0 %v13868_v42  ;;  %10845 = vmatprep.subr.mxu1 %v1475_v52  ;;  %v1354_v1 = vand.u32 4294901760, %v1353_v40 }
  0xe3   : > { %10810 = vmatpush3.msra.mxu0 %v13868_v42  ;;  %10846 = vmatpush3.msra.mxu1 %v1475_v52  ;;  %v1496_v42 = vand.u32 4294901760, %v1495_v3  ;;  %v1372_v52 = vand.u32 4294901760, %v13943_v33  ;;  %v13976_v3 = vsub.f32 %v255_v26, %v13958_v43  ;;  %v1382_v34 = vand.u32 4294901760, %v13967_v39 }
  0xe4   : > { %10811 = vmatprep.subr.mxu0 %v13883_v6  ;;  %10847 = vmatprep.subr.mxu1 %v1482_v55 }
  0xe5   : > { %10812 = vmatpush3.msra.mxu0 %v13883_v6  ;;  %10813 = vmatprep.mubr.f32.mxu0 %v1324_v31  ;;  %v1363_v31 = vsub.f32 %v13935_v5, %v18624_v32  ;;  %v1383_v54 = vsub.f32 %v13967_v39, %v1382_v34 }
  0xe6   : > { %10848 = vmatpush3.msra.mxu1 %v1482_v55  ;;  %10814 = vmatmul.mubr.f32.vlgmr.msra.gmra.mxu0 %v1334_v61  ;;  %v1373_v55 = vsub.f32 %v13943_v33, %v1372_v52  ;;  %v1510_v61 = vand.u32 4294901760, %v1509_v53 }
  0xe7   : > { %10849 = vmatprep.subr.mxu1 %v1489_v57  ;;  %10869 = vmatprep.subr.mxu0 %v13699_v63  ;;  %v1364_v26 = vand.u32 4294901760, %v1363_v31 }
  0xe8   : > { %10850 = vmatpush3.msra.mxu1 %v1489_v57  ;;  %10870 = vmatpush3.msra.mxu0 %v13699_v63  ;;  %v1392_v57 = vand.u32 4294901760, %v13976_v3  ;;  %v1374_v63 = vand.u32 4294901760, %v1373_v55  ;;  %v2198_v55 = vld [vmem:[#allocation6 + $0x140] sm:$0xff] }
  0xe9   : > { %10851 = vmatprep.subr.mxu1 %v1496_v42  ;;  %10871 = vmatprep.subr.mxu0 %v13708_v35 }
  0xea   : > { %10816 = vmatprep.mubr.f32.mxu0 %v1344_v28  ;;  %10852 = vmatpush3.msra.mxu1 %v1496_v42 }
  0xeb   : > { %10872 = vmatpush3.msra.mxu0 %v13708_v35  ;;  %10853 = vmatprep.subr.mxu1 %v1503_v24  ;;  %v1393_v35 = vsub.f32 %v13976_v3, %v1392_v57 }
  0xec   : > { %10817 = vmatmul.mubr.f32.gmra.mxu0 %v1354_v1  ;;  %10873 = vmatprep.subr.mxu0 %v13727_v50 }
  0xed   : > { %10854 = vmatpush3.msra.mxu1 %v1503_v24  ;;  %10874 = vmatpush3.msra.mxu0 %v13727_v50  ;;  %v1384_v50 = vand.u32 4294901760, %v1383_v54  ;;  %v1394_v53 = vand.u32 4294901760, %v1393_v35 }
  0xee   : > { %10855 = vmatprep.subr.mxu1 %v1510_v61  ;;  %10875 = vmatprep.subr.mxu0 %v13738_v14 }
  0xef   : > { %10819 = vmatprep.mubr.f32.mxu0 %v1364_v26  ;;  %10856 = vmatpush3.msra.mxu1 %v1510_v61 }
  0xf0   : > { %10857 = vmatprep.mubr.f32.mxu1 %v13826_v9  ;;  %10876 = vmatpush3.msra.mxu0 %v13738_v14  ;;  %v18625_v14 = vld [vmem:[#allocation23_spill] sm:$0xff] }
  0xf1   : > { %10820 = vmatmul.mubr.f32.gmra.mxu0 %v1374_v63  ;;  %10858 = vmatmul.mubr.f32.vlgmr.msra.gmra.mxu1 %v13835_v41  ;;  %v2197_v63 = vld [vmem:[#allocation6 + $0x138] sm:$0xff] }
  0xf2   : > { %10877 = vmatprep.subr.mxu0 %v13756_v20  ;;  %10913 = vmatprep.subr.mxu1 %v13686_v58 }
  0xf3   : > { %10878 = vmatpush3.msra.mxu0 %v13756_v20  ;;  %10914 = vmatpush3.msra.mxu1 %v13686_v58  ;;  %v18626_v20 = vld [vmem:[#allocation21_spill] sm:$0xff] }
  0xf4   : > { %10879 = vmatprep.subr.mxu0 %v13766_v29  ;;  %10915 = vmatprep.subr.mxu1 %v13692_v16 }
  0xf5   : > { %10822 = vmatprep.mubr.f32.mxu0 %v1384_v50  ;;  %10860 = vmatprep.mubr.f32.mxu1 %v13865_v25 }
  0xf6   : > { %10880 = vmatpush3.msra.mxu0 %v13766_v29  ;;  %10916 = vmatpush3.msra.mxu1 %v13692_v16  ;;  %v18627_v29 = vld [vmem:[#allocation12_spill] sm:$0xff] }
  0xf7   : > { %10823 = vmatmul.mubr.f32.gmra.mxu0 %v1394_v53  ;;  %10861 = vmatmul.mubr.f32.gmra.mxu1 %v13880_v22  ;;  %v14214_v53 = vand.u32 4294901760, %v2198_v55 }
  0xf8   : > { %10881 = vmatprep.subr.mxu0 %v13780_v60  ;;  %10917 = vmatprep.subr.mxu1 %v13705_v8 }
  0xf9   : > { %10882 = vmatpush3.msra.mxu0 %v13780_v60  ;;  %10918 = vmatpush3.msra.mxu1 %v13705_v8  ;;  %v18630_v60 = vand.u32 4294901760, %v13863_v15 }
  0xfa   : > { %10883 = vmatprep.subr.mxu0 %v13795_v47  ;;  %10919 = vmatprep.subr.mxu1 %v13714_v0 }
  0xfb   : > { %10863 = vmatprep.mubr.f32.mxu1 %v13903_v30  ;;  %10884 = vmatpush3.msra.mxu0 %v13795_v47  ;;  %v18631_v47 = vld [vmem:[#allocation14_spill] sm:$0xff] }
  0xfc   : > { %10920 = vmatpush3.msra.mxu1 %v13714_v0  ;;  %10885 = vmatprep.subr.mxu0 %v13808_v21 }
  0xfd   : > { %10864 = vmatmul.mubr.f32.gmra.mxu1 %v13918_v10  ;;  %10921 = vmatprep.subr.mxu1 %v13731_v51 }
  0xfe   : > { %10886 = vmatpush3.msra.mxu0 %v13808_v21  ;;  %10922 = vmatpush3.msra.mxu1 %v13731_v51  ;;  %v18632_v21 = vld [vmem:[#allocation15_spill] sm:$0xff] }
  0xff   : > { %10887 = vmatprep.subr.mxu0 %v13821_v4  ;;  %10923 = vmatprep.subr.mxu1 %v13742_v17 }
 0x100   : > { %10866 = vmatprep.mubr.f32.mxu1 %v13945_v38  ;;  %10888 = vmatpush3.msra.mxu0 %v13821_v4  ;;  %v18633_v4 = vand.u32 4294901760, %v18625_v14 }
 0x101   : > { %10924 = vmatpush3.msra.mxu1 %v13742_v17  ;;  %10889 = vmatprep.subr.mxu0 %v13833_v11 }
 0x102   : > { %10867 = vmatmul.mubr.f32.gmra.mxu1 %v13958_v43  ;;  %10925 = vmatprep.subr.mxu1 %v13753_v59 }
 0x103   : > { %10890 = vmatpush3.msra.mxu0 %v13833_v11  ;;  %10926 = vmatpush3.msra.mxu1 %v13753_v59  ;;  %v18634_v11 = vand.u32 4294901760, %v13909_v46 }
 0x104   : > { %10891 = vmatprep.subr.mxu0 %v13848_v18  ;;  %10927 = vmatprep.subr.mxu1 %v13772_v62 }
 0x105   : > { %10892 = vmatpush3.msra.mxu0 %v13848_v18  ;;  %10928 = vmatpush3.msra.mxu1 %v13772_v62  ;;  %v18635_v18 = vld [vmem:[#allocation16_spill] sm:$0xff] }
 0x106   : > { %10893 = vmatprep.subr.mxu0 %v13871_v2  ;;  %10929 = vmatprep.subr.mxu1 %v13785_v36 }
 0x107   : > { %10894 = vmatpush3.msra.mxu0 %v13871_v2  ;;  %10930 = vmatpush3.msra.mxu1 %v13785_v36 }
 0x108   : > { %10895 = vmatprep.subr.mxu0 %v13887_v19  ;;  %10931 = vmatprep.subr.mxu1 %v13792_v56 }
 0x109   : > { %10896 = vmatpush3.msra.mxu0 %v13887_v19  ;;  %10932 = vmatpush3.msra.mxu1 %v13792_v56  ;;  %v18644_v19 = vld [vmem:[#allocation26_spill] sm:$0xff] }
 0x10a   : > { %10897 = vmatprep.subr.mxu0 %v13901_v12  ;;  %10933 = vmatprep.subr.mxu1 %v13805_v48 }
 0x10b   : > { %10898 = vmatpush3.msra.mxu0 %v13901_v12  ;;  %10934 = vmatpush3.msra.mxu1 %v13805_v48 }
 0x10c   : > { %10899 = vmatprep.subr.mxu0 %v13926_v49  ;;  %10935 = vmatprep.subr.mxu1 %v13815_v23 }
 0x10d   : > { %10900 = vmatpush3.msra.mxu0 %v13926_v49  ;;  %10901 = vmatprep.mubr.f32.mxu0 %v13854_v7 }
 0x10e   : > { %10936 = vmatpush3.msra.mxu1 %v13815_v23  ;;  %10902 = vmatmul.mubr.f32.vlgmr.msra.gmra.mxu0 %v13863_v15  ;;  %v18642_v15 = vld [vmem:[#allocation24_spill] sm:$0xff] }
 0x10f   : > { %10937 = vmatprep.subr.mxu1 %v13839_v27  ;;  %10957 = vmatprep.subr.mxu0 %v13717_v37 }
 0x110   : > { %10938 = vmatpush3.msra.mxu1 %v13839_v27  ;;  %10958 = vmatpush3.msra.mxu0 %v13717_v37  ;;  %v18628_v37 = vld [vmem:[#allocation13_spill] sm:$0xff] }
 0x111   : > { %10939 = vmatprep.subr.mxu1 %v13851_v44  ;;  %10959 = vmatprep.subr.mxu0 %v13724_v45 }
 0x112   : > { %10904 = vmatprep.mubr.f32.mxu0 %v18625_v14  ;;  %10940 = vmatpush3.msra.mxu1 %v13851_v44  ;;  %v14218_v14 = vand.u32 4294901760, %v2197_v63 }
 0x113   : > { %10960 = vmatpush3.msra.mxu0 %v13724_v45  ;;  %10941 = vmatprep.subr.mxu1 %v18626_v20  ;;  %v18629_v45 = vand.u32 4294901760, %v13854_v7  ;;  %v18637_v7 = vmov %v18624_v32 }
 0x114   : > { %10905 = vmatmul.mubr.f32.gmra.mxu0 %v13909_v46  ;;  %10961 = vmatprep.subr.mxu0 %v18627_v29 }
 0x115   : > { %10942 = vmatpush3.msra.mxu1 %v18626_v20  ;;  %10962 = vmatpush3.msra.mxu0 %v18627_v29 }
 0x116   : > { %10943 = vmatprep.subr.mxu1 %v13883_v6  ;;  %10963 = vmatprep.subr.mxu0 %v18628_v37 }
 0x117   : > { %10907 = vmatprep.mubr.f32.mxu0 %v13935_v5  ;;  %10944 = vmatpush3.msra.mxu1 %v13883_v6 }
 0x118   : > { %10945 = vmatprep.mubr.f32.mxu1 %v18629_v45  ;;  %10964 = vmatpush3.msra.mxu0 %v18628_v37  ;;  %v2195_v45 = vld [vmem:[#allocation6 + $0x128] sm:$0xff] }
 0x119   : > { %10908 = vmatmul.mubr.f32.gmra.mxu0 %v13943_v33  ;;  %10946 = vmatmul.mubr.f32.vlgmr.msra.gmra.mxu1 %v18630_v60  ;;  %v18641_v33 = vld [vmem:[#allocation22_spill] sm:$0xff] }
 0x11a   : > { %10965 = vmatprep.subr.mxu0 %v18631_v47  ;;  %11001 = vmatprep.subr.mxu1 %v13686_v58 }
 0x11b   : > { %10966 = vmatpush3.msra.mxu0 %v18631_v47  ;;  %11002 = vmatpush3.msra.mxu1 %v13686_v58  ;;  %v18636_v58 = vld [vmem:[#allocation17_spill] sm:$0xff] }
 0x11c   : > { %10967 = vmatprep.subr.mxu0 %v18632_v21  ;;  %11003 = vmatprep.subr.mxu1 %v13692_v16 }
 0x11d   : > { %10910 = vmatprep.mubr.f32.mxu0 %v13967_v39  ;;  %10948 = vmatprep.mubr.f32.mxu1 %v18633_v4 }
 0x11e   : > { %10968 = vmatpush3.msra.mxu0 %v18632_v21  ;;  %11004 = vmatpush3.msra.mxu1 %v13692_v16  ;;  %v18638_v16 = vld [vmem:[#allocation18_spill] sm:$0xff]  ;;  %v14239_v21 = vsub.f32 %v2198_v55, %v14214_v53 }
 0x11f   : > { %10911 = vmatmul.mubr.f32.gmra.mxu0 %v13976_v3  ;;  %10949 = vmatmul.mubr.f32.gmra.mxu1 %v18634_v11  ;;  %v2199_v3 = vld [vmem:[#allocation6 + $0x148] sm:$0xff] }
 0x120   : > { %10969 = vmatprep.subr.mxu0 %v18635_v18  ;;  %11005 = vmatprep.subr.mxu1 %v13705_v8  ;;  %v14200_v26 = vand.u32 4294901760, %v2199_v3 }
 0x121   : > { %10970 = vmatpush3.msra.mxu0 %v18635_v18  ;;  %11006 = vmatpush3.msra.mxu1 %v13705_v8  ;;  %v18639_v8 = vld [vmem:[#allocation19_spill] sm:$0xff]  ;;  %v2194_v18 = vld [vmem:[#allocation6 + $0x120] sm:$0xff] }
 0x122   : > { %10971 = vmatprep.subr.mxu0 %v18636_v58  ;;  %11007 = vmatprep.subr.mxu1 %v13714_v0  ;;  %v14227_v29 = vsub.f32 %v2199_v3, %v14200_v26 }
 0x123   : > { %10951 = vmatprep.mubr.f32.mxu1 %v18637_v7  ;;  %10972 = vmatpush3.msra.mxu0 %v18636_v58  ;;  %v14246_v58 = vsub.f32 %v2197_v63, %v14218_v14 }
 0x124   : > { %11008 = vmatpush3.msra.mxu1 %v13714_v0  ;;  %10973 = vmatprep.subr.mxu0 %v18638_v16  ;;  %v18640_v0 = vld [vmem:[#allocation20_spill] sm:$0xff] }
 0x125   : > { %10952 = vmatmul.mubr.f32.gmra.mxu1 %v1372_v52  ;;  %11009 = vmatprep.subr.mxu1 %v13731_v51 }
 0x126   : > { %10974 = vmatpush3.msra.mxu0 %v18638_v16  ;;  %11010 = vmatpush3.msra.mxu1 %v13731_v51  ;;  %v2205_v51 = vld [vmem:[#allocation6 + $0x178] sm:$0xff]  ;;  %v14249_v16 = vand.u32 4294901760, %v2195_v45 }
 0x127   : > { %10975 = vmatprep.subr.mxu0 %v18639_v8  ;;  %11011 = vmatprep.subr.mxu1 %v13742_v17  ;;  %v14126_v42 = vand.u32 4294901760, %v2205_v51 }
 0x128   : > { %10954 = vmatprep.mubr.f32.mxu1 %v1382_v34  ;;  %10976 = vmatpush3.msra.mxu0 %v18639_v8  ;;  %v14252_v8 = vand.u32 4294901760, %v14227_v29 }
 0x129   : > { %11012 = vmatpush3.msra.mxu1 %v13742_v17  ;;  %10977 = vmatprep.subr.mxu0 %v18640_v0  ;;  %v2204_v17 = vld [vmem:[#allocation6 + $0x170] sm:$0xff]  ;;  %v14139_v46 = vsub.f32 %v2205_v51, %v14126_v42  ;;  %v2193_v51 = vld [vmem:[#allocation6 + $0x118] sm:$0xff] }
 0x12a   : > { %10955 = vmatmul.mubr.f32.gmra.mxu1 %v1392_v57  ;;  %11013 = vmatprep.subr.mxu1 %v13753_v59  ;;  %v14132_v2 = vand.u32 4294901760, %v2204_v17 }
 0x12b   : > { %10978 = vmatpush3.msra.mxu0 %v18640_v0  ;;  %11014 = vmatpush3.msra.mxu1 %v13753_v59  ;;  %v18643_v59 = vld [vmem:[#allocation25_spill] sm:$0xff]  ;;  %v14157_v49 = vand.u32 4294901760, %v14139_v46 }
 0x12c   : > { %10979 = vmatprep.subr.mxu0 %v18641_v33  ;;  %11015 = vmatprep.subr.mxu1 %v13772_v62 }
 0x12d   : > { %10980 = vmatpush3.msra.mxu0 %v18641_v33  ;;  %11016 = vmatpush3.msra.mxu1 %v13772_v62  ;;  %v2203_v62 = vld [vmem:[#allocation6 + $0x168] sm:$0xff]  ;;  %v2181_v33 = vld [vmem:[#allocation2 + $0x11] sm:$0xff] }
 0x12e   : > { %10981 = vmatprep.subr.mxu0 %v18642_v15  ;;  %11017 = vmatprep.subr.mxu1 %v13785_v36  ;;  %v14145_v24 = vand.u32 4294901760, %v2203_v62  ;;  %v14283_v3 = vand.u32 4294901760, %v2181_v33 }
 0x12f   : > { %10982 = vmatpush3.msra.mxu0 %v18642_v15  ;;  %11018 = vmatpush3.msra.mxu1 %v13785_v36  ;;  %v2202_v36 = vld [vmem:[#allocation6 + $0x160] sm:$0xff]  ;;  %v10551_v5 = vpop.f32.mrf.mxu0  ;;  %v14264_v15 = vand.u32 4294901760, %v14239_v21 }
 0x130   : > { %10983 = vmatprep.subr.mxu0 %v18643_v59  ;;  %11019 = vmatprep.subr.mxu1 %v13792_v56  ;;  %v14154_v12 = vand.u32 4294901760, %v2202_v36  ;;  %v14167_v40 = vsub.f32 %v2203_v62, %v14145_v24  ;;  %v2182_v62 = vld [vmem:[#allocation2 + $0x19] sm:$0xff] }
 0x131   : > { %10984 = vmatpush3.msra.mxu0 %v18643_v59  ;;  %11020 = vmatpush3.msra.mxu1 %v13792_v56  ;;  %v14148_v56 = vsub.f32 %v2204_v17, %v14132_v2  ;;  %v14229_v37 = vpop.f32.mrf.mxu0  ;;  %v14261_v17 = vand.u32 4294901760, %v2194_v18  ;;  %18647 = vst [vmem:[#allocation12_spill] sm:$0xff] %v14264_v15  ;;  %v14287_v55 = vand.u32 4294901760, %v2182_v62 }
 0x132   : > { %10985 = vmatprep.subr.mxu0 %v18644_v19  ;;  %11021 = vmatprep.subr.mxu1 %v13805_v48  ;;  %v14180_v32 = vsub.f32 %v2202_v36, %v14154_v12  ;;  %v14191_v1 = vand.u32 4294901760, %v14167_v40  ;;  %18645 = vst [vmem:[#allocation23_spill] sm:$0xff] %v14229_v37 }
 0x133   : > { %10986 = vmatpush3.msra.mxu0 %v18644_v19  ;;  %11022 = vmatpush3.msra.mxu1 %v13805_v48  ;;  %v2201_v48 = vld [vmem:[#allocation6 + $0x158] sm:$0xff]  ;;  %v14271_v19 = vand.u32 4294901760, %v14246_v58 }
 0x134   : > { %10987 = vmatprep.subr.mxu0 %v13952_v13  ;;  %11023 = vmatprep.subr.mxu1 %v13815_v23  ;;  %v14173_v39 = vand.u32 4294901760, %v2201_v48  ;;  %v14203_v57 = vand.u32 4294901760, %v14180_v32  ;;  %v2385_v50 = vsub.f32 %v14167_v40, %v14191_v1 }
 0x135   : > { %10988 = vmatpush3.msra.mxu0 %v13952_v13  ;;  %10989 = vmatprep.mubr.f32.mxu0 %v13826_v9  ;;  %v2200_v13 = vld [vmem:[#allocation6 + $0x150] sm:$0xff]  ;;  %18648 = vst [vmem:[#allocation13_spill] sm:$0xff] %v14271_v19 }
 0x136   : > { %11024 = vmatpush3.msra.mxu1 %v13815_v23  ;;  %10990 = vmatmul.mubr.f32.vlgmr.msra.gmra.mxu0 %v13835_v41  ;;  %v14164_v23 = vand.u32 4294901760, %v14148_v56  ;;  %v14184_v31 = vand.u32 4294901760, %v2200_v13  ;;  %v14196_v34 = vsub.f32 %v2201_v48, %v14173_v39  ;;  %v2386_v60 = vand.u32 4294901760, %v2385_v50 }
 0x137   : > { %11025 = vmatprep.subr.mxu1 %v13839_v27  ;;  %11045 = vmatprep.subr.mxu0 %v14126_v42  ;;  %v10595_v28 = vpop.f32.mrf.mxu1 }
 0x138   : > { %11026 = vmatpush3.msra.mxu1 %v13839_v27  ;;  %11046 = vmatpush3.msra.mxu0 %v14126_v42  ;;  %v14169_v52 = vadd.f32 %v10595_v28, %v10551_v5  ;;  %v2371_v27 = vsub.f32 %v14139_v46, %v14157_v49  ;;  %v14208_v54 = vsub.f32 %v2200_v13, %v14184_v31  ;;  %v14278_v28 = vand.u32 4294901760, %v2193_v51  ;;  %v2192_v13 = vld [vmem:[#allocation6 + $0x110] sm:$0xff] }
 0x139   : > { %11027 = vmatprep.subr.mxu1 %v13851_v44  ;;  %11047 = vmatprep.subr.mxu0 %v14132_v2  ;;  %v14273_v36 = vpop.f32.mrf.mxu1  ;;  %v2413_v5 = vsub.f32 %v14227_v29, %v14252_v8 }
 0x13a   : > { %10992 = vmatprep.mubr.f32.mxu0 %v13865_v25  ;;  %11028 = vmatpush3.msra.mxu1 %v13851_v44  ;;  %v2378_v44 = vsub.f32 %v14148_v56, %v14164_v23  ;;  %v2372_v61 = vand.u32 4294901760, %v2371_v27  ;;  %18649 = vst [vmem:[#allocation14_spill] sm:$0xff] %v14273_v36  ;;  %v14281_v27 = vsub.f32 %v2195_v45, %v14249_v16 }
 0x13b   : > { %11048 = vmatpush3.msra.mxu0 %v14132_v2  ;;  %11029 = vmatprep.subr.mxu1 %v18626_v20  ;;  %v2427_v45 = vsub.f32 %v14246_v58, %v14271_v19 }
 0x13c   : > { %10993 = vmatmul.mubr.f32.gmra.mxu0 %v13880_v22  ;;  %11049 = vmatprep.subr.mxu0 %v14145_v24  ;;  %v2379_v35 = vand.u32 4294901760, %v2378_v44 }
 0x13d   : > { %11030 = vmatpush3.msra.mxu1 %v18626_v20  ;;  %11050 = vmatpush3.msra.mxu0 %v14145_v24  ;;  %v2196_v20 = vld [vmem:[#allocation6 + $0x130] sm:$0xff] }
 0x13e   : > { %11031 = vmatprep.subr.mxu1 %v13883_v6  ;;  %11051 = vmatprep.subr.mxu0 %v14154_v12  ;;  %v14236_v47 = vand.u32 4294901760, %v2196_v20 }
 0x13f   : > { %10995 = vmatprep.mubr.f32.mxu0 %v13903_v30  ;;  %11032 = vmatpush3.msra.mxu1 %v13883_v6  ;;  %v14221_v6 = vand.u32 4294901760, %v14196_v34 }
 0x140   : > { %11033 = vmatprep.mubr.f32.mxu1 %v13826_v9  ;;  %11052 = vmatpush3.msra.mxu0 %v14154_v12  ;;  %v2392_v9 = vsub.f32 %v14180_v32, %v14203_v57  ;;  %v14267_v59 = vsub.f32 %v2196_v20, %v14236_v47  ;;  %v2191_v20 = vld [vmem:[#allocation6 + $0x108] sm:$0xff] }
 0x141   : > { %10996 = vmatmul.mubr.f32.gmra.mxu0 %v13918_v10  ;;  %11034 = vmatmul.mubr.f32.vlgmr.msra.gmra.mxu1 %v13835_v41  ;;  %v14233_v41 = vand.u32 4294901760, %v14208_v54  ;;  %v2399_v11 = vsub.f32 %v14196_v34, %v14221_v6 }
 0x142   : > { %11053 = vmatprep.subr.mxu0 %v14173_v39  ;;  %11089 = vmatprep.subr.mxu1 %v2372_v61  ;;  %v2393_v7 = vand.u32 4294901760, %v2392_v9  ;;  %v14295_v50 = vand.u32 4294901760, %v14267_v59 }
 0x143   : > { %11054 = vmatpush3.msra.mxu0 %v14173_v39  ;;  %11090 = vmatpush3.msra.mxu1 %v2372_v61 }
 0x144   : > { %11055 = vmatprep.subr.mxu0 %v14184_v31  ;;  %11091 = vmatprep.subr.mxu1 %v2379_v35  ;;  %v10554_v4 = vpop.f32.mrf.mxu0  ;;  %18651 = vst [vmem:[#allocation16_spill] sm:$0xff] %v14295_v50 }
 0x145   : > { %10998 = vmatprep.mubr.f32.mxu0 %v13945_v38  ;;  %11036 = vmatprep.mubr.f32.mxu1 %v13865_v25  ;;  %v2406_v25 = vsub.f32 %v14208_v54, %v14233_v41 }
 0x146   : > { %11056 = vmatpush3.msra.mxu0 %v14184_v31  ;;  %11092 = vmatpush3.msra.mxu1 %v2379_v35  ;;  %v14254_v0 = vpop.f32.mrf.mxu0  ;;  %v2420_v35 = vsub.f32 %v14239_v21, %v14264_v15 }
 0x147   : > { %18646 = vst [vmem:[#allocation21_spill] sm:$0xff] %v14254_v0  ;;  %10999 = vmatmul.mubr.f32.gmra.mxu0 %v13958_v43  ;;  %11037 = vmatmul.mubr.f32.gmra.mxu1 %v13880_v22  ;;  %v2400_v22 = vand.u32 4294901760, %v2399_v11  ;;  %v2407_v44 = vand.u32 4294901760, %v2406_v25  ;;  %v14311_v25 = vand.u32 4294901760, %v14281_v27 }
 0x148   : > { %11057 = vmatprep.subr.mxu0 %v14200_v26  ;;  %11093 = vmatprep.subr.mxu1 %v2386_v60 }
 0x149   : > { %11058 = vmatpush3.msra.mxu0 %v14200_v26  ;;  %11094 = vmatpush3.msra.mxu1 %v2386_v60  ;;  %v10557_v48 = vpop.f32.mrf.mxu0  ;;  %v14305_v60 = vand.u32 4294901760, %v2192_v13  ;;  %18653 = vst [vmem:[#allocation18_spill] sm:$0xff] %v14311_v25 }
 0x14a   : > { %11059 = vmatprep.subr.mxu0 %v14214_v53  ;;  %11095 = vmatprep.subr.mxu1 %v2393_v7 }
 0x14b   : > { %11039 = vmatprep.mubr.f32.mxu1 %v13903_v30  ;;  %11060 = vmatpush3.msra.mxu0 %v14214_v53  ;;  %v10598_v61 = vpop.f32.mrf.mxu1  ;;  %v14289_v63 = vpop.f32.mrf.mxu0  ;;  %v14298_v30 = vsub.f32 %v2194_v18, %v14261_v17  ;;  %v2190_v18 = vld [vmem:[#allocation6 + $0x100] sm:$0xff] }
 0x14c   : > { %18650 = vst [vmem:[#allocation15_spill] sm:$0xff] %v14289_v63  ;;  %11096 = vmatpush3.msra.mxu1 %v2393_v7  ;;  %11061 = vmatprep.subr.mxu0 %v14218_v14  ;;  %v14300_v9 = vadd.f32 %v10598_v61, %v10554_v4  ;;  %v2414_v7 = vand.u32 4294901760, %v2413_v5  ;;  %v14314_v4 = vsub.f32 %v2181_v33, %v14283_v3  ;;  %v14320_v61 = vand.u32 4294901760, %v2191_v20 }
 0x14d   : > { %11040 = vmatmul.mubr.f32.gmra.mxu1 %v13918_v10  ;;  %11097 = vmatprep.subr.mxu1 %v2400_v22  ;;  %v14307_v11 = vpop.f32.mrf.mxu1  ;;  %v14317_v10 = vsub.f32 %v2193_v51, %v14278_v28  ;;  %v14323_v63 = vsub.f32 %v2182_v62, %v14287_v55  ;;  %v2421_v5 = vand.u32 4294901760, %v2420_v35  ;;  %v2434_v33 = vsub.f32 %v14267_v59, %v14295_v50 }
 0x14e   : > { %18652 = vst [vmem:[#allocation17_spill] sm:$0xff] %v14307_v11  ;;  %11062 = vmatpush3.msra.mxu0 %v14218_v14  ;;  %11098 = vmatpush3.msra.mxu1 %v2400_v22  ;;  %v14330_v51 = vand.u32 4294901760, %v14298_v30  ;;  %v2428_v11 = vand.u32 4294901760, %v2427_v45  ;;  %v14333_v0 = vand.u32 4294901760, %v2190_v18  ;;  %v14336_v62 = vsub.f32 %v2192_v13, %v14305_v60 }
 0x14f   : > { %11063 = vmatprep.subr.mxu0 %v14236_v47  ;;  %11099 = vmatprep.subr.mxu1 %v2407_v44  ;;  %v10560_v22 = vpop.f32.mrf.mxu0  ;;  %v14343_v37 = vand.u32 4294901760, %v14317_v10  ;;  %v2435_v35 = vand.u32 4294901760, %v2434_v33  ;;  %v18659_v13 = vand.u32 4294901760, %v14314_v4 }
 0x150   : > { %11042 = vmatprep.mubr.f32.mxu1 %v13945_v38  ;;  %11064 = vmatpush3.msra.mxu0 %v14236_v47  ;;  %18654 = vst [vmem:[#allocation19_spill] sm:$0xff] %v14330_v51  ;;  %v2441_v38 = vsub.f32 %v14281_v27, %v14311_v25 }
 0x151   : > { %11100 = vmatpush3.msra.mxu1 %v2407_v44  ;;  %11065 = vmatprep.subr.mxu0 %v14249_v16  ;;  %v10601_v36 = vpop.f32.mrf.mxu1  ;;  %18655 = vst [vmem:[#allocation20_spill] sm:$0xff] %v14343_v37  ;;  %v14347_v45 = vpop.f32.mrf.mxu0  ;;  %v2290_v33 = vsub.f32 %v14314_v4, %v18659_v13 }
 0x152   : > { %11043 = vmatmul.mubr.f32.gmra.mxu1 %v13958_v43  ;;  %11101 = vmatprep.subr.mxu1 %v2414_v7  ;;  %v14345_v44 = vadd.f32 %v10601_v36, %v10557_v48  ;;  %18656 = vst [vmem:[#allocation22_spill] sm:$0xff] %v14347_v45  ;;  %v14352_v43 = vsub.f32 %v2191_v20, %v14320_v61  ;;  %v14361_v48 = vand.u32 4294901760, %v14336_v62  ;;  %v2442_v20 = vand.u32 4294901760, %v2441_v38 }
 0x153   : > { %11066 = vmatpush3.msra.mxu0 %v14249_v16  ;;  %11102 = vmatpush3.msra.mxu1 %v2414_v7  ;;  %v14354_v50 = vpop.f32.mrf.mxu1  ;;  %v2448_v36 = vsub.f32 %v14298_v30, %v14330_v51  ;;  %v14364_v7 = vsub.f32 %v2190_v18, %v14333_v0  ;;  %v2455_v45 = vsub.f32 %v14317_v10, %v14343_v37 }
 0x154   : > { %18657 = vst [vmem:[#allocation24_spill] sm:$0xff] %v14354_v50  ;;  %11067 = vmatprep.subr.mxu0 %v14261_v17  ;;  %11103 = vmatprep.subr.mxu1 %v2421_v5  ;;  %18658 = vst [vmem:[#allocation25_spill] sm:$0xff] %v14361_v48  ;;  %v14377_v51 = vand.u32 4294901760, %v14352_v43 }
 0x155   : > { %11068 = vmatpush3.msra.mxu0 %v14261_v17  ;;  %11104 = vmatpush3.msra.mxu1 %v2421_v5  ;;  %v18660_v5 = vand.u32 4294901760, %v14323_v63  ;;  %v2449_v13 = vand.u32 4294901760, %v2448_v36 }
 0x156   : > { %11069 = vmatprep.subr.mxu0 %v14278_v28  ;;  %11105 = vmatprep.subr.mxu1 %v2428_v11  ;;  %v10639_v50 = vpop.f32.mrf.mxu0  ;;  %18661 = vst [vmem:[#allocation26_spill] sm:$0xff] %v14377_v51 }
 0x157   : > { %11070 = vmatpush3.msra.mxu0 %v14278_v28  ;;  %11106 = vmatpush3.msra.mxu1 %v2428_v11  ;;  %v2300_v18 = vsub.f32 %v14323_v63, %v18660_v5  ;;  %v759_v38 = vadd.f32 %v10639_v50, %v14169_v52  ;;  %v10604_v25 = vpop.f32.mrf.mxu1  ;;  %v2462_v11 = vsub.f32 %v14336_v62, %v14361_v48  ;;  %v14389_v5 = vand.u32 4294901760, %v14364_v7 }
 0x158   : > { %11071 = vmatprep.subr.mxu0 %v14305_v60  ;;  %11107 = vmatprep.subr.mxu1 %v2435_v35  ;;  %v14381_v19 = vadd.f32 %v10604_v25, %v10560_v22  ;;  %v14383_v37 = vpop.f32.mrf.mxu0  ;;  %v2291_v52 = vand.u32 4294901760, %v2290_v33  ;;  %v2456_v50 = vand.u32 4294901760, %v2455_v45  ;;  %v2469_v22 = vsub.f32 %v14352_v43, %v14377_v51  ;;  %v2184_v45 = vld [vmem:[#allocation2 + $0x29] sm:$0xff] }
 0x159   : > { %18662 = vst [vmem:[#allocation27_spill] sm:$0xff] %v14383_v37  ;;  %11072 = vmatpush3.msra.mxu0 %v14305_v60  ;;  %11108 = vmatpush3.msra.mxu1 %v2435_v35  ;;  %v2301_v25 = vand.u32 4294901760, %v2300_v18  ;;  %v2183_v35 = vld [vmem:[#allocation2 + $0x21] sm:$0xff]  ;;  %v2463_v37 = vand.u32 4294901760, %v2462_v11  ;;  %v2476_v33 = vsub.f32 %v14364_v7, %v14389_v5  ;;  %v14405_v15 = vpop.f32.mrf.mxu1  ;;  %v2185_v11 = vld [vmem:[#allocation2 + $0x31] sm:$0xff] }
 0x15a   : > { %11073 = vmatprep.subr.mxu0 %v14320_v61  ;;  %11109 = vmatprep.subr.mxu1 %v2442_v20  ;;  %v2470_v18 = vand.u32 4294901760, %v2469_v22  ;;  %v14403_v51 = vand.u32 4294901760, %v2183_v35 }
 0x15b   : > { %11074 = vmatpush3.msra.mxu0 %v14320_v61  ;;  %11110 = vmatpush3.msra.mxu1 %v2442_v20 }
 0x15c   : > { %11075 = vmatprep.subr.mxu0 %v14333_v0  ;;  %11111 = vmatprep.subr.mxu1 %v2449_v13  ;;  %v10642_v36 = vpop.f32.mrf.mxu0 }
 0x15d   : > { %11076 = vmatpush3.msra.mxu0 %v14333_v0  ;;  %11112 = vmatpush3.msra.mxu1 %v2449_v13  ;;  %v773_v48 = vadd.f32 %v10642_v36, %v14300_v9  ;;  %v14408_v13 = vand.u32 4294901760, %v2184_v45  ;;  %v2477_v9 = vand.u32 4294901760, %v2476_v33 }
 0x15e   : > { %11077 = vmatprep.mubr.f32.mxu0 %v2291_v52  ;;  %11113 = vmatprep.subr.mxu1 %v2456_v50  ;;  %v14400_v20 = vpop.f32.mrf.mxu0 }
 0x15f   : > { %18663 = vst [vmem:[#allocation28_spill] sm:$0xff] %v14400_v20  ;;  %11133 = vmatprep.subr.mxu0 %v14139_v46  ;;  %11078 = vmatmul.mubr.f32.vlgmr.msra.gmra.mxu0 %v2301_v25  ;;  %v2186_v25 = vld [vmem:[#allocation2 + $0x39] sm:$0xff] }
 0x160   : > { %11114 = vmatpush3.msra.mxu1 %v2456_v50  ;;  %11134 = vmatpush3.msra.mxu0 %v14139_v46  ;;  %v14417_v46 = vsub.f32 %v2183_v35, %v14403_v51 }
 0x161   : > { %11115 = vmatprep.subr.mxu1 %v2463_v37  ;;  %11135 = vmatprep.subr.mxu0 %v14148_v56  ;;  %v10645_v52 = vpop.f32.mrf.mxu0  ;;  %v10683_v36 = vpop.f32.mrf.mxu1 }
 0x162   : > { %11116 = vmatpush3.msra.mxu1 %v2463_v37  ;;  %11136 = vmatpush3.msra.mxu0 %v14148_v56  ;;  %v787_v22 = vadd.f32 %v10645_v52, %v14345_v44  ;;  %v14413_v20 = vadd.f32 %v10683_v36, %v759_v38  ;;  %v14425_v56 = vsub.f32 %v2184_v45, %v14408_v13  ;;  %v14427_v37 = vand.u32 4294901760, %v2185_v11 }
 0x163   : > { %11117 = vmatprep.subr.mxu1 %v2470_v18  ;;  %11137 = vmatprep.subr.mxu0 %v14167_v40  ;;  %v14419_v50 = vpop.f32.mrf.mxu0  ;;  %v14421_v33 = vpop.f32.mrf.mxu1  ;;  %v14430_v44 = vand.u32 4294901760, %v2186_v25 }
 0x164   : > { %18664 = vst [vmem:[#allocation29_spill] sm:$0xff] %v14421_v33  ;;  %11118 = vmatpush3.msra.mxu1 %v2470_v18  ;;  %11138 = vmatpush3.msra.mxu0 %v14167_v40  ;;  %v2187_v40 = vld [vmem:[#allocation2 + $0x41] sm:$0xff]  ;;  %v18271_v18 = vand.u32 4294901760, %v14425_v56  ;;  %v14440_v52 = vsub.f32 %v2185_v11, %v14427_v37 }
 0x165   : > { %11119 = vmatprep.subr.mxu1 %v2477_v9  ;;  %11139 = vmatprep.subr.mxu0 %v14180_v32  ;;  %v14448_v38 = vsub.f32 %v2186_v25, %v14430_v44  ;;  %v14454_v11 = vand.u32 4294901760, %v2187_v40 }
 0x166   : > { %11120 = vmatpush3.msra.mxu1 %v2477_v9  ;;  %11121 = vmatprep.mubr.f32.mxu1 %v14283_v3  ;;  %v2188_v9 = vld [vmem:[#allocation2 + $0x49] sm:$0xff]  ;;  %v2320_v25 = vsub.f32 %v14425_v56, %v18271_v18 }
 0x167   : > { %11140 = vmatpush3.msra.mxu0 %v14180_v32  ;;  %11122 = vmatmul.mubr.f32.vlgmr.msra.gmra.mxu1 %v14287_v55  ;;  %v10648_v35 = vpop.f32.mrf.mxu0  ;;  %v10686_v45 = vpop.f32.mrf.mxu1 }
 0x168   : > { %11141 = vmatprep.subr.mxu0 %v14196_v34  ;;  %11177 = vmatprep.subr.mxu1 %v14126_v42  ;;  %v801_v36 = vadd.f32 %v10648_v35, %v14381_v19  ;;  %v14443_v32 = vadd.f32 %v10686_v45, %v773_v48  ;;  %v18666_v19 = vand.u32 4294901760, %v14417_v46  ;;  %v14461_v48 = vand.u32 4294901760, %v2188_v9 }
 0x169   : > { %11142 = vmatpush3.msra.mxu0 %v14196_v34  ;;  %11178 = vmatpush3.msra.mxu1 %v14126_v42  ;;  %v14450_v33 = vpop.f32.mrf.mxu1 }
 0x16a   : > { %18665 = vst [vmem:[#allocation30_spill] sm:$0xff] %v14450_v33  ;;  %11143 = vmatprep.subr.mxu0 %v14208_v54  ;;  %11179 = vmatprep.subr.mxu1 %v14132_v2  ;;  %v2310_v34 = vsub.f32 %v14417_v46, %v18666_v19  ;;  %v14475_v19 = vsub.f32 %v2187_v40, %v14454_v11  ;;  %v18667_v40 = vand.u32 4294901760, %v14440_v52 }
 0x16b   : > { %11144 = vmatpush3.msra.mxu0 %v14208_v54  ;;  %11180 = vmatpush3.msra.mxu1 %v14132_v2  ;;  %v2321_v54 = vand.u32 4294901760, %v2320_v25 }
 0x16c   : > { %11145 = vmatprep.subr.mxu0 %v14227_v29  ;;  %11181 = vmatprep.subr.mxu1 %v14145_v24  ;;  %v2311_v18 = vand.u32 4294901760, %v2310_v34  ;;  %v2349_v34 = vand.u32 4294901760, %v14475_v19 }
 0x16d   : > { %11146 = vmatpush3.msra.mxu0 %v14227_v29  ;;  %11182 = vmatpush3.msra.mxu1 %v14145_v24  ;;  %v10689_v45 = vpop.f32.mrf.mxu1  ;;  %v14482_v29 = vsub.f32 %v2188_v9, %v14461_v48 }
 0x16e   : > { %11147 = vmatprep.subr.mxu0 %v14239_v21  ;;  %11183 = vmatprep.subr.mxu1 %v14154_v12  ;;  %v14477_v33 = vadd.f32 %v10689_v45, %v787_v22  ;;  %v2330_v22 = vsub.f32 %v14440_v52, %v18667_v40 }
 0x16f   : > { %11148 = vmatpush3.msra.mxu0 %v14239_v21  ;;  %11184 = vmatpush3.msra.mxu1 %v14154_v12  ;;  %v14484_v35 = vpop.f32.mrf.mxu1  ;;  %v18668_v21 = vand.u32 4294901760, %v14448_v38  ;;  %v2359_v25 = vand.u32 4294901760, %v14482_v29 }
 0x170   : > { %11149 = vmatprep.subr.mxu0 %v14246_v58  ;;  %11185 = vmatprep.subr.mxu1 %v14173_v39 }
 0x171   : > { %11150 = vmatpush3.msra.mxu0 %v14246_v58  ;;  %11186 = vmatpush3.msra.mxu1 %v14173_v39  ;;  %v2340_v9 = vsub.f32 %v14448_v38, %v18668_v21  ;;  %v2331_v58 = vand.u32 4294901760, %v2330_v22 }
 0x172   : > { %11151 = vmatprep.subr.mxu0 %v14267_v59  ;;  %11187 = vmatprep.subr.mxu1 %v14184_v31  ;;  %v10692_v45 = vpop.f32.mrf.mxu1 }
 0x173   : > { %11080 = vmatprep.mubr.f32.mxu0 %v2311_v18  ;;  %11152 = vmatpush3.msra.mxu0 %v14267_v59  ;;  %v14501_v40 = vadd.f32 %v10692_v45, %v801_v36  ;;  %v2341_v21 = vand.u32 4294901760, %v2340_v9  ;;  %v2350_v59 = vsub.f32 %v14475_v19, %v2349_v34  ;;  %v2360_v18 = vsub.f32 %v14482_v29, %v2359_v25 }
 0x174   : > { %11188 = vmatpush3.msra.mxu1 %v14184_v31  ;;  %11081 = vmatmul.mubr.f32.gmra.mxu0 %v2321_v54  ;;  %v14524_v54 = vpop.f32.mrf.mxu0 }
 0x175   : > { %11153 = vmatprep.subr.mxu0 %v14281_v27  ;;  %11189 = vmatprep.subr.mxu1 %v14200_v26  ;;  %v2361_v36 = vand.u32 4294901760, %v2360_v18 }
 0x176   : > { %11154 = vmatpush3.msra.mxu0 %v14281_v27  ;;  %11190 = vmatpush3.msra.mxu1 %v14200_v26  ;;  %v2351_v27 = vand.u32 4294901760, %v2350_v59  ;;  %v18669_v59 = vand.u32 4294901760, %v14314_v4 }
 0x177   : > { %11155 = vmatprep.subr.mxu0 %v14298_v30  ;;  %11191 = vmatprep.subr.mxu1 %v14214_v53 }
 0x178   : > { %11083 = vmatprep.mubr.f32.mxu0 %v2331_v58  ;;  %11156 = vmatpush3.msra.mxu0 %v14298_v30 }
 0x179   : > { %11192 = vmatpush3.msra.mxu1 %v14214_v53  ;;  %11084 = vmatmul.mubr.f32.gmra.mxu0 %v2341_v21 }
 0x17a   : > { %11124 = vmatprep.mubr.f32.mxu1 %v14403_v51  ;;  %11157 = vmatprep.subr.mxu0 %v14317_v10 }
 0x17b   : > { %11193 = vmatprep.subr.mxu1 %v14218_v14  ;;  %11125 = vmatmul.mubr.f32.gmra.mxu1 %v14408_v13 }
 0x17c   : > { %11158 = vmatpush3.msra.mxu0 %v14317_v10  ;;  %11194 = vmatpush3.msra.mxu1 %v14218_v14 }
 0x17d   : > { %11159 = vmatprep.subr.mxu0 %v14336_v62  ;;  %11195 = vmatprep.subr.mxu1 %v14236_v47 }
 0x17e   : > { %11086 = vmatprep.mubr.f32.mxu0 %v2351_v27  ;;  %11160 = vmatpush3.msra.mxu0 %v14336_v62  ;;  %v10727_v30 = vpop.f32.mrf.mxu0 }
 0x17f   : > { %11196 = vmatpush3.msra.mxu1 %v14236_v47  ;;  %11087 = vmatmul.mubr.f32.gmra.mxu0 %v2361_v36  ;;  %v1071_v22 = vadd.f32 %v10727_v30, %v14413_v20 }
 0x180   : > { %11127 = vmatprep.mubr.f32.mxu1 %v14427_v37  ;;  %11161 = vmatprep.subr.mxu0 %v14352_v43  ;;  %v14533_v10 = vpop.f32.mrf.mxu0 }
 0x181   : > { %11197 = vmatprep.subr.mxu1 %v14249_v16  ;;  %11128 = vmatmul.mubr.f32.gmra.mxu1 %v14430_v44 }
 0x182   : > { %11162 = vmatpush3.msra.mxu0 %v14352_v43  ;;  %11198 = vmatpush3.msra.mxu1 %v14249_v16 }
 0x183   : > { %11163 = vmatprep.subr.mxu0 %v14364_v7  ;;  %11199 = vmatprep.subr.mxu1 %v14261_v17 }
 0x184   : > { %11164 = vmatpush3.msra.mxu0 %v14364_v7  ;;  %11165 = vmatprep.mubr.f32.mxu0 %v14314_v4  ;;  %v10730_v62 = vpop.f32.mrf.mxu0  ;;  %v14552_v7 = vpop.f32.mrf.mxu1 }
 0x185   : > { %11200 = vmatpush3.msra.mxu1 %v14261_v17  ;;  %11130 = vmatprep.mubr.f32.mxu1 %v14454_v11  ;;  %v1083_v20 = vadd.f32 %v10730_v62, %v14443_v32 }
 0x186   : > { %11166 = vmatmul.mubr.f32.vlgmr.msra.gmra.mxu0 %v14323_v63  ;;  %11201 = vmatprep.subr.mxu1 %v14278_v28  ;;  %v14548_v43 = vpop.f32.mrf.mxu0 }
 0x187   : > { %11221 = vmatprep.subr.mxu0 %v14157_v49  ;;  %11131 = vmatmul.mubr.f32.gmra.mxu1 %v14461_v48 }
 0x188   : > { %11202 = vmatpush3.msra.mxu1 %v14278_v28  ;;  %11222 = vmatpush3.msra.mxu0 %v14157_v49 }
 0x189   : > { %11203 = vmatprep.subr.mxu1 %v14305_v60  ;;  %11223 = vmatprep.subr.mxu0 %v14164_v23  ;;  %v10733_v32 = vpop.f32.mrf.mxu0  ;;  %v10771_v9 = vpop.f32.mrf.mxu1 }
 0x18a   : > { %11168 = vmatprep.mubr.f32.mxu0 %v14417_v46  ;;  %11204 = vmatpush3.msra.mxu1 %v14305_v60  ;;  %v1095_v45 = vadd.f32 %v10733_v32, %v14477_v33  ;;  %v14561_v58 = vadd.f32 %v10771_v9, %v1071_v22 }
 0x18b   : > { %11224 = vmatpush3.msra.mxu0 %v14164_v23  ;;  %11205 = vmatprep.subr.mxu1 %v14320_v61  ;;  %v14565_v21 = vpop.f32.mrf.mxu0  ;;  %v14567_v49 = vpop.f32.mrf.mxu1 }
 0x18c   : > { %11169 = vmatmul.mubr.f32.gmra.mxu0 %v14425_v56  ;;  %11225 = vmatprep.subr.mxu0 %v14191_v1 }
 0x18d   : > { %11206 = vmatpush3.msra.mxu1 %v14320_v61  ;;  %11226 = vmatpush3.msra.mxu0 %v14191_v1  ;;  %v18670_v1 = vand.u32 4294901760, %v14323_v63 }
 0x18e   : > { %11207 = vmatprep.subr.mxu1 %v14333_v0  ;;  %11227 = vmatprep.subr.mxu0 %v14203_v57 }
 0x18f   : > { %11171 = vmatprep.mubr.f32.mxu0 %v14440_v52  ;;  %11208 = vmatpush3.msra.mxu1 %v14333_v0  ;;  %v10736_v23 = vpop.f32.mrf.mxu0  ;;  %v10774_v33 = vpop.f32.mrf.mxu1 }
 0x190   : > { %11209 = vmatprep.mubr.f32.mxu1 %v18669_v59  ;;  %11228 = vmatpush3.msra.mxu0 %v14203_v57  ;;  %v1107_v18 = vadd.f32 %v10736_v23, %v14501_v40  ;;  %v14581_v27 = vadd.f32 %v10774_v33, %v1083_v20  ;;  %v18671_v57 = vand.u32 4294901760, %v14417_v46  ;;  %v18674_v46 = vand.u32 4294901760, %v14440_v52  ;;  %v18675_v40 = vld [vmem:[#allocation13_spill] sm:$0xff]  ;;  %v3249_v59 = vld [vmem:[#allocation6 + $0x260] sm:$0xff] }
 0x191   : > { %11172 = vmatmul.mubr.f32.gmra.mxu0 %v14448_v38  ;;  %11210 = vmatmul.mubr.f32.vlgmr.msra.gmra.mxu1 %v18670_v1  ;;  %v14586_v36 = vpop.f32.mrf.mxu1 }
 0x192   : > { %11229 = vmatprep.subr.mxu0 %v14221_v6  ;;  %11265 = vmatprep.subr.mxu1 %v14126_v42 }
 0x193   : > { %11230 = vmatpush3.msra.mxu0 %v14221_v6  ;;  %11266 = vmatpush3.msra.mxu1 %v14126_v42  ;;  %v18672_v42 = vand.u32 4294901760, %v14425_v56 }
 0x194   : > { %11231 = vmatprep.subr.mxu0 %v14233_v41  ;;  %11267 = vmatprep.subr.mxu1 %v14132_v2 }
 0x195   : > { %11174 = vmatprep.mubr.f32.mxu0 %v14475_v19  ;;  %11212 = vmatprep.mubr.f32.mxu1 %v18671_v57  ;;  %v10777_v63 = vpop.f32.mrf.mxu1  ;;  %v18681_v19 = vld [vmem:[#allocation25_spill] sm:$0xff]  ;;  %v14735_v57 = vand.u32 4294901760, %v3249_v59 }
 0x196   : > { %11232 = vmatpush3.msra.mxu0 %v14233_v41  ;;  %11268 = vmatpush3.msra.mxu1 %v14132_v2  ;;  %v14599_v4 = vadd.f32 %v10777_v63, %v1095_v45  ;;  %v18673_v41 = vld [vmem:[#allocation12_spill] sm:$0xff]  ;;  %v3252_v45 = vld [vmem:[#allocation6 + $0x278] sm:$0xff] }
 0x197   : > { %11175 = vmatmul.mubr.f32.gmra.mxu0 %v14482_v29  ;;  %11213 = vmatmul.mubr.f32.gmra.mxu1 %v18672_v42  ;;  %v14604_v6 = vpop.f32.mrf.mxu1  ;;  %18691 = vst [vmem:[#allocation31_spill] sm:$0xff] %v14735_v57  ;;  %v3248_v63 = vld [vmem:[#allocation6 + $0x258] sm:$0xff] }
 0x198   : > { %11233 = vmatprep.subr.mxu0 %v14252_v8  ;;  %11269 = vmatprep.subr.mxu1 %v14145_v24 }
 0x199   : > { %11234 = vmatpush3.msra.mxu0 %v14252_v8  ;;  %11270 = vmatpush3.msra.mxu1 %v14145_v24  ;;  %v18676_v8 = vand.u32 4294901760, %v14448_v38  ;;  %v18677_v24 = vld [vmem:[#allocation16_spill] sm:$0xff]  ;;  %v14638_v38 = vpop.f32.mrf.mxu0 }
 0x19a   : > { %11235 = vmatprep.subr.mxu0 %v18673_v41  ;;  %11271 = vmatprep.subr.mxu1 %v14154_v12  ;;  %v10780_v2 = vpop.f32.mrf.mxu1 }
 0x19b   : > { %11215 = vmatprep.mubr.f32.mxu1 %v18674_v46  ;;  %11236 = vmatpush3.msra.mxu0 %v18673_v41  ;;  %v14615_v56 = vadd.f32 %v10780_v2, %v1107_v18  ;;  %v14745_v2 = vsub.f32 %v3249_v59, %v14735_v57  ;;  %v14748_v46 = vand.u32 4294901760, %v3248_v63 }
 0x19c   : > { %11272 = vmatpush3.msra.mxu1 %v14154_v12  ;;  %11237 = vmatprep.subr.mxu0 %v18675_v40  ;;  %v18678_v12 = vld [vmem:[#allocation18_spill] sm:$0xff] }
 0x19d   : > { %11216 = vmatmul.mubr.f32.gmra.mxu1 %v18676_v8  ;;  %11273 = vmatprep.subr.mxu1 %v14173_v39  ;;  %18693 = vst [vmem:[#allocation33_spill] sm:$0xff] %v14745_v2  ;;  %18694 = vst [vmem:[#allocation34_spill] sm:$0xff] %v14748_v46 }
 0x19e   : > { %11238 = vmatpush3.msra.mxu0 %v18675_v40  ;;  %11274 = vmatpush3.msra.mxu1 %v14173_v39  ;;  %v18679_v39 = vld [vmem:[#allocation19_spill] sm:$0xff] }
 0x19f   : > { %11239 = vmatprep.subr.mxu0 %v18677_v24  ;;  %11275 = vmatprep.subr.mxu1 %v14184_v31 }
 0x1a0   : > { %11218 = vmatprep.mubr.f32.mxu1 %v2349_v34  ;;  %11240 = vmatpush3.msra.mxu0 %v18677_v24  ;;  %v14754_v24 = vand.u32 4294901760, %v14745_v2 }
 0x1a1   : > { %11276 = vmatpush3.msra.mxu1 %v14184_v31  ;;  %11241 = vmatprep.subr.mxu0 %v18678_v12  ;;  %v18680_v31 = vld [vmem:[#allocation20_spill] sm:$0xff] }
 0x1a2   : > { %11219 = vmatmul.mubr.f32.gmra.mxu1 %v2359_v25  ;;  %11277 = vmatprep.subr.mxu1 %v14200_v26  ;;  %18695 = vst [vmem:[#allocation35_spill] sm:$0xff] %v14754_v24 }
 0x1a3   : > { %11242 = vmatpush3.msra.mxu0 %v18678_v12  ;;  %11278 = vmatpush3.msra.mxu1 %v14200_v26 }
 0x1a4   : > { %11243 = vmatprep.subr.mxu0 %v18679_v39  ;;  %11279 = vmatprep.subr.mxu1 %v14214_v53 }
 0x1a5   : > { %11244 = vmatpush3.msra.mxu0 %v18679_v39  ;;  %11280 = vmatpush3.msra.mxu1 %v14214_v53  ;;  %v18682_v53 = vld [vmem:[#allocation26_spill] sm:$0xff]  ;;  %v14759_v39 = vsub.f32 %v3248_v63, %v14748_v46 }
 0x1a6   : > { %11245 = vmatprep.subr.mxu0 %v18680_v31  ;;  %11281 = vmatprep.subr.mxu1 %v14218_v14  ;;  %v10815_v52 = vpop.f32.mrf.mxu0 }
 0x1a7   : > { %11246 = vmatpush3.msra.mxu0 %v18680_v31  ;;  %11282 = vmatpush3.msra.mxu1 %v14218_v14  ;;  %v1337_v26 = vadd.f32 %v10815_v52, %v14561_v58  ;;  %v14708_v58 = vand.u32 4294901760, %v3252_v45  ;;  %18697 = vst [vmem:[#allocation37_spill] sm:$0xff] %v14759_v39  ;;  %v3246_v31 = vld [vmem:[#allocation6 + $0x248] sm:$0xff] }
 0x1a8   : > { %11247 = vmatprep.subr.mxu0 %v18681_v19  ;;  %11283 = vmatprep.subr.mxu1 %v14236_v47  ;;  %v14649_v29 = vpop.f32.mrf.mxu0 }
 0x1a9   : > { %11248 = vmatpush3.msra.mxu0 %v18681_v19  ;;  %11284 = vmatpush3.msra.mxu1 %v14236_v47  ;;  %18683 = vst [vmem:[#allocation12_spill] sm:$0xff] %v14708_v58 }
 0x1aa   : > { %11249 = vmatprep.subr.mxu0 %v18682_v53  ;;  %11285 = vmatprep.subr.mxu1 %v14249_v16 }
 0x1ab   : > { %11250 = vmatpush3.msra.mxu0 %v18682_v53  ;;  %11286 = vmatpush3.msra.mxu1 %v14249_v16  ;;  %v14668_v16 = vpop.f32.mrf.mxu1  ;;  %v14767_v53 = vand.u32 4294901760, %v3246_v31 }
 0x1ac   : > { %11251 = vmatprep.subr.mxu0 %v14389_v5  ;;  %11287 = vmatprep.subr.mxu1 %v14261_v17  ;;  %v10818_v14 = vpop.f32.mrf.mxu0 }
 0x1ad   : > { %11252 = vmatpush3.msra.mxu0 %v14389_v5  ;;  %11253 = vmatprep.mubr.f32.mxu0 %v14283_v3  ;;  %v1357_v34 = vadd.f32 %v10818_v14, %v14581_v27  ;;  %18699 = vst [vmem:[#allocation39_spill] sm:$0xff] %v14767_v53  ;;  %v14771_v14 = vand.u32 4294901760, %v14759_v39 }
 0x1ae   : > { %11288 = vmatpush3.msra.mxu1 %v14261_v17  ;;  %11254 = vmatmul.mubr.f32.vlgmr.msra.gmra.mxu0 %v14287_v55  ;;  %v14664_v47 = vpop.f32.mrf.mxu0 }
 0x1af   : > { %11289 = vmatprep.subr.mxu1 %v14278_v28  ;;  %11256 = vmatprep.mubr.f32.mxu0 %v14403_v51  ;;  %18700 = vst [vmem:[#allocation40_spill] sm:$0xff] %v14771_v14 }
 0x1b0   : > { %11290 = vmatpush3.msra.mxu1 %v14278_v28  ;;  %11297 = vmatprep.mubr.f32.mxu1 %v14283_v3 }
 0x1b1   : > { %11291 = vmatprep.subr.mxu1 %v14305_v60  ;;  %v10821_v5 = vpop.f32.mrf.mxu0  ;;  %v10859_v25 = vpop.f32.mrf.mxu1  ;;  %11309 = vmatprep.subr.mxu0 %v14708_v58 }
 0x1b2   : > { %11292 = vmatpush3.msra.mxu1 %v14305_v60  ;;  %11257 = vmatmul.mubr.f32.gmra.mxu0 %v14408_v13  ;;  %v1377_v17 = vadd.f32 %v10821_v5, %v14599_v4  ;;  %v14676_v30 = vadd.f32 %v10859_v25, %v1337_v26  ;;  %v3439_v26 = vsub.f32 %v14745_v2, %v14754_v24  ;;  %v3238_v24 = vld [vmem:[#allocation6 + $0x208] sm:$0xff] }
 0x1b3   : > { %11293 = vmatprep.subr.mxu1 %v14320_v61  ;;  %11259 = vmatprep.mubr.f32.mxu0 %v14427_v37  ;;  %v14680_v22 = vpop.f32.mrf.mxu0  ;;  %v14682_v28 = vpop.f32.mrf.mxu1 }
 0x1b4   : > { %11294 = vmatpush3.msra.mxu1 %v14320_v61  ;;  %11310 = vmatpush3.msra.mxu0 %v14708_v58  ;;  %v3440_v5 = vand.u32 4294901760, %v3439_v26 }
 0x1b5   : > { %11295 = vmatprep.subr.mxu1 %v14333_v0 }
 0x1b6   : > { %11296 = vmatpush3.msra.mxu1 %v14333_v0  ;;  %11260 = vmatmul.mubr.f32.gmra.mxu0 %v14430_v44 }
 0x1b7   : > { %11298 = vmatmul.mubr.f32.vlgmr.msra.gmra.mxu1 %v14287_v55  ;;  %11262 = vmatprep.mubr.f32.mxu0 %v14454_v11  ;;  %v10824_v3 = vpop.f32.mrf.mxu0  ;;  %v10862_v60 = vpop.f32.mrf.mxu1 }
 0x1b8   : > { %11300 = vmatprep.mubr.f32.mxu1 %v14403_v51  ;;  %v1397_v62 = vadd.f32 %v10824_v3, %v14615_v56  ;;  %v14692_v20 = vadd.f32 %v10862_v60, %v1357_v34  ;;  %v3247_v56 = vld [vmem:[#allocation6 + $0x250] sm:$0xff]  ;;  %v3245_v34 = vld [vmem:[#allocation6 + $0x240] sm:$0xff]  ;;  %v3446_v60 = vsub.f32 %v14759_v39, %v14771_v14 }
 0x1b9   : > { %v14694_v32 = vpop.f32.mrf.mxu1  ;;  %v14756_v12 = vand.u32 4294901760, %v3247_v56  ;;  %v14780_v3 = vand.u32 4294901760, %v3245_v34 }
 0x1ba   : > { %11263 = vmatmul.mubr.f32.gmra.mxu0 %v14461_v48 }
 0x1bb   : > { %11301 = vmatmul.mubr.f32.gmra.mxu1 %v14408_v13  ;;  %v3251_v13 = vld [vmem:[#allocation6 + $0x270] sm:$0xff]  ;;  %18696 = vst [vmem:[#allocation36_spill] sm:$0xff] %v14756_v12  ;;  %v14765_v19 = vsub.f32 %v3247_v56, %v14756_v12  ;;  %18703 = vst [vmem:[#allocation43_spill] sm:$0xff] %v14780_v3 }
 0x1bc   : > { %11303 = vmatprep.mubr.f32.mxu1 %v14427_v37  ;;  %v14711_v37 = vsub.f32 %v3252_v45, %v14708_v58  ;;  %v14713_v23 = vand.u32 4294901760, %v3251_v13  ;;  %v3244_v45 = vld [vmem:[#allocation6 + $0x238] sm:$0xff] }
 0x1bd   : > { %v10865_v0 = vpop.f32.mrf.mxu1  ;;  %18698 = vst [vmem:[#allocation38_spill] sm:$0xff] %v14765_v19  ;;  %v14775_v25 = vand.u32 4294901760, %v14765_v19 }
 0x1be   : > { %v14699_v55 = vadd.f32 %v10865_v0, %v1377_v17  ;;  %18684 = vst [vmem:[#allocation13_spill] sm:$0xff] %v14711_v37  ;;  %18685 = vst [vmem:[#allocation16_spill] sm:$0xff] %v14713_v23  ;;  %11311 = vmatprep.subr.mxu0 %v14713_v23  ;;  %v14778_v17 = vsub.f32 %v3246_v31, %v14767_v53  ;;  %v3242_v31 = vld [vmem:[#allocation6 + $0x228] sm:$0xff] }
 0x1bf   : > { %11304 = vmatmul.mubr.f32.gmra.mxu1 %v14430_v44  ;;  %v14702_v61 = vpop.f32.mrf.mxu1  ;;  %v3250_v44 = vld [vmem:[#allocation6 + $0x268] sm:$0xff]  ;;  %11312 = vmatpush3.msra.mxu0 %v14713_v23  ;;  %18701 = vst [vmem:[#allocation41_spill] sm:$0xff] %v14775_v25 }
 0x1c0   : > { %11306 = vmatprep.mubr.f32.mxu1 %v14454_v11  ;;  %v14718_v11 = vand.u32 4294901760, %v14711_v37  ;;  %v14723_v33 = vand.u32 4294901760, %v3250_v44  ;;  %18702 = vst [vmem:[#allocation42_spill] sm:$0xff] %v14778_v17  ;;  %v14789_v0 = vand.u32 4294901760, %v14778_v17 }
 0x1c2   : > { %v10868_v51 = vpop.f32.mrf.mxu1  ;;  %18686 = vst [vmem:[#allocation18_spill] sm:$0xff] %v14718_v11  ;;  %18688 = vst [vmem:[#allocation20_spill] sm:$0xff] %v14723_v33  ;;  %v3418_v18 = vsub.f32 %v14711_v37, %v14718_v11  ;;  %v14733_v1 = vsub.f32 %v3250_v44, %v14723_v33  ;;  %11313 = vmatprep.subr.mxu0 %v14723_v33  ;;  %v14795_v44 = vand.u32 4294901760, %v3244_v45 }
 0x1c3   : > { %11307 = vmatmul.mubr.f32.gmra.mxu1 %v14461_v48  ;;  %v14706_v9 = vadd.f32 %v10868_v51, %v1397_v62  ;;  %v14721_v48 = vsub.f32 %v3251_v13, %v14713_v23  ;;  %11314 = vmatpush3.msra.mxu0 %v14723_v33  ;;  %v3453_v62 = vsub.f32 %v14765_v19, %v14775_v25  ;;  %v3447_v13 = vand.u32 4294901760, %v3446_v60  ;;  %v3241_v60 = vld [vmem:[#allocation6 + $0x220] sm:$0xff] }
 0x1c4   : > { %18690 = vst [vmem:[#allocation26_spill] sm:$0xff] %v14733_v1  ;;  %v3419_v4 = vand.u32 4294901760, %v3418_v18  ;;  %v14742_v41 = vand.u32 4294901760, %v14733_v1  ;;  %11315 = vmatprep.subr.mxu0 %v14735_v57  ;;  %18704 = vst [vmem:[#allocation44_spill] sm:$0xff] %v14789_v0  ;;  %v14792_v51 = vsub.f32 %v3245_v34, %v14780_v3  ;;  %v3460_v18 = vsub.f32 %v14778_v17, %v14789_v0  ;;  %v3239_v0 = vld [vmem:[#allocation6 + $0x210] sm:$0xff] }
 0x1c5   : > { %18687 = vst [vmem:[#allocation19_spill] sm:$0xff] %v14721_v48  ;;  %v14730_v27 = vand.u32 4294901760, %v14721_v48  ;;  %11316 = vmatpush3.msra.mxu0 %v14735_v57  ;;  %18706 = vst [vmem:[#allocation46_spill] sm:$0xff] %v14795_v44  ;;  %v3454_v59 = vand.u32 4294901760, %v3453_v62  ;;  %v14819_v34 = vand.u32 4294901760, %v3242_v31 }
 0x1c6   : > { %18692 = vst [vmem:[#allocation32_spill] sm:$0xff] %v14742_v41  ;;  %11353 = vmatprep.subr.mxu1 %v3419_v4  ;;  %v3432_v8 = vsub.f32 %v14733_v1, %v14742_v41  ;;  %11317 = vmatprep.subr.mxu0 %v14748_v46  ;;  %18705 = vst [vmem:[#allocation45_spill] sm:$0xff] %v14792_v51  ;;  %v14801_v63 = vand.u32 4294901760, %v14792_v51 }
 0x1c7   : > { %18689 = vst [vmem:[#allocation25_spill] sm:$0xff] %v14730_v27  ;;  %v3425_v42 = vsub.f32 %v14721_v48, %v14730_v27  ;;  %11354 = vmatpush3.msra.mxu1 %v3419_v4  ;;  %11318 = vmatpush3.msra.mxu0 %v14748_v46  ;;  %v3243_v4 = vld [vmem:[#allocation6 + $0x230] sm:$0xff]  ;;  %18712 = vst [vmem:[#allocation52_spill] sm:$0xff] %v14819_v34 }
 0x1c8   : > { %v3433_v52 = vand.u32 4294901760, %v3432_v8  ;;  %11319 = vmatprep.subr.mxu0 %v14756_v12  ;;  %18707 = vst [vmem:[#allocation47_spill] sm:$0xff] %v14801_v63  ;;  %v14807_v56 = vand.u32 4294901760, %v3243_v4  ;;  %v3467_v8 = vsub.f32 %v14792_v51, %v14801_v63 }
 0x1c9   : > { %v3426_v40 = vand.u32 4294901760, %v3425_v42  ;;  %11320 = vmatpush3.msra.mxu0 %v14756_v12  ;;  %v14805_v42 = vsub.f32 %v3244_v45, %v14795_v44 }
 0x1ca   : > { %11321 = vmatprep.subr.mxu0 %v14767_v53  ;;  %18709 = vst [vmem:[#allocation49_spill] sm:$0xff] %v14807_v56  ;;  %v14817_v26 = vsub.f32 %v3243_v4, %v14807_v56  ;;  %v14835_v4 = vpop.f32.mrf.mxu0 }
 0x1cb   : > { %11355 = vmatprep.subr.mxu1 %v3426_v40  ;;  %11322 = vmatpush3.msra.mxu0 %v14767_v53  ;;  %18708 = vst [vmem:[#allocation48_spill] sm:$0xff] %v14805_v42 }
 0x1cc   : > { %11356 = vmatpush3.msra.mxu1 %v3426_v40  ;;  %11323 = vmatprep.subr.mxu0 %v14780_v3  ;;  %v3461_v40 = vand.u32 4294901760, %v3460_v18  ;;  %18711 = vst [vmem:[#allocation51_spill] sm:$0xff] %v14817_v26  ;;  %v14826_v45 = vand.u32 4294901760, %v14817_v26  ;;  %v14831_v18 = vand.u32 4294901760, %v3241_v60 }
 0x1cd   : > { %11357 = vmatprep.subr.mxu1 %v3433_v52  ;;  %11324 = vmatpush3.msra.mxu0 %v14780_v3 }
 0x1ce   : > { %11358 = vmatpush3.msra.mxu1 %v3433_v52  ;;  %11325 = vmatprep.subr.mxu0 %v14795_v44  ;;  %v14814_v52 = vand.u32 4294901760, %v14805_v42  ;;  %18713 = vst [vmem:[#allocation53_spill] sm:$0xff] %v14826_v45  ;;  %18715 = vst [vmem:[#allocation55_spill] sm:$0xff] %v14831_v18  ;;  %v14849_v25 = vpop.f32.mrf.mxu0 }
 0x1cf   : > { %11359 = vmatprep.subr.mxu1 %v3440_v5  ;;  %11326 = vmatpush3.msra.mxu0 %v14795_v44 }
 0x1d0   : > { %11360 = vmatpush3.msra.mxu1 %v3440_v5  ;;  %18710 = vst [vmem:[#allocation50_spill] sm:$0xff] %v14814_v52  ;;  %11327 = vmatprep.subr.mxu0 %v14807_v56  ;;  %v3468_v5 = vand.u32 4294901760, %v3467_v8  ;;  %v3474_v62 = vsub.f32 %v14805_v42, %v14814_v52  ;;  %v3481_v52 = vsub.f32 %v14817_v26, %v14826_v45  ;;  %v14874_v11 = vpop.f32.mrf.mxu0 }
 0x1d1   : > { %11361 = vmatprep.subr.mxu1 %v3447_v13  ;;  %11328 = vmatpush3.msra.mxu0 %v14807_v56 }
 0x1d2   : > { %11362 = vmatpush3.msra.mxu1 %v3447_v13  ;;  %v14829_v13 = vsub.f32 %v3242_v31, %v14819_v34  ;;  %11329 = vmatprep.subr.mxu0 %v14819_v34  ;;  %v3475_v8 = vand.u32 4294901760, %v3474_v62  ;;  %v14843_v31 = vsub.f32 %v3241_v60, %v14831_v18  ;;  %v3482_v62 = vand.u32 4294901760, %v3481_v52 }
 0x1d3   : > { %11363 = vmatprep.subr.mxu1 %v3454_v59  ;;  %11330 = vmatpush3.msra.mxu0 %v14819_v34  ;;  %v14856_v60 = vand.u32 4294901760, %v3239_v0 }
 0x1d4   : > { %11364 = vmatpush3.msra.mxu1 %v3454_v59  ;;  %18714 = vst [vmem:[#allocation54_spill] sm:$0xff] %v14829_v13  ;;  %v3240_v59 = vld [vmem:[#allocation6 + $0x218] sm:$0xff]  ;;  %v14840_v63 = vand.u32 4294901760, %v14829_v13  ;;  %18717 = vst [vmem:[#allocation57_spill] sm:$0xff] %v14843_v31  ;;  %11331 = vmatprep.subr.mxu0 %v14831_v18  ;;  %v14854_v14 = vand.u32 4294901760, %v14843_v31 }
 0x1d5   : > { %11365 = vmatprep.subr.mxu1 %v3461_v40  ;;  %11332 = vmatpush3.msra.mxu0 %v14831_v18  ;;  %18720 = vst [vmem:[#allocation60_spill] sm:$0xff] %v14856_v60  ;;  %v14865_v27 = vsub.f32 %v3239_v0, %v14856_v60 }
 0x1d6   : > { %11366 = vmatpush3.msra.mxu1 %v3461_v40  ;;  %18716 = vst [vmem:[#allocation56_spill] sm:$0xff] %v14840_v63  ;;  %v14846_v40 = vand.u32 4294901760, %v3240_v59  ;;  %v3488_v45 = vsub.f32 %v14829_v13, %v14840_v63  ;;  %18719 = vst [vmem:[#allocation59_spill] sm:$0xff] %v14854_v14  ;;  %v3495_v52 = vsub.f32 %v14843_v31, %v14854_v14  ;;  %v14867_v63 = vand.u32 4294901760, %v3238_v24 }
 0x1d7   : > { %11367 = vmatprep.subr.mxu1 %v3468_v5  ;;  %18722 = vst [vmem:[#allocation62_spill] sm:$0xff] %v14865_v27  ;;  %v14877_v14 = vand.u32 4294901760, %v14865_v27 }
 0x1d8   : > { %11368 = vmatpush3.msra.mxu1 %v3468_v5  ;;  %18718 = vst [vmem:[#allocation58_spill] sm:$0xff] %v14846_v40  ;;  %v14859_v5 = vsub.f32 %v3240_v59, %v14846_v40  ;;  %11333 = vmatprep.subr.mxu0 %v14846_v40  ;;  %v3489_v41 = vand.u32 4294901760, %v3488_v45  ;;  %18723 = vst [vmem:[#allocation63_spill] sm:$0xff] %v14867_v63  ;;  %v3237_v59 = vld [vmem:[#allocation6 + $0x200] sm:$0xff]  ;;  %v3496_v45 = vand.u32 4294901760, %v3495_v52 }
 0x1d9   : > { %11369 = vmatprep.subr.mxu1 %v3475_v8  ;;  %11334 = vmatpush3.msra.mxu0 %v14846_v40  ;;  %18725 = vst [vmem:[#allocation65_spill] sm:$0xff] %v14877_v14  ;;  %v14880_v0 = vsub.f32 %v3238_v24, %v14867_v63  ;;  %v14882_v31 = vand.u32 4294901760, %v3237_v59  ;;  %v3509_v52 = vsub.f32 %v14865_v27, %v14877_v14  ;;  %v14906_v27 = vpop.f32.mrf.mxu1 }
 0x1da   : > { %11370 = vmatpush3.msra.mxu1 %v3475_v8  ;;  %18721 = vst [vmem:[#allocation61_spill] sm:$0xff] %v14859_v5  ;;  %v14871_v8 = vand.u32 4294901760, %v14859_v5  ;;  %11335 = vmatprep.subr.mxu0 %v14856_v60 }
 0x1db   : > { %11371 = vmatprep.subr.mxu1 %v3482_v62  ;;  %18726 = vst [vmem:[#allocation66_spill] sm:$0xff] %v14880_v0  ;;  %18727 = vst [vmem:[#allocation67_spill] sm:$0xff] %v14882_v31  ;;  %11336 = vmatpush3.msra.mxu0 %v14856_v60  ;;  %v14891_v13 = vand.u32 4294901760, %v14880_v0  ;;  %v14894_v24 = vsub.f32 %v3237_v59, %v14882_v31 }
 0x1dc   : > { %11372 = vmatpush3.msra.mxu1 %v3482_v62  ;;  %18724 = vst [vmem:[#allocation64_spill] sm:$0xff] %v14871_v8  ;;  %v3502_v62 = vsub.f32 %v14859_v5, %v14871_v8  ;;  %11337 = vmatprep.subr.mxu0 %v14867_v63  ;;  %v3510_v8 = vand.u32 4294901760, %v3509_v52 }
 0x1dd   : > { %11373 = vmatprep.subr.mxu1 %v3489_v41  ;;  %18728 = vst [vmem:[#allocation68_spill] sm:$0xff] %v14891_v13  ;;  %18729 = vst [vmem:[#allocation69_spill] sm:$0xff] %v14894_v24  ;;  %11338 = vmatpush3.msra.mxu0 %v14867_v63  ;;  %v3516_v5 = vsub.f32 %v14880_v0, %v14891_v13  ;;  %v14903_v14 = vand.u32 4294901760, %v14894_v24 }
 0x1de   : > { %11374 = vmatpush3.msra.mxu1 %v3489_v41  ;;  %v3503_v60 = vand.u32 4294901760, %v3502_v62  ;;  %11339 = vmatprep.subr.mxu0 %v14882_v31  ;;  %v14898_v41 = vpop.f32.mrf.mxu0  ;;  %v14911_v62 = vpop.f32.mrf.mxu1 }
 0x1df   : > { %11375 = vmatprep.subr.mxu1 %v3496_v45  ;;  %18730 = vst [vmem:[#allocation70_spill] sm:$0xff] %v14903_v14  ;;  %11340 = vmatpush3.msra.mxu0 %v14882_v31  ;;  %v3517_v59 = vand.u32 4294901760, %v3516_v5 }
 0x1e0   : > { %11376 = vmatpush3.msra.mxu1 %v3496_v45  ;;  %11397 = vmatprep.subr.mxu0 %v14711_v37  ;;  %v3523_v45 = vsub.f32 %v14894_v24, %v14903_v14  ;;  %v14913_v52 = vpop.f32.mrf.mxu0  ;;  %v14915_v0 = vpop.f32.mrf.mxu1 }
 0x1e1   : > { %11377 = vmatprep.subr.mxu1 %v3503_v60 }
 0x1e2   : > { %11378 = vmatpush3.msra.mxu1 %v3503_v60  ;;  %v3524_v13 = vand.u32 4294901760, %v3523_v45  ;;  %v14917_v31 = vpop.f32.mrf.mxu0  ;;  %v14920_v60 = vpop.f32.mrf.mxu1 }
 0x1e3   : > { %11379 = vmatprep.subr.mxu1 %v3510_v8 }
 0x1e4   : > { %11380 = vmatpush3.msra.mxu1 %v3510_v8  ;;  %v14922_v5 = vpop.f32.mrf.mxu0  ;;  %v14924_v14 = vpop.f32.mrf.mxu1 }
 0x1e5   : > { %11381 = vmatprep.subr.mxu1 %v3517_v59 }
 0x1e6   : > { %11382 = vmatpush3.msra.mxu1 %v3517_v59  ;;  %v14926_v24 = vpop.f32.mrf.mxu0  ;;  %v14928_v8 = vpop.f32.mrf.mxu1 }
 0x1e7   : > { %11383 = vmatprep.subr.mxu1 %v3524_v13 }
 0x1e8   : > { %11384 = vmatpush3.msra.mxu1 %v3524_v13  ;;  %v14930_v45 = vpop.f32.mrf.mxu0  ;;  %v14934_v63 = vpop.f32.mrf.mxu1 }
 0x1e9   : > { %11441 = vmatprep.subr.mxu1 %v14708_v58 }
 0x1ea   : > { %v14938_v13 = vpop.f32.mrf.mxu1 }
 0x1ec   : > { %v14942_v42 = vpop.f32.mrf.mxu1 }
 0x1f6   : > { %v14932_v59 = vpop.f32.mrf.mxu0 }
 0x1f8   : > { %v14936_v26 = vpop.f32.mrf.mxu0 }
 0x1fc   : > { %v14940_v40 = vpop.f32.mrf.mxu0 }
 0x1fd   : > { %18731 = vst [vmem:[#allocation71_spill] sm:$0xff] %v14940_v40 }
 0x1fe   : > { %v14946_v51 = vpop.f32.mrf.mxu0 }
 0x1ff   : > { %18733 = vst [vmem:[#allocation73_spill] sm:$0xff] %v14946_v51 }
 0x201   : > { %v14944_v18 = vpop.f32.mrf.mxu1  ;;  %v14950_v17 = vpop.f32.mrf.mxu0 }
 0x202   : > { %18732 = vst [vmem:[#allocation72_spill] sm:$0xff] %v14944_v18  ;;  %18735 = vst [vmem:[#allocation75_spill] sm:$0xff] %v14950_v17 }
 0x203   : > { %v14948_v34 = vpop.f32.mrf.mxu1  ;;  %v14954_v19 = vpop.f32.mrf.mxu0 }
 0x204   : > { %18734 = vst [vmem:[#allocation74_spill] sm:$0xff] %v14948_v34  ;;  %18737 = vst [vmem:[#allocation77_spill] sm:$0xff] %v14954_v19  ;;  %v18768_v19 = vld [vmem:[#allocation17_spill] sm:$0xff] }
 0x207   : > { %v14952_v56 = vpop.f32.mrf.mxu1  ;;  %v14958_v39 = vpop.f32.mrf.mxu0 }
 0x208   : > { %18736 = vst [vmem:[#allocation76_spill] sm:$0xff] %v14952_v56  ;;  %18739 = vst [vmem:[#allocation79_spill] sm:$0xff] %v14958_v39 }
 0x209   : > { %v14956_v44 = vpop.f32.mrf.mxu1  ;;  %v14962_v2 = vpop.f32.mrf.mxu0 }
 0x20a   : > { %18738 = vst [vmem:[#allocation78_spill] sm:$0xff] %v14956_v44  ;;  %18741 = vst [vmem:[#allocation81_spill] sm:$0xff] %v14962_v2 }
 0x20d   : > { %v14960_v3 = vpop.f32.mrf.mxu1 }
 0x20e   : > { %18740 = vst [vmem:[#allocation80_spill] sm:$0xff] %v14960_v3 }
 0x20f   : > { %v14966_v1 = vpop.f32.mrf.mxu1 }
 0x210   : > { %18742 = vst [vmem:[#allocation82_spill] sm:$0xff] %v14966_v1 }
 0x212   : > { %v14970_v12 = vpop.f32.mrf.mxu1 }
 0x213   : > { %18744 = vst [vmem:[#allocation84_spill] sm:$0xff] %v14970_v12 }
 0x214   : > { %v14974_v46 = vpop.f32.mrf.mxu1 }
 0x215   : > { %18746 = vst [vmem:[#allocation86_spill] sm:$0xff] %v14974_v46 }
 0x21f   : > { %v14964_v53 = vpop.f32.mrf.mxu0 }
 0x221   : > { %v14968_v48 = vpop.f32.mrf.mxu0 }
 0x222   : > { %18743 = vst [vmem:[#allocation83_spill] sm:$0xff] %v14968_v48 }
 0x227   : > { %v14978_v33 = vpop.f32.mrf.mxu1 }
 0x229   : > { %v14982_v58 = vpop.f32.mrf.mxu1 }
 0x22a   : > { %18749 = vst [vmem:[#allocation89_spill] sm:$0xff] %v14982_v58 }
 0x234   : > { %v14972_v37 = vpop.f32.mrf.mxu0 }
 0x235   : > { %18745 = vst [vmem:[#allocation85_spill] sm:$0xff] %v14972_v37 }
 0x236   : > { %v14976_v57 = vpop.f32.mrf.mxu0 }
 0x237   : > { %18747 = vst [vmem:[#allocation87_spill] sm:$0xff] %v14976_v57 }
 0x239   : > { %v14980_v23 = vpop.f32.mrf.mxu0 }
 0x23a   : > { %18748 = vst [vmem:[#allocation88_spill] sm:$0xff] %v14980_v23 }
 0x23b   : > { %v14984_v3 = vpop.f32.mrf.mxu1  ;;  %v14986_v44 = vpop.f32.mrf.mxu0 }
 0x23c   : > { %18750 = vst [vmem:[#allocation90_spill] sm:$0xff] %v14984_v3  ;;  %18751 = vst [vmem:[#allocation91_spill] sm:$0xff] %v14986_v44 }
 0x23d   : > { %v14988_v1 = vpop.f32.mrf.mxu1 }
 0x23e   : > { %18752 = vst [vmem:[#allocation92_spill] sm:$0xff] %v14988_v1 }
 0x23f   : > { %v14990_v2 = vpop.f32.mrf.mxu0 }
 0x240   : > { %18753 = vst [vmem:[#allocation93_spill] sm:$0xff] %v14990_v2 }
 0x241   : > { %v14992_v12 = vpop.f32.mrf.mxu1  ;;  %v14994_v56 = vpop.f32.mrf.mxu0 }
 0x242   : > { %18754 = vst [vmem:[#allocation94_spill] sm:$0xff] %v14992_v12  ;;  %18755 = vst [vmem:[#allocation95_spill] sm:$0xff] %v14994_v56  ;;  %v18765_v12 = vld [vmem:[#allocation23_spill] sm:$0xff]  ;;  %v18766_v56 = vld [vmem:[#allocation14_spill] sm:$0xff] }
 0x243   : > { %v14996_v46 = vpop.f32.mrf.mxu1  ;;  %v606_v37 = vadd.f32 %v18766_v56, %v18765_v12  ;;  %v18775_v12 = vld [vmem:[#allocation29_spill] sm:$0xff] }
 0x244   : > { %18756 = vst [vmem:[#allocation96_spill] sm:$0xff] %v14996_v46  ;;  %v18767_v46 = vld [vmem:[#allocation21_spill] sm:$0xff] }
 0x245   : > { %v618_v18 = vadd.f32 %v18768_v19, %v18767_v46  ;;  %v18776_v19 = vld [vmem:[#allocation30_spill] sm:$0xff] }
 0x246   : > { %v14998_v57 = vpop.f32.mrf.mxu0 }
 0x247   : > { %18757 = vst [vmem:[#allocation97_spill] sm:$0xff] %v14998_v57  ;;  %v15000_v39 = vpop.f32.mrf.mxu1  ;;  %v18774_v57 = vld [vmem:[#allocation28_spill] sm:$0xff] }
 0x248   : > { %18758 = vst [vmem:[#allocation98_spill] sm:$0xff] %v15000_v39  ;;  %v15002_v23 = vpop.f32.mrf.mxu0  ;;  %v18770_v39 = vld [vmem:[#allocation15_spill] sm:$0xff] }
 0x249   : > { %18759 = vst [vmem:[#allocation99_spill] sm:$0xff] %v15002_v23  ;;  %v15004_v34 = vpop.f32.mrf.mxu1  ;;  %v18771_v23 = vld [vmem:[#allocation24_spill] sm:$0xff] }
 0x24a   : > { %18760 = vst [vmem:[#allocation100_spill] sm:$0xff] %v15004_v34  ;;  %v630_v51 = vadd.f32 %v18771_v23, %v18770_v39  ;;  %v18772_v34 = vld [vmem:[#allocation27_spill] sm:$0xff] }
 0x24b   : > { %v752_v40 = vadd.f32 %v18772_v34, %v606_v37 }
 0x24c   : > { %v15006_v3 = vpop.f32.mrf.mxu0  ;;  %v780_v58 = vadd.f32 %v14419_v50, %v630_v51 }
 0x24d   : > { %18761 = vst [vmem:[#allocation101_spill] sm:$0xff] %v15006_v3  ;;  %v890_v56 = vadd.f32 %v18775_v12, %v752_v40 }
 0x24e   : > { %v15010_v1 = vpop.f32.mrf.mxu0  ;;  %v922_v23 = vadd.f32 %v14484_v35, %v780_v58 }
 0x24f   : > { %18763 = vst [vmem:[#allocation103_spill] sm:$0xff] %v15010_v1  ;;  %v1065_v37 = vadd.f32 %v14533_v10, %v890_v56 }
 0x250   : > { %v1089_v50 = vadd.f32 %v14565_v21, %v922_v23 }
 0x251   : > { %v15008_v44 = vpop.f32.mrf.mxu1  ;;  %v15018_v17 = vpop.f32.mrf.mxu0  ;;  %v1194_v51 = vadd.f32 %v14567_v49, %v1065_v37  ;;  %v18785_v37 = vld [vmem:[#allocation85_spill] sm:$0xff] }
 0x252   : > { %18762 = vst [vmem:[#allocation102_spill] sm:$0xff] %v15008_v44  ;;  %18769 = vst [vmem:[#allocation23_spill] sm:$0xff] %v15018_v17  ;;  %v18773_v44 = vld [vmem:[#allocation22_spill] sm:$0xff]  ;;  %v1218_v35 = vadd.f32 %v14604_v6, %v1089_v50 }
 0x253   : > { %v15012_v2 = vpop.f32.mrf.mxu1  ;;  %v642_v1 = vadd.f32 %v14405_v15, %v18773_v44  ;;  %v15032_v48 = vpop.f32.mrf.mxu0  ;;  %v1327_v10 = vadd.f32 %v14649_v29, %v1194_v51  ;;  %v1701_v29 = vadd.f32 %v14849_v25, %v14676_v30 }
 0x254   : > { %18764 = vst [vmem:[#allocation104_spill] sm:$0xff] %v15012_v2  ;;  %v766_v2 = vadd.f32 %v18774_v57, %v618_v18  ;;  %v1367_v21 = vadd.f32 %v14680_v22, %v1218_v35  ;;  %v1715_v22 = vadd.f32 %v14898_v41, %v14692_v20 }
 0x255   : > { %v794_v46 = vadd.f32 %v14524_v54, %v642_v1  ;;  %v1548_v49 = vadd.f32 %v14682_v28, %v1327_v10  ;;  %v18790_v10 = vld [vmem:[#allocation79_spill] sm:$0xff] }
 0x256   : > { %v906_v17 = vadd.f32 %v18776_v19, %v766_v2  ;;  %v1572_v6 = vadd.f32 %v14702_v61, %v1367_v21  ;;  %v1840_v61 = vadd.f32 %v14911_v62, %v1701_v29 }
 0x257   : > { %v15023_v3 = vpop.f32.mrf.mxu1  ;;  %v938_v15 = vadd.f32 %v14552_v7, %v794_v46  ;;  %v15044_v2 = vpop.f32.mrf.mxu0  ;;  %v1694_v44 = vadd.f32 %v14874_v11, %v1548_v49  ;;  %v1743_v11 = vadd.f32 %v14926_v24, %v14706_v9  ;;  %v18792_v49 = vld [vmem:[#allocation81_spill] sm:$0xff] }
 0x258   : > { %v1077_v57 = vadd.f32 %v14548_v43, %v906_v17  ;;  %v1722_v18 = vadd.f32 %v14922_v5, %v1572_v6  ;;  %v18779_v5 = vld [vmem:[#allocation97_spill] sm:$0xff]  ;;  %v18793_v6 = vld [vmem:[#allocation78_spill] sm:$0xff] }
 0x259   : > { %v15036_v39 = vpop.f32.mrf.mxu1  ;;  %v1101_v54 = vadd.f32 %v14638_v38, %v938_v15  ;;  %v15056_v17 = vpop.f32.mrf.mxu0  ;;  %v1832_v30 = vadd.f32 %v14915_v0, %v1694_v44  ;;  %v1888_v41 = vadd.f32 %v14938_v13, %v1743_v11  ;;  %v2013_v0 = vadd.f32 %v14932_v59, %v1840_v61  ;;  %v18783_v13 = vld [vmem:[#allocation72_spill] sm:$0xff]  ;;  %v18784_v59 = vld [vmem:[#allocation77_spill] sm:$0xff]  ;;  %v18788_v50 = vld [vmem:[#allocation102_spill] sm:$0xff] }
 0x25a   : > { %v1206_v1 = vadd.f32 %v14586_v36, %v1077_v57  ;;  %v1864_v40 = vadd.f32 %v14934_v63, %v1722_v18  ;;  %v18782_v63 = vld [vmem:[#allocation75_spill] sm:$0xff]  ;;  %v18794_v44 = vld [vmem:[#allocation101_spill] sm:$0xff]  ;;  %v18796_v18 = vld [vmem:[#allocation80_spill] sm:$0xff] }
 0x25b   : > { %v1230_v7 = vadd.f32 %v14668_v16, %v1101_v54  ;;  %v2007_v24 = vadd.f32 %v14936_v26, %v1832_v30  ;;  %v2142_v19 = vadd.f32 %v18783_v13, %v2013_v0  ;;  %v18787_v26 = vld [vmem:[#allocation99_spill] sm:$0xff]  ;;  %v18797_v11 = vld [vmem:[#allocation82_spill] sm:$0xff] }
 0x25c   : > { %v1347_v43 = vadd.f32 %v14664_v47, %v1206_v1  ;;  %v2031_v23 = vadd.f32 %v18784_v59, %v1864_v40  ;;  %v18789_v1 = vld [vmem:[#allocation74_spill] sm:$0xff]  ;;  %v15128_v59 = vld [vmem:[%s18201_s2] ss:$0 sm:$0xff] }
 0x25d   : > { %v15048_v58 = vpop.f32.mrf.mxu1  ;;  %v1387_v38 = vadd.f32 %v14835_v4, %v1230_v7  ;;  %v2521_v4 = vadd.f32 %v14978_v33, %v14964_v53  ;;  %v18780_v53 = vld [vmem:[#allocation71_spill] sm:$0xff]  ;;  %v2136_v35 = vadd.f32 %v18789_v1, %v2007_v24  ;;  %v2049_v7 = vadd.f32 %v18790_v10, %v1888_v41  ;;  %v18801_v0 = vld [vmem:[#allocation86_spill] sm:$0xff] }
 0x25e   : > { %v1560_v36 = vadd.f32 %v14694_v32, %v1347_v43  ;;  %v1729_v32 = vadd.f32 %v14917_v31, %v14699_v55  ;;  %v18791_v43 = vld [vmem:[#allocation76_spill] sm:$0xff] }
 0x25f   : > { %v15062_v16 = vpop.f32.mrf.mxu1  ;;  %v1584_v47 = vadd.f32 %v14906_v27, %v1387_v38  ;;  %v1856_v27 = vadd.f32 %v14920_v60, %v1715_v22  ;;  %v18778_v60 = vld [vmem:[#allocation89_spill] sm:$0xff]  ;;  %v18795_v22 = vld [vmem:[#allocation104_spill] sm:$0xff] }
 0x260   : > { %v1708_v28 = vadd.f32 %v14913_v52, %v1560_v36  ;;  %v1872_v31 = vadd.f32 %v14928_v8, %v1729_v32  ;;  %v18777_v52 = vld [vmem:[#allocation83_spill] sm:$0xff]  ;;  %v18781_v8 = vld [vmem:[#allocation73_spill] sm:$0xff] }
 0x261   : > { %v1736_v25 = vadd.f32 %v14930_v45, %v1584_v47  ;;  %v2668_v45 = vadd.f32 %v18779_v5, %v2521_v4  ;;  %v2025_v12 = vadd.f32 %v18780_v53, %v1856_v27  ;;  %v15107_v27 = vadd.f32 %v18797_v11, %v2031_v23  ;;  %v18799_v4 = vld [vmem:[#allocation87_spill] sm:$0xff]  ;;  %v18805_v53 = vld [vmem:[#allocation96_spill] sm:$0xff] }
 0x262   : > { %v1848_v20 = vadd.f32 %v14924_v14, %v1708_v28  ;;  %v11220_v62 = vpop.f32.mrf.mxu1  ;;  %v2515_v14 = vadd.f32 %v18778_v60, %v18777_v52  ;;  %v2037_v46 = vadd.f32 %v18782_v63, %v1872_v31  ;;  %v18800_v31 = vld [vmem:[#allocation92_spill] sm:$0xff] }
 0x263   : > { %v1880_v9 = vadd.f32 %v14942_v42, %v1736_v25  ;;  %v18786_v42 = vld [vmem:[#allocation90_spill] sm:$0xff]  ;;  %v2807_v51 = vadd.f32 %v18788_v50, %v2668_v45  ;;  %v2154_v21 = vadd.f32 %v18791_v43, %v2025_v12  ;;  %v18798_v25 = vld [vmem:[#allocation84_spill] sm:$0xff]  ;;  %v2527_v40 = vadd.f32 %v18800_v31, %v18799_v4  ;;  %v18804_v45 = vld [vmem:[#allocation91_spill] sm:$0xff] }
 0x264   : > { %v2019_v56 = vadd.f32 %v18781_v8, %v1848_v20  ;;  %v2533_v15 = vadd.f32 %v18786_v42, %v18785_v37  ;;  %v2661_v57 = vadd.f32 %v18787_v26, %v2515_v14  ;;  %v2846_v36 = vpop.f32.mrf.mxu1  ;;  %v2166_v30 = vadd.f32 %v18796_v18, %v2037_v46  ;;  %v18802_v60 = vld [vmem:[#allocation88_spill] sm:$0xff]  ;;  %v18803_v14 = vld [vmem:[#allocation94_spill] sm:$0xff]  ;;  %v18806_v8 = vld [vmem:[#allocation93_spill] sm:$0xff] }
 0x265   : > { %v2043_v38 = vadd.f32 %v18792_v49, %v1880_v9  ;;  %v15110_v20 = vadd.f32 %v18798_v25, %v2049_v7  ;;  %v2545_v5 = vadd.f32 %v18803_v14, %v18802_v60  ;;  %v2539_v12 = vadd.f32 %v18805_v53, %v18804_v45  ;;  %v18808_v46 = vld [vmem:[#allocation103_spill] sm:$0xff]  ;;  %v18810_v37 = vld [vmem:[#allocation100_spill] sm:$0xff] }
 0x266   : > { %v2148_v29 = vadd.f32 %v18793_v6, %v2019_v56  ;;  %v2682_v47 = vadd.f32 %v18794_v44, %v2533_v15  ;;  %v2799_v28 = vadd.f32 %v18795_v22, %v2661_v57  ;;  %v18807_v56 = vld [vmem:[#allocation98_spill] sm:$0xff]  ;;  %v2675_v13 = vadd.f32 %v18808_v46, %v2527_v40  ;;  %v18811_v50 = vld [vmem:[#allocation23_spill] sm:$0xff] }
 0x267   : > { %v15115_v9 = vadd.f32 %v18801_v0, %v2043_v38  ;;  %v2557_v63 = vadd.f32 %v18807_v56, %v18806_v8  ;;  %v2689_v1 = vadd.f32 %v15032_v48, %v2539_v12 }
 0x268   : > { %v2823_v24 = vadd.f32 %v15023_v3, %v2682_v47  ;;  %v2815_v7 = vadd.f32 %v15036_v39, %v2675_v13 }
 0x269   : > { %v2710_v10 = vadd.f32 %v15044_v2, %v2557_v63 }
 0x26e   : > { %v11255_v34 = vpop.f32.mrf.mxu0 }
 0x26f   : > { %v2980_v32 = vadd.f32 %v11255_v34, %v2807_v51  ;;  %v2696_v51 = vadd.f32 %v18811_v50, %v2545_v5 }
 0x270   : > { %v2973_v55 = vpop.f32.mrf.mxu0 }
 0x271   : > { %v2974_v52 = vadd.f32 %v2973_v55, %v2799_v28  ;;  %v18809_v55 = vld [vmem:[#allocation95_spill] sm:$0xff]  ;;  %v2839_v47 = vadd.f32 %v15048_v58, %v2696_v51 }
 0x272   : > { %v11258_v33 = vpop.f32.mrf.mxu0  ;;  %v2551_v42 = vadd.f32 %v18810_v37, %v18809_v55  ;;  %v18812_v55 = vld [vmem:[#allocation12_spill] sm:$0xff] }
 0x273   : > { %v2992_v15 = vadd.f32 %v11258_v33, %v2823_v24  ;;  %v2831_v33 = vadd.f32 %v15062_v16, %v2689_v1 }
 0x274   : > { %v2985_v54 = vpop.f32.mrf.mxu0  ;;  %v2703_v49 = vadd.f32 %v15056_v17, %v2551_v42 }
 0x275   : > { %v2986_v22 = vadd.f32 %v2985_v54, %v2815_v7 }
 0x276   : > { %v11261_v61 = vpop.f32.mrf.mxu0  ;;  %v2847_v18 = vadd.f32 %v2846_v36, %v2703_v49 }
 0x277   : > { %v11299_v41 = vpop.f32.mrf.mxu1  ;;  %v3004_v11 = vadd.f32 %v11261_v61, %v2839_v47 }
 0x278   : > { %v3109_v34 = vadd.f32 %v11299_v41, %v2980_v32  ;;  %v2997_v23 = vpop.f32.mrf.mxu0 }
 0x279   : > { %v3102_v3 = vpop.f32.mrf.mxu1  ;;  %v2998_v17 = vadd.f32 %v2997_v23, %v2831_v33 }
 0x27a   : > { %v3149_v26 = vadd.f32 %v3109_v34, %v2142_v19  ;;  %v3103_v57 = vadd.f32 %v3102_v3, %v2974_v52  ;;  %v2855_v19 = vadd.f32 %v11220_v62, %v2710_v10  ;;  %v11264_v28 = vpop.f32.mrf.mxu0 }
 0x27b   : > { %v11302_v43 = vpop.f32.mrf.mxu1 }
 0x27c   : > { %v3164_v38 = vadd.f32 %v15128_v59, %v3149_v26  ;;  %v3148_v6 = vadd.f32 %v3103_v57, %v2136_v35  ;;  %v3121_v44 = vadd.f32 %v11302_v43, %v2992_v15  ;;  %v3016_v16 = vadd.f32 %v11264_v28, %v2855_v19  ;;  %v3009_v62 = vpop.f32.mrf.mxu0  ;;  %v18813_v26 = vld [vmem:[#allocation16_spill] sm:$0xff] }
 0x27d   : > { %v3114_v32 = vpop.f32.mrf.mxu1 }
 0x27e   : > { %vm3172_vm8 = vcmp.gt.f32.partialorder %v3164_v38, 0.0  ;;  %v3180_v48 = vmul.f32 0.2, %v3164_v38  ;;  %v3163_v2 = vadd.f32 %v15128_v59, %v3148_v6  ;;  %v3151_v39 = vadd.f32 %v3121_v44, %v2154_v21 }
 0x27f   : > { %v3115_v25 = vadd.f32 %v3114_v32, %v2986_v22  ;;  %v11305_v4 = vpop.f32.mrf.mxu1 }
 0x280   : > { %v3188_v35 = vsel %vm3172_vm8, %v3164_v38, %v3180_v48  ;;  %vm3171_vm9 = vcmp.gt.f32.partialorder %v3163_v2, 0.0  ;;  %v3179_v31 = vmul.f32 0.2, %v3163_v2  ;;  %v3166_v58 = vadd.f32 %v15128_v59, %v3151_v39 }
 0x281   : > { %3196 = vst [vmem:[#allocation2 + $0x18] sm:$0xff] %v3188_v35  ;;  %v3150_v54 = vadd.f32 %v3115_v25, %v2148_v29  ;;  %v3133_v40 = vadd.f32 %v11305_v4, %v3004_v11  ;;  %v3126_v41 = vpop.f32.mrf.mxu1  ;;  %v15142_v0 = vand.u32 4294901760, %v3188_v35  ;;  %v3010_v29 = vadd.f32 %v3009_v62, %v2847_v18 }
 0x282   : > { %v3187_v24 = vsel %vm3171_vm9, %v3163_v2, %v3179_v31  ;;  %vm3174_vm10 = vcmp.gt.f32.partialorder %v3166_v58, 0.0  ;;  %v3182_v21 = vmul.f32 0.2, %v3166_v58  ;;  %v3127_v36 = vadd.f32 %v3126_v41, %v2998_v17  ;;  %v18816_v2 = vld [vmem:[#allocation34_spill] sm:$0xff]  ;;  %v18817_v31 = vld [vmem:[#allocation13_spill] sm:$0xff] }
 0x283   : > { %3195 = vst [vmem:[#allocation2 + $0x10] sm:$0xff] %v3187_v24  ;;  %v3165_v61 = vadd.f32 %v15128_v59, %v3150_v54  ;;  %v3153_v52 = vadd.f32 %v3133_v40, %v2166_v30  ;;  %v11308_v34 = vpop.f32.mrf.mxu1  ;;  %v15145_v60 = vand.u32 4294901760, %v3187_v24  ;;  %v15148_v14 = vsub.f32 %v3188_v35, %v15142_v0  ;;  %v18819_v40 = vld [vmem:[#allocation19_spill] sm:$0xff] }
 0x284   : > { %v3190_v5 = vsel %vm3174_vm10, %v3166_v58, %v3182_v21  ;;  %v3152_v45 = vadd.f32 %v3127_v36, %v15107_v27  ;;  %v3145_v53 = vadd.f32 %v11308_v34, %v3016_v16  ;;  %v18818_v58 = vld [vmem:[#allocation36_spill] sm:$0xff]  ;;  %v18821_v34 = vld [vmem:[#allocation39_spill] sm:$0xff] }
 0x285   : > { %3198 = vst [vmem:[#allocation2 + $0x28] sm:$0xff] %v3190_v5  ;;  %vm3173_vm11 = vcmp.gt.f32.partialorder %v3165_v61, 0.0  ;;  %v3181_v12 = vmul.f32 0.2, %v3165_v61  ;;  %v3168_v8 = vadd.f32 %v15128_v59, %v3153_v52  ;;  %v3138_v56 = vpop.f32.mrf.mxu1  ;;  %11385 = vmatprep.mubr.f32.mxu1 %v15145_v60  ;;  %v15153_v30 = vand.u32 4294901760, %v3190_v5  ;;  %v18820_v52 = vld [vmem:[#allocation26_spill] sm:$0xff] }
 0x286   : > { %v3167_v63 = vadd.f32 %v15128_v59, %v3152_v45  ;;  %v3155_v46 = vadd.f32 %v3145_v53, %v15110_v20  ;;  %v3139_v13 = vadd.f32 %v3138_v56, %v3010_v29  ;;  %11386 = vmatmul.mubr.f32.vlgmr.msra.gmra.mxu1 %v15142_v0  ;;  %v15159_v27 = vsub.f32 %v3187_v24, %v15145_v60  ;;  %v18822_v53 = vld [vmem:[#allocation33_spill] sm:$0xff] }
 0x287   : > { %v3189_v23 = vsel %vm3173_vm11, %v3165_v61, %v3181_v12  ;;  %vm3176_vm12 = vcmp.gt.f32.partialorder %v3168_v8, 0.0  ;;  %v3184_v3 = vmul.f32 0.2, %v3168_v8  ;;  %11442 = vmatpush3.msra.mxu1 %v18812_v55  ;;  %v3346_v37 = vand.u32 4294901760, %v15148_v14 }
 0x288   : > { %3197 = vst [vmem:[#allocation2 + $0x20] sm:$0xff] %v3189_v23  ;;  %vm3175_vm13 = vcmp.gt.f32.partialorder %v3167_v63, 0.0  ;;  %v3183_v42 = vmul.f32 0.2, %v3167_v63  ;;  %v3170_v15 = vadd.f32 %v15128_v59, %v3155_v46  ;;  %v3154_v20 = vadd.f32 %v3139_v13, %v15115_v9  ;;  %11443 = vmatprep.subr.mxu1 %v18813_v26  ;;  %v18814_v9 = vld [vmem:[#allocation20_spill] sm:$0xff]  ;;  %v18825_v13 = vld [vmem:[#allocation46_spill] sm:$0xff] }
 0x289   : > { %v3192_v57 = vsel %vm3176_vm12, %v3168_v8, %v3184_v3  ;;  %11444 = vmatpush3.msra.mxu1 %v18813_v26  ;;  %v15167_v50 = vand.u32 4294901760, %v3189_v23  ;;  %v3336_v51 = vand.u32 4294901760, %v15159_v27  ;;  %v3347_v1 = vsub.f32 %v15148_v14, %v3346_v37  ;;  %v18823_v8 = vld [vmem:[#allocation43_spill] sm:$0xff]  ;;  %v18826_v3 = vld [vmem:[#allocation38_spill] sm:$0xff] }
 0x28a   : > { %3200 = vst [vmem:[#allocation2 + $0x38] sm:$0xff] %v3192_v57  ;;  %v3191_v10 = vsel %vm3175_vm13, %v3167_v63, %v3183_v42  ;;  %vm3178_vm14 = vcmp.gt.f32.partialorder %v3170_v15, 0.0  ;;  %v3186_v7 = vmul.f32 0.2, %v3170_v15  ;;  %v3169_v43 = vadd.f32 %v15128_v59, %v3154_v20  ;;  %11445 = vmatprep.subr.mxu1 %v18814_v9  ;;  %v18815_v59 = vld [vmem:[#allocation31_spill] sm:$0xff]  ;;  %v18824_v63 = vld [vmem:[#allocation37_spill] sm:$0xff] }
 0x28b   : > { %3199 = vst [vmem:[#allocation2 + $0x30] sm:$0xff] %v3191_v10  ;;  %11388 = vmatprep.mubr.f32.mxu1 %v15167_v50  ;;  %11446 = vmatpush3.msra.mxu1 %v18814_v9  ;;  %v3337_v49 = vsub.f32 %v15159_v27, %v3336_v51  ;;  %v15180_v38 = vand.u32 4294901760, %v3191_v10  ;;  %v15182_v6 = vand.u32 4294901760, %v3192_v57  ;;  %v15187_v33 = vsub.f32 %v3189_v23, %v15167_v50  ;;  %v18827_v42 = vld [vmem:[#allocation49_spill] sm:$0xff]  ;;  %v18828_v20 = vld [vmem:[#allocation42_spill] sm:$0xff] }
 0x28c   : > { %v3194_v44 = vsel %vm3178_vm14, %v3170_v15, %v3186_v7  ;;  %vm3177_vm15 = vcmp.gt.f32.partialorder %v3169_v43, 0.0  ;;  %v3185_v47 = vmul.f32 0.2, %v3169_v43  ;;  %11389 = vmatmul.mubr.f32.gmra.mxu1 %v15153_v30  ;;  %11447 = vmatprep.subr.mxu1 %v18815_v59  ;;  %v3348_v22 = vand.u32 4294901760, %v3347_v1  ;;  %v18831_v1 = vld [vmem:[#allocation55_spill] sm:$0xff]  ;;  %v18833_v7 = vld [vmem:[#allocation58_spill] sm:$0xff] }
 0x28d   : > { %3202 = vst [vmem:[#allocation2 + $0x48] sm:$0xff] %v3194_v44  ;;  %11448 = vmatpush3.msra.mxu1 %v18815_v59  ;;  %v3338_v19 = vand.u32 4294901760, %v3337_v49  ;;  %11391 = vmatprep.mubr.f32.mxu1 %v15180_v38  ;;  %v15192_v28 = vsub.f32 %v3190_v5, %v15153_v30  ;;  %v15195_v32 = vsub.f32 %v3191_v10, %v15180_v38  ;;  %v3356_v39 = vand.u32 4294901760, %v15187_v33  ;;  %v18832_v10 = vld [vmem:[#allocation48_spill] sm:$0xff] }
 0x28e   : > { %v3193_v48 = vsel %vm3177_vm15, %v3169_v43, %v3185_v47  ;;  %11449 = vmatprep.subr.mxu1 %v18816_v2  ;;  %v15199_v18 = vand.u32 4294901760, %v3194_v44  ;;  %v15202_v11 = vsub.f32 %v3192_v57, %v15182_v6  ;;  %v18829_v57 = vld [vmem:[#allocation52_spill] sm:$0xff]  ;;  %v18834_v43 = vld [vmem:[#allocation51_spill] sm:$0xff]  ;;  %v18838_v47 = vld [vmem:[#allocation57_spill] sm:$0xff] }
 0x28f   : > { %3201 = vst [vmem:[#allocation2 + $0x40] sm:$0xff] %v3193_v48  ;;  %11341 = vmatprep.mubr.f32.mxu0 %v3338_v19  ;;  %11450 = vmatpush3.msra.mxu1 %v18816_v2  ;;  %v15205_v17 = vand.u32 4294901760, %v3193_v48  ;;  %v3366_v25 = vand.u32 4294901760, %v15192_v28  ;;  %v3376_v4 = vand.u32 4294901760, %v15195_v32  ;;  %v3357_v35 = vsub.f32 %v15187_v33, %v3356_v39  ;;  %v18835_v49 = vld [vmem:[#allocation60_spill] sm:$0xff]  ;;  %v18839_v19 = vld [vmem:[#allocation67_spill] sm:$0xff] }
 0x290   : > { %11342 = vmatmul.mubr.f32.vlgmr.msra.gmra.mxu0 %v3348_v22  ;;  %11392 = vmatmul.mubr.f32.gmra.mxu1 %v15182_v6  ;;  %v3386_v62 = vand.u32 4294901760, %v15202_v11  ;;  %v15228_v21 = vsub.f32 %v3194_v44, %v15199_v18  ;;  %v18837_v44 = vld [vmem:[#allocation63_spill] sm:$0xff]  ;;  %v18840_v22 = vld [vmem:[#allocation61_spill] sm:$0xff] }
 0x291   : > { %11398 = vmatpush3.msra.mxu0 %v18817_v31  ;;  %11451 = vmatprep.subr.mxu1 %v18818_v58  ;;  %v3367_v16 = vsub.f32 %v15192_v28, %v3366_v25  ;;  %v15220_v54 = vsub.f32 %v3193_v48, %v15205_v17  ;;  %v3358_v41 = vand.u32 4294901760, %v3357_v35  ;;  %v3377_v24 = vsub.f32 %v15195_v32, %v3376_v4  ;;  %v18841_v48 = vld [vmem:[#allocation62_spill] sm:$0xff]  ;;  %v3224_v31 = vld [vmem:[#allocation6 + $0x1e0] sm:$0xff] }
 0x292   : > { %11399 = vmatprep.subr.mxu0 %v18819_v40  ;;  %11452 = vmatpush3.msra.mxu1 %v18818_v58  ;;  %v3387_v5 = vsub.f32 %v15202_v11, %v3386_v62  ;;  %v3406_v45 = vand.u32 4294901760, %v15228_v21  ;;  %v18842_v35 = vld [vmem:[#allocation66_spill] sm:$0xff] }
 0x293   : > { %11400 = vmatpush3.msra.mxu0 %v18819_v40  ;;  %11394 = vmatprep.mubr.f32.mxu1 %v15205_v17  ;;  %v3368_v36 = vand.u32 4294901760, %v3367_v16  ;;  %v3396_v61 = vand.u32 4294901760, %v15220_v54  ;;  %v3378_v29 = vand.u32 4294901760, %v3377_v24  ;;  %v3223_v40 = vld [vmem:[#allocation6 + $0x1d8] sm:$0xff] }
 0x294   : > { %11344 = vmatprep.mubr.f32.mxu0 %v3358_v41  ;;  %11401 = vmatprep.subr.mxu0 %v18820_v52  ;;  %v3388_v56 = vand.u32 4294901760, %v3387_v5  ;;  %v3407_v46 = vsub.f32 %v15228_v21, %v3406_v45  ;;  %v18851_v41 = vld [vmem:[#allocation47_spill] sm:$0xff]  ;;  %v18853_v5 = vld [vmem:[#allocation53_spill] sm:$0xff] }
 0x295   : > { %11453 = vmatprep.subr.mxu1 %v18821_v34  ;;  %11345 = vmatmul.mubr.f32.gmra.mxu0 %v3368_v36  ;;  %v3397_v12 = vsub.f32 %v15220_v54, %v3396_v61  ;;  %v15382_v36 = vand.u32 4294901760, %v3223_v40 }
 0x296   : > { %11395 = vmatmul.mubr.f32.gmra.mxu1 %v15199_v18  ;;  %11402 = vmatpush3.msra.mxu0 %v18820_v52  ;;  %v3408_v15 = vand.u32 4294901760, %v3407_v46 }
 0x297   : > { %11454 = vmatpush3.msra.mxu1 %v18821_v34  ;;  %11403 = vmatprep.subr.mxu0 %v18822_v53  ;;  %v3398_v23 = vand.u32 4294901760, %v3397_v12  ;;  %v18854_v12 = vld [vmem:[#allocation56_spill] sm:$0xff] }
 0x298   : > { %11455 = vmatprep.subr.mxu1 %v18823_v8  ;;  %11473 = vmatprep.mubr.f32.mxu1 %v3336_v51  ;;  %v18830_v51 = vld [vmem:[#allocation45_spill] sm:$0xff] }
 0x299   : > { %11404 = vmatpush3.msra.mxu0 %v18822_v53  ;;  %11456 = vmatpush3.msra.mxu1 %v18823_v8  ;;  %v3221_v53 = vld [vmem:[#allocation6 + $0x1c8] sm:$0xff] }
 0x29a   : > { %11347 = vmatprep.mubr.f32.mxu0 %v3378_v29  ;;  %11405 = vmatprep.subr.mxu0 %v18824_v63 }
 0x29b   : > { %11457 = vmatprep.subr.mxu1 %v18825_v13  ;;  %11348 = vmatmul.mubr.f32.gmra.mxu0 %v3388_v56  ;;  %v15405_v56 = vsub.f32 %v3223_v40, %v15382_v36 }
 0x29c   : > { %11406 = vmatpush3.msra.mxu0 %v18824_v63  ;;  %11458 = vmatpush3.msra.mxu1 %v18825_v13 }
 0x29d   : > { %11407 = vmatprep.subr.mxu0 %v18826_v3  ;;  %11459 = vmatprep.subr.mxu1 %v18827_v42 }
 0x29e   : > { %11408 = vmatpush3.msra.mxu0 %v18826_v3  ;;  %11460 = vmatpush3.msra.mxu1 %v18827_v42  ;;  %v15416_v3 = vand.u32 4294901760, %v3221_v53 }
 0x29f   : > { %11350 = vmatprep.mubr.f32.mxu0 %v3398_v23  ;;  %11409 = vmatprep.subr.mxu0 %v18828_v20 }
 0x2a0   : > { %11461 = vmatprep.subr.mxu1 %v18829_v57  ;;  %11351 = vmatmul.mubr.f32.gmra.mxu0 %v3408_v15 }
 0x2a1   : > { %11410 = vmatpush3.msra.mxu0 %v18828_v20  ;;  %11462 = vmatpush3.msra.mxu1 %v18829_v57  ;;  %v3219_v20 = vld [vmem:[#allocation6 + $0x1b8] sm:$0xff] }
 0x2a2   : > { %11411 = vmatprep.subr.mxu0 %v18830_v51  ;;  %11429 = vmatprep.mubr.f32.mxu0 %v15159_v27  ;;  %v18836_v27 = vld [vmem:[#allocation54_spill] sm:$0xff] }
 0x2a3   : > { %11463 = vmatprep.subr.mxu1 %v18831_v1  ;;  %11412 = vmatpush3.msra.mxu0 %v18830_v51 }
 0x2a4   : > { %11464 = vmatpush3.msra.mxu1 %v18831_v1  ;;  %11413 = vmatprep.subr.mxu0 %v18832_v10 }
 0x2a5   : > { %11465 = vmatprep.subr.mxu1 %v18833_v7  ;;  %11414 = vmatpush3.msra.mxu0 %v18832_v10 }
 0x2a6   : > { %11466 = vmatpush3.msra.mxu1 %v18833_v7  ;;  %11415 = vmatprep.subr.mxu0 %v18834_v43 }
 0x2a7   : > { %11467 = vmatprep.subr.mxu1 %v18835_v49  ;;  %11416 = vmatpush3.msra.mxu0 %v18834_v43 }
 0x2a8   : > { %11468 = vmatpush3.msra.mxu1 %v18835_v49  ;;  %11417 = vmatprep.subr.mxu0 %v18836_v27 }
 0x2a9   : > { %11469 = vmatprep.subr.mxu1 %v18837_v44  ;;  %11418 = vmatpush3.msra.mxu0 %v18836_v27  ;;  %v15438_v27 = vand.u32 4294901760, %v3219_v20 }
 0x2aa   : > { %11470 = vmatpush3.msra.mxu1 %v18837_v44  ;;  %11419 = vmatprep.subr.mxu0 %v18838_v47 }
 0x2ab   : > { %11471 = vmatprep.subr.mxu1 %v18839_v19  ;;  %11420 = vmatpush3.msra.mxu0 %v18838_v47 }
 0x2ac   : > { %11472 = vmatpush3.msra.mxu1 %v18839_v19  ;;  %11421 = vmatprep.subr.mxu0 %v18840_v22 }
 0x2ad   : > { %11474 = vmatmul.mubr.f32.vlgmr.msra.gmra.mxu1 %v3346_v37  ;;  %11529 = vmatprep.subr.mxu1 %v18812_v55  ;;  %v18844_v37 = vld [vmem:[#allocation18_spill] sm:$0xff] }
 0x2ae   : > { %11422 = vmatpush3.msra.mxu0 %v18840_v22  ;;  %11476 = vmatprep.mubr.f32.mxu1 %v3356_v39 }
 0x2af   : > { %11530 = vmatpush3.msra.mxu1 %v18812_v55  ;;  %11423 = vmatprep.subr.mxu0 %v18841_v48  ;;  %v18843_v55 = vld [vmem:[#allocation69_spill] sm:$0xff] }
 0x2b0   : > { %11531 = vmatprep.subr.mxu1 %v18813_v26  ;;  %11424 = vmatpush3.msra.mxu0 %v18841_v48  ;;  %v18858_v48 = vld [vmem:[#allocation68_spill] sm:$0xff] }
 0x2b1   : > { %11532 = vmatpush3.msra.mxu1 %v18813_v26  ;;  %11425 = vmatprep.subr.mxu0 %v18842_v35  ;;  %v18845_v26 = vld [vmem:[#allocation25_spill] sm:$0xff] }
 0x2b2   : > { %11477 = vmatmul.mubr.f32.gmra.mxu1 %v3366_v25  ;;  %11533 = vmatprep.subr.mxu1 %v18814_v9  ;;  %v18849_v25 = vld [vmem:[#allocation41_spill] sm:$0xff] }
 0x2b3   : > { %11426 = vmatpush3.msra.mxu0 %v18842_v35  ;;  %11479 = vmatprep.mubr.f32.mxu1 %v3376_v4 }
 0x2b4   : > { %11534 = vmatpush3.msra.mxu1 %v18814_v9  ;;  %11427 = vmatprep.subr.mxu0 %v18843_v55  ;;  %v3227_v9 = vld [vmem:[#allocation6 + $0x1f8] sm:$0xff] }
 0x2b5   : > { %11535 = vmatprep.subr.mxu1 %v18815_v59  ;;  %11428 = vmatpush3.msra.mxu0 %v18843_v55 }
 0x2b6   : > { %11536 = vmatpush3.msra.mxu1 %v18815_v59  ;;  %11430 = vmatmul.mubr.f32.vlgmr.msra.gmra.mxu0 %v15148_v14  ;;  %v18846_v14 = vld [vmem:[#allocation32_spill] sm:$0xff]  ;;  %v18847_v59 = vld [vmem:[#allocation35_spill] sm:$0xff] }
 0x2b7   : > { %11480 = vmatmul.mubr.f32.gmra.mxu1 %v3386_v62  ;;  %11485 = vmatprep.subr.mxu0 %v18844_v37 }
 0x2b8   : > { %11537 = vmatprep.subr.mxu1 %v18816_v2  ;;  %11432 = vmatprep.mubr.f32.mxu0 %v15187_v33  ;;  %v15337_v33 = vand.u32 4294901760, %v3227_v9 }
 0x2b9   : > { %11482 = vmatprep.mubr.f32.mxu1 %v3396_v61  ;;  %11486 = vmatpush3.msra.mxu0 %v18844_v37  ;;  %v3222_v61 = vld [vmem:[#allocation6 + $0x1d0] sm:$0xff]  ;;  %v3217_v37 = vld [vmem:[#allocation6 + $0x1a8] sm:$0xff] }
 0x2ba   : > { %11538 = vmatpush3.msra.mxu1 %v18816_v2  ;;  %11487 = vmatprep.subr.mxu0 %v18845_v26  ;;  %v3225_v2 = vld [vmem:[#allocation6 + $0x1e8] sm:$0xff]  ;;  %v15350_v4 = vsub.f32 %v3227_v9, %v15337_v33 }
 0x2bb   : > { %11539 = vmatprep.subr.mxu1 %v18818_v58  ;;  %11488 = vmatpush3.msra.mxu0 %v18845_v26 }
 0x2bc   : > { %11540 = vmatpush3.msra.mxu1 %v18818_v58  ;;  %11433 = vmatmul.mubr.f32.gmra.mxu0 %v15192_v28  ;;  %v3226_v28 = vld [vmem:[#allocation6 + $0x1f0] sm:$0xff]  ;;  %v18850_v58 = vld [vmem:[#allocation44_spill] sm:$0xff]  ;;  %v15366_v62 = vand.u32 4294901760, %v15350_v4 }
 0x2bd   : > { %11483 = vmatmul.mubr.f32.gmra.mxu1 %v3406_v45  ;;  %11489 = vmatprep.subr.mxu0 %v18846_v14  ;;  %v15345_v39 = vand.u32 4294901760, %v3226_v28  ;;  %v15398_v45 = vand.u32 4294901760, %v3222_v61 }
 0x2be   : > { %11541 = vmatprep.subr.mxu1 %v18821_v34  ;;  %11435 = vmatprep.mubr.f32.mxu0 %v15195_v32  ;;  %v18848_v32 = vld [vmem:[#allocation40_spill] sm:$0xff]  ;;  %v4360_v52 = vsub.f32 %v15350_v4, %v15366_v62 }
 0x2bf   : > { %11490 = vmatpush3.msra.mxu0 %v18846_v14  ;;  %11542 = vmatpush3.msra.mxu1 %v18821_v34  ;;  %v15361_v16 = vsub.f32 %v3226_v28, %v15345_v39  ;;  %v15421_v15 = vsub.f32 %v3222_v61, %v15398_v45  ;;  %v15456_v14 = vsub.f32 %v3219_v20, %v15438_v27  ;;  %v18859_v28 = vld [vmem:[#allocation70_spill] sm:$0xff]  ;;  %v3215_v61 = vld [vmem:[#allocation6 + $0x198] sm:$0xff] }
 0x2c0   : > { %11561 = vmatprep.mubr.f32.mxu1 %v15145_v60  ;;  %11491 = vmatprep.subr.mxu0 %v18847_v59  ;;  %v4361_v63 = vand.u32 4294901760, %v4360_v52 }
 0x2c1   : > { %11543 = vmatprep.subr.mxu1 %v18823_v8  ;;  %11492 = vmatpush3.msra.mxu0 %v18847_v59  ;;  %v15442_v47 = vand.u32 4294901760, %v15421_v15 }
 0x2c2   : > { %11544 = vmatpush3.msra.mxu1 %v18823_v8  ;;  %11436 = vmatmul.mubr.f32.gmra.mxu0 %v15202_v11  ;;  %v15354_v11 = vand.u32 4294901760, %v3225_v2 }
 0x2c3   : > { %11493 = vmatprep.subr.mxu0 %v18848_v32  ;;  %11545 = vmatprep.subr.mxu1 %v18825_v13  ;;  %v4395_v59 = vsub.f32 %v15421_v15, %v15442_v47 }
 0x2c4   : > { %11438 = vmatprep.mubr.f32.mxu0 %v15220_v54  ;;  %11494 = vmatpush3.msra.mxu0 %v18848_v32  ;;  %v15368_v54 = vand.u32 4294901760, %v3224_v31  ;;  %v15373_v24 = vsub.f32 %v3225_v2, %v15354_v11  ;;  %v3203_v2 = vld [vmem:[#allocation2 + $0xd] sm:$0xff] }
 0x2c5   : > { %11546 = vmatpush3.msra.mxu1 %v18825_v13  ;;  %11495 = vmatprep.subr.mxu0 %v18849_v25  ;;  %v18855_v13 = vld [vmem:[#allocation59_spill] sm:$0xff]  ;;  %v4396_v52 = vand.u32 4294901760, %v4395_v59 }
 0x2c6   : > { %11547 = vmatprep.subr.mxu1 %v18827_v42  ;;  %11496 = vmatpush3.msra.mxu0 %v18849_v25  ;;  %v15389_v34 = vsub.f32 %v3224_v31, %v15368_v54  ;;  %v15394_v29 = vand.u32 4294901760, %v15373_v24  ;;  %v15465_v25 = vand.u32 4294901760, %v3217_v37  ;;  %v3216_v31 = vld [vmem:[#allocation6 + $0x1a0] sm:$0xff] }
 0x2c7   : > { %11548 = vmatpush3.msra.mxu1 %v18827_v42  ;;  %11439 = vmatmul.mubr.f32.gmra.mxu0 %v15228_v21  ;;  %v15380_v21 = vand.u32 4294901760, %v15361_v16  ;;  %v3220_v42 = vld [vmem:[#allocation6 + $0x1c0] sm:$0xff] }
 0x2c8   : > { %11497 = vmatprep.subr.mxu0 %v18850_v58  ;;  %11549 = vmatprep.subr.mxu1 %v18829_v57  ;;  %v15410_v46 = vand.u32 4294901760, %v15389_v34  ;;  %v4374_v23 = vsub.f32 %v15373_v24, %v15394_v29 }
 0x2c9   : > { %11498 = vmatpush3.msra.mxu0 %v18850_v58  ;;  %11517 = vmatprep.mubr.f32.mxu0 %v15145_v60  ;;  %v18852_v60 = vld [vmem:[#allocation50_spill] sm:$0xff]  ;;  %v4367_v8 = vsub.f32 %v15361_v16, %v15380_v21 }
 0x2ca   : > { %11550 = vmatpush3.msra.mxu1 %v18829_v57  ;;  %11499 = vmatprep.subr.mxu0 %v18851_v41  ;;  %v18856_v57 = vld [vmem:[#allocation64_spill] sm:$0xff]  ;;  %v4381_v10 = vsub.f32 %v15389_v34, %v15410_v46  ;;  %v4375_v43 = vand.u32 4294901760, %v4374_v23 }
 0x2cb   : > { %11551 = vmatprep.subr.mxu1 %v18831_v1  ;;  %11500 = vmatpush3.msra.mxu0 %v18851_v41  ;;  %v4368_v51 = vand.u32 4294901760, %v4367_v8  ;;  %v15475_v41 = vand.u32 4294901760, %v15456_v14 }
 0x2cc   : > { %11552 = vmatpush3.msra.mxu1 %v18831_v1  ;;  %11501 = vmatprep.subr.mxu0 %v18852_v60  ;;  %v15426_v1 = vand.u32 4294901760, %v15405_v56  ;;  %v4382_v35 = vand.u32 4294901760, %v4381_v10 }
 0x2cd   : > { %11553 = vmatprep.subr.mxu1 %v18833_v7  ;;  %11502 = vmatpush3.msra.mxu0 %v18852_v60 }
 0x2ce   : > { %11554 = vmatpush3.msra.mxu1 %v18833_v7  ;;  %11503 = vmatprep.subr.mxu0 %v18853_v5  ;;  %v15431_v7 = vand.u32 4294901760, %v3220_v42  ;;  %v4388_v22 = vsub.f32 %v15405_v56, %v15426_v1 }
 0x2cf   : > { %11555 = vmatprep.subr.mxu1 %v18835_v49  ;;  %11504 = vmatpush3.msra.mxu0 %v18853_v5  ;;  %v15482_v5 = vand.u32 4294901760, %v3203_v2 }
 0x2d0   : > { %11556 = vmatpush3.msra.mxu1 %v18835_v49  ;;  %11505 = vmatprep.subr.mxu0 %v18854_v12  ;;  %v15436_v49 = vsub.f32 %v3221_v53, %v15416_v3  ;;  %v15449_v55 = vsub.f32 %v3220_v42, %v15431_v7  ;;  %v4389_v32 = vand.u32 4294901760, %v4388_v22  ;;  %v15484_v53 = vand.u32 4294901760, %v3216_v31  ;;  %v3213_v42 = vld [vmem:[#allocation6 + $0x188] sm:$0xff] }
 0x2d1   : > { %11557 = vmatprep.subr.mxu1 %v18837_v44  ;;  %11506 = vmatpush3.msra.mxu0 %v18854_v12  ;;  %v3214_v12 = vld [vmem:[#allocation6 + $0x190] sm:$0xff]  ;;  %v15504_v20 = vsub.f32 %v3203_v2, %v15482_v5  ;;  %v15520_v22 = vand.u32 4294901760, %v3213_v42 }
 0x2d2   : > { %11558 = vmatpush3.msra.mxu1 %v18837_v44  ;;  %11507 = vmatprep.subr.mxu0 %v18855_v13  ;;  %v18857_v44 = vld [vmem:[#allocation65_spill] sm:$0xff]  ;;  %v15453_v26 = vand.u32 4294901760, %v15436_v49  ;;  %v15469_v58 = vand.u32 4294901760, %v15449_v55 }
 0x2d3   : > { %11559 = vmatprep.subr.mxu1 %v18839_v19  ;;  %11508 = vmatpush3.msra.mxu0 %v18855_v13  ;;  %v15544_v2 = vsub.f32 %v3213_v42, %v15520_v22 }
 0x2d4   : > { %11560 = vmatpush3.msra.mxu1 %v18839_v19  ;;  %11509 = vmatprep.subr.mxu0 %v18856_v57  ;;  %v3218_v19 = vld [vmem:[#allocation6 + $0x1b0] sm:$0xff]  ;;  %v4402_v40 = vsub.f32 %v15436_v49, %v15453_v26  ;;  %v4409_v8 = vsub.f32 %v15449_v55, %v15469_v58 }
 0x2d5   : > { %11562 = vmatmul.mubr.f32.vlgmr.msra.gmra.mxu1 %v15142_v0  ;;  %11617 = vmatprep.subr.mxu1 %v4361_v63  ;;  %v15458_v9 = vand.u32 4294901760, %v3218_v19 }
 0x2d6   : > { %11510 = vmatpush3.msra.mxu0 %v18856_v57  ;;  %11564 = vmatprep.mubr.f32.mxu1 %v15167_v50  ;;  %v4403_v13 = vand.u32 4294901760, %v4402_v40  ;;  %v15507_v57 = vsub.f32 %v3216_v31, %v15484_v53 }
 0x2d7   : > { %11618 = vmatpush3.msra.mxu1 %v4361_v63  ;;  %11511 = vmatprep.subr.mxu0 %v18857_v44  ;;  %v15478_v60 = vsub.f32 %v3218_v19, %v15458_v9  ;;  %v15494_v63 = vand.u32 4294901760, %v3215_v61 }
 0x2d8   : > { %11619 = vmatprep.subr.mxu1 %v4368_v51  ;;  %11512 = vmatpush3.msra.mxu0 %v18857_v44  ;;  %v4410_v44 = vand.u32 4294901760, %v4409_v8 }
 0x2d9   : > { %11620 = vmatpush3.msra.mxu1 %v4368_v51  ;;  %11513 = vmatprep.subr.mxu0 %v18858_v48  ;;  %v15500_v23 = vand.u32 4294901760, %v15478_v60  ;;  %v15509_v51 = vand.u32 4294901760, %v3214_v12  ;;  %v15518_v19 = vsub.f32 %v3215_v61, %v15494_v63 }
 0x2da   : > { %11565 = vmatmul.mubr.f32.gmra.mxu1 %v15153_v30  ;;  %11621 = vmatprep.subr.mxu1 %v4375_v43 }
 0x2db   : > { %11514 = vmatpush3.msra.mxu0 %v18858_v48  ;;  %11567 = vmatprep.mubr.f32.mxu1 %v15180_v38  ;;  %v15531_v59 = vsub.f32 %v3214_v12, %v15509_v51 }
 0x2dc   : > { %11622 = vmatpush3.msra.mxu1 %v4375_v43  ;;  %11515 = vmatprep.subr.mxu0 %v18859_v28  ;;  %v3212_v43 = vld [vmem:[#allocation6 + $0x180] sm:$0xff] }
 0x2dd   : > { %11623 = vmatprep.subr.mxu1 %v4382_v35  ;;  %11516 = vmatpush3.msra.mxu0 %v18859_v28  ;;  %v15533_v28 = vand.u32 4294901760, %v3212_v43 }
 0x2de   : > { %11624 = vmatpush3.msra.mxu1 %v4382_v35  ;;  %11518 = vmatmul.mubr.f32.vlgmr.msra.gmra.mxu0 %v15142_v0  ;;  %v15488_v0 = vsub.f32 %v3217_v37, %v15465_v25  ;;  %v18367_v35 = vand.u32 4294901760, %v15504_v20  ;;  %v15528_v37 = vand.u32 4294901760, %v15507_v57 }
 0x2df   : > { %11568 = vmatmul.mubr.f32.gmra.mxu1 %v15182_v6  ;;  %11573 = vmatprep.subr.mxu0 %v15337_v33  ;;  %v15557_v12 = vsub.f32 %v3212_v43, %v15533_v28 }
 0x2e0   : > { %11625 = vmatprep.subr.mxu1 %v4389_v32  ;;  %11520 = vmatprep.mubr.f32.mxu0 %v15167_v50  ;;  %v4416_v50 = vsub.f32 %v15456_v14, %v15475_v41  ;;  %v15513_v10 = vand.u32 4294901760, %v15488_v0  ;;  %v4279_v40 = vsub.f32 %v15504_v20, %v18367_v35  ;;  %v4437_v61 = vsub.f32 %v15507_v57, %v15528_v37 }
 0x2e1   : > { %11570 = vmatprep.mubr.f32.mxu1 %v15205_v17  ;;  %11574 = vmatpush3.msra.mxu0 %v15337_v33  ;;  %v15572_v43 = vand.u32 4294901760, %v15557_v12 }
 0x2e2   : > { %11626 = vmatpush3.msra.mxu1 %v4389_v32  ;;  %11575 = vmatprep.subr.mxu0 %v15345_v39  ;;  %v4417_v48 = vand.u32 4294901760, %v4416_v50  ;;  %v15541_v32 = vand.u32 4294901760, %v15518_v19  ;;  %v4280_v50 = vand.u32 4294901760, %v4279_v40 }
 0x2e3   : > { %11627 = vmatprep.subr.mxu1 %v4396_v52  ;;  %11576 = vmatpush3.msra.mxu0 %v15345_v39  ;;  %18863 = vst [vmem:[#allocation15_spill] sm:$0xff] %v15572_v43 }
 0x2e4   : > { %11628 = vmatpush3.msra.mxu1 %v4396_v52  ;;  %11521 = vmatmul.mubr.f32.gmra.mxu0 %v15153_v30  ;;  %v4423_v30 = vsub.f32 %v15478_v60, %v15500_v23  ;;  %18860 = vst [vmem:[#allocation14_spill] sm:$0xff] %v15541_v32  ;;  %v15554_v52 = vand.u32 4294901760, %v15531_v59  ;;  %v4444_v8 = vsub.f32 %v15518_v19, %v15541_v32 }
 0x2e5   : > { %11571 = vmatmul.mubr.f32.gmra.mxu1 %v15199_v18  ;;  %11577 = vmatprep.subr.mxu0 %v15354_v11 }
 0x2e6   : > { %11629 = vmatprep.subr.mxu1 %v4403_v13  ;;  %11523 = vmatprep.mubr.f32.mxu0 %v15180_v38  ;;  %v4430_v38 = vsub.f32 %v15488_v0, %v15513_v10  ;;  %v4424_v31 = vand.u32 4294901760, %v4423_v30  ;;  %18861 = vst [vmem:[#allocation21_spill] sm:$0xff] %v15554_v52  ;;  %v4451_v42 = vsub.f32 %v15531_v59, %v15554_v52  ;;  %v3204_v30 = vld [vmem:[#allocation2 + $0x15] sm:$0xff] }
 0x2e7   : > { %11578 = vmatpush3.msra.mxu0 %v15354_v11  ;;  %11630 = vmatpush3.msra.mxu1 %v4403_v13  ;;  %v15565_v13 = vand.u32 4294901760, %v15544_v2  ;;  %v15583_v40 = vand.u32 4294901760, %v3204_v30 }
 0x2e8   : > { %11649 = vmatprep.mubr.f32.mxu1 %v15482_v5  ;;  %11579 = vmatprep.subr.mxu0 %v15368_v54 }
 0x2e9   : > { %11631 = vmatprep.subr.mxu1 %v4410_v44  ;;  %11580 = vmatpush3.msra.mxu0 %v15368_v54  ;;  %18862 = vst [vmem:[#allocation17_spill] sm:$0xff] %v15565_v13  ;;  %18864 = vst [vmem:[#allocation24_spill] sm:$0xff] %v15583_v40 }
 0x2ea   : > { %11632 = vmatpush3.msra.mxu1 %v4410_v44  ;;  %11524 = vmatmul.mubr.f32.gmra.mxu0 %v15182_v6  ;;  %v4431_v6 = vand.u32 4294901760, %v4430_v38  ;;  %v4445_v44 = vand.u32 4294901760, %v4444_v8  ;;  %v4465_v38 = vsub.f32 %v15557_v12, %v15572_v43 }
 0x2eb   : > { %11581 = vmatprep.subr.mxu0 %v15382_v36  ;;  %11633 = vmatprep.subr.mxu1 %v4417_v48 }
 0x2ec   : > { %11526 = vmatprep.mubr.f32.mxu0 %v15205_v17  ;;  %11582 = vmatpush3.msra.mxu0 %v15382_v36  ;;  %v4438_v17 = vand.u32 4294901760, %v4437_v61  ;;  %v4466_v8 = vand.u32 4294901760, %v4465_v38  ;;  %v3208_v38 = vld [vmem:[#allocation2 + $0x35] sm:$0xff] }
 0x2ed   : > { %11634 = vmatpush3.msra.mxu1 %v4417_v48  ;;  %11583 = vmatprep.subr.mxu0 %v15398_v45  ;;  %v4458_v48 = vsub.f32 %v15544_v2, %v15565_v13  ;;  %v15621_v43 = vand.u32 4294901760, %v3208_v38 }
 0x2ee   : > { %11635 = vmatprep.subr.mxu1 %v4424_v31  ;;  %11584 = vmatpush3.msra.mxu0 %v15398_v45 }
 0x2ef   : > { %11636 = vmatpush3.msra.mxu1 %v4424_v31  ;;  %11527 = vmatmul.mubr.f32.gmra.mxu0 %v15199_v18  ;;  %v4452_v18 = vand.u32 4294901760, %v4451_v42  ;;  %v3205_v31 = vld [vmem:[#allocation2 + $0x1d] sm:$0xff]  ;;  %v4459_v61 = vand.u32 4294901760, %v4458_v48  ;;  %v3207_v42 = vld [vmem:[#allocation2 + $0x2d] sm:$0xff] }
 0x2f0   : > { %11585 = vmatprep.subr.mxu0 %v15416_v3  ;;  %11637 = vmatprep.subr.mxu1 %v4431_v6 }
 0x2f1   : > { %11586 = vmatpush3.msra.mxu0 %v15416_v3  ;;  %11605 = vmatprep.mubr.f32.mxu0 %v4280_v50  ;;  %v3206_v50 = vld [vmem:[#allocation2 + $0x25] sm:$0xff] }
 0x2f2   : > { %11638 = vmatpush3.msra.mxu1 %v4431_v6  ;;  %11587 = vmatprep.subr.mxu0 %v15431_v7  ;;  %v15587_v6 = vand.u32 4294901760, %v3205_v31 }
 0x2f3   : > { %11639 = vmatprep.subr.mxu1 %v4438_v17  ;;  %11588 = vmatpush3.msra.mxu0 %v15431_v7 }
 0x2f4   : > { %11640 = vmatpush3.msra.mxu1 %v4438_v17  ;;  %11589 = vmatprep.subr.mxu0 %v15438_v27  ;;  %18865 = vst [vmem:[#allocation27_spill] sm:$0xff] %v15587_v6  ;;  %v15592_v17 = vsub.f32 %v3204_v30, %v15583_v40  ;;  %v15599_v48 = vsub.f32 %v3205_v31, %v15587_v6  ;;  %v15603_v30 = vand.u32 4294901760, %v3207_v42 }
 0x2f5   : > { %11641 = vmatprep.subr.mxu1 %v4445_v44  ;;  %11590 = vmatpush3.msra.mxu0 %v15438_v27 }
 0x2f6   : > { %11642 = vmatpush3.msra.mxu1 %v4445_v44  ;;  %11591 = vmatprep.subr.mxu0 %v15458_v9  ;;  %v15596_v44 = vand.u32 4294901760, %v3206_v50  ;;  %18867 = vst [vmem:[#allocation28_spill] sm:$0xff] %v15603_v30  ;;  %v15624_v31 = vsub.f32 %v3207_v42, %v15603_v30 }
 0x2f7   : > { %11643 = vmatprep.subr.mxu1 %v4452_v18  ;;  %11592 = vmatpush3.msra.mxu0 %v15458_v9 }
 0x2f8   : > { %11644 = vmatpush3.msra.mxu1 %v4452_v18  ;;  %11593 = vmatprep.subr.mxu0 %v15465_v25  ;;  %18866 = vst [vmem:[#allocation22_spill] sm:$0xff] %v15596_v44  ;;  %v18374_v18 = vand.u32 4294901760, %v15592_v17 }
 0x2f9   : > { %11645 = vmatprep.subr.mxu1 %v4459_v61  ;;  %11594 = vmatpush3.msra.mxu0 %v15465_v25 }
 0x2fa   : > { %11646 = vmatpush3.msra.mxu1 %v4459_v61  ;;  %11595 = vmatprep.subr.mxu0 %v15484_v53  ;;  %v15612_v61 = vsub.f32 %v3206_v50, %v15596_v44  ;;  %v4289_v35 = vsub.f32 %v15592_v17, %v18374_v18  ;;  %v18868_v50 = vand.u32 4294901760, %v15599_v48 }
 0x2fb   : > { %11647 = vmatprep.subr.mxu1 %v4466_v8  ;;  %11596 = vmatpush3.msra.mxu0 %v15484_v53 }
 0x2fc   : > { %11648 = vmatpush3.msra.mxu1 %v4466_v8  ;;  %11597 = vmatprep.subr.mxu0 %v15494_v63  ;;  %v3209_v8 = vld [vmem:[#allocation2 + $0x3d] sm:$0xff]  ;;  %v4299_v13 = vsub.f32 %v15599_v48, %v18868_v50  ;;  %v4290_v42 = vand.u32 4294901760, %v4289_v35 }
 0x2fd   : > { %11650 = vmatmul.mubr.f32.vlgmr.msra.gmra.mxu1 %v15583_v40  ;;  %11705 = vmatprep.subr.mxu1 %v15337_v33  ;;  %v15633_v52 = vand.u32 4294901760, %v3209_v8  ;;  %v15642_v40 = vsub.f32 %v3208_v38, %v15621_v43 }
 0x2fe   : > { %11598 = vmatpush3.msra.mxu0 %v15494_v63  ;;  %11652 = vmatprep.mubr.f32.mxu1 %v15587_v6  ;;  %v3210_v6 = vld [vmem:[#allocation2 + $0x45] sm:$0xff]  ;;  %v4300_v18 = vand.u32 4294901760, %v4299_v13 }
 0x2ff   : > { %11706 = vmatpush3.msra.mxu1 %v15337_v33  ;;  %11599 = vmatprep.subr.mxu0 %v15509_v51  ;;  %v15646_v50 = vand.u32 4294901760, %v3210_v6  ;;  %v15653_v35 = vsub.f32 %v3209_v8, %v15633_v52  ;;  %v4328_v13 = vand.u32 4294901760, %v15642_v40 }
 0x300   : > { %11707 = vmatprep.subr.mxu1 %v15345_v39  ;;  %11600 = vmatpush3.msra.mxu0 %v15509_v51 }
 0x301   : > { %11708 = vmatpush3.msra.mxu1 %v15345_v39  ;;  %11601 = vmatprep.subr.mxu0 %v15520_v22 }
 0x302   : > { %11653 = vmatmul.mubr.f32.gmra.mxu1 %v15596_v44  ;;  %11709 = vmatprep.subr.mxu1 %v15354_v11  ;;  %v4318_v44 = vand.u32 4294901760, %v15624_v31 }
 0x303   : > { %11602 = vmatpush3.msra.mxu0 %v15520_v22  ;;  %11655 = vmatprep.mubr.f32.mxu1 %v15603_v30  ;;  %v18869_v30 = vand.u32 4294901760, %v15612_v61 }
 0x304   : > { %11710 = vmatpush3.msra.mxu1 %v15354_v11  ;;  %11603 = vmatprep.subr.mxu0 %v15533_v28  ;;  %v4319_v38 = vsub.f32 %v15624_v31, %v4318_v44 }
 0x305   : > { %11711 = vmatprep.subr.mxu1 %v15368_v54  ;;  %11604 = vmatpush3.msra.mxu0 %v15533_v28  ;;  %v4309_v32 = vsub.f32 %v15612_v61, %v18869_v30  ;;  %v15665_v30 = vsub.f32 %v3210_v6, %v15646_v50  ;;  %v18870_v6 = vand.u32 4294901760, %v15504_v20 }
 0x306   : > { %11712 = vmatpush3.msra.mxu1 %v15368_v54  ;;  %11606 = vmatmul.mubr.f32.vlgmr.msra.gmra.mxu0 %v4290_v42  ;;  %v4320_v42 = vand.u32 4294901760, %v4319_v38 }
 0x307   : > { %11656 = vmatmul.mubr.f32.gmra.mxu1 %v15621_v43  ;;  %11661 = vmatprep.subr.mxu0 %v15350_v4  ;;  %v4310_v8 = vand.u32 4294901760, %v4309_v32  ;;  %v4348_v32 = vand.u32 4294901760, %v15665_v30 }
 0x308   : > { %11713 = vmatprep.subr.mxu1 %v15382_v36  ;;  %11608 = vmatprep.mubr.f32.mxu0 %v4300_v18  ;;  %v4338_v18 = vand.u32 4294901760, %v15653_v35 }
 0x309   : > { %11658 = vmatprep.mubr.f32.mxu1 %v15633_v52  ;;  %11662 = vmatpush3.msra.mxu0 %v15350_v4  ;;  %v4329_v4 = vsub.f32 %v15642_v40, %v4328_v13 }
 0x30a   : > { %11714 = vmatpush3.msra.mxu1 %v15382_v36  ;;  %11663 = vmatprep.subr.mxu0 %v15361_v16 }
 0x30b   : > { %11715 = vmatprep.subr.mxu1 %v15398_v45  ;;  %11664 = vmatpush3.msra.mxu0 %v15361_v16  ;;  %v4339_v16 = vsub.f32 %v15653_v35, %v4338_v18  ;;  %v4330_v38 = vand.u32 4294901760, %v4329_v4 }
 0x30c   : > { %11716 = vmatpush3.msra.mxu1 %v15398_v45  ;;  %11609 = vmatmul.mubr.f32.gmra.mxu0 %v4310_v8  ;;  %v4349_v8 = vsub.f32 %v15665_v30, %v4348_v32 }
 0x30d   : > { %11659 = vmatmul.mubr.f32.gmra.mxu1 %v15646_v50  ;;  %11665 = vmatprep.subr.mxu0 %v15373_v24 }
 0x30e   : > { %11717 = vmatprep.subr.mxu1 %v15416_v3  ;;  %11611 = vmatprep.mubr.f32.mxu0 %v4320_v42 }
 0x30f   : > { %11666 = vmatpush3.msra.mxu0 %v15373_v24  ;;  %11718 = vmatpush3.msra.mxu1 %v15416_v3  ;;  %v4340_v24 = vand.u32 4294901760, %v4339_v16 }
 0x310   : > { %11737 = vmatprep.mubr.f32.mxu1 %v18870_v6  ;;  %11667 = vmatprep.subr.mxu0 %v15389_v34  ;;  %v18881_v6 = vld [vmem:[#allocation22_spill] sm:$0xff] }
 0x311   : > { %11719 = vmatprep.subr.mxu1 %v15431_v7  ;;  %11668 = vmatpush3.msra.mxu0 %v15389_v34  ;;  %v4350_v34 = vand.u32 4294901760, %v4349_v8 }
 0x312   : > { %11720 = vmatpush3.msra.mxu1 %v15431_v7  ;;  %11612 = vmatmul.mubr.f32.gmra.mxu0 %v4330_v38 }
 0x313   : > { %11669 = vmatprep.subr.mxu0 %v15405_v56  ;;  %11721 = vmatprep.subr.mxu1 %v15438_v27 }
 0x314   : > { %11614 = vmatprep.mubr.f32.mxu0 %v4340_v24  ;;  %11670 = vmatpush3.msra.mxu0 %v15405_v56  ;;  %v18871_v56 = vand.u32 4294901760, %v15592_v17 }
 0x315   : > { %11722 = vmatpush3.msra.mxu1 %v15438_v27  ;;  %11671 = vmatprep.subr.mxu0 %v15421_v15 }
 0x316   : > { %11723 = vmatprep.subr.mxu1 %v15458_v9  ;;  %11672 = vmatpush3.msra.mxu0 %v15421_v15  ;;  %v18872_v15 = vand.u32 4294901760, %v15599_v48 }
 0x317   : > { %11724 = vmatpush3.msra.mxu1 %v15458_v9  ;;  %11615 = vmatmul.mubr.f32.gmra.mxu0 %v4350_v34  ;;  %v18884_v34 = vld [vmem:[#allocation28_spill] sm:$0xff] }
 0x318   : > { %11673 = vmatprep.subr.mxu0 %v15436_v49  ;;  %11725 = vmatprep.subr.mxu1 %v15465_v25 }
 0x319   : > { %11674 = vmatpush3.msra.mxu0 %v15436_v49  ;;  %11693 = vmatprep.mubr.f32.mxu0 %v15504_v20  ;;  %v18873_v49 = vand.u32 4294901760, %v15612_v61  ;;  %v5154_v20 = vld [vmem:[#allocation6 + $0x2c0] sm:$0xff] }
 0x31a   : > { %11726 = vmatpush3.msra.mxu1 %v15465_v25  ;;  %11675 = vmatprep.subr.mxu0 %v15449_v55 }
 0x31b   : > { %11727 = vmatprep.subr.mxu1 %v15484_v53  ;;  %11676 = vmatpush3.msra.mxu0 %v15449_v55  ;;  %v5156_v55 = vld [vmem:[#allocation6 + $0x2d0] sm:$0xff] }
 0x31c   : > { %11728 = vmatpush3.msra.mxu1 %v15484_v53  ;;  %11677 = vmatprep.subr.mxu0 %v15456_v14 }
 0x31d   : > { %11729 = vmatprep.subr.mxu1 %v15494_v63  ;;  %11678 = vmatpush3.msra.mxu0 %v15456_v14 }
 0x31e   : > { %11730 = vmatpush3.msra.mxu1 %v15494_v63  ;;  %11679 = vmatprep.subr.mxu0 %v15478_v60 }
 0x31f   : > { %11731 = vmatprep.subr.mxu1 %v15509_v51  ;;  %11680 = vmatpush3.msra.mxu0 %v15478_v60 }
 0x320   : > { %11732 = vmatpush3.msra.mxu1 %v15509_v51  ;;  %11681 = vmatprep.subr.mxu0 %v15488_v0 }
 0x321   : > { %11733 = vmatprep.subr.mxu1 %v15520_v22  ;;  %11682 = vmatpush3.msra.mxu0 %v15488_v0 }
 0x322   : > { %11734 = vmatpush3.msra.mxu1 %v15520_v22  ;;  %11683 = vmatprep.subr.mxu0 %v15507_v57 }
 0x323   : > { %11735 = vmatprep.subr.mxu1 %v15533_v28  ;;  %11684 = vmatpush3.msra.mxu0 %v15507_v57 }
 0x324   : > { %11736 = vmatpush3.msra.mxu1 %v15533_v28  ;;  %11685 = vmatprep.subr.mxu0 %v15518_v19 }
 0x325   : > { %11738 = vmatmul.mubr.f32.vlgmr.msra.gmra.mxu1 %v18871_v56  ;;  %11793 = vmatprep.subr.mxu1 %v15337_v33 }
 0x326   : > { %11686 = vmatpush3.msra.mxu0 %v15518_v19  ;;  %11740 = vmatprep.mubr.f32.mxu1 %v18872_v15  ;;  %v5137_v15 = vld [vmem:[#allocation2 + $0x13] sm:$0xff] }
 0x327   : > { %11794 = vmatpush3.msra.mxu1 %v15337_v33  ;;  %11687 = vmatprep.subr.mxu0 %v15531_v59  ;;  %v5161_v33 = vld [vmem:[#allocation6 + $0x2f8] sm:$0xff] }
 0x328   : > { %11795 = vmatprep.subr.mxu1 %v15345_v39  ;;  %11688 = vmatpush3.msra.mxu0 %v15531_v59 }
 0x329   : > { %11796 = vmatpush3.msra.mxu1 %v15345_v39  ;;  %11689 = vmatprep.subr.mxu0 %v15544_v2  ;;  %v15777_v39 = vand.u32 4294901760, %v5161_v33 }
 0x32a   : > { %11741 = vmatmul.mubr.f32.gmra.mxu1 %v18873_v49  ;;  %11797 = vmatprep.subr.mxu1 %v15354_v11 }
 0x32b   : > { %11690 = vmatpush3.msra.mxu0 %v15544_v2  ;;  %11743 = vmatprep.mubr.f32.mxu1 %v4318_v44  ;;  %v18876_v2 = vld [vmem:[#allocation24_spill] sm:$0xff]  ;;  %v18878_v44 = vld [vmem:[#allocation21_spill] sm:$0xff] }
 0x32c   : > { %11798 = vmatpush3.msra.mxu1 %v15354_v11  ;;  %11691 = vmatprep.subr.mxu0 %v15557_v12  ;;  %v5160_v11 = vld [vmem:[#allocation6 + $0x2f0] sm:$0xff] }
 0x32d   : > { %11799 = vmatprep.subr.mxu1 %v15368_v54  ;;  %11692 = vmatpush3.msra.mxu0 %v15557_v12  ;;  %v15873_v12 = vand.u32 4294901760, %v5154_v20 }
 0x32e   : > { %11800 = vmatpush3.msra.mxu1 %v15368_v54  ;;  %11694 = vmatmul.mubr.f32.vlgmr.msra.gmra.mxu0 %v15592_v17  ;;  %v15785_v54 = vand.u32 4294901760, %v5160_v11 }
 0x32f   : > { %11744 = vmatmul.mubr.f32.gmra.mxu1 %v4328_v13  ;;  %11749 = vmatprep.subr.mxu0 %v15366_v62  ;;  %v15891_v4 = vsub.f32 %v5154_v20, %v15873_v12 }
 0x330   : > { %11801 = vmatprep.subr.mxu1 %v15382_v36  ;;  %11696 = vmatprep.mubr.f32.mxu0 %v15599_v48 }
 0x331   : > { %11746 = vmatprep.mubr.f32.mxu1 %v4338_v18  ;;  %11750 = vmatpush3.msra.mxu0 %v15366_v62  ;;  %v5159_v62 = vld [vmem:[#allocation6 + $0x2e8] sm:$0xff] }
 0x332   : > { %11802 = vmatpush3.msra.mxu1 %v15382_v36  ;;  %11751 = vmatprep.subr.mxu0 %v15380_v21  ;;  %v15794_v36 = vand.u32 4294901760, %v5159_v62  ;;  %v18880_v18 = vld [vmem:[#allocation17_spill] sm:$0xff] }
 0x333   : > { %11803 = vmatprep.subr.mxu1 %v15398_v45  ;;  %11752 = vmatpush3.msra.mxu0 %v15380_v21  ;;  %v15790_v21 = vsub.f32 %v5161_v33, %v15777_v39  ;;  %v18885_v33 = vld [vmem:[#allocation15_spill] sm:$0xff] }
 0x334   : > { %11804 = vmatpush3.msra.mxu1 %v15398_v45  ;;  %11697 = vmatmul.mubr.f32.gmra.mxu0 %v15612_v61  ;;  %v15801_v45 = vsub.f32 %v5160_v11, %v15785_v54  ;;  %v5152_v61 = vld [vmem:[#allocation6 + $0x2b0] sm:$0xff] }
 0x335   : > { %11747 = vmatmul.mubr.f32.gmra.mxu1 %v4348_v32  ;;  %11753 = vmatprep.subr.mxu0 %v15394_v29  ;;  %v5151_v32 = vld [vmem:[#allocation6 + $0x2a8] sm:$0xff]  ;;  %v15899_v8 = vand.u32 4294901760, %v5152_v61 }
 0x336   : > { %11805 = vmatprep.subr.mxu1 %v15416_v3  ;;  %11699 = vmatprep.mubr.f32.mxu0 %v15624_v31 }
 0x337   : > { %11754 = vmatpush3.msra.mxu0 %v15394_v29  ;;  %11806 = vmatpush3.msra.mxu1 %v15416_v3  ;;  %v5158_v29 = vld [vmem:[#allocation6 + $0x2e0] sm:$0xff] }
 0x338   : > { %11825 = vmatprep.mubr.f32.mxu1 %v15482_v5  ;;  %11755 = vmatprep.subr.mxu0 %v15410_v46  ;;  %v15808_v3 = vand.u32 4294901760, %v5158_v29 }
 0x339   : > { %11807 = vmatprep.subr.mxu1 %v15431_v7  ;;  %11756 = vmatpush3.msra.mxu0 %v15410_v46  ;;  %v15806_v46 = vand.u32 4294901760, %v15790_v21 }
 0x33a   : > { %11808 = vmatpush3.msra.mxu1 %v15431_v7  ;;  %11700 = vmatmul.mubr.f32.gmra.mxu0 %v15642_v40  ;;  %v15813_v7 = vsub.f32 %v5159_v62, %v15794_v36  ;;  %v15829_v14 = vsub.f32 %v5158_v29, %v15808_v3  ;;  %v15911_v62 = vand.u32 4294901760, %v5151_v32  ;;  %v5150_v29 = vld [vmem:[#allocation6 + $0x2a0] sm:$0xff] }
 0x33b   : > { %11757 = vmatprep.subr.mxu0 %v15426_v1  ;;  %11809 = vmatprep.subr.mxu1 %v15438_v27 }
 0x33c   : > { %11702 = vmatprep.mubr.f32.mxu0 %v15653_v35  ;;  %11758 = vmatpush3.msra.mxu0 %v15426_v1  ;;  %v5157_v1 = vld [vmem:[#allocation6 + $0x2d8] sm:$0xff]  ;;  %v15850_v0 = vand.u32 4294901760, %v15829_v14 }
 0x33d   : > { %11810 = vmatpush3.msra.mxu1 %v15438_v27  ;;  %11759 = vmatprep.subr.mxu0 %v15442_v47  ;;  %v15820_v27 = vand.u32 4294901760, %v15801_v45 }
 0x33e   : > { %11811 = vmatprep.subr.mxu1 %v15458_v9  ;;  %11760 = vmatpush3.msra.mxu0 %v15442_v47  ;;  %v15822_v47 = vand.u32 4294901760, %v5157_v1 }
 0x33f   : > { %11812 = vmatpush3.msra.mxu1 %v15458_v9  ;;  %11703 = vmatmul.mubr.f32.gmra.mxu0 %v15665_v30  ;;  %v15834_v9 = vand.u32 4294901760, %v15813_v7 }
 0x340   : > { %11761 = vmatprep.subr.mxu0 %v15453_v26  ;;  %11813 = vmatprep.subr.mxu1 %v15465_v25  ;;  %v15845_v60 = vsub.f32 %v5157_v1, %v15822_v47 }
 0x341   : > { %11762 = vmatpush3.msra.mxu0 %v15453_v26  ;;  %11781 = vmatprep.mubr.f32.mxu0 %v15482_v5  ;;  %v5327_v26 = vsub.f32 %v15790_v21, %v15806_v46 }
 0x342   : > { %11814 = vmatpush3.msra.mxu1 %v15465_v25  ;;  %11763 = vmatprep.subr.mxu0 %v15469_v58  ;;  %v15838_v25 = vand.u32 4294901760, %v5156_v55  ;;  %v15866_v19 = vand.u32 4294901760, %v15845_v60 }
 0x343   : > { %11815 = vmatprep.subr.mxu1 %v15484_v53  ;;  %11764 = vmatpush3.msra.mxu0 %v15469_v58  ;;  %v5155_v58 = vld [vmem:[#allocation6 + $0x2c8] sm:$0xff] }
 0x344   : > { %11816 = vmatpush3.msra.mxu1 %v15484_v53  ;;  %11765 = vmatprep.subr.mxu0 %v15475_v41  ;;  %v5328_v53 = vand.u32 4294901760, %v5327_v26  ;;  %v15861_v57 = vsub.f32 %v5156_v55, %v15838_v25  ;;  %v5355_v35 = vsub.f32 %v15845_v60, %v15866_v19  ;;  %v15917_v55 = vand.u32 4294901760, %v15891_v4 }
 0x345   : > { %11817 = vmatprep.subr.mxu1 %v15494_v63  ;;  %11766 = vmatpush3.msra.mxu0 %v15475_v41  ;;  %v5334_v41 = vsub.f32 %v15801_v45, %v15820_v27 }
 0x346   : > { %11818 = vmatpush3.msra.mxu1 %v15494_v63  ;;  %11767 = vmatprep.subr.mxu0 %v15500_v23  ;;  %v11387_v5 = vpop.f32.mrf.mxu1  ;;  %v5341_v63 = vsub.f32 %v15813_v7, %v15834_v9  ;;  %v15882_v48 = vand.u32 4294901760, %v15861_v57  ;;  %v5356_v11 = vand.u32 4294901760, %v5355_v35  ;;  %18887 = vst [vmem:[#allocation71_spill] sm:$0xff] %v15917_v55 }
 0x347   : > { %11819 = vmatprep.subr.mxu1 %v15509_v51  ;;  %11768 = vmatpush3.msra.mxu0 %v15500_v23  ;;  %v15856_v23 = vand.u32 4294901760, %v5155_v58 }
 0x348   : > { %11820 = vmatpush3.msra.mxu1 %v15509_v51  ;;  %11769 = vmatprep.subr.mxu0 %v15513_v10  ;;  %v18874_v51 = vld [vmem:[#allocation14_spill] sm:$0xff]  ;;  %v15868_v59 = vpop.f32.mrf.mxu1  ;;  %v5342_v40 = vand.u32 4294901760, %v5341_v63  ;;  %18879 = vst [vmem:[#allocation30_spill] sm:$0xff] %v15882_v48  ;;  %v5362_v56 = vsub.f32 %v15861_v57, %v15882_v48 }
 0x349   : > { %11821 = vmatprep.subr.mxu1 %v15520_v22  ;;  %11770 = vmatpush3.msra.mxu0 %v15513_v10  ;;  %v5335_v10 = vand.u32 4294901760, %v5334_v41  ;;  %18875 = vst [vmem:[#allocation29_spill] sm:$0xff] %v15868_v59  ;;  %v15878_v17 = vsub.f32 %v5155_v58, %v15856_v23  ;;  %v15922_v41 = vand.u32 4294901760, %v5137_v15 }
 0x34a   : > { %11822 = vmatpush3.msra.mxu1 %v15520_v22  ;;  %11771 = vmatprep.subr.mxu0 %v15528_v37  ;;  %v5153_v22 = vld [vmem:[#allocation6 + $0x2b8] sm:$0xff]  ;;  %v5363_v20 = vand.u32 4294901760, %v5362_v56 }
 0x34b   : > { %11823 = vmatprep.subr.mxu1 %v15533_v28  ;;  %11772 = vmatpush3.msra.mxu0 %v15528_v37  ;;  %v5348_v37 = vsub.f32 %v15829_v14, %v15850_v0  ;;  %v15884_v31 = vand.u32 4294901760, %v5153_v22  ;;  %v15897_v38 = vand.u32 4294901760, %v15878_v17 }
 0x34c   : > { %11824 = vmatpush3.msra.mxu1 %v15533_v28  ;;  %11773 = vmatprep.subr.mxu0 %v18874_v51  ;;  %v18877_v28 = vld [vmem:[#allocation27_spill] sm:$0xff]  ;;  %v11390_v13 = vpop.f32.mrf.mxu1 }
 0x34d   : > { %11826 = vmatmul.mubr.f32.vlgmr.msra.gmra.mxu1 %v18876_v2  ;;  %11881 = vmatprep.subr.mxu1 %v5328_v53  ;;  %v5349_v42 = vand.u32 4294901760, %v5348_v37  ;;  %18882 = vst [vmem:[#allocation83_spill] sm:$0xff] %v15897_v38  ;;  %v15908_v49 = vsub.f32 %v5153_v22, %v15884_v31  ;;  %v5369_v58 = vsub.f32 %v15878_v17, %v15897_v38  ;;  %v5148_v37 = vld [vmem:[#allocation6 + $0x290] sm:$0xff] }
 0x34e   : > { %11774 = vmatpush3.msra.mxu0 %v18874_v51  ;;  %11828 = vmatprep.mubr.f32.mxu1 %v18877_v28  ;;  %v15913_v1 = vpop.f32.mrf.mxu1 }
 0x34f   : > { %11882 = vmatpush3.msra.mxu1 %v5328_v53  ;;  %11775 = vmatprep.subr.mxu0 %v18878_v44  ;;  %18886 = vst [vmem:[#allocation97_spill] sm:$0xff] %v15913_v1  ;;  %v5149_v53 = vld [vmem:[#allocation6 + $0x298] sm:$0xff]  ;;  %v15932_v51 = vand.u32 4294901760, %v15908_v49  ;;  %v5370_v35 = vand.u32 4294901760, %v5369_v58 }
 0x350   : > { %11883 = vmatprep.subr.mxu1 %v5335_v10  ;;  %11776 = vmatpush3.msra.mxu0 %v18878_v44  ;;  %v11343_v30 = vpop.f32.mrf.mxu0  ;;  %v5376_v44 = vsub.f32 %v15891_v4, %v15917_v55 }
 0x351   : > { %11884 = vmatpush3.msra.mxu1 %v5335_v10  ;;  %11777 = vmatprep.subr.mxu0 %v18880_v18  ;;  %v15893_v16 = vadd.f32 %v11387_v5, %v11343_v30  ;;  %v15925_v5 = vsub.f32 %v5152_v61, %v15899_v8  ;;  %18888 = vst [vmem:[#allocation73_spill] sm:$0xff] %v15932_v51  ;;  %v15934_v10 = vand.u32 4294901760, %v5150_v29  ;;  %v15946_v61 = vand.u32 4294901760, %v5149_v53  ;;  %v5147_v30 = vld [vmem:[#allocation6 + $0x288] sm:$0xff] }
 0x352   : > { %11829 = vmatmul.mubr.f32.gmra.mxu1 %v18881_v6  ;;  %11885 = vmatprep.subr.mxu1 %v5342_v40  ;;  %v15901_v24 = vpop.f32.mrf.mxu0  ;;  %v15976_v1 = vand.u32 4294901760, %v5147_v30 }
 0x353   : > { %18883 = vst [vmem:[#allocation89_spill] sm:$0xff] %v15901_v24  ;;  %11778 = vmatpush3.msra.mxu0 %v18880_v18  ;;  %11831 = vmatprep.mubr.f32.mxu1 %v18884_v34  ;;  %v5383_v18 = vsub.f32 %v15908_v49, %v15932_v51  ;;  %v15974_v58 = vsub.f32 %v5149_v53, %v15946_v61 }
 0x354   : > { %11886 = vmatpush3.msra.mxu1 %v5342_v40  ;;  %11779 = vmatprep.subr.mxu0 %v18885_v33  ;;  %v11393_v40 = vpop.f32.mrf.mxu1 }
 0x355   : > { %11887 = vmatprep.subr.mxu1 %v5349_v42  ;;  %11780 = vmatpush3.msra.mxu0 %v18885_v33  ;;  %v11346_v26 = vpop.f32.mrf.mxu0 }
 0x356   : > { %11888 = vmatpush3.msra.mxu1 %v5349_v42  ;;  %11782 = vmatmul.mubr.f32.vlgmr.msra.gmra.mxu0 %v18876_v2  ;;  %v15927_v63 = vadd.f32 %v11390_v13, %v11346_v26  ;;  %v15940_v2 = vsub.f32 %v5151_v32, %v15911_v62  ;;  %v15953_v13 = vsub.f32 %v5137_v15, %v15922_v41  ;;  %v15961_v32 = vand.u32 4294901760, %v5148_v37  ;;  %v5146_v15 = vld [vmem:[#allocation6 + $0x280] sm:$0xff] }
 0x357   : > { %11832 = vmatmul.mubr.f32.gmra.mxu1 %v15621_v43  ;;  %11837 = vmatprep.subr.mxu0 %v15777_v39  ;;  %v15936_v22 = vpop.f32.mrf.mxu0  ;;  %v15959_v42 = vsub.f32 %v5150_v29, %v15934_v10  ;;  %v5377_v29 = vand.u32 4294901760, %v5376_v44 }
 0x358   : > { %18889 = vst [vmem:[#allocation75_spill] sm:$0xff] %v15936_v22  ;;  %11889 = vmatprep.subr.mxu1 %v5356_v11  ;;  %11784 = vmatprep.mubr.f32.mxu0 %v18877_v28  ;;  %v15950_v28 = vand.u32 4294901760, %v15925_v5  ;;  %v15965_v33 = vand.u32 4294901760, %v15940_v2  ;;  %v15989_v53 = vsub.f32 %v5148_v37, %v15961_v32  ;;  %v16002_v37 = vsub.f32 %v5147_v30, %v15976_v1 }
 0x359   : > { %11834 = vmatprep.mubr.f32.mxu1 %v15633_v52  ;;  %11838 = vmatpush3.msra.mxu0 %v15777_v39  ;;  %v15986_v44 = vand.u32 4294901760, %v15959_v42  ;;  %v18896_v59 = vand.u32 4294901760, %v15953_v13 }
 0x35a   : > { %11890 = vmatpush3.msra.mxu1 %v5356_v11  ;;  %11839 = vmatprep.subr.mxu0 %v15785_v54  ;;  %18890 = vst [vmem:[#allocation72_spill] sm:$0xff] %v15950_v28  ;;  %18891 = vst [vmem:[#allocation77_spill] sm:$0xff] %v15965_v33  ;;  %v15967_v11 = vpop.f32.mrf.mxu1 }
 0x35b   : > { %11891 = vmatprep.subr.mxu1 %v5363_v20  ;;  %11840 = vmatpush3.msra.mxu0 %v15785_v54  ;;  %v11349_v56 = vpop.f32.mrf.mxu0  ;;  %18892 = vst [vmem:[#allocation85_spill] sm:$0xff] %v15967_v11  ;;  %18894 = vst [vmem:[#allocation99_spill] sm:$0xff] %v15986_v44  ;;  %v15991_v11 = vand.u32 4294901760, %v5146_v15  ;;  %v5246_v24 = vsub.f32 %v15953_v13, %v18896_v59 }
 0x35c   : > { %11892 = vmatpush3.msra.mxu1 %v5363_v20  ;;  %11785 = vmatmul.mubr.f32.gmra.mxu0 %v18881_v6  ;;  %v15969_v26 = vadd.f32 %v11393_v40, %v11349_v56  ;;  %v5390_v6 = vsub.f32 %v15925_v5, %v15950_v28  ;;  %v5384_v56 = vand.u32 4294901760, %v5383_v18  ;;  %v11396_v40 = vpop.f32.mrf.mxu1  ;;  %v16014_v28 = vand.u32 4294901760, %v15989_v53 }
 0x35d   : > { %11835 = vmatmul.mubr.f32.gmra.mxu1 %v15646_v50  ;;  %11841 = vmatprep.subr.mxu0 %v15794_v36  ;;  %v15978_v20 = vpop.f32.mrf.mxu0  ;;  %v16017_v30 = vsub.f32 %v5146_v15, %v15991_v11  ;;  %v5247_v15 = vand.u32 4294901760, %v5246_v24 }
 0x35e   : > { %18893 = vst [vmem:[#allocation90_spill] sm:$0xff] %v15978_v20  ;;  %11893 = vmatprep.subr.mxu1 %v5370_v35  ;;  %11787 = vmatprep.mubr.f32.mxu0 %v18884_v34  ;;  %v5397_v34 = vsub.f32 %v15940_v2, %v15965_v33  ;;  %v5391_v22 = vand.u32 4294901760, %v5390_v6  ;;  %v5404_v33 = vsub.f32 %v15959_v42, %v15986_v44  ;;  %18897 = vst [vmem:[#allocation74_spill] sm:$0xff] %v16014_v28 }
 0x35f   : > { %11842 = vmatpush3.msra.mxu0 %v15794_v36  ;;  %11894 = vmatpush3.msra.mxu1 %v5370_v35  ;;  %v15999_v35 = vand.u32 4294901760, %v15974_v58  ;;  %v16032_v6 = vand.u32 4294901760, %v16017_v30 }
 0x360   : > { %11913 = vmatprep.mubr.f32.mxu1 %v15922_v41  ;;  %11843 = vmatprep.subr.mxu0 %v15808_v3  ;;  %v11352_v20 = vpop.f32.mrf.mxu0 }
 0x361   : > { %11895 = vmatprep.subr.mxu1 %v5377_v29  ;;  %11844 = vmatpush3.msra.mxu0 %v15808_v3  ;;  %18895 = vst [vmem:[#allocation102_spill] sm:$0xff] %v15999_v35  ;;  %v16004_v18 = vadd.f32 %v11396_v40, %v11352_v20  ;;  %v5411_v59 = vsub.f32 %v15974_v58, %v15999_v35  ;;  %18899 = vst [vmem:[#allocation76_spill] sm:$0xff] %v16032_v6 }
 0x362   : > { %11896 = vmatpush3.msra.mxu1 %v5377_v29  ;;  %11788 = vmatmul.mubr.f32.gmra.mxu0 %v15621_v43  ;;  %v5398_v43 = vand.u32 4294901760, %v5397_v34  ;;  %v16025_v29 = vand.u32 4294901760, %v16002_v37  ;;  %v5418_v20 = vsub.f32 %v15989_v53, %v16014_v28  ;;  %v5432_v24 = vsub.f32 %v16017_v30, %v16032_v6  ;;  %v16050_v6 = vpop.f32.mrf.mxu1 }
 0x363   : > { %11845 = vmatprep.subr.mxu0 %v15822_v47  ;;  %11897 = vmatprep.subr.mxu1 %v5384_v56  ;;  %v5412_v40 = vand.u32 4294901760, %v5411_v59  ;;  %18902 = vst [vmem:[#allocation101_spill] sm:$0xff] %v16050_v6  ;;  %v16068_v6 = vpop.f32.mrf.mxu0 }
 0x364   : > { %11790 = vmatprep.mubr.f32.mxu0 %v15633_v52  ;;  %11846 = vmatpush3.msra.mxu0 %v15822_v47  ;;  %18898 = vst [vmem:[#allocation79_spill] sm:$0xff] %v16025_v29  ;;  %v5405_v52 = vand.u32 4294901760, %v5404_v33  ;;  %v5139_v33 = vld [vmem:[#allocation2 + $0x23] sm:$0xff]  ;;  %18905 = vst [vmem:[#allocation82_spill] sm:$0xff] %v16068_v6 }
 0x365   : > { %11898 = vmatpush3.msra.mxu1 %v5384_v56  ;;  %11847 = vmatprep.subr.mxu0 %v15838_v25  ;;  %v5138_v56 = vld [vmem:[#allocation2 + $0x1b] sm:$0xff] }
 0x366   : > { %11899 = vmatprep.subr.mxu1 %v5391_v22  ;;  %11848 = vmatpush3.msra.mxu0 %v15838_v25  ;;  %v16043_v34 = vand.u32 4294901760, %v5138_v56 }
 0x367   : > { %11900 = vmatpush3.msra.mxu1 %v5391_v22  ;;  %11791 = vmatmul.mubr.f32.gmra.mxu0 %v15646_v50  ;;  %v5425_v22 = vsub.f32 %v16002_v37, %v16025_v29  ;;  %v5419_v50 = vand.u32 4294901760, %v5418_v20  ;;  %v5140_v20 = vld [vmem:[#allocation2 + $0x2b] sm:$0xff] }
 0x368   : > { %11849 = vmatprep.subr.mxu0 %v15856_v23  ;;  %11901 = vmatprep.subr.mxu1 %v5398_v43  ;;  %18900 = vst [vmem:[#allocation81_spill] sm:$0xff] %v16043_v34  ;;  %v16058_v29 = vand.u32 4294901760, %v5140_v20 }
 0x369   : > { %11850 = vmatpush3.msra.mxu0 %v15856_v23  ;;  %11869 = vmatprep.mubr.f32.mxu0 %v5247_v15  ;;  %v5426_v59 = vand.u32 4294901760, %v5425_v22  ;;  %v5433_v15 = vand.u32 4294901760, %v5432_v24 }
 0x36a   : > { %11902 = vmatpush3.msra.mxu1 %v5398_v43  ;;  %11851 = vmatprep.subr.mxu0 %v15873_v12  ;;  %v16047_v43 = vand.u32 4294901760, %v5139_v33  ;;  %18903 = vst [vmem:[#allocation104_spill] sm:$0xff] %v16058_v29 }
 0x36b   : > { %11903 = vmatprep.subr.mxu1 %v5405_v52  ;;  %11852 = vmatpush3.msra.mxu0 %v15873_v12 }
 0x36c   : > { %11904 = vmatpush3.msra.mxu1 %v5405_v52  ;;  %11853 = vmatprep.subr.mxu0 %v15884_v31  ;;  %18901 = vst [vmem:[#allocation78_spill] sm:$0xff] %v16047_v43  ;;  %v16054_v52 = vsub.f32 %v5138_v56, %v16043_v34  ;;  %v16061_v24 = vsub.f32 %v5139_v33, %v16047_v43 }
 0x36d   : > { %11905 = vmatprep.subr.mxu1 %v5412_v40  ;;  %11854 = vmatpush3.msra.mxu0 %v15884_v31  ;;  %v11475_v22 = vpop.f32.mrf.mxu1 }
 0x36e   : > { %11906 = vmatpush3.msra.mxu1 %v5412_v40  ;;  %11855 = vmatprep.subr.mxu0 %v15899_v8  ;;  %v5141_v40 = vld [vmem:[#allocation2 + $0x33] sm:$0xff] }
 0x36f   : > { %11907 = vmatprep.subr.mxu1 %v5419_v50  ;;  %11856 = vmatpush3.msra.mxu0 %v15899_v8  ;;  %v16065_v56 = vand.u32 4294901760, %v5141_v40  ;;  %v16072_v28 = vpop.f32.mrf.mxu1 }
 0x370   : > { %11908 = vmatpush3.msra.mxu1 %v5419_v50  ;;  %11857 = vmatprep.subr.mxu0 %v15911_v62  ;;  %18906 = vst [vmem:[#allocation84_spill] sm:$0xff] %v16072_v28  ;;  %v5143_v50 = vld [vmem:[#allocation2 + $0x43] sm:$0xff]  ;;  %v18907_v28 = vand.u32 4294901760, %v16054_v52 }
 0x371   : > { %11909 = vmatprep.subr.mxu1 %v5426_v59  ;;  %11858 = vmatpush3.msra.mxu0 %v15911_v62  ;;  %18904 = vst [vmem:[#allocation80_spill] sm:$0xff] %v16065_v56  ;;  %v16104_v51 = vand.u32 4294901760, %v5143_v50 }
 0x372   : > { %11910 = vmatpush3.msra.mxu1 %v5426_v59  ;;  %11859 = vmatprep.subr.mxu0 %v15934_v10  ;;  %v5142_v59 = vld [vmem:[#allocation2 + $0x3b] sm:$0xff] }
 0x373   : > { %11911 = vmatprep.subr.mxu1 %v5433_v15  ;;  %11860 = vmatpush3.msra.mxu0 %v15934_v10  ;;  %v16088_v33 = vand.u32 4294901760, %v5142_v59  ;;  %v16127_v38 = vsub.f32 %v5143_v50, %v16104_v51 }
 0x374   : > { %11912 = vmatpush3.msra.mxu1 %v5433_v15  ;;  %11861 = vmatprep.subr.mxu0 %v15946_v61  ;;  %v16078_v15 = vsub.f32 %v5140_v20, %v16058_v29  ;;  %v16091_v20 = vsub.f32 %v5141_v40, %v16065_v56 }
 0x375   : > { %11914 = vmatmul.mubr.f32.vlgmr.msra.gmra.mxu1 %v16043_v34  ;;  %11969 = vmatprep.subr.mxu1 %v15777_v39 }
 0x376   : > { %11862 = vmatpush3.msra.mxu0 %v15946_v61  ;;  %11916 = vmatprep.mubr.f32.mxu1 %v16047_v43  ;;  %v11431_v35 = vpop.f32.mrf.mxu0  ;;  %v5256_v43 = vsub.f32 %v16054_v52, %v18907_v28  ;;  %v18909_v28 = vand.u32 4294901760, %v16061_v24 }
 0x377   : > { %11970 = vmatpush3.msra.mxu1 %v15777_v39  ;;  %11863 = vmatprep.subr.mxu0 %v15961_v32  ;;  %v3715_v6 = vadd.f32 %v11431_v35, %v15893_v16  ;;  %v11478_v16 = vpop.f32.mrf.mxu1 }
 0x378   : > { %11971 = vmatprep.subr.mxu1 %v15785_v54  ;;  %11864 = vmatpush3.msra.mxu0 %v15961_v32  ;;  %v16093_v34 = vpop.f32.mrf.mxu0  ;;  %v5266_v44 = vsub.f32 %v16061_v24, %v18909_v28 }
 0x379   : > { %18908 = vst [vmem:[#allocation87_spill] sm:$0xff] %v16093_v34  ;;  %11972 = vmatpush3.msra.mxu1 %v15785_v54  ;;  %11865 = vmatprep.subr.mxu0 %v15976_v1  ;;  %v16097_v35 = vadd.f32 %v11475_v22, %v3715_v6  ;;  %v5144_v34 = vld [vmem:[#allocation2 + $0x4b] sm:$0xff]  ;;  %v5257_v6 = vand.u32 4294901760, %v5256_v43  ;;  %v16119_v55 = vpop.f32.mrf.mxu1  ;;  %v18911_v22 = vand.u32 4294901760, %v16078_v15 }
 0x37a   : > { %11917 = vmatmul.mubr.f32.gmra.mxu1 %v16058_v29  ;;  %11973 = vmatprep.subr.mxu1 %v15794_v36  ;;  %v16113_v29 = vsub.f32 %v5142_v59, %v16088_v33  ;;  %v16117_v40 = vand.u32 4294901760, %v5144_v34  ;;  %18910 = vst [vmem:[#allocation92_spill] sm:$0xff] %v16119_v55  ;;  %v5267_v43 = vand.u32 4294901760, %v5266_v44 }
 0x37b   : > { %11866 = vmatpush3.msra.mxu0 %v15976_v1  ;;  %11919 = vmatprep.mubr.f32.mxu1 %v16065_v56  ;;  %v5276_v59 = vsub.f32 %v16078_v15, %v18911_v22  ;;  %v11481_v22 = vpop.f32.mrf.mxu1 }
 0x37c   : > { %11974 = vmatpush3.msra.mxu1 %v15794_v36  ;;  %11867 = vmatprep.subr.mxu0 %v15991_v11  ;;  %v11434_v28 = vpop.f32.mrf.mxu0  ;;  %v16143_v50 = vsub.f32 %v5144_v34, %v16117_v40 }
 0x37d   : > { %11975 = vmatprep.subr.mxu1 %v15808_v3  ;;  %11868 = vmatpush3.msra.mxu0 %v15991_v11  ;;  %v3729_v56 = vadd.f32 %v11434_v28, %v15927_v63  ;;  %v18912_v63 = vand.u32 4294901760, %v16091_v20 }
 0x37e   : > { %11976 = vmatpush3.msra.mxu1 %v15808_v3  ;;  %11870 = vmatmul.mubr.f32.vlgmr.msra.gmra.mxu0 %v5257_v6  ;;  %v16129_v48 = vpop.f32.mrf.mxu0  ;;  %v18415_v6 = vand.u32 4294901760, %v16113_v29 }
 0x37f   : > { %11920 = vmatmul.mubr.f32.gmra.mxu1 %v16088_v33  ;;  %11925 = vmatprep.subr.mxu0 %v15790_v21  ;;  %v16133_v55 = vadd.f32 %v11478_v16, %v3729_v56  ;;  %v5286_v44 = vsub.f32 %v16091_v20, %v18912_v63  ;;  %v5277_v56 = vand.u32 4294901760, %v5276_v59  ;;  %v5315_v59 = vand.u32 4294901760, %v16143_v50  ;;  %v16160_v16 = vpop.f32.mrf.mxu1 }
 0x380   : > { %11977 = vmatprep.subr.mxu1 %v15822_v47  ;;  %11872 = vmatprep.mubr.f32.mxu0 %v5267_v43  ;;  %v5296_v34 = vsub.f32 %v16113_v29, %v18415_v6 }
 0x381   : > { %11922 = vmatprep.mubr.f32.mxu1 %v16104_v51  ;;  %11926 = vmatpush3.msra.mxu0 %v15790_v21  ;;  %v5287_v21 = vand.u32 4294901760, %v5286_v44 }
 0x382   : > { %11978 = vmatpush3.msra.mxu1 %v15822_v47  ;;  %11927 = vmatprep.subr.mxu0 %v15801_v45  ;;  %v11437_v28 = vpop.f32.mrf.mxu0  ;;  %v5297_v6 = vand.u32 4294901760, %v5296_v34  ;;  %v18919_v34 = vand.u32 4294901760, %v16113_v29 }
 0x383   : > { %11979 = vmatprep.subr.mxu1 %v15838_v25  ;;  %11928 = vmatpush3.msra.mxu0 %v15801_v45  ;;  %v3743_v43 = vadd.f32 %v11437_v28, %v15969_v26  ;;  %v18913_v26 = vand.u32 4294901760, %v16127_v38  ;;  %v18914_v28 = vand.u32 4294901760, %v15953_v13 }
 0x384   : > { %11980 = vmatpush3.msra.mxu1 %v15838_v25  ;;  %11873 = vmatmul.mubr.f32.gmra.mxu0 %v5277_v56  ;;  %v16155_v63 = vpop.f32.mrf.mxu0 }
 0x385   : > { %11923 = vmatmul.mubr.f32.gmra.mxu1 %v16117_v40  ;;  %11929 = vmatprep.subr.mxu0 %v15813_v7  ;;  %v16162_v45 = vadd.f32 %v11481_v22, %v3743_v43  ;;  %v5306_v44 = vsub.f32 %v16127_v38, %v18913_v26  ;;  %v5316_v43 = vsub.f32 %v16143_v50, %v5315_v59 }
 0x386   : > { %11981 = vmatprep.subr.mxu1 %v15856_v23  ;;  %11875 = vmatprep.mubr.f32.mxu0 %v5287_v21 }
 0x387   : > { %11930 = vmatpush3.msra.mxu0 %v15813_v7  ;;  %11982 = vmatpush3.msra.mxu1 %v15856_v23  ;;  %v11440_v56 = vpop.f32.mrf.mxu0  ;;  %v11484_v7 = vpop.f32.mrf.mxu1  ;;  %v5307_v21 = vand.u32 4294901760, %v5306_v44  ;;  %v18933_v44 = vld [vmem:[#allocation104_spill] sm:$0xff] }
 0x388   : > { %12001 = vmatprep.mubr.f32.mxu1 %v18914_v28  ;;  %11931 = vmatprep.subr.mxu0 %v15829_v14  ;;  %v3757_v22 = vadd.f32 %v11440_v56, %v16004_v18 }
 0x389   : > { %11983 = vmatprep.subr.mxu1 %v15873_v12  ;;  %11932 = vmatpush3.msra.mxu0 %v15829_v14  ;;  %v5317_v14 = vand.u32 4294901760, %v5316_v43  ;;  %v18935_v43 = vld [vmem:[#allocation76_spill] sm:$0xff] }
 0x38a   : > { %11984 = vmatpush3.msra.mxu1 %v15873_v12  ;;  %11876 = vmatmul.mubr.f32.gmra.mxu0 %v5297_v6  ;;  %v16180_v26 = vadd.f32 %v11484_v7, %v3757_v22  ;;  %v18917_v6 = vand.u32 4294901760, %v16078_v15  ;;  %v18934_v22 = vld [vmem:[#allocation80_spill] sm:$0xff] }
 0x38b   : > { %11933 = vmatprep.subr.mxu0 %v15845_v60  ;;  %11985 = vmatprep.subr.mxu1 %v15884_v31 }
 0x38c   : > { %11878 = vmatprep.mubr.f32.mxu0 %v5307_v21  ;;  %11934 = vmatpush3.msra.mxu0 %v15845_v60  ;;  %v16206_v60 = vpop.f32.mrf.mxu1 }
 0x38d   : > { %11986 = vmatpush3.msra.mxu1 %v15884_v31  ;;  %11935 = vmatprep.subr.mxu0 %v15861_v57 }
 0x38e   : > { %11987 = vmatprep.subr.mxu1 %v15899_v8  ;;  %11936 = vmatpush3.msra.mxu0 %v15861_v57 }
 0x38f   : > { %11988 = vmatpush3.msra.mxu1 %v15899_v8  ;;  %11879 = vmatmul.mubr.f32.gmra.mxu0 %v5317_v14 }
 0x390   : > { %11937 = vmatprep.subr.mxu0 %v15878_v17  ;;  %11989 = vmatprep.subr.mxu1 %v15911_v62 }
 0x391   : > { %11938 = vmatpush3.msra.mxu0 %v15878_v17  ;;  %11957 = vmatprep.mubr.f32.mxu0 %v15953_v13  ;;  %v16218_v17 = vpop.f32.mrf.mxu0 }
 0x392   : > { %11990 = vmatpush3.msra.mxu1 %v15911_v62  ;;  %11939 = vmatprep.subr.mxu0 %v15891_v4 }
 0x393   : > { %11991 = vmatprep.subr.mxu1 %v15934_v10  ;;  %11940 = vmatpush3.msra.mxu0 %v15891_v4  ;;  %v18915_v4 = vand.u32 4294901760, %v16054_v52 }
 0x394   : > { %11992 = vmatpush3.msra.mxu1 %v15934_v10  ;;  %11941 = vmatprep.subr.mxu0 %v15908_v49 }
 0x395   : > { %11993 = vmatprep.subr.mxu1 %v15946_v61  ;;  %11942 = vmatpush3.msra.mxu0 %v15908_v49  ;;  %v11563_v57 = vpop.f32.mrf.mxu1 }
 0x396   : > { %11994 = vmatpush3.msra.mxu1 %v15946_v61  ;;  %11943 = vmatprep.subr.mxu0 %v15925_v5 }
 0x397   : > { %11995 = vmatprep.subr.mxu1 %v15961_v32  ;;  %11944 = vmatpush3.msra.mxu0 %v15925_v5  ;;  %v16223_v49 = vpop.f32.mrf.mxu1  ;;  %v18916_v5 = vand.u32 4294901760, %v16061_v24 }
 0x398   : > { %11996 = vmatpush3.msra.mxu1 %v15961_v32  ;;  %11945 = vmatprep.subr.mxu0 %v15940_v2 }
 0x399   : > { %11997 = vmatprep.subr.mxu1 %v15976_v1  ;;  %11946 = vmatpush3.msra.mxu0 %v15940_v2 }
 0x39a   : > { %11998 = vmatpush3.msra.mxu1 %v15976_v1  ;;  %11947 = vmatprep.subr.mxu0 %v15959_v42 }
 0x39b   : > { %11999 = vmatprep.subr.mxu1 %v15991_v11  ;;  %11948 = vmatpush3.msra.mxu0 %v15959_v42 }
 0x39c   : > { %12000 = vmatpush3.msra.mxu1 %v15991_v11  ;;  %11949 = vmatprep.subr.mxu0 %v15974_v58 }
 0x39d   : > { %12002 = vmatmul.mubr.f32.vlgmr.msra.gmra.mxu1 %v18915_v4  ;;  %12057 = vmatprep.subr.mxu1 %v15777_v39 }
 0x39e   : > { %11950 = vmatpush3.msra.mxu0 %v15974_v58  ;;  %12004 = vmatprep.mubr.f32.mxu1 %v18916_v5  ;;  %v11519_v2 = vpop.f32.mrf.mxu0  ;;  %v11566_v58 = vpop.f32.mrf.mxu1 }
 0x39f   : > { %12058 = vmatpush3.msra.mxu1 %v15777_v39  ;;  %11951 = vmatprep.subr.mxu0 %v15989_v53  ;;  %v4027_v13 = vadd.f32 %v11519_v2, %v16097_v35  ;;  %v18918_v39 = vand.u32 4294901760, %v16091_v20 }
 0x3a0   : > { %12059 = vmatprep.subr.mxu1 %v15785_v54  ;;  %11952 = vmatpush3.msra.mxu0 %v15989_v53  ;;  %v16233_v42 = vpop.f32.mrf.mxu0  ;;  %v16249_v53 = vpop.f32.mrf.mxu1 }
 0x3a1   : > { %12060 = vmatpush3.msra.mxu1 %v15785_v54  ;;  %11953 = vmatprep.subr.mxu0 %v16002_v37  ;;  %v16237_v18 = vadd.f32 %v11563_v57, %v4027_v13 }
 0x3a2   : > { %12005 = vmatmul.mubr.f32.gmra.mxu1 %v18917_v6  ;;  %12061 = vmatprep.subr.mxu1 %v15794_v36 }
 0x3a3   : > { %11954 = vmatpush3.msra.mxu0 %v16002_v37  ;;  %12007 = vmatprep.mubr.f32.mxu1 %v18918_v39 }
 0x3a4   : > { %12062 = vmatpush3.msra.mxu1 %v15794_v36  ;;  %11955 = vmatprep.subr.mxu0 %v16017_v30  ;;  %v11522_v54 = vpop.f32.mrf.mxu0 }
 0x3a5   : > { %12063 = vmatprep.subr.mxu1 %v15808_v3  ;;  %11956 = vmatpush3.msra.mxu0 %v16017_v30  ;;  %v4039_v35 = vadd.f32 %v11522_v54, %v16133_v55  ;;  %v18920_v30 = vand.u32 4294901760, %v16127_v38 }
 0x3a6   : > { %12064 = vmatpush3.msra.mxu1 %v15808_v3  ;;  %11958 = vmatmul.mubr.f32.vlgmr.msra.gmra.mxu0 %v16054_v52  ;;  %v16254_v37 = vpop.f32.mrf.mxu0  ;;  %v11569_v3 = vpop.f32.mrf.mxu1 }
 0x3a7   : > { %12008 = vmatmul.mubr.f32.gmra.mxu1 %v18919_v34  ;;  %12013 = vmatprep.subr.mxu0 %v15806_v46  ;;  %v16259_v36 = vadd.f32 %v11566_v58, %v4039_v35  ;;  %v6209_v34 = vld [vmem:[#allocation6 + $0x3f8] sm:$0xff] }
 0x3a8   : > { %12065 = vmatprep.subr.mxu1 %v15822_v47  ;;  %11960 = vmatprep.mubr.f32.mxu0 %v16061_v24 }
 0x3a9   : > { %12010 = vmatprep.mubr.f32.mxu1 %v18920_v30  ;;  %12014 = vmatpush3.msra.mxu0 %v15806_v46  ;;  %v16278_v46 = vpop.f32.mrf.mxu1 }
 0x3aa   : > { %12066 = vmatpush3.msra.mxu1 %v15822_v47  ;;  %12015 = vmatprep.subr.mxu0 %v15820_v27  ;;  %v11525_v55 = vpop.f32.mrf.mxu0 }
 0x3ab   : > { %12067 = vmatprep.subr.mxu1 %v15838_v25  ;;  %12016 = vmatpush3.msra.mxu0 %v15820_v27  ;;  %v4051_v52 = vadd.f32 %v11525_v55, %v16162_v45 }
 0x3ac   : > { %12068 = vmatpush3.msra.mxu1 %v15838_v25  ;;  %11961 = vmatmul.mubr.f32.gmra.mxu0 %v16078_v15  ;;  %v16273_v24 = vpop.f32.mrf.mxu0  ;;  %v11572_v15 = vpop.f32.mrf.mxu1 }
 0x3ad   : > { %12011 = vmatmul.mubr.f32.gmra.mxu1 %v5315_v59  ;;  %12017 = vmatprep.subr.mxu0 %v15834_v9  ;;  %v16280_v47 = vadd.f32 %v11569_v3, %v4051_v52  ;;  %v6207_v3 = vld [vmem:[#allocation6 + $0x3e8] sm:$0xff] }
 0x3ae   : > { %12069 = vmatprep.subr.mxu1 %v15856_v23  ;;  %11963 = vmatprep.mubr.f32.mxu0 %v16091_v20  ;;  %v16396_v52 = vand.u32 4294901760, %v6207_v3 }
 0x3af   : > { %12018 = vmatpush3.msra.mxu0 %v15834_v9  ;;  %12070 = vmatpush3.msra.mxu1 %v15856_v23  ;;  %v11528_v27 = vpop.f32.mrf.mxu0  ;;  %v18921_v9 = vld [vmem:[#allocation30_spill] sm:$0xff]  ;;  %v18923_v23 = vld [vmem:[#allocation71_spill] sm:$0xff] }
 0x3b0   : > { %12089 = vmatprep.mubr.f32.mxu1 %v15922_v41  ;;  %12019 = vmatprep.subr.mxu0 %v15850_v0  ;;  %v4063_v25 = vadd.f32 %v11528_v27, %v16180_v26  ;;  %18941 = vst [vmem:[#allocation93_spill] sm:$0xff] %v16396_v52 }
 0x3b1   : > { %12071 = vmatprep.subr.mxu1 %v15873_v12  ;;  %12020 = vmatpush3.msra.mxu0 %v15850_v0  ;;  %v18922_v0 = vld [vmem:[#allocation83_spill] sm:$0xff] }
 0x3b2   : > { %12072 = vmatpush3.msra.mxu1 %v15873_v12  ;;  %11964 = vmatmul.mubr.f32.gmra.mxu0 %v16113_v29  ;;  %v16293_v20 = vadd.f32 %v11572_v15, %v4063_v25  ;;  %v18925_v12 = vld [vmem:[#allocation72_spill] sm:$0xff]  ;;  %v18930_v29 = vld [vmem:[#allocation78_spill] sm:$0xff] }
 0x3b3   : > { %12021 = vmatprep.subr.mxu0 %v15866_v19  ;;  %12073 = vmatprep.subr.mxu1 %v15884_v31 }
 0x3b4   : > { %11966 = vmatprep.mubr.f32.mxu0 %v16127_v38  ;;  %12022 = vmatpush3.msra.mxu0 %v15866_v19  ;;  %v18924_v19 = vld [vmem:[#allocation73_spill] sm:$0xff] }
 0x3b5   : > { %12074 = vmatpush3.msra.mxu1 %v15884_v31  ;;  %12023 = vmatprep.subr.mxu0 %v18921_v9  ;;  %v16321_v31 = vpop.f32.mrf.mxu1  ;;  %v18926_v38 = vld [vmem:[#allocation77_spill] sm:$0xff] }
 0x3b6   : > { %12075 = vmatprep.subr.mxu1 %v15899_v8  ;;  %12024 = vmatpush3.msra.mxu0 %v18921_v9  ;;  %v6205_v9 = vld [vmem:[#allocation6 + $0x3d8] sm:$0xff] }
 0x3b7   : > { %12076 = vmatpush3.msra.mxu1 %v15899_v8  ;;  %11967 = vmatmul.mubr.f32.gmra.mxu0 %v16143_v50 }
 0x3b8   : > { %12025 = vmatprep.subr.mxu0 %v18922_v0  ;;  %12077 = vmatprep.subr.mxu1 %v15911_v62 }
 0x3b9   : > { %12026 = vmatpush3.msra.mxu0 %v18922_v0  ;;  %12045 = vmatprep.mubr.f32.mxu0 %v15922_v41  ;;  %v18928_v41 = vld [vmem:[#allocation102_spill] sm:$0xff] }
 0x3ba   : > { %12078 = vmatpush3.msra.mxu1 %v15911_v62  ;;  %12027 = vmatprep.subr.mxu0 %v18923_v23  ;;  %v18927_v62 = vld [vmem:[#allocation99_spill] sm:$0xff] }
 0x3bb   : > { %12079 = vmatprep.subr.mxu1 %v15934_v10  ;;  %12028 = vmatpush3.msra.mxu0 %v18923_v23 }
 0x3bc   : > { %12080 = vmatpush3.msra.mxu1 %v15934_v10  ;;  %12029 = vmatprep.subr.mxu0 %v18924_v19  ;;  %v16333_v10 = vpop.f32.mrf.mxu0 }
 0x3bd   : > { %12081 = vmatprep.subr.mxu1 %v15946_v61  ;;  %12030 = vmatpush3.msra.mxu0 %v18924_v19  ;;  %v11651_v8 = vpop.f32.mrf.mxu1 }
 0x3be   : > { %12082 = vmatpush3.msra.mxu1 %v15946_v61  ;;  %12031 = vmatprep.subr.mxu0 %v18925_v12  ;;  %v18929_v61 = vld [vmem:[#allocation81_spill] sm:$0xff] }
 0x3bf   : > { %12083 = vmatprep.subr.mxu1 %v15961_v32  ;;  %12032 = vmatpush3.msra.mxu0 %v18925_v12 }
 0x3c0   : > { %12084 = vmatpush3.msra.mxu1 %v15961_v32  ;;  %12033 = vmatprep.subr.mxu0 %v18926_v38  ;;  %v16337_v32 = vpop.f32.mrf.mxu1 }
 0x3c1   : > { %12085 = vmatprep.subr.mxu1 %v15976_v1  ;;  %12034 = vmatpush3.msra.mxu0 %v18926_v38  ;;  %v16419_v38 = vand.u32 4294901760, %v6205_v9 }
 0x3c2   : > { %12086 = vmatpush3.msra.mxu1 %v15976_v1  ;;  %12035 = vmatprep.subr.mxu0 %v18927_v62  ;;  %v18931_v1 = vld [vmem:[#allocation74_spill] sm:$0xff]  ;;  %v11654_v56 = vpop.f32.mrf.mxu1 }
 0x3c3   : > { %12087 = vmatprep.subr.mxu1 %v15991_v11  ;;  %12036 = vmatpush3.msra.mxu0 %v18927_v62  ;;  %18947 = vst [vmem:[#allocation12_spill] sm:$0xff] %v16419_v38 }
 0x3c4   : > { %12088 = vmatpush3.msra.mxu1 %v15991_v11  ;;  %12037 = vmatprep.subr.mxu0 %v18928_v41  ;;  %v18932_v11 = vld [vmem:[#allocation79_spill] sm:$0xff]  ;;  %v16356_v21 = vpop.f32.mrf.mxu1 }
 0x3c5   : > { %12090 = vmatmul.mubr.f32.vlgmr.msra.gmra.mxu1 %v18929_v61  ;;  %12038 = vmatpush3.msra.mxu0 %v18928_v41 }
 0x3c6   : > { %12092 = vmatprep.mubr.f32.mxu1 %v18930_v29  ;;  %12039 = vmatprep.subr.mxu0 %v18931_v1  ;;  %v11607_v50 = vpop.f32.mrf.mxu0 }
 0x3c7   : > { %12040 = vmatpush3.msra.mxu0 %v18931_v1  ;;  %v4293_v59 = vadd.f32 %v11607_v50, %v16237_v18  ;;  %v11657_v4 = vpop.f32.mrf.mxu1  ;;  %v6203_v50 = vld [vmem:[#allocation6 + $0x3c8] sm:$0xff] }
 0x3c8   : > { %12041 = vmatprep.subr.mxu0 %v18932_v11  ;;  %v16344_v45 = vpop.f32.mrf.mxu0 }
 0x3c9   : > { %12093 = vmatmul.mubr.f32.gmra.mxu1 %v18933_v44  ;;  %12042 = vmatpush3.msra.mxu0 %v18932_v11  ;;  %v16348_v28 = vadd.f32 %v11651_v8, %v4293_v59  ;;  %v16372_v58 = vpop.f32.mrf.mxu1  ;;  %v6204_v8 = vld [vmem:[#allocation6 + $0x3d0] sm:$0xff]  ;;  %v16436_v11 = vand.u32 4294901760, %v6203_v50 }
 0x3ca   : > { %12095 = vmatprep.mubr.f32.mxu1 %v18934_v22  ;;  %12043 = vmatprep.subr.mxu0 %v18935_v43  ;;  %v16431_v1 = vand.u32 4294901760, %v6204_v8 }
 0x3cb   : > { %12044 = vmatpush3.msra.mxu0 %v18935_v43  ;;  %18951 = vst [vmem:[#allocation34_spill] sm:$0xff] %v16436_v11  ;;  %v6202_v43 = vld [vmem:[#allocation6 + $0x3c0] sm:$0xff] }
 0x3cc   : > { %12046 = vmatmul.mubr.f32.vlgmr.msra.gmra.mxu0 %v18929_v61  ;;  %v11610_v7 = vpop.f32.mrf.mxu0  ;;  %18950 = vst [vmem:[#allocation31_spill] sm:$0xff] %v16431_v1 }
 0x3cd   : > { %12096 = vmatmul.mubr.f32.gmra.mxu1 %v16088_v33  ;;  %12048 = vmatprep.mubr.f32.mxu0 %v18930_v29  ;;  %v4313_v26 = vadd.f32 %v11610_v7, %v16259_v36  ;;  %v11660_v54 = vpop.f32.mrf.mxu1  ;;  %v16380_v36 = vand.u32 4294901760, %v6209_v34  ;;  %v16429_v29 = vsub.f32 %v6205_v9, %v16419_v38 }
 0x3ce   : > { %12098 = vmatprep.mubr.f32.mxu1 %v16104_v51  ;;  %v16360_v14 = vpop.f32.mrf.mxu0 }
 0x3cf   : > { %v16362_v57 = vadd.f32 %v11654_v56, %v4313_v26  ;;  %18936 = vst [vmem:[#allocation86_spill] sm:$0xff] %v16380_v36  ;;  %v16383_v30 = vsub.f32 %v6209_v34, %v16380_v36  ;;  %12101 = vmatprep.subr.mxu0 %v16380_v36  ;;  %18949 = vst [vmem:[#allocation20_spill] sm:$0xff] %v16429_v29  ;;  %v16440_v56 = vand.u32 4294901760, %v16429_v29 }
 0x3d0   : > { %12049 = vmatmul.mubr.f32.gmra.mxu0 %v18933_v44  ;;  %v16447_v26 = vsub.f32 %v6203_v50, %v16436_v11 }
 0x3d1   : > { %12099 = vmatmul.mubr.f32.gmra.mxu1 %v16117_v40  ;;  %12051 = vmatprep.mubr.f32.mxu0 %v18934_v22  ;;  %18937 = vst [vmem:[#allocation88_spill] sm:$0xff] %v16383_v30  ;;  %18952 = vst [vmem:[#allocation13_spill] sm:$0xff] %v16440_v56  ;;  %v16443_v22 = vsub.f32 %v6204_v8, %v16431_v1 }
 0x3d2   : > { %v11613_v5 = vpop.f32.mrf.mxu0  ;;  %12102 = vmatpush3.msra.mxu0 %v16380_v36  ;;  %18954 = vst [vmem:[#allocation19_spill] sm:$0xff] %v16447_v26 }
 0x3d3   : > { %v4333_v2 = vadd.f32 %v11613_v5, %v16280_v47  ;;  %v6206_v47 = vld [vmem:[#allocation6 + $0x3e0] sm:$0xff]  ;;  %18953 = vst [vmem:[#allocation36_spill] sm:$0xff] %v16443_v22  ;;  %v6403_v5 = vsub.f32 %v16429_v29, %v16440_v56 }
 0x3d4   : > { %12052 = vmatmul.mubr.f32.gmra.mxu0 %v16088_v33  ;;  %v16369_v13 = vpop.f32.mrf.mxu0  ;;  %v6208_v33 = vld [vmem:[#allocation6 + $0x3f0] sm:$0xff]  ;;  %v16404_v15 = vand.u32 4294901760, %v6206_v47 }
 0x3d5   : > { %12054 = vmatprep.mubr.f32.mxu0 %v16104_v51  ;;  %v16374_v18 = vadd.f32 %v11657_v4, %v4333_v2  ;;  %v16385_v51 = vand.u32 4294901760, %v6208_v33  ;;  %v16449_v4 = vand.u32 4294901760, %v6202_v43  ;;  %v16455_v2 = vand.u32 4294901760, %v16443_v22 }
 0x3d6   : > { %18943 = vst [vmem:[#allocation103_spill] sm:$0xff] %v16404_v15  ;;  %v16413_v19 = vsub.f32 %v6206_v47, %v16404_v15  ;;  %v6200_v47 = vld [vmem:[#allocation6 + $0x3b0] sm:$0xff] }
 0x3d7   : > { %v11616_v6 = vpop.f32.mrf.mxu0  ;;  %18938 = vst [vmem:[#allocation94_spill] sm:$0xff] %v16385_v51  ;;  %v16393_v55 = vsub.f32 %v6208_v33, %v16385_v51  ;;  %12103 = vmatprep.subr.mxu0 %v16385_v51  ;;  %18955 = vst [vmem:[#allocation26_spill] sm:$0xff] %v16449_v4  ;;  %v6404_v33 = vand.u32 4294901760, %v6403_v5 }
 0x3d8   : > { %12055 = vmatmul.mubr.f32.gmra.mxu0 %v16117_v40  ;;  %v4353_v39 = vadd.f32 %v11616_v6, %v16293_v20  ;;  %v16390_v40 = vand.u32 4294901760, %v16383_v30  ;;  %v16407_v20 = vsub.f32 %v6207_v3, %v16396_v52  ;;  %18945 = vst [vmem:[#allocation100_spill] sm:$0xff] %v16413_v19  ;;  %v16423_v41 = vand.u32 4294901760, %v16413_v19  ;;  %18956 = vst [vmem:[#allocation39_spill] sm:$0xff] %v16455_v2  ;;  %v6201_v6 = vld [vmem:[#allocation6 + $0x3b8] sm:$0xff] }
 0x3d9   : > { %18940 = vst [vmem:[#allocation96_spill] sm:$0xff] %v16393_v55  ;;  %12104 = vmatpush3.msra.mxu0 %v16385_v51  ;;  %v16402_v25 = vand.u32 4294901760, %v16393_v55  ;;  %v16464_v34 = vand.u32 4294901760, %v6201_v6  ;;  %v6410_v3 = vsub.f32 %v16443_v22, %v16455_v2  ;;  %v6196_v2 = vld [vmem:[#allocation6 + $0x390] sm:$0xff] }
 0x3da   : > { %v16378_v35 = vadd.f32 %v11660_v54, %v4353_v39  ;;  %18939 = vst [vmem:[#allocation91_spill] sm:$0xff] %v16390_v40  ;;  %v6375_v27 = vsub.f32 %v16383_v30, %v16390_v40  ;;  %18944 = vst [vmem:[#allocation95_spill] sm:$0xff] %v16407_v20  ;;  %12105 = vmatprep.subr.mxu0 %v16396_v52  ;;  %v16417_v12 = vand.u32 4294901760, %v16407_v20  ;;  %v16459_v39 = vand.u32 4294901760, %v16447_v26 }
 0x3db   : > { %18942 = vst [vmem:[#allocation98_spill] sm:$0xff] %v16402_v25  ;;  %v6382_v23 = vsub.f32 %v16393_v55, %v16402_v25  ;;  %12106 = vmatpush3.msra.mxu0 %v16396_v52  ;;  %18948 = vst [vmem:[#allocation16_spill] sm:$0xff] %v16423_v41  ;;  %v6396_v59 = vsub.f32 %v16413_v19, %v16423_v41  ;;  %v16462_v54 = vsub.f32 %v6202_v43, %v16449_v4 }
 0x3dc   : > { %v6376_v0 = vand.u32 4294901760, %v6375_v27  ;;  %18946 = vst [vmem:[#allocation23_spill] sm:$0xff] %v16417_v12  ;;  %12107 = vmatprep.subr.mxu0 %v16404_v15  ;;  %v6389_v61 = vsub.f32 %v16407_v20, %v16417_v12  ;;  %18957 = vst [vmem:[#allocation33_spill] sm:$0xff] %v16459_v39  ;;  %v6417_v27 = vsub.f32 %v16447_v26, %v16459_v39  ;;  %v6411_v8 = vand.u32 4294901760, %v6410_v3  ;;  %v6195_v12 = vld [vmem:[#allocation6 + $0x388] sm:$0xff] }
 0x3dd   : > { %v6383_v62 = vand.u32 4294901760, %v6382_v23  ;;  %12108 = vmatpush3.msra.mxu0 %v16404_v15  ;;  %v6397_v7 = vand.u32 4294901760, %v6396_v59  ;;  %18958 = vst [vmem:[#allocation43_spill] sm:$0xff] %v16462_v54  ;;  %18959 = vst [vmem:[#allocation37_spill] sm:$0xff] %v16464_v34  ;;  %v16473_v9 = vand.u32 4294901760, %v16462_v54  ;;  %v16478_v23 = vand.u32 4294901760, %v6200_v47 }
 0x3de   : > { %12145 = vmatprep.subr.mxu1 %v6376_v0  ;;  %12109 = vmatprep.subr.mxu0 %v16419_v38  ;;  %v6390_v44 = vand.u32 4294901760, %v6389_v61  ;;  %v6418_v61 = vand.u32 4294901760, %v6417_v27  ;;  %v6197_v27 = vld [vmem:[#allocation6 + $0x398] sm:$0xff]  ;;  %v16542_v25 = vand.u32 4294901760, %v6195_v12 }
 0x3df   : > { %12146 = vmatpush3.msra.mxu1 %v6376_v0  ;;  %12110 = vmatpush3.msra.mxu0 %v16419_v38  ;;  %18960 = vst [vmem:[#allocation46_spill] sm:$0xff] %v16473_v9  ;;  %v16476_v0 = vsub.f32 %v6201_v6, %v16464_v34  ;;  %18962 = vst [vmem:[#allocation49_spill] sm:$0xff] %v16478_v23  ;;  %v6424_v50 = vsub.f32 %v16462_v54, %v16473_v9  ;;  %v16506_v9 = vpop.f32.mrf.mxu1  ;;  %v16513_v39 = vand.u32 4294901760, %v6197_v27 }
 0x3e0   : > { %12147 = vmatprep.subr.mxu1 %v6383_v62  ;;  %12111 = vmatprep.subr.mxu0 %v16431_v1  ;;  %18977 = vst [vmem:[#allocation66_spill] sm:$0xff] %v16542_v25 }
 0x3e1   : > { %12148 = vmatpush3.msra.mxu1 %v6383_v62  ;;  %12112 = vmatpush3.msra.mxu0 %v16431_v1  ;;  %18961 = vst [vmem:[#allocation38_spill] sm:$0xff] %v16476_v0  ;;  %v6199_v62 = vld [vmem:[#allocation6 + $0x3a8] sm:$0xff]  ;;  %v16485_v59 = vand.u32 4294901760, %v16476_v0  ;;  %v6425_v5 = vand.u32 4294901760, %v6424_v50  ;;  %18970 = vst [vmem:[#allocation60_spill] sm:$0xff] %v16513_v39 }
 0x3e2   : > { %12149 = vmatprep.subr.mxu1 %v6390_v44  ;;  %12113 = vmatprep.subr.mxu0 %v16436_v11  ;;  %v16491_v43 = vand.u32 4294901760, %v6199_v62 }
 0x3e3   : > { %12150 = vmatpush3.msra.mxu1 %v6390_v44  ;;  %12114 = vmatpush3.msra.mxu0 %v16436_v11  ;;  %18963 = vst [vmem:[#allocation42_spill] sm:$0xff] %v16485_v59  ;;  %v16488_v44 = vsub.f32 %v6200_v47, %v16478_v23  ;;  %v6431_v6 = vsub.f32 %v16476_v0, %v16485_v59 }
 0x3e4   : > { %12151 = vmatprep.subr.mxu1 %v6397_v7  ;;  %12115 = vmatprep.subr.mxu0 %v16449_v4  ;;  %18965 = vst [vmem:[#allocation45_spill] sm:$0xff] %v16491_v43  ;;  %v16503_v47 = vsub.f32 %v6199_v62, %v16491_v43 }
 0x3e5   : > { %12152 = vmatpush3.msra.mxu1 %v6397_v7  ;;  %12116 = vmatpush3.msra.mxu0 %v16449_v4  ;;  %18964 = vst [vmem:[#allocation52_spill] sm:$0xff] %v16488_v44  ;;  %v6198_v7 = vld [vmem:[#allocation6 + $0x3a0] sm:$0xff]  ;;  %v16520_v56 = vpop.f32.mrf.mxu1 }
 0x3e6   : > { %12153 = vmatprep.subr.mxu1 %v6404_v33  ;;  %12117 = vmatprep.subr.mxu0 %v16464_v34  ;;  %v16499_v3 = vand.u32 4294901760, %v6198_v7  ;;  %18968 = vst [vmem:[#allocation58_spill] sm:$0xff] %v16503_v47  ;;  %v16517_v62 = vand.u32 4294901760, %v16503_v47 }
 0x3e7   : > { %12154 = vmatpush3.msra.mxu1 %v6404_v33  ;;  %12118 = vmatpush3.msra.mxu0 %v16464_v34  ;;  %v16497_v33 = vand.u32 4294901760, %v16488_v44 }
 0x3e8   : > { %12155 = vmatprep.subr.mxu1 %v6411_v8  ;;  %12119 = vmatprep.subr.mxu0 %v16478_v23  ;;  %18967 = vst [vmem:[#allocation48_spill] sm:$0xff] %v16499_v3  ;;  %v16511_v59 = vsub.f32 %v6198_v7, %v16499_v3  ;;  %18971 = vst [vmem:[#allocation54_spill] sm:$0xff] %v16517_v62  ;;  %v16526_v7 = vsub.f32 %v6197_v27, %v16513_v39 }
 0x3e9   : > { %12156 = vmatpush3.msra.mxu1 %v6411_v8  ;;  %18966 = vst [vmem:[#allocation55_spill] sm:$0xff] %v16497_v33  ;;  %12120 = vmatpush3.msra.mxu0 %v16478_v23  ;;  %v6432_v8 = vand.u32 4294901760, %v6431_v6  ;;  %v6438_v50 = vsub.f32 %v16488_v44, %v16497_v33  ;;  %v16528_v33 = vand.u32 4294901760, %v6196_v2  ;;  %v6445_v41 = vsub.f32 %v16503_v47, %v16517_v62  ;;  %v6194_v62 = vld [vmem:[#allocation6 + $0x380] sm:$0xff]  ;;  %v16546_v47 = vpop.f32.mrf.mxu1  ;;  %v16557_v44 = vpop.f32.mrf.mxu0 }
 0x3ea   : > { %12157 = vmatprep.subr.mxu1 %v6418_v61  ;;  %12121 = vmatprep.subr.mxu0 %v16491_v43  ;;  %18969 = vst [vmem:[#allocation51_spill] sm:$0xff] %v16511_v59  ;;  %v16523_v6 = vand.u32 4294901760, %v16511_v59  ;;  %18973 = vst [vmem:[#allocation57_spill] sm:$0xff] %v16526_v7 }
 0x3eb   : > { %12158 = vmatpush3.msra.mxu1 %v6418_v61  ;;  %12122 = vmatpush3.msra.mxu0 %v16491_v43  ;;  %v6439_v61 = vand.u32 4294901760, %v6438_v50  ;;  %18974 = vst [vmem:[#allocation67_spill] sm:$0xff] %v16528_v33  ;;  %v16537_v50 = vand.u32 4294901760, %v16526_v7  ;;  %v16540_v27 = vsub.f32 %v6196_v2, %v16528_v33  ;;  %v6446_v40 = vand.u32 4294901760, %v6445_v41 }
 0x3ec   : > { %12159 = vmatprep.subr.mxu1 %v6425_v5  ;;  %12123 = vmatprep.subr.mxu0 %v16499_v3  ;;  %18972 = vst [vmem:[#allocation63_spill] sm:$0xff] %v16523_v6  ;;  %v16554_v2 = vsub.f32 %v6195_v12, %v16542_v25  ;;  %v16559_v41 = vand.u32 4294901760, %v6194_v62 }
 0x3ed   : > { %12160 = vmatpush3.msra.mxu1 %v6425_v5  ;;  %12124 = vmatpush3.msra.mxu0 %v16499_v3  ;;  %v6452_v5 = vsub.f32 %v16511_v59, %v16523_v6  ;;  %18975 = vst [vmem:[#allocation61_spill] sm:$0xff] %v16537_v50  ;;  %18976 = vst [vmem:[#allocation62_spill] sm:$0xff] %v16540_v27  ;;  %v6459_v6 = vsub.f32 %v16526_v7, %v16537_v50  ;;  %v16551_v59 = vand.u32 4294901760, %v16540_v27 }
 0x3ee   : > { %12161 = vmatprep.subr.mxu1 %v6432_v8  ;;  %12125 = vmatprep.subr.mxu0 %v16513_v39  ;;  %18979 = vst [vmem:[#allocation18_spill] sm:$0xff] %v16554_v2  ;;  %18980 = vst [vmem:[#allocation25_spill] sm:$0xff] %v16559_v41  ;;  %v16565_v50 = vand.u32 4294901760, %v16554_v2  ;;  %v16568_v12 = vpop.f32.mrf.mxu0  ;;  %v16571_v7 = vsub.f32 %v6194_v62, %v16559_v41 }
 0x3ef   : > { %12162 = vmatpush3.msra.mxu1 %v6432_v8  ;;  %12126 = vmatpush3.msra.mxu0 %v16513_v39  ;;  %v6453_v8 = vand.u32 4294901760, %v6452_v5  ;;  %18978 = vst [vmem:[#allocation69_spill] sm:$0xff] %v16551_v59  ;;  %v6466_v5 = vsub.f32 %v16540_v27, %v16551_v59 }
 0x3f0   : > { %12163 = vmatprep.subr.mxu1 %v6439_v61  ;;  %12127 = vmatprep.subr.mxu0 %v16528_v33  ;;  %18981 = vst [vmem:[#allocation32_spill] sm:$0xff] %v16565_v50  ;;  %18982 = vst [vmem:[#allocation35_spill] sm:$0xff] %v16571_v7  ;;  %v16580_v59 = vand.u32 4294901760, %v16571_v7  ;;  %v16583_v27 = vpop.f32.mrf.mxu0 }
 0x3f1   : > { %12164 = vmatpush3.msra.mxu1 %v6439_v61  ;;  %12128 = vmatpush3.msra.mxu0 %v16528_v33  ;;  %v6460_v61 = vand.u32 4294901760, %v6459_v6  ;;  %v16574_v33 = vpop.f32.mrf.mxu1  ;;  %v6473_v6 = vsub.f32 %v16554_v2, %v16565_v50 }
 0x3f2   : > { %12165 = vmatprep.subr.mxu1 %v6446_v40  ;;  %12129 = vmatprep.subr.mxu0 %v16542_v25  ;;  %18983 = vst [vmem:[#allocation40_spill] sm:$0xff] %v16580_v59 }
 0x3f3   : > { %12166 = vmatpush3.msra.mxu1 %v6446_v40  ;;  %12130 = vmatpush3.msra.mxu0 %v16542_v25  ;;  %v6467_v40 = vand.u32 4294901760, %v6466_v5  ;;  %v6474_v62 = vand.u32 4294901760, %v6473_v6  ;;  %v16587_v5 = vpop.f32.mrf.mxu1 }
 0x3f4   : > { %12167 = vmatprep.subr.mxu1 %v6453_v8  ;;  %12131 = vmatprep.subr.mxu0 %v16559_v41  ;;  %v16589_v2 = vpop.f32.mrf.mxu0 }
 0x3f5   : > { %12168 = vmatpush3.msra.mxu1 %v6453_v8  ;;  %12132 = vmatpush3.msra.mxu0 %v16559_v41  ;;  %v6480_v8 = vsub.f32 %v16571_v7, %v16580_v59  ;;  %v16591_v41 = vpop.f32.mrf.mxu1 }
 0x3f6   : > { %12169 = vmatprep.subr.mxu1 %v6460_v61  ;;  %12189 = vmatprep.subr.mxu0 %v16383_v30  ;;  %18984 = vst [vmem:[#allocation41_spill] sm:$0xff] %v16591_v41  ;;  %v19022_v41 = vld [vmem:[#allocation82_spill] sm:$0xff] }
 0x3f7   : > { %12170 = vmatpush3.msra.mxu1 %v6460_v61  ;;  %v6481_v50 = vand.u32 4294901760, %v6480_v8  ;;  %v16594_v61 = vpop.f32.mrf.mxu0  ;;  %v16596_v6 = vpop.f32.mrf.mxu1 }
 0x3f8   : > { %12171 = vmatprep.subr.mxu1 %v6467_v40  ;;  %18985 = vst [vmem:[#allocation44_spill] sm:$0xff] %v16596_v6  ;;  %v19021_v6 = vld [vmem:[#allocation85_spill] sm:$0xff] }
 0x3f9   : > { %12172 = vmatpush3.msra.mxu1 %v6467_v40  ;;  %v16600_v59 = vpop.f32.mrf.mxu1 }
 0x3fa   : > { %12173 = vmatprep.subr.mxu1 %v6474_v62  ;;  %v16598_v25 = vpop.f32.mrf.mxu0  ;;  %18986 = vst [vmem:[#allocation47_spill] sm:$0xff] %v16600_v59 }
 0x3fb   : > { %12174 = vmatpush3.msra.mxu1 %v6474_v62  ;;  %v16604_v8 = vpop.f32.mrf.mxu1 }
 0x3fc   : > { %12175 = vmatprep.subr.mxu1 %v6481_v50  ;;  %v16602_v40 = vpop.f32.mrf.mxu0  ;;  %18987 = vst [vmem:[#allocation50_spill] sm:$0xff] %v16604_v8 }
 0x3fd   : > { %12176 = vmatpush3.msra.mxu1 %v6481_v50 }
 0x3fe   : > { %12233 = vmatprep.subr.mxu1 %v16380_v36 }
 0x3ff   : > { %v16608_v7 = vpop.f32.mrf.mxu0 }
 0x401   : > { %v16612_v50 = vpop.f32.mrf.mxu0 }
 0x40d   : > { %v16606_v62 = vpop.f32.mrf.mxu1 }
 0x40e   : > { %18988 = vst [vmem:[#allocation53_spill] sm:$0xff] %v16606_v62  ;;  %v19016_v62 = vld [vmem:[#allocation29_spill] sm:$0xff] }
 0x40f   : > { %v16610_v39 = vpop.f32.mrf.mxu1 }
 0x410   : > { %18989 = vst [vmem:[#allocation56_spill] sm:$0xff] %v16610_v39 }
 0x412   : > { %v16616_v3 = vpop.f32.mrf.mxu1 }
 0x413   : > { %18990 = vst [vmem:[#allocation59_spill] sm:$0xff] %v16616_v3 }
 0x414   : > { %v16620_v43 = vpop.f32.mrf.mxu1 }
 0x415   : > { %18991 = vst [vmem:[#allocation64_spill] sm:$0xff] %v16620_v43 }
 0x416   : > { %v16614_v0 = vpop.f32.mrf.mxu0 }
 0x417   : > { %v16624_v23 = vpop.f32.mrf.mxu1 }
 0x418   : > { %v16618_v54 = vpop.f32.mrf.mxu0  ;;  %18992 = vst [vmem:[#allocation65_spill] sm:$0xff] %v16624_v23 }
 0x419   : > { %v16628_v34 = vpop.f32.mrf.mxu1 }
 0x41a   : > { %18994 = vst [vmem:[#allocation70_spill] sm:$0xff] %v16628_v34 }
 0x41c   : > { %v16622_v26 = vpop.f32.mrf.mxu0 }
 0x41d   : > { %v16632_v4 = vpop.f32.mrf.mxu1 }
 0x41e   : > { %v16626_v22 = vpop.f32.mrf.mxu0  ;;  %18996 = vst [vmem:[#allocation24_spill] sm:$0xff] %v16632_v4 }
 0x41f   : > { %18993 = vst [vmem:[#allocation68_spill] sm:$0xff] %v16626_v22  ;;  %v16636_v11 = vpop.f32.mrf.mxu1 }
 0x420   : > { %18998 = vst [vmem:[#allocation21_spill] sm:$0xff] %v16636_v11 }
 0x422   : > { %v16630_v29 = vpop.f32.mrf.mxu0 }
 0x423   : > { %18995 = vst [vmem:[#allocation14_spill] sm:$0xff] %v16630_v29 }
 0x424   : > { %v16634_v19 = vpop.f32.mrf.mxu0 }
 0x425   : > { %18997 = vst [vmem:[#allocation27_spill] sm:$0xff] %v16634_v19 }
 0x427   : > { %v16640_v55 = vpop.f32.mrf.mxu0 }
 0x428   : > { %18999 = vst [vmem:[#allocation17_spill] sm:$0xff] %v16640_v55 }
 0x429   : > { %v16644_v30 = vpop.f32.mrf.mxu0 }
 0x42a   : > { %19000 = vst [vmem:[#allocation22_spill] sm:$0xff] %v16644_v30 }
 0x435   : > { %v16638_v20 = vpop.f32.mrf.mxu1 }
 0x437   : > { %v16642_v1 = vpop.f32.mrf.mxu1 }
 0x43a   : > { %v16648_v15 = vpop.f32.mrf.mxu1 }
 0x43b   : > { %19001 = vst [vmem:[#allocation28_spill] sm:$0xff] %v16648_v15 }
 0x43c   : > { %v16652_v51 = vpop.f32.mrf.mxu1 }
 0x43d   : > { %19002 = vst [vmem:[#allocation15_spill] sm:$0xff] %v16652_v51 }
 0x43e   : > { %v16646_v38 = vpop.f32.mrf.mxu0 }
 0x43f   : > { %v16656_v4 = vpop.f32.mrf.mxu1 }
 0x440   : > { %v16650_v52 = vpop.f32.mrf.mxu0  ;;  %19004 = vst [vmem:[#allocation83_spill] sm:$0xff] %v16656_v4  ;;  %v19015_v4 = vld [vmem:[#allocation89_spill] sm:$0xff] }
 0x441   : > { %v16660_v34 = vpop.f32.mrf.mxu1  ;;  %v3562_v51 = vadd.f32 %v19016_v62, %v19015_v4 }
 0x442   : > { %19006 = vst [vmem:[#allocation73_spill] sm:$0xff] %v16660_v34  ;;  %v19017_v34 = vld [vmem:[#allocation75_spill] sm:$0xff] }
 0x444   : > { %v16654_v36 = vpop.f32.mrf.mxu0 }
 0x445   : > { %19003 = vst [vmem:[#allocation30_spill] sm:$0xff] %v16654_v36  ;;  %v16664_v55 = vpop.f32.mrf.mxu1  ;;  %v19024_v36 = vld [vmem:[#allocation84_spill] sm:$0xff] }
 0x446   : > { %v16658_v11 = vpop.f32.mrf.mxu0  ;;  %19008 = vst [vmem:[#allocation77_spill] sm:$0xff] %v16664_v55  ;;  %v19019_v55 = vld [vmem:[#allocation87_spill] sm:$0xff] }
 0x447   : > { %19005 = vst [vmem:[#allocation71_spill] sm:$0xff] %v16658_v11  ;;  %v16668_v19 = vpop.f32.mrf.mxu1  ;;  %v19018_v11 = vld [vmem:[#allocation97_spill] sm:$0xff]  ;;  %v3708_v59 = vadd.f32 %v19019_v55, %v3562_v51  ;;  %v19025_v51 = vld [vmem:[#allocation92_spill] sm:$0xff] }
 0x448   : > { %19010 = vst [vmem:[#allocation102_spill] sm:$0xff] %v16668_v19 }
 0x449   : > { %v3846_v22 = vadd.f32 %v19024_v36, %v3708_v59 }
 0x44a   : > { %v16662_v23 = vpop.f32.mrf.mxu0 }
 0x44b   : > { %19007 = vst [vmem:[#allocation72_spill] sm:$0xff] %v16662_v23  ;;  %v3574_v23 = vadd.f32 %v19018_v11, %v19017_v34  ;;  %v4021_v62 = vadd.f32 %v16233_v42, %v3846_v22 }
 0x44c   : > { %v16666_v30 = vpop.f32.mrf.mxu0 }
 0x44d   : > { %19009 = vst [vmem:[#allocation99_spill] sm:$0xff] %v16666_v30  ;;  %v3722_v19 = vadd.f32 %v16129_v48, %v3574_v23  ;;  %v4150_v36 = vadd.f32 %v16223_v49, %v4021_v62  ;;  %v19029_v62 = vld [vmem:[#allocation41_spill] sm:$0xff] }
 0x44f   : > { %v16672_v43 = vpop.f32.mrf.mxu0  ;;  %v3862_v55 = vadd.f32 %v19025_v51, %v3722_v19  ;;  %v4283_v42 = vadd.f32 %v16344_v45, %v4150_v36  ;;  %v19027_v51 = vld [vmem:[#allocation30_spill] sm:$0xff]  ;;  %v19033_v36 = vld [vmem:[#allocation71_spill] sm:$0xff] }
 0x450   : > { %19012 = vst [vmem:[#allocation78_spill] sm:$0xff] %v16672_v43 }
 0x451   : > { %v16676_v39 = vpop.f32.mrf.mxu0  ;;  %v4033_v48 = vadd.f32 %v16254_v37, %v3862_v55  ;;  %v4504_v49 = vadd.f32 %v16337_v32, %v4283_v42  ;;  %v19036_v42 = vld [vmem:[#allocation53_spill] sm:$0xff] }
 0x452   : > { %19014 = vst [vmem:[#allocation79_spill] sm:$0xff] %v16676_v39 }
 0x45d   : > { %v16670_v29 = vpop.f32.mrf.mxu1 }
 0x45e   : > { %19011 = vst [vmem:[#allocation81_spill] sm:$0xff] %v16670_v29  ;;  %v19020_v29 = vld [vmem:[#allocation90_spill] sm:$0xff] }
 0x45f   : > { %v16674_v3 = vpop.f32.mrf.mxu1  ;;  %v3586_v43 = vadd.f32 %v19021_v6, %v19020_v29 }
 0x460   : > { %19013 = vst [vmem:[#allocation74_spill] sm:$0xff] %v16674_v3  ;;  %v19023_v3 = vld [vmem:[#allocation101_spill] sm:$0xff] }
 0x461   : > { %v3598_v15 = vadd.f32 %v19023_v3, %v19022_v41  ;;  %v3736_v11 = vadd.f32 %v16155_v63, %v3586_v43  ;;  %v4657_v43 = vadd.f32 %v16568_v12, %v16348_v28 }
 0x462   : > { %v16683_v30 = vpop.f32.mrf.mxu1 }
 0x463   : > { %v3750_v34 = vadd.f32 %v16218_v17, %v3598_v15  ;;  %v3878_v3 = vadd.f32 %v16160_v16, %v3736_v11  ;;  %v4162_v17 = vadd.f32 %v16249_v53, %v4033_v48  ;;  %v19030_v48 = vld [vmem:[#allocation44_spill] sm:$0xff] }
 0x464   : > { %v16691_v4 = vpop.f32.mrf.mxu1 }
 0x465   : > { %v3894_v41 = vadd.f32 %v16206_v60, %v3750_v34  ;;  %v4045_v59 = vadd.f32 %v16273_v24, %v3878_v3  ;;  %v4303_v37 = vadd.f32 %v16360_v14, %v4162_v17  ;;  %v4650_v14 = vadd.f32 %v16583_v27, %v4504_v49 }
 0x466   : > { %v11959_v8 = vpop.f32.mrf.mxu0  ;;  %v5477_v27 = vadd.f32 %v16638_v20, %v16646_v38 }
 0x467   : > { %v16698_v29 = vpop.f32.mrf.mxu1  ;;  %v4057_v63 = vadd.f32 %v16333_v10, %v3894_v41  ;;  %v4174_v22 = vadd.f32 %v16278_v46, %v4045_v59  ;;  %v4516_v45 = vadd.f32 %v16356_v21, %v4303_v37  ;;  %v4671_v46 = vadd.f32 %v16589_v2, %v16362_v57  ;;  %v19032_v41 = vld [vmem:[#allocation50_spill] sm:$0xff] }
 0x468   : > { %v5616_v39 = vpop.f32.mrf.mxu0  ;;  %v4788_v21 = vadd.f32 %v16546_v47, %v4650_v14  ;;  %v4685_v57 = vadd.f32 %v16598_v25, %v16374_v18  ;;  %v5624_v47 = vadd.f32 %v11959_v8, %v5477_v27  ;;  %v19026_v25 = vld [vmem:[#allocation68_spill] sm:$0xff]  ;;  %v19040_v14 = vld [vmem:[#allocation14_spill] sm:$0xff] }
 0x469   : > { %v16707_v19 = vpop.f32.mrf.mxu1  ;;  %v4186_v16 = vadd.f32 %v16321_v31, %v4057_v63  ;;  %v4323_v10 = vadd.f32 %v16369_v13, %v4174_v22  ;;  %v4664_v31 = vadd.f32 %v16594_v61, %v4516_v45  ;;  %v4812_v28 = vadd.f32 %v16574_v33, %v4671_v46  ;;  %v19035_v63 = vld [vmem:[#allocation81_spill] sm:$0xff]  ;;  %v19037_v22 = vld [vmem:[#allocation56_spill] sm:$0xff] }
 0x46a   : > { %v5471_v33 = vadd.f32 %v16642_v1, %v16650_v52  ;;  %v4963_v38 = vadd.f32 %v16618_v54, %v4788_v21  ;;  %v19031_v52 = vld [vmem:[#allocation47_spill] sm:$0xff]  ;;  %v5763_v17 = vadd.f32 %v19035_v63, %v5624_v47 }
 0x46b   : > { %v4343_v53 = vadd.f32 %v16557_v44, %v4186_v16  ;;  %v4528_v11 = vadd.f32 %v16372_v58, %v4323_v10  ;;  %v4796_v44 = vadd.f32 %v16520_v56, %v4657_v43  ;;  %v4699_v58 = vadd.f32 %v16608_v7, %v16378_v35  ;;  %v19028_v35 = vld [vmem:[#allocation28_spill] sm:$0xff]  ;;  %v19034_v54 = vld [vmem:[#allocation15_spill] sm:$0xff] }
 0x46c   : > { %v11962_v23 = vpop.f32.mrf.mxu0  ;;  %v4981_v18 = vadd.f32 %v16622_v26, %v4812_v28  ;;  %v5489_v7 = vadd.f32 %v19028_v35, %v19027_v51  ;;  %v5483_v59 = vadd.f32 %v19034_v54, %v19033_v36  ;;  %v19038_v16 = vld [vmem:[#allocation59_spill] sm:$0xff]  ;;  %v19039_v10 = vld [vmem:[#allocation64_spill] sm:$0xff]  ;;  %v19043_v28 = vld [vmem:[#allocation17_spill] sm:$0xff] }
 0x46d   : > { %v16715_v24 = vpop.f32.mrf.mxu1  ;;  %v4540_v13 = vadd.f32 %v16506_v9, %v4343_v53  ;;  %v4678_v2 = vadd.f32 %v16602_v40, %v4528_v11  ;;  %v4804_v9 = vadd.f32 %v16587_v5, %v4664_v31  ;;  %v4969_v20 = vadd.f32 %v16614_v0, %v4796_v44  ;;  %v19042_v21 = vld [vmem:[#allocation27_spill] sm:$0xff]  ;;  %v19050_v51 = vld [vmem:[#allocation77_spill] sm:$0xff] }
 0x46e   : > { %v5630_v15 = vpop.f32.mrf.mxu0  ;;  %v5617_v5 = vadd.f32 %v5616_v39, %v5471_v33  ;;  %v4844_v1 = vadd.f32 %v19031_v52, %v4699_v58  ;;  %v5638_v26 = vadd.f32 %v11962_v23, %v5489_v7  ;;  %v5092_v39 = vadd.f32 %v19037_v22, %v4963_v38  ;;  %v19051_v7 = vld [vmem:[#allocation79_spill] sm:$0xff]  ;;  %v19053_v36 = vld [vmem:[#allocation65_spill] sm:$0xff] }
 0x46f   : > { %v16726_v32 = vpop.f32.mrf.mxu1  ;;  %v4692_v56 = vadd.f32 %v16612_v50, %v4540_v13  ;;  %v4975_v40 = vadd.f32 %v19026_v25, %v4804_v9  ;;  %v4828_v50 = vadd.f32 %v19029_v62, %v4685_v57  ;;  %v4820_v3 = vadd.f32 %v19030_v48, %v4678_v2  ;;  %v19041_v13 = vld [vmem:[#allocation74_spill] sm:$0xff]  ;;  %v19044_v57 = vld [vmem:[#allocation72_spill] sm:$0xff]  ;;  %v19045_v2 = vld [vmem:[#allocation83_spill] sm:$0xff] }
 0x470   : > { %v5098_v37 = vadd.f32 %v19036_v42, %v4969_v20  ;;  %v5110_v49 = vadd.f32 %v19038_v16, %v4981_v18  ;;  %v5631_v31 = vadd.f32 %v5630_v15, %v5483_v59  ;;  %v5755_v44 = vadd.f32 %v19041_v13, %v5617_v5  ;;  %v19046_v9 = vld [vmem:[#allocation99_spill] sm:$0xff]  ;;  %v19048_v20 = vld [vmem:[#allocation22_spill] sm:$0xff] }
 0x471   : > { %v4836_v0 = vadd.f32 %v19032_v41, %v4692_v56  ;;  %v5104_v53 = vadd.f32 %v19039_v10, %v4975_v40  ;;  %v4993_v46 = vadd.f32 %v19040_v14, %v4828_v50  ;;  %v4987_v23 = vadd.f32 %v19042_v21, %v4820_v3  ;;  %v19047_v56 = vld [vmem:[#allocation73_spill] sm:$0xff]  ;;  %v19049_v40 = vld [vmem:[#allocation78_spill] sm:$0xff]  ;;  %v16779_v3 = vld [vmem:[%s18201_s2 + $0x1] ss:$0 sm:$0xff] }
 0x472   : > { %v16712_v60 = vpop.f32.mrf.mxu0  ;;  %v5005_v27 = vadd.f32 %v19043_v28, %v4844_v1  ;;  %v5501_v58 = vadd.f32 %v19045_v2, %v19044_v57  ;;  %v5495_v33 = vadd.f32 %v19047_v56, %v19046_v9  ;;  %v5779_v15 = vadd.f32 %v16683_v30, %v5638_v26  ;;  %v19052_v5 = vld [vmem:[#allocation102_spill] sm:$0xff]  ;;  %v19055_v10 = vld [vmem:[#allocation24_spill] sm:$0xff]  ;;  %v19056_v14 = vld [vmem:[#allocation21_spill] sm:$0xff] }
 0x473   : > { %v4999_v38 = vadd.f32 %v19048_v20, %v4836_v0  ;;  %v5513_v35 = vadd.f32 %v19050_v51, %v19049_v40  ;;  %v5507_v62 = vadd.f32 %v19052_v5, %v19051_v7  ;;  %v5771_v30 = vadd.f32 %v16691_v4, %v5631_v31  ;;  %v19054_v59 = vld [vmem:[#allocation70_spill] sm:$0xff] }
 0x474   : > { %v5644_v6 = vpop.f32.mrf.mxu0  ;;  %v5652_v50 = vadd.f32 %v16712_v60, %v5501_v58  ;;  %v5122_v54 = vadd.f32 %v19053_v36, %v4993_v46  ;;  %v5116_v26 = vadd.f32 %v19054_v59, %v4987_v23 }
 0x475   : > { %v5645_v48 = vadd.f32 %v5644_v6, %v5495_v33 }
 0x477   : > { %v11968_v61 = vpop.f32.mrf.mxu0  ;;  %v5787_v46 = vadd.f32 %v16707_v19, %v5645_v48 }
 0x478   : > { %v5666_v63 = vadd.f32 %v11968_v61, %v5513_v35 }
 0x479   : > { %v5658_v8 = vpop.f32.mrf.mxu0 }
 0x485   : > { %v12091_v12 = vpop.f32.mrf.mxu1 }
 0x487   : > { %v6058_v34 = vpop.f32.mrf.mxu1 }
 0x489   : > { %v12094_v55 = vpop.f32.mrf.mxu1 }
 0x48b   : > { %v6070_v45 = vpop.f32.mrf.mxu1 }
 0x48c   : > { %v12047_v43 = vpop.f32.mrf.mxu0 }
 0x48d   : > { %v5936_v11 = vadd.f32 %v12047_v43, %v5763_v17  ;;  %v12097_v52 = vpop.f32.mrf.mxu1  ;;  %v5659_v17 = vadd.f32 %v5658_v8, %v5507_v62  ;;  %v5134_v43 = vadd.f32 %v19055_v10, %v5005_v27 }
 0x48e   : > { %v5929_v47 = vpop.f32.mrf.mxu0 }
 0x48f   : > { %v6065_v18 = vadd.f32 %v12091_v12, %v5936_v11  ;;  %v5930_v25 = vadd.f32 %v5929_v47, %v5755_v44  ;;  %v5795_v11 = vadd.f32 %v16698_v29, %v5652_v50  ;;  %v5803_v21 = vadd.f32 %v16726_v32, %v5659_v17 }
 0x490   : > { %v12050_v1 = vpop.f32.mrf.mxu0 }
 0x491   : > { %v6105_v12 = vadd.f32 %v6065_v18, %v5098_v37  ;;  %v6059_v41 = vadd.f32 %v6058_v34, %v5930_v25  ;;  %v5948_v0 = vadd.f32 %v12050_v1, %v5779_v15  ;;  %v5128_v37 = vadd.f32 %v19056_v14, %v4999_v38  ;;  %v6082_v34 = vpop.f32.mrf.mxu1 }
 0x492   : > { %v5941_v60 = vpop.f32.mrf.mxu0 }
 0x493   : > { %v6121_v6 = vadd.f32 %v16779_v3, %v6105_v12  ;;  %v6104_v42 = vadd.f32 %v6059_v41, %v5092_v39  ;;  %v6077_v22 = vadd.f32 %v12094_v55, %v5948_v0  ;;  %v5942_v16 = vadd.f32 %v5941_v60, %v5771_v30  ;;  %v12100_v27 = vpop.f32.mrf.mxu1  ;;  %v19057_v12 = vld [vmem:[#allocation86_spill] sm:$0xff] }
 0x494   : > { %v12053_v4 = vpop.f32.mrf.mxu0  ;;  %v5811_v55 = vadd.f32 %v16715_v24, %v5666_v63  ;;  %v19058_v30 = vld [vmem:[#allocation94_spill] sm:$0xff] }
 0x495   : > { %vm6129_vm0 = vcmp.gt.f32.partialorder %v6121_v6, 0.0  ;;  %v6137_v31 = vmul.f32 0.2, %v6121_v6  ;;  %v6120_v61 = vadd.f32 %v16779_v3, %v6104_v42  ;;  %v6107_v8 = vadd.f32 %v6077_v22, %v5110_v49  ;;  %v6094_v40 = vpop.f32.mrf.mxu1 }
 0x496   : > { %v6071_v13 = vadd.f32 %v6070_v45, %v5942_v16  ;;  %v5960_v44 = vadd.f32 %v12053_v4, %v5795_v11  ;;  %v5953_v39 = vpop.f32.mrf.mxu0 }
 0x497   : > { %v6145_v23 = vsel %vm6129_vm0, %v6121_v6, %v6137_v31  ;;  %vm6128_vm1 = vcmp.gt.f32.partialorder %v6120_v61, 0.0  ;;  %v6136_v28 = vmul.f32 0.2, %v6120_v61  ;;  %v6123_v29 = vadd.f32 %v16779_v3, %v6107_v8  ;;  %v19059_v6 = vld [vmem:[#allocation93_spill] sm:$0xff] }
 0x498   : > { %6153 = vst [vmem:[#allocation2 + $0x18] sm:$0xff] %v6145_v23  ;;  %v6106_v19 = vadd.f32 %v6071_v13, %v5104_v53  ;;  %v6089_v57 = vadd.f32 %v12097_v52, %v5960_v44  ;;  %v5954_v2 = vadd.f32 %v5953_v39, %v5787_v46  ;;  %v12056_v58 = vpop.f32.mrf.mxu0  ;;  %v16793_v9 = vand.u32 4294901760, %v6145_v23  ;;  %v19061_v44 = vld [vmem:[#allocation12_spill] sm:$0xff] }
 0x499   : > { %v6144_v49 = vsel %vm6128_vm1, %v6120_v61, %v6136_v28  ;;  %vm6131_vm2 = vcmp.gt.f32.partialorder %v6123_v29, 0.0  ;;  %v6139_v45 = vmul.f32 0.2, %v6123_v29  ;;  %v5972_v56 = vadd.f32 %v12056_v58, %v5811_v55 }
 0x49a   : > { %6152 = vst [vmem:[#allocation2 + $0x10] sm:$0xff] %v6144_v49  ;;  %v6122_v24 = vadd.f32 %v16779_v3, %v6106_v19  ;;  %v6109_v32 = vadd.f32 %v6089_v57, %v5122_v54  ;;  %v6083_v33 = vadd.f32 %v6082_v34, %v5954_v2  ;;  %v5965_v47 = vpop.f32.mrf.mxu0  ;;  %v16796_v20 = vand.u32 4294901760, %v6144_v49  ;;  %v19060_v34 = vld [vmem:[#allocation103_spill] sm:$0xff]  ;;  %v19062_v57 = vld [vmem:[#allocation88_spill] sm:$0xff] }
 0x49b   : > { %v6147_v38 = vsel %vm6131_vm2, %v6123_v29, %v6139_v45  ;;  %v6101_v18 = vadd.f32 %v12100_v27, %v5972_v56  ;;  %v5966_v53 = vadd.f32 %v5965_v47, %v5803_v21  ;;  %v16799_v25 = vsub.f32 %v6145_v23, %v16793_v9  ;;  %v19063_v2 = vld [vmem:[#allocation31_spill] sm:$0xff]  ;;  %v19066_v47 = vld [vmem:[#allocation34_spill] sm:$0xff] }
 0x49c   : > { %6155 = vst [vmem:[#allocation2 + $0x28] sm:$0xff] %v6147_v38  ;;  %vm6130_vm3 = vcmp.gt.f32.partialorder %v6122_v24, 0.0  ;;  %v6138_v15 = vmul.f32 0.2, %v6122_v24  ;;  %v6125_v51 = vadd.f32 %v16779_v3, %v6109_v32  ;;  %v6108_v35 = vadd.f32 %v6083_v33, %v5116_v26  ;;  %12177 = vmatprep.mubr.f32.mxu1 %v16796_v20  ;;  %v19065_v33 = vld [vmem:[#allocation95_spill] sm:$0xff] }
 0x49d   : > { %v6111_v7 = vadd.f32 %v6101_v18, %v5134_v43  ;;  %v6095_v5 = vadd.f32 %v6094_v40, %v5966_v53  ;;  %12178 = vmatmul.mubr.f32.vlgmr.msra.gmra.mxu1 %v16793_v9  ;;  %v16804_v62 = vand.u32 4294901760, %v6147_v38  ;;  %v16807_v50 = vsub.f32 %v6144_v49, %v16796_v20  ;;  %v19064_v49 = vld [vmem:[#allocation96_spill] sm:$0xff] }
 0x49e   : > { %v6146_v48 = vsel %vm6130_vm3, %v6122_v24, %v6138_v15  ;;  %vm6133_vm4 = vcmp.gt.f32.partialorder %v6125_v51, 0.0  ;;  %v6141_v52 = vmul.f32 0.2, %v6125_v51  ;;  %v6124_v1 = vadd.f32 %v16779_v3, %v6108_v35  ;;  %12234 = vmatpush3.msra.mxu1 %v19057_v12  ;;  %v19067_v15 = vld [vmem:[#allocation100_spill] sm:$0xff] }
 0x49f   : > { %6154 = vst [vmem:[#allocation2 + $0x20] sm:$0xff] %v6146_v48  ;;  %v6127_v41 = vadd.f32 %v16779_v3, %v6111_v7  ;;  %v6110_v0 = vadd.f32 %v6095_v5, %v5128_v37  ;;  %12235 = vmatprep.subr.mxu1 %v19058_v30  ;;  %v16813_v36 = vand.u32 4294901760, %v6146_v48  ;;  %v16816_v54 = vsub.f32 %v6147_v38, %v16804_v62  ;;  %v19069_v7 = vld [vmem:[#allocation20_spill] sm:$0xff] }
 0x4a0   : > { %v6149_v59 = vsel %vm6133_vm4, %v6125_v51, %v6141_v52  ;;  %vm6132_vm5 = vcmp.gt.f32.partialorder %v6124_v1, 0.0  ;;  %v6140_v26 = vmul.f32 0.2, %v6124_v1  ;;  %12236 = vmatpush3.msra.mxu1 %v19058_v30  ;;  %v6293_v63 = vand.u32 4294901760, %v16807_v50  ;;  %v19068_v51 = vld [vmem:[#allocation26_spill] sm:$0xff] }
 0x4a1   : > { %6157 = vst [vmem:[#allocation2 + $0x38] sm:$0xff] %v6149_v59  ;;  %vm6135_vm6 = vcmp.gt.f32.partialorder %v6127_v41, 0.0  ;;  %v6143_v17 = vmul.f32 0.2, %v6127_v41  ;;  %v6126_v60 = vadd.f32 %v16779_v3, %v6110_v0  ;;  %12180 = vmatprep.mubr.f32.mxu1 %v16813_v36  ;;  %12237 = vmatprep.subr.mxu1 %v19059_v6  ;;  %v6303_v42 = vand.u32 4294901760, %v16799_v25 }
 0x4a2   : > { %v6148_v22 = vsel %vm6132_vm5, %v6124_v1, %v6140_v26  ;;  %12181 = vmatmul.mubr.f32.gmra.mxu1 %v16804_v62  ;;  %v6294_v16 = vsub.f32 %v16807_v50, %v6293_v63  ;;  %v16828_v10 = vand.u32 4294901760, %v6149_v59  ;;  %v16831_v43 = vsub.f32 %v6146_v48, %v16813_v36  ;;  %v19070_v48 = vld [vmem:[#allocation37_spill] sm:$0xff]  ;;  %v19071_v1 = vld [vmem:[#allocation36_spill] sm:$0xff] }
 0x4a3   : > { %6156 = vst [vmem:[#allocation2 + $0x30] sm:$0xff] %v6148_v22  ;;  %v6151_v3 = vsel %vm6135_vm6, %v6127_v41, %v6143_v17  ;;  %vm6134_vm7 = vcmp.gt.f32.partialorder %v6126_v60, 0.0  ;;  %v6142_v14 = vmul.f32 0.2, %v6126_v60  ;;  %12238 = vmatpush3.msra.mxu1 %v19059_v6  ;;  %v16834_v37 = vand.u32 4294901760, %v6148_v22  ;;  %v19072_v41 = vld [vmem:[#allocation49_spill] sm:$0xff] }
 0x4a4   : > { %6159 = vst [vmem:[#allocation2 + $0x48] sm:$0xff] %v6151_v3  ;;  %12239 = vmatprep.subr.mxu1 %v19060_v34  ;;  %v6295_v11 = vand.u32 4294901760, %v6294_v16  ;;  %v6304_v4 = vsub.f32 %v16799_v25, %v6303_v42  ;;  %v6313_v46 = vand.u32 4294901760, %v16831_v43  ;;  %v16844_v61 = vsub.f32 %v6149_v59, %v16828_v10  ;;  %v19073_v59 = vld [vmem:[#allocation19_spill] sm:$0xff]  ;;  %v19074_v26 = vld [vmem:[#allocation45_spill] sm:$0xff]  ;;  %v19076_v17 = vld [vmem:[#allocation48_spill] sm:$0xff] }
 0x4a5   : > { %v6150_v31 = vsel %vm6134_vm7, %v6126_v60, %v6142_v14  ;;  %12240 = vmatpush3.msra.mxu1 %v19060_v34  ;;  %12183 = vmatprep.mubr.f32.mxu1 %v16834_v37  ;;  %v6323_v8 = vand.u32 4294901760, %v16816_v54  ;;  %v16848_v13 = vsub.f32 %v6148_v22, %v16834_v37  ;;  %v16856_v23 = vand.u32 4294901760, %v6151_v3  ;;  %v19077_v60 = vld [vmem:[#allocation38_spill] sm:$0xff]  ;;  %v19078_v22 = vld [vmem:[#allocation60_spill] sm:$0xff] }
 0x4a6   : > { %6158 = vst [vmem:[#allocation2 + $0x40] sm:$0xff] %v6150_v31  ;;  %12133 = vmatprep.mubr.f32.mxu0 %v6295_v11  ;;  %12241 = vmatprep.subr.mxu1 %v19061_v44  ;;  %v6305_v39 = vand.u32 4294901760, %v6304_v4  ;;  %v6314_v55 = vsub.f32 %v16831_v43, %v6313_v46  ;;  %v16854_v21 = vand.u32 4294901760, %v6150_v31  ;;  %v6343_v58 = vand.u32 4294901760, %v16844_v61  ;;  %v19079_v16 = vld [vmem:[#allocation52_spill] sm:$0xff]  ;;  %v19082_v14 = vld [vmem:[#allocation66_spill] sm:$0xff] }
 0x4a7   : > { %12184 = vmatmul.mubr.f32.gmra.mxu1 %v16828_v10  ;;  %v6324_v28 = vsub.f32 %v16816_v54, %v6323_v8  ;;  %v6333_v29 = vand.u32 4294901760, %v16848_v13  ;;  %v16873_v45 = vsub.f32 %v6151_v3, %v16856_v23  ;;  %v19080_v3 = vld [vmem:[#allocation67_spill] sm:$0xff]  ;;  %v19084_v4 = vld [vmem:[#allocation25_spill] sm:$0xff] }
 0x4a8   : > { %12134 = vmatmul.mubr.f32.vlgmr.msra.gmra.mxu0 %v6305_v39  ;;  %12242 = vmatpush3.msra.mxu1 %v19061_v44  ;;  %v6315_v27 = vand.u32 4294901760, %v6314_v55  ;;  %v16865_v19 = vsub.f32 %v6150_v31, %v16854_v21  ;;  %v6344_v38 = vsub.f32 %v16844_v61, %v6343_v58  ;;  %v19083_v11 = vld [vmem:[#allocation51_spill] sm:$0xff]  ;;  %v19085_v31 = vld [vmem:[#allocation57_spill] sm:$0xff]  ;;  %v19086_v39 = vld [vmem:[#allocation62_spill] sm:$0xff] }
 0x4a9   : > { %12190 = vmatpush3.msra.mxu0 %v19062_v57  ;;  %12243 = vmatprep.subr.mxu1 %v19063_v2  ;;  %v6334_v56 = vsub.f32 %v16848_v13, %v6333_v29  ;;  %v6325_v24 = vand.u32 4294901760, %v6324_v28  ;;  %v6363_v53 = vand.u32 4294901760, %v16873_v45  ;;  %v19087_v55 = vld [vmem:[#allocation18_spill] sm:$0xff] }
 0x4aa   : > { %12191 = vmatprep.subr.mxu0 %v19064_v49  ;;  %12244 = vmatpush3.msra.mxu1 %v19063_v2  ;;  %v6353_v32 = vand.u32 4294901760, %v16865_v19  ;;  %v6345_v35 = vand.u32 4294901760, %v6344_v38  ;;  %v19098_v38 = vld [vmem:[#allocation55_spill] sm:$0xff] }
 0x4ab   : > { %12192 = vmatpush3.msra.mxu0 %v19064_v49  ;;  %12136 = vmatprep.mubr.f32.mxu0 %v6315_v27  ;;  %v6335_v18 = vand.u32 4294901760, %v6334_v56  ;;  %v6364_v5 = vsub.f32 %v16873_v45, %v6363_v53  ;;  %v19095_v27 = vld [vmem:[#allocation33_spill] sm:$0xff]  ;;  %v19096_v49 = vld [vmem:[#allocation46_spill] sm:$0xff] }
 0x4ac   : > { %12186 = vmatprep.mubr.f32.mxu1 %v16854_v21  ;;  %12193 = vmatprep.subr.mxu0 %v19065_v33  ;;  %v6354_v40 = vsub.f32 %v16865_v19, %v6353_v32 }
 0x4ad   : > { %12245 = vmatprep.subr.mxu1 %v19066_v47  ;;  %12137 = vmatmul.mubr.f32.gmra.mxu0 %v6325_v24  ;;  %v6365_v0 = vand.u32 4294901760, %v6364_v5 }
 0x4ae   : > { %12187 = vmatmul.mubr.f32.gmra.mxu1 %v16856_v23  ;;  %12194 = vmatpush3.msra.mxu0 %v19065_v33  ;;  %v6355_v52 = vand.u32 4294901760, %v6354_v40  ;;  %v19099_v40 = vld [vmem:[#allocation54_spill] sm:$0xff] }
 0x4af   : > { %12246 = vmatpush3.msra.mxu1 %v19066_v47  ;;  %12195 = vmatprep.subr.mxu0 %v19067_v15 }
 0x4b0   : > { %12247 = vmatprep.subr.mxu1 %v19068_v51  ;;  %12265 = vmatprep.mubr.f32.mxu1 %v6293_v63  ;;  %v19075_v63 = vld [vmem:[#allocation43_spill] sm:$0xff] }
 0x4b1   : > { %12196 = vmatpush3.msra.mxu0 %v19067_v15  ;;  %12248 = vmatpush3.msra.mxu1 %v19068_v51  ;;  %v6178_v15 = vld [vmem:[#allocation6 + $0x348] sm:$0xff] }
 0x4b2   : > { %12139 = vmatprep.mubr.f32.mxu0 %v6335_v18  ;;  %12197 = vmatprep.subr.mxu0 %v19069_v7 }
 0x4b3   : > { %12249 = vmatprep.subr.mxu1 %v19070_v48  ;;  %12140 = vmatmul.mubr.f32.gmra.mxu0 %v6345_v35 }
 0x4b4   : > { %12198 = vmatpush3.msra.mxu0 %v19069_v7  ;;  %12250 = vmatpush3.msra.mxu1 %v19070_v48 }
 0x4b5   : > { %12199 = vmatprep.subr.mxu0 %v19071_v1  ;;  %12251 = vmatprep.subr.mxu1 %v19072_v41 }
 0x4b6   : > { %12200 = vmatpush3.msra.mxu0 %v19071_v1  ;;  %12252 = vmatpush3.msra.mxu1 %v19072_v41 }
 0x4b7   : > { %12142 = vmatprep.mubr.f32.mxu0 %v6355_v52  ;;  %12201 = vmatprep.subr.mxu0 %v19073_v59  ;;  %v19100_v52 = vld [vmem:[#allocation63_spill] sm:$0xff] }
 0x4b8   : > { %12253 = vmatprep.subr.mxu1 %v19074_v26  ;;  %12143 = vmatmul.mubr.f32.gmra.mxu0 %v6365_v0 }
 0x4b9   : > { %12202 = vmatpush3.msra.mxu0 %v19073_v59  ;;  %12254 = vmatpush3.msra.mxu1 %v19074_v26  ;;  %v19101_v59 = vld [vmem:[#allocation61_spill] sm:$0xff] }
 0x4ba   : > { %12203 = vmatprep.subr.mxu0 %v19075_v63  ;;  %12221 = vmatprep.mubr.f32.mxu0 %v16807_v50  ;;  %v19081_v50 = vld [vmem:[#allocation58_spill] sm:$0xff] }
 0x4bb   : > { %12255 = vmatprep.subr.mxu1 %v19076_v17  ;;  %12204 = vmatpush3.msra.mxu0 %v19075_v63 }
 0x4bc   : > { %12256 = vmatpush3.msra.mxu1 %v19076_v17  ;;  %12205 = vmatprep.subr.mxu0 %v19077_v60 }
 0x4bd   : > { %12257 = vmatprep.subr.mxu1 %v19078_v22  ;;  %12206 = vmatpush3.msra.mxu0 %v19077_v60  ;;  %v6176_v60 = vld [vmem:[#allocation6 + $0x338] sm:$0xff] }
 0x4be   : > { %12258 = vmatpush3.msra.mxu1 %v19078_v22  ;;  %12207 = vmatprep.subr.mxu0 %v19079_v16 }
 0x4bf   : > { %12259 = vmatprep.subr.mxu1 %v19080_v3  ;;  %12208 = vmatpush3.msra.mxu0 %v19079_v16 }
 0x4c0   : > { %12260 = vmatpush3.msra.mxu1 %v19080_v3  ;;  %12209 = vmatprep.subr.mxu0 %v19081_v50 }
 0x4c1   : > { %12261 = vmatprep.subr.mxu1 %v19082_v14  ;;  %12210 = vmatpush3.msra.mxu0 %v19081_v50  ;;  %v6175_v50 = vld [vmem:[#allocation6 + $0x330] sm:$0xff] }
 0x4c2   : > { %12262 = vmatpush3.msra.mxu1 %v19082_v14  ;;  %12211 = vmatprep.subr.mxu0 %v19083_v11 }
 0x4c3   : > { %12263 = vmatprep.subr.mxu1 %v19084_v4  ;;  %12212 = vmatpush3.msra.mxu0 %v19083_v11 }
 0x4c4   : > { %12264 = vmatpush3.msra.mxu1 %v19084_v4  ;;  %12213 = vmatprep.subr.mxu0 %v19085_v31 }
 0x4c5   : > { %12266 = vmatmul.mubr.f32.vlgmr.msra.gmra.mxu1 %v6303_v42  ;;  %12321 = vmatprep.subr.mxu1 %v19057_v12  ;;  %v6184_v42 = vld [vmem:[#allocation6 + $0x378] sm:$0xff] }
 0x4c6   : > { %12214 = vmatpush3.msra.mxu0 %v19085_v31  ;;  %12268 = vmatprep.mubr.f32.mxu1 %v6313_v46  ;;  %v19093_v46 = vld [vmem:[#allocation13_spill] sm:$0xff] }
 0x4c7   : > { %12322 = vmatpush3.msra.mxu1 %v19057_v12  ;;  %12215 = vmatprep.subr.mxu0 %v19086_v39  ;;  %v19088_v12 = vld [vmem:[#allocation35_spill] sm:$0xff] }
 0x4c8   : > { %12323 = vmatprep.subr.mxu1 %v19058_v30  ;;  %12216 = vmatpush3.msra.mxu0 %v19086_v39 }
 0x4c9   : > { %12324 = vmatpush3.msra.mxu1 %v19058_v30  ;;  %12217 = vmatprep.subr.mxu0 %v19087_v55  ;;  %v19089_v30 = vld [vmem:[#allocation91_spill] sm:$0xff] }
 0x4ca   : > { %12269 = vmatmul.mubr.f32.gmra.mxu1 %v6323_v8  ;;  %12325 = vmatprep.subr.mxu1 %v19059_v6  ;;  %v6182_v8 = vld [vmem:[#allocation6 + $0x368] sm:$0xff] }
 0x4cb   : > { %12218 = vmatpush3.msra.mxu0 %v19087_v55  ;;  %12271 = vmatprep.mubr.f32.mxu1 %v6333_v29  ;;  %v6181_v29 = vld [vmem:[#allocation6 + $0x360] sm:$0xff] }
 0x4cc   : > { %12326 = vmatpush3.msra.mxu1 %v19059_v6  ;;  %12219 = vmatprep.subr.mxu0 %v19088_v12  ;;  %v19090_v6 = vld [vmem:[#allocation98_spill] sm:$0xff]  ;;  %v19103_v55 = vld [vmem:[#allocation32_spill] sm:$0xff] }
 0x4cd   : > { %12327 = vmatprep.subr.mxu1 %v19060_v34  ;;  %12220 = vmatpush3.msra.mxu0 %v19088_v12 }
 0x4ce   : > { %12328 = vmatpush3.msra.mxu1 %v19060_v34  ;;  %12222 = vmatmul.mubr.f32.vlgmr.msra.gmra.mxu0 %v16799_v25  ;;  %v19091_v25 = vld [vmem:[#allocation23_spill] sm:$0xff]  ;;  %v6183_v34 = vld [vmem:[#allocation6 + $0x370] sm:$0xff] }
 0x4cf   : > { %12272 = vmatmul.mubr.f32.gmra.mxu1 %v6343_v58  ;;  %12277 = vmatprep.subr.mxu0 %v19089_v30  ;;  %v6180_v58 = vld [vmem:[#allocation6 + $0x358] sm:$0xff] }
 0x4d0   : > { %12329 = vmatprep.subr.mxu1 %v19061_v44  ;;  %12224 = vmatprep.mubr.f32.mxu0 %v16831_v43  ;;  %v19092_v43 = vld [vmem:[#allocation16_spill] sm:$0xff]  ;;  %v17030_v24 = vand.u32 4294901760, %v6180_v58 }
 0x4d1   : > { %12274 = vmatprep.mubr.f32.mxu1 %v6353_v32  ;;  %12278 = vmatpush3.msra.mxu0 %v19089_v30  ;;  %v6179_v32 = vld [vmem:[#allocation6 + $0x350] sm:$0xff]  ;;  %v17099_v30 = vand.u32 4294901760, %v6175_v50 }
 0x4d2   : > { %12330 = vmatpush3.msra.mxu1 %v19061_v44  ;;  %12279 = vmatprep.subr.mxu0 %v19090_v6  ;;  %v19094_v44 = vld [vmem:[#allocation39_spill] sm:$0xff]  ;;  %v17053_v35 = vsub.f32 %v6180_v58, %v17030_v24 }
 0x4d3   : > { %12331 = vmatprep.subr.mxu1 %v19063_v2  ;;  %12280 = vmatpush3.msra.mxu0 %v19090_v6  ;;  %v6174_v6 = vld [vmem:[#allocation6 + $0x328] sm:$0xff]  ;;  %v6172_v58 = vld [vmem:[#allocation6 + $0x318] sm:$0xff] }
 0x4d4   : > { %12332 = vmatpush3.msra.mxu1 %v19063_v2  ;;  %12225 = vmatmul.mubr.f32.gmra.mxu0 %v16816_v54  ;;  %v16985_v54 = vand.u32 4294901760, %v6184_v42  ;;  %v17016_v2 = vand.u32 4294901760, %v6181_v29  ;;  %v17074_v63 = vand.u32 4294901760, %v17053_v35 }
 0x4d5   : > { %12275 = vmatmul.mubr.f32.gmra.mxu1 %v6363_v53  ;;  %12281 = vmatprep.subr.mxu0 %v19091_v25  ;;  %v17046_v53 = vand.u32 4294901760, %v6179_v32 }
 0x4d6   : > { %12333 = vmatprep.subr.mxu1 %v19066_v47  ;;  %12227 = vmatprep.mubr.f32.mxu0 %v16848_v13  ;;  %v16993_v13 = vand.u32 4294901760, %v6183_v34  ;;  %v16998_v28 = vsub.f32 %v6184_v42, %v16985_v54  ;;  %v7345_v31 = vsub.f32 %v17053_v35, %v17074_v63 }
 0x4d7   : > { %12282 = vmatpush3.msra.mxu0 %v19091_v25  ;;  %12334 = vmatpush3.msra.mxu1 %v19066_v47  ;;  %v17037_v47 = vsub.f32 %v6181_v29, %v17016_v2  ;;  %v17069_v0 = vsub.f32 %v6179_v32, %v17046_v53  ;;  %v17116_v29 = vand.u32 4294901760, %v6174_v6 }
 0x4d8   : > { %12353 = vmatprep.mubr.f32.mxu1 %v16796_v20  ;;  %12283 = vmatprep.subr.mxu0 %v19092_v43  ;;  %v17014_v57 = vand.u32 4294901760, %v16998_v28 }
 0x4d9   : > { %12335 = vmatprep.subr.mxu1 %v19068_v51  ;;  %12284 = vmatpush3.msra.mxu0 %v19092_v43  ;;  %v17058_v5 = vand.u32 4294901760, %v17037_v47  ;;  %v17088_v11 = vand.u32 4294901760, %v17069_v0 }
 0x4da   : > { %12336 = vmatpush3.msra.mxu1 %v19068_v51  ;;  %12228 = vmatmul.mubr.f32.gmra.mxu0 %v16844_v61  ;;  %v17002_v61 = vand.u32 4294901760, %v6182_v8  ;;  %v7317_v33 = vsub.f32 %v16998_v28, %v17014_v57 }
 0x4db   : > { %12285 = vmatprep.subr.mxu0 %v19093_v46  ;;  %12337 = vmatprep.subr.mxu1 %v19070_v48  ;;  %v7352_v42 = vsub.f32 %v17069_v0, %v17088_v11 }
 0x4dc   : > { %12230 = vmatprep.mubr.f32.mxu0 %v16865_v19  ;;  %12286 = vmatpush3.msra.mxu0 %v19093_v46  ;;  %v17009_v19 = vsub.f32 %v6183_v34, %v16993_v13  ;;  %v7318_v7 = vand.u32 4294901760, %v7317_v33  ;;  %v6173_v34 = vld [vmem:[#allocation6 + $0x320] sm:$0xff] }
 0x4dd   : > { %12338 = vmatpush3.msra.mxu1 %v19070_v48  ;;  %12287 = vmatprep.subr.mxu0 %v19094_v44  ;;  %v6177_v48 = vld [vmem:[#allocation6 + $0x340] sm:$0xff]  ;;  %v7353_v32 = vand.u32 4294901760, %v7352_v42 }
 0x4de   : > { %12339 = vmatprep.subr.mxu1 %v19072_v41  ;;  %12288 = vmatpush3.msra.mxu0 %v19094_v44  ;;  %v17028_v56 = vand.u32 4294901760, %v17009_v19  ;;  %v19104_v46 = vld [vmem:[#allocation40_spill] sm:$0xff] }
 0x4df   : > { %12340 = vmatpush3.msra.mxu1 %v19072_v41  ;;  %12231 = vmatmul.mubr.f32.gmra.mxu0 %v16873_v45  ;;  %v17021_v45 = vsub.f32 %v6182_v8, %v17002_v61  ;;  %v17064_v41 = vand.u32 4294901760, %v6178_v15  ;;  %v7346_v8 = vand.u32 4294901760, %v7345_v31 }
 0x4e0   : > { %12289 = vmatprep.subr.mxu0 %v19095_v27  ;;  %12341 = vmatprep.subr.mxu1 %v19074_v26  ;;  %v7324_v51 = vsub.f32 %v17009_v19, %v17028_v56 }
 0x4e1   : > { %12290 = vmatpush3.msra.mxu0 %v19095_v27  ;;  %12309 = vmatprep.mubr.f32.mxu0 %v16796_v20  ;;  %v19097_v20 = vld [vmem:[#allocation42_spill] sm:$0xff]  ;;  %v17042_v18 = vand.u32 4294901760, %v17021_v45  ;;  %v17120_v27 = vsub.f32 %v6175_v50, %v17099_v30 }
 0x4e2   : > { %12342 = vmatpush3.msra.mxu1 %v19074_v26  ;;  %12291 = vmatprep.subr.mxu0 %v19096_v49  ;;  %v7325_v26 = vand.u32 4294901760, %v7324_v51 }
 0x4e3   : > { %12343 = vmatprep.subr.mxu1 %v19076_v17  ;;  %12292 = vmatpush3.msra.mxu0 %v19096_v49  ;;  %v7331_v1 = vsub.f32 %v17021_v45, %v17042_v18  ;;  %v17143_v51 = vand.u32 4294901760, %v17120_v27 }
 0x4e4   : > { %12344 = vmatpush3.msra.mxu1 %v19076_v17  ;;  %12293 = vmatprep.subr.mxu0 %v19097_v20  ;;  %v17076_v17 = vand.u32 4294901760, %v6177_v48 }
 0x4e5   : > { %12345 = vmatprep.subr.mxu1 %v19078_v22  ;;  %12294 = vmatpush3.msra.mxu0 %v19097_v20  ;;  %v7332_v16 = vand.u32 4294901760, %v7331_v1  ;;  %v17125_v20 = vand.u32 4294901760, %v6173_v34  ;;  %v7380_v50 = vsub.f32 %v17120_v27, %v17143_v51 }
 0x4e6   : > { %12346 = vmatpush3.msra.mxu1 %v19078_v22  ;;  %12295 = vmatprep.subr.mxu0 %v19098_v38  ;;  %v7338_v22 = vsub.f32 %v17037_v47, %v17058_v5  ;;  %v17096_v39 = vsub.f32 %v6177_v48, %v17076_v17 }
 0x4e7   : > { %12347 = vmatprep.subr.mxu1 %v19080_v3  ;;  %12296 = vmatpush3.msra.mxu0 %v19098_v38  ;;  %v6171_v38 = vld [vmem:[#allocation6 + $0x310] sm:$0xff]  ;;  %v17147_v48 = vsub.f32 %v6173_v34, %v17125_v20  ;;  %v7381_v42 = vand.u32 4294901760, %v7380_v50 }
 0x4e8   : > { %12348 = vmatpush3.msra.mxu1 %v19080_v3  ;;  %12297 = vmatprep.subr.mxu0 %v19099_v40  ;;  %v17084_v3 = vsub.f32 %v6178_v15, %v17064_v41  ;;  %v7339_v12 = vand.u32 4294901760, %v7338_v22  ;;  %v17114_v44 = vand.u32 4294901760, %v17096_v39  ;;  %v17136_v15 = vsub.f32 %v6174_v6, %v17116_v29  ;;  %v6162_v50 = vld [vmem:[#allocation2 + $0x17] sm:$0xff] }
 0x4e9   : > { %12349 = vmatprep.subr.mxu1 %v19082_v14  ;;  %12298 = vmatpush3.msra.mxu0 %v19099_v40  ;;  %v17138_v40 = vand.u32 4294901760, %v6172_v58 }
 0x4ea   : > { %12350 = vmatpush3.msra.mxu1 %v19082_v14  ;;  %12299 = vmatprep.subr.mxu0 %v19100_v52  ;;  %v19102_v14 = vld [vmem:[#allocation69_spill] sm:$0xff]  ;;  %v17103_v25 = vand.u32 4294901760, %v17084_v3 }
 0x4eb   : > { %12351 = vmatprep.subr.mxu1 %v19084_v4  ;;  %12300 = vmatpush3.msra.mxu0 %v19100_v52  ;;  %v17149_v52 = vand.u32 4294901760, %v6171_v38  ;;  %v17159_v22 = vsub.f32 %v6172_v58, %v17138_v40 }
 0x4ec   : > { %12352 = vmatpush3.msra.mxu1 %v19084_v4  ;;  %12301 = vmatprep.subr.mxu0 %v19101_v59  ;;  %v17090_v4 = vand.u32 4294901760, %v6176_v60  ;;  %v7359_v49 = vsub.f32 %v17084_v3, %v17103_v25 }
 0x4ed   : > { %12354 = vmatmul.mubr.f32.vlgmr.msra.gmra.mxu1 %v16793_v9  ;;  %12409 = vmatprep.subr.mxu1 %v7318_v7 }
 0x4ee   : > { %12302 = vmatpush3.msra.mxu0 %v19101_v59  ;;  %12356 = vmatprep.mubr.f32.mxu1 %v16813_v36  ;;  %v17110_v43 = vsub.f32 %v6176_v60, %v17090_v4  ;;  %v6169_v59 = vld [vmem:[#allocation6 + $0x300] sm:$0xff]  ;;  %v17156_v60 = vand.u32 4294901760, %v17136_v15 }
 0x4ef   : > { %12410 = vmatpush3.msra.mxu1 %v7318_v7  ;;  %12303 = vmatprep.subr.mxu0 %v19102_v14  ;;  %v6170_v7 = vld [vmem:[#allocation6 + $0x308] sm:$0xff]  ;;  %v17174_v31 = vand.u32 4294901760, %v6169_v59 }
 0x4f0   : > { %12411 = vmatprep.subr.mxu1 %v7325_v26  ;;  %12304 = vmatpush3.msra.mxu0 %v19102_v14  ;;  %v17130_v33 = vand.u32 4294901760, %v17110_v43  ;;  %v17172_v14 = vsub.f32 %v6171_v38, %v17149_v52 }
 0x4f1   : > { %12412 = vmatpush3.msra.mxu1 %v7325_v26  ;;  %12305 = vmatprep.subr.mxu0 %v19103_v55 }
 0x4f2   : > { %12357 = vmatmul.mubr.f32.gmra.mxu1 %v16804_v62  ;;  %12413 = vmatprep.subr.mxu1 %v7332_v16  ;;  %v7373_v1 = vsub.f32 %v17110_v43, %v17130_v33 }
 0x4f3   : > { %12306 = vmatpush3.msra.mxu0 %v19103_v55  ;;  %12359 = vmatprep.mubr.f32.mxu1 %v16834_v37 }
 0x4f4   : > { %12414 = vmatpush3.msra.mxu1 %v7332_v16  ;;  %12307 = vmatprep.subr.mxu0 %v19104_v46  ;;  %v17161_v16 = vand.u32 4294901760, %v6170_v7  ;;  %v7374_v55 = vand.u32 4294901760, %v7373_v1 }
 0x4f5   : > { %12415 = vmatprep.subr.mxu1 %v7339_v12  ;;  %12308 = vmatpush3.msra.mxu0 %v19104_v46  ;;  %v17192_v46 = vand.u32 4294901760, %v17172_v14 }
 0x4f6   : > { %12416 = vmatpush3.msra.mxu1 %v7339_v12  ;;  %12310 = vmatmul.mubr.f32.vlgmr.msra.gmra.mxu0 %v16793_v9  ;;  %v7366_v9 = vsub.f32 %v17096_v39, %v17114_v44  ;;  %v7387_v12 = vsub.f32 %v17136_v15, %v17156_v60  ;;  %v17184_v6 = vsub.f32 %v6170_v7, %v17161_v16 }
 0x4f7   : > { %12360 = vmatmul.mubr.f32.gmra.mxu1 %v16828_v10  ;;  %12365 = vmatprep.subr.mxu0 %v16985_v54  ;;  %19106 = vst [vmem:[#allocation80_spill] sm:$0xff] %v17192_v46 }
 0x4f8   : > { %12417 = vmatprep.subr.mxu1 %v7346_v8  ;;  %12312 = vmatprep.mubr.f32.mxu0 %v16813_v36  ;;  %v7360_v36 = vand.u32 4294901760, %v7359_v49  ;;  %v7367_v26 = vand.u32 4294901760, %v7366_v9  ;;  %v7388_v58 = vand.u32 4294901760, %v7387_v12  ;;  %v17202_v49 = vand.u32 4294901760, %v17184_v6  ;;  %v6160_v9 = vld [vmem:[#allocation2 + $0x7] sm:$0xff] }
 0x4f9   : > { %12362 = vmatprep.mubr.f32.mxu1 %v16854_v21  ;;  %12366 = vmatpush3.msra.mxu0 %v16985_v54  ;;  %v17217_v1 = vand.u32 4294901760, %v6160_v9 }
 0x4fa   : > { %12418 = vmatpush3.msra.mxu1 %v7346_v8  ;;  %12367 = vmatprep.subr.mxu0 %v16993_v13  ;;  %v17195_v8 = vsub.f32 %v6169_v59, %v17174_v31  ;;  %19107 = vst [vmem:[#allocation76_spill] sm:$0xff] %v17202_v49  ;;  %v6161_v59 = vld [vmem:[#allocation2 + $0xf] sm:$0xff] }
 0x4fb   : > { %12419 = vmatprep.subr.mxu1 %v7353_v32  ;;  %12368 = vmatpush3.msra.mxu0 %v16993_v13  ;;  %19109 = vst [vmem:[#allocation29_spill] sm:$0xff] %v17217_v1  ;;  %v17224_v12 = vand.u32 4294901760, %v6161_v59 }
 0x4fc   : > { %12420 = vmatpush3.msra.mxu1 %v7353_v32  ;;  %12313 = vmatmul.mubr.f32.gmra.mxu0 %v16804_v62  ;;  %v17169_v62 = vand.u32 4294901760, %v17147_v48  ;;  %v17209_v38 = vand.u32 4294901760, %v17195_v8 }
 0x4fd   : > { %12363 = vmatmul.mubr.f32.gmra.mxu1 %v16856_v23  ;;  %12369 = vmatprep.subr.mxu0 %v17002_v61  ;;  %19110 = vst [vmem:[#allocation75_spill] sm:$0xff] %v17224_v12 }
 0x4fe   : > { %12421 = vmatprep.subr.mxu1 %v7360_v36  ;;  %12315 = vmatprep.mubr.f32.mxu0 %v16834_v37  ;;  %v17181_v37 = vand.u32 4294901760, %v17159_v22  ;;  %v7394_v34 = vsub.f32 %v17147_v48, %v17169_v62  ;;  %19108 = vst [vmem:[#allocation89_spill] sm:$0xff] %v17209_v38 }
 0x4ff   : > { %12370 = vmatpush3.msra.mxu0 %v17002_v61  ;;  %12422 = vmatpush3.msra.mxu1 %v7360_v36  ;;  %v7415_v36 = vsub.f32 %v17184_v6, %v17202_v49 }
 0x500   : > { %12371 = vmatprep.subr.mxu0 %v17016_v2  ;;  %12423 = vmatprep.subr.mxu1 %v7367_v26  ;;  %19105 = vst [vmem:[#allocation104_spill] sm:$0xff] %v17181_v37  ;;  %v7395_v32 = vand.u32 4294901760, %v7394_v34 }
 0x501   : > { %12372 = vmatpush3.msra.mxu0 %v17016_v2  ;;  %12424 = vmatpush3.msra.mxu1 %v7367_v26 }
 0x502   : > { %12316 = vmatmul.mubr.f32.gmra.mxu0 %v16828_v10  ;;  %12373 = vmatprep.subr.mxu0 %v17030_v24  ;;  %v7401_v10 = vsub.f32 %v17159_v22, %v17181_v37  ;;  %v6167_v37 = vld [vmem:[#allocation2 + $0x3f] sm:$0xff] }
 0x503   : > { %12425 = vmatprep.subr.mxu1 %v7374_v55  ;;  %12318 = vmatprep.mubr.f32.mxu0 %v16854_v21  ;;  %v7408_v21 = vsub.f32 %v17172_v14, %v17192_v46 }
 0x504   : > { %12374 = vmatpush3.msra.mxu0 %v17030_v24  ;;  %12426 = vmatpush3.msra.mxu1 %v7374_v55  ;;  %v7402_v7 = vand.u32 4294901760, %v7401_v10  ;;  %v7416_v55 = vand.u32 4294901760, %v7415_v36  ;;  %v6163_v10 = vld [vmem:[#allocation2 + $0x1f] sm:$0xff] }
 0x505   : > { %12375 = vmatprep.subr.mxu0 %v17046_v53  ;;  %12427 = vmatprep.subr.mxu1 %v7381_v42  ;;  %v7409_v26 = vand.u32 4294901760, %v7408_v21  ;;  %v6164_v21 = vld [vmem:[#allocation2 + $0x27] sm:$0xff] }
 0x506   : > { %12376 = vmatpush3.msra.mxu0 %v17046_v53  ;;  %12428 = vmatpush3.msra.mxu1 %v7381_v42  ;;  %v17228_v42 = vsub.f32 %v6160_v9, %v17217_v1 }
 0x507   : > { %12319 = vmatmul.mubr.f32.gmra.mxu0 %v16856_v23  ;;  %12377 = vmatprep.subr.mxu0 %v17064_v41  ;;  %v7422_v23 = vsub.f32 %v17195_v8, %v17209_v38  ;;  %v6166_v38 = vld [vmem:[#allocation2 + $0x37] sm:$0xff] }
 0x508   : > { %12429 = vmatprep.subr.mxu1 %v7388_v58  ;;  %12378 = vmatpush3.msra.mxu0 %v17064_v41  ;;  %v18513_v9 = vand.u32 4294901760, %v17228_v42  ;;  %v17277_v46 = vand.u32 4294901760, %v6166_v38 }
 0x509   : > { %12430 = vmatpush3.msra.mxu1 %v7388_v58  ;;  %12379 = vmatprep.subr.mxu0 %v17076_v17  ;;  %v7423_v34 = vand.u32 4294901760, %v7422_v23  ;;  %v17231_v58 = vand.u32 4294901760, %v6162_v50 }
 0x50a   : > { %12431 = vmatprep.subr.mxu1 %v7395_v32  ;;  %12380 = vmatpush3.msra.mxu0 %v17076_v17  ;;  %v7236_v23 = vsub.f32 %v17228_v42, %v18513_v9 }
 0x50b   : > { %12432 = vmatpush3.msra.mxu1 %v7395_v32  ;;  %12381 = vmatprep.subr.mxu0 %v17090_v4  ;;  %19111 = vst [vmem:[#allocation97_spill] sm:$0xff] %v17231_v58  ;;  %v17236_v32 = vsub.f32 %v6161_v59, %v17224_v12  ;;  %v17244_v36 = vsub.f32 %v6162_v50, %v17231_v58  ;;  %v17249_v59 = vand.u32 4294901760, %v6164_v21  ;;  %v6165_v50 = vld [vmem:[#allocation2 + $0x2f] sm:$0xff] }
 0x50c   : > { %12433 = vmatprep.subr.mxu1 %v7402_v7  ;;  %12382 = vmatpush3.msra.mxu0 %v17090_v4  ;;  %v17270_v49 = vand.u32 4294901760, %v6165_v50 }
 0x50d   : > { %12434 = vmatpush3.msra.mxu1 %v7402_v7  ;;  %12383 = vmatprep.subr.mxu0 %v17099_v30  ;;  %v17241_v7 = vand.u32 4294901760, %v6163_v10  ;;  %19113 = vst [vmem:[#allocation90_spill] sm:$0xff] %v17249_v59 }
 0x50e   : > { %12435 = vmatprep.subr.mxu1 %v7409_v26  ;;  %12384 = vmatpush3.msra.mxu0 %v17099_v30 }
 0x50f   : > { %12436 = vmatpush3.msra.mxu1 %v7409_v26  ;;  %12385 = vmatprep.subr.mxu0 %v17116_v29  ;;  %19112 = vst [vmem:[#allocation87_spill] sm:$0xff] %v17241_v7  ;;  %v18520_v26 = vand.u32 4294901760, %v17236_v32 }
 0x510   : > { %12437 = vmatprep.subr.mxu1 %v7416_v55  ;;  %12386 = vmatpush3.msra.mxu0 %v17116_v29 }
 0x511   : > { %12438 = vmatpush3.msra.mxu1 %v7416_v55  ;;  %12387 = vmatprep.subr.mxu0 %v17125_v20  ;;  %v17260_v55 = vsub.f32 %v6163_v10, %v17241_v7  ;;  %v7246_v9 = vsub.f32 %v17236_v32, %v18520_v26  ;;  %v17273_v10 = vsub.f32 %v6164_v21, %v17249_v59 }
 0x512   : > { %12439 = vmatprep.subr.mxu1 %v7423_v34  ;;  %12388 = vmatpush3.msra.mxu0 %v17125_v20 }
 0x513   : > { %12440 = vmatpush3.msra.mxu1 %v7423_v34  ;;  %12441 = vmatprep.mubr.f32.mxu1 %v17217_v1  ;;  %v7237_v34 = vand.u32 4294901760, %v7236_v23  ;;  %v7247_v21 = vand.u32 4294901760, %v7246_v9  ;;  %v17290_v23 = vsub.f32 %v6165_v50, %v17270_v49  ;;  %v19115_v1 = vand.u32 4294901760, %v17260_v55 }
 0x514   : > { %12389 = vmatprep.subr.mxu0 %v17138_v40  ;;  %12442 = vmatmul.mubr.f32.vlgmr.msra.gmra.mxu1 %v17224_v12  ;;  %v17297_v12 = vsub.f32 %v6166_v38, %v17277_v46 }
 0x515   : > { %12497 = vmatprep.subr.mxu1 %v16985_v54  ;;  %12390 = vmatpush3.msra.mxu0 %v17138_v40  ;;  %v7266_v9 = vsub.f32 %v17260_v55, %v19115_v1  ;;  %v7285_v50 = vand.u32 4294901760, %v17290_v23 }
 0x516   : > { %12444 = vmatprep.mubr.f32.mxu1 %v17231_v58  ;;  %12498 = vmatpush3.msra.mxu1 %v16985_v54  ;;  %v19114_v58 = vand.u32 4294901760, %v17244_v36  ;;  %v7295_v1 = vand.u32 4294901760, %v17297_v12 }
 0x517   : > { %12391 = vmatprep.subr.mxu0 %v17149_v52  ;;  %12499 = vmatprep.subr.mxu1 %v16993_v13 }
 0x518   : > { %12392 = vmatpush3.msra.mxu0 %v17149_v52  ;;  %12500 = vmatpush3.msra.mxu1 %v16993_v13  ;;  %v7256_v26 = vsub.f32 %v17244_v36, %v19114_v58  ;;  %v17294_v58 = vand.u32 4294901760, %v6167_v37 }
 0x519   : > { %12393 = vmatprep.subr.mxu0 %v17161_v16  ;;  %12445 = vmatmul.mubr.f32.gmra.mxu1 %v17241_v7  ;;  %v7275_v7 = vand.u32 4294901760, %v17273_v10 }
 0x51a   : > { %12501 = vmatprep.subr.mxu1 %v17002_v61  ;;  %12394 = vmatpush3.msra.mxu0 %v17161_v16 }
 0x51b   : > { %12447 = vmatprep.mubr.f32.mxu1 %v17249_v59  ;;  %12502 = vmatpush3.msra.mxu1 %v17002_v61  ;;  %v7257_v59 = vand.u32 4294901760, %v7256_v26  ;;  %v7276_v38 = vsub.f32 %v17273_v10, %v7275_v7  ;;  %v17313_v26 = vsub.f32 %v6167_v37, %v17294_v58  ;;  %v7296_v37 = vsub.f32 %v17297_v12, %v7295_v1 }
 0x51c   : > { %12395 = vmatprep.subr.mxu0 %v17174_v31  ;;  %12503 = vmatprep.subr.mxu1 %v17016_v2 }
 0x51d   : > { %12396 = vmatpush3.msra.mxu0 %v17174_v31  ;;  %12397 = vmatprep.mubr.f32.mxu0 %v7237_v34  ;;  %v7277_v34 = vand.u32 4294901760, %v7276_v38 }
 0x51e   : > { %12504 = vmatpush3.msra.mxu1 %v17016_v2  ;;  %12398 = vmatmul.mubr.f32.vlgmr.msra.gmra.mxu0 %v7247_v21  ;;  %v7305_v21 = vand.u32 4294901760, %v17313_v26 }
 0x51f   : > { %12448 = vmatmul.mubr.f32.gmra.mxu1 %v17270_v49  ;;  %12453 = vmatprep.subr.mxu0 %v16998_v28 }
 0x520   : > { %12505 = vmatprep.subr.mxu1 %v17030_v24  ;;  %12400 = vmatprep.mubr.f32.mxu0 %v7257_v59  ;;  %v7267_v59 = vand.u32 4294901760, %v7266_v9  ;;  %v7297_v9 = vand.u32 4294901760, %v7296_v37  ;;  %v7306_v38 = vsub.f32 %v17313_v26, %v7305_v21  ;;  %v19131_v37 = vld [vmem:[#allocation87_spill] sm:$0xff] }
 0x521   : > { %12450 = vmatprep.mubr.f32.mxu1 %v17277_v46  ;;  %12454 = vmatpush3.msra.mxu0 %v16998_v28  ;;  %v7286_v28 = vsub.f32 %v17290_v23, %v7285_v50 }
 0x522   : > { %12506 = vmatpush3.msra.mxu1 %v17030_v24  ;;  %12455 = vmatprep.subr.mxu0 %v17009_v19 }
 0x523   : > { %12507 = vmatprep.subr.mxu1 %v17046_v53  ;;  %12456 = vmatpush3.msra.mxu0 %v17009_v19  ;;  %v7287_v19 = vand.u32 4294901760, %v7286_v28  ;;  %v19130_v28 = vld [vmem:[#allocation76_spill] sm:$0xff] }
 0x524   : > { %12508 = vmatpush3.msra.mxu1 %v17046_v53  ;;  %12401 = vmatmul.mubr.f32.gmra.mxu0 %v7267_v59 }
 0x525   : > { %12451 = vmatmul.mubr.f32.gmra.mxu1 %v17294_v58  ;;  %12457 = vmatprep.subr.mxu0 %v17021_v45 }
 0x526   : > { %12509 = vmatprep.subr.mxu1 %v17064_v41  ;;  %12403 = vmatprep.mubr.f32.mxu0 %v7277_v34 }
 0x527   : > { %12458 = vmatpush3.msra.mxu0 %v17021_v45  ;;  %12510 = vmatpush3.msra.mxu1 %v17064_v41  ;;  %v7307_v45 = vand.u32 4294901760, %v7306_v38 }
 0x528   : > { %12459 = vmatprep.subr.mxu0 %v17037_v47  ;;  %12511 = vmatprep.subr.mxu1 %v17076_v17 }
 0x529   : > { %12460 = vmatpush3.msra.mxu0 %v17037_v47  ;;  %12512 = vmatpush3.msra.mxu1 %v17076_v17  ;;  %v19116_v47 = vand.u32 4294901760, %v17228_v42 }
 0x52a   : > { %12404 = vmatmul.mubr.f32.gmra.mxu0 %v7287_v19  ;;  %12461 = vmatprep.subr.mxu0 %v17053_v35  ;;  %v8108_v19 = vld [vmem:[#allocation6 + $0x428] sm:$0xff] }
 0x52b   : > { %12513 = vmatprep.subr.mxu1 %v17090_v4  ;;  %12406 = vmatprep.mubr.f32.mxu0 %v7297_v9 }
 0x52c   : > { %12462 = vmatpush3.msra.mxu0 %v17053_v35  ;;  %12514 = vmatpush3.msra.mxu1 %v17090_v4  ;;  %v19117_v35 = vand.u32 4294901760, %v17236_v32 }
 0x52d   : > { %12463 = vmatprep.subr.mxu0 %v17069_v0  ;;  %12515 = vmatprep.subr.mxu1 %v17099_v30 }
 0x52e   : > { %12464 = vmatpush3.msra.mxu0 %v17069_v0  ;;  %12516 = vmatpush3.msra.mxu1 %v17099_v30  ;;  %v19118_v0 = vand.u32 4294901760, %v17244_v36 }
 0x52f   : > { %12407 = vmatmul.mubr.f32.gmra.mxu0 %v7307_v45  ;;  %12465 = vmatprep.subr.mxu0 %v17084_v3 }
 0x530   : > { %12517 = vmatprep.subr.mxu1 %v17116_v29  ;;  %12466 = vmatpush3.msra.mxu0 %v17084_v3  ;;  %v19119_v3 = vand.u32 4294901760, %v17260_v55 }
 0x531   : > { %12518 = vmatpush3.msra.mxu1 %v17116_v29  ;;  %12467 = vmatprep.subr.mxu0 %v17096_v39 }
 0x532   : > { %12519 = vmatprep.subr.mxu1 %v17125_v20  ;;  %12468 = vmatpush3.msra.mxu0 %v17096_v39 }
 0x533   : > { %12520 = vmatpush3.msra.mxu1 %v17125_v20  ;;  %12469 = vmatprep.subr.mxu0 %v17110_v43 }
 0x534   : > { %12521 = vmatprep.subr.mxu1 %v17138_v40  ;;  %12470 = vmatpush3.msra.mxu0 %v17110_v43 }
 0x535   : > { %12522 = vmatpush3.msra.mxu1 %v17138_v40  ;;  %12471 = vmatprep.subr.mxu0 %v17120_v27 }
 0x536   : > { %12523 = vmatprep.subr.mxu1 %v17149_v52  ;;  %12472 = vmatpush3.msra.mxu0 %v17120_v27 }
 0x537   : > { %12524 = vmatpush3.msra.mxu1 %v17149_v52  ;;  %12473 = vmatprep.subr.mxu0 %v17136_v15 }
 0x538   : > { %12525 = vmatprep.subr.mxu1 %v17161_v16  ;;  %12474 = vmatpush3.msra.mxu0 %v17136_v15 }
 0x539   : > { %12526 = vmatpush3.msra.mxu1 %v17161_v16  ;;  %12475 = vmatprep.subr.mxu0 %v17147_v48 }
 0x53a   : > { %12527 = vmatprep.subr.mxu1 %v17174_v31  ;;  %12476 = vmatpush3.msra.mxu0 %v17147_v48 }
 0x53b   : > { %12528 = vmatpush3.msra.mxu1 %v17174_v31  ;;  %12529 = vmatprep.mubr.f32.mxu1 %v19116_v47 }
 0x53c   : > { %12477 = vmatprep.subr.mxu0 %v17159_v22  ;;  %12530 = vmatmul.mubr.f32.vlgmr.msra.gmra.mxu1 %v19117_v35 }
 0x53d   : > { %12585 = vmatprep.subr.mxu1 %v16985_v54  ;;  %12478 = vmatpush3.msra.mxu0 %v17159_v22  ;;  %v19123_v22 = vld [vmem:[#allocation29_spill] sm:$0xff] }
 0x53e   : > { %12532 = vmatprep.mubr.f32.mxu1 %v19118_v0  ;;  %12586 = vmatpush3.msra.mxu1 %v16985_v54  ;;  %v8118_v54 = vld [vmem:[#allocation6 + $0x478] sm:$0xff]  ;;  %v19133_v0 = vld [vmem:[#allocation90_spill] sm:$0xff] }
 0x53f   : > { %12479 = vmatprep.subr.mxu0 %v17172_v14  ;;  %12587 = vmatprep.subr.mxu1 %v16993_v13 }
 0x540   : > { %12480 = vmatpush3.msra.mxu0 %v17172_v14  ;;  %12588 = vmatpush3.msra.mxu1 %v16993_v13  ;;  %v8117_v13 = vld [vmem:[#allocation6 + $0x470] sm:$0xff] }
 0x541   : > { %12481 = vmatprep.subr.mxu0 %v17184_v6  ;;  %12533 = vmatmul.mubr.f32.gmra.mxu1 %v19119_v3 }
 0x542   : > { %12589 = vmatprep.subr.mxu1 %v17002_v61  ;;  %12482 = vmatpush3.msra.mxu0 %v17184_v6  ;;  %v19124_v6 = vld [vmem:[#allocation104_spill] sm:$0xff] }
 0x543   : > { %12535 = vmatprep.mubr.f32.mxu1 %v7275_v7  ;;  %12590 = vmatpush3.msra.mxu1 %v17002_v61  ;;  %v17425_v61 = vand.u32 4294901760, %v8118_v54 }
 0x544   : > { %12483 = vmatprep.subr.mxu0 %v17195_v8  ;;  %12591 = vmatprep.subr.mxu1 %v17016_v2 }
 0x545   : > { %12484 = vmatpush3.msra.mxu0 %v17195_v8  ;;  %12485 = vmatprep.mubr.f32.mxu0 %v17228_v42  ;;  %v19125_v8 = vld [vmem:[#allocation75_spill] sm:$0xff] }
 0x546   : > { %12592 = vmatpush3.msra.mxu1 %v17016_v2  ;;  %12486 = vmatmul.mubr.f32.vlgmr.msra.gmra.mxu0 %v17236_v32  ;;  %v8116_v2 = vld [vmem:[#allocation6 + $0x468] sm:$0xff]  ;;  %v8110_v42 = vld [vmem:[#allocation6 + $0x438] sm:$0xff] }
 0x547   : > { %12536 = vmatmul.mubr.f32.gmra.mxu1 %v7285_v50  ;;  %12541 = vmatprep.subr.mxu0 %v17014_v57  ;;  %v19127_v32 = vld [vmem:[#allocation97_spill] sm:$0xff]  ;;  %v17529_v50 = vand.u32 4294901760, %v8110_v42 }
 0x548   : > { %12593 = vmatprep.subr.mxu1 %v17030_v24  ;;  %12488 = vmatprep.mubr.f32.mxu0 %v17244_v36 }
 0x549   : > { %12538 = vmatprep.mubr.f32.mxu1 %v7295_v1  ;;  %12542 = vmatpush3.msra.mxu0 %v17014_v57  ;;  %v17431_v57 = vand.u32 4294901760, %v8117_v13 }
 0x54a   : > { %12594 = vmatpush3.msra.mxu1 %v17030_v24  ;;  %12543 = vmatprep.subr.mxu0 %v17028_v56  ;;  %v8115_v24 = vld [vmem:[#allocation6 + $0x460] sm:$0xff] }
 0x54b   : > { %12595 = vmatprep.subr.mxu1 %v17046_v53  ;;  %12544 = vmatpush3.msra.mxu0 %v17028_v56  ;;  %v17438_v56 = vsub.f32 %v8118_v54, %v17425_v61  ;;  %v8094_v54 = vld [vmem:[#allocation2 + $0x19] sm:$0xff] }
 0x54c   : > { %12596 = vmatpush3.msra.mxu1 %v17046_v53  ;;  %12489 = vmatmul.mubr.f32.gmra.mxu0 %v17260_v55  ;;  %v17447_v53 = vsub.f32 %v8117_v13, %v17431_v57  ;;  %v17551_v13 = vsub.f32 %v8110_v42, %v17529_v50 }
 0x54d   : > { %12539 = vmatmul.mubr.f32.gmra.mxu1 %v7305_v21  ;;  %12545 = vmatprep.subr.mxu0 %v17042_v18 }
 0x54e   : > { %12597 = vmatprep.subr.mxu1 %v17064_v41  ;;  %12491 = vmatprep.mubr.f32.mxu0 %v17273_v10  ;;  %v19128_v10 = vld [vmem:[#allocation80_spill] sm:$0xff] }
 0x54f   : > { %12546 = vmatpush3.msra.mxu0 %v17042_v18  ;;  %12598 = vmatpush3.msra.mxu1 %v17064_v41  ;;  %v17442_v18 = vand.u32 4294901760, %v8116_v2  ;;  %v17456_v41 = vand.u32 4294901760, %v17438_v56 }
 0x550   : > { %12547 = vmatprep.subr.mxu0 %v17058_v5  ;;  %12599 = vmatprep.subr.mxu1 %v17076_v17 }
 0x551   : > { %12548 = vmatpush3.msra.mxu0 %v17058_v5  ;;  %12600 = vmatpush3.msra.mxu1 %v17076_v17  ;;  %v17451_v5 = vand.u32 4294901760, %v8115_v24  ;;  %v17461_v17 = vsub.f32 %v8116_v2, %v17442_v18 }
 0x552   : > { %12492 = vmatmul.mubr.f32.gmra.mxu0 %v17290_v23  ;;  %12549 = vmatprep.subr.mxu0 %v17074_v63 }
 0x553   : > { %12601 = vmatprep.subr.mxu1 %v17090_v4  ;;  %12494 = vmatprep.mubr.f32.mxu0 %v17297_v12  ;;  %v17482_v43 = vand.u32 4294901760, %v17461_v17 }
 0x554   : > { %12550 = vmatpush3.msra.mxu0 %v17074_v63  ;;  %12602 = vmatpush3.msra.mxu1 %v17090_v4  ;;  %v8114_v63 = vld [vmem:[#allocation6 + $0x458] sm:$0xff]  ;;  %v17471_v4 = vsub.f32 %v8115_v24, %v17451_v5  ;;  %v19134_v24 = vld [vmem:[#allocation89_spill] sm:$0xff] }
 0x555   : > { %12551 = vmatprep.subr.mxu0 %v17088_v11  ;;  %12603 = vmatprep.subr.mxu1 %v17099_v30  ;;  %v17473_v39 = vand.u32 4294901760, %v8114_v63  ;;  %19121 = vst [vmem:[#allocation82_spill] sm:$0xff] %v17482_v43 }
 0x556   : > { %12552 = vmatpush3.msra.mxu0 %v17088_v11  ;;  %12604 = vmatpush3.msra.mxu1 %v17099_v30  ;;  %v17466_v11 = vand.u32 4294901760, %v17447_v53  ;;  %v8113_v30 = vld [vmem:[#allocation6 + $0x450] sm:$0xff] }
 0x557   : > { %12495 = vmatmul.mubr.f32.gmra.mxu0 %v17313_v26  ;;  %12553 = vmatprep.subr.mxu0 %v17103_v25  ;;  %v17488_v27 = vand.u32 4294901760, %v8113_v30  ;;  %v17496_v15 = vsub.f32 %v8114_v63, %v17473_v39  ;;  %v8109_v26 = vld [vmem:[#allocation6 + $0x430] sm:$0xff] }
 0x558   : > { %12605 = vmatprep.subr.mxu1 %v17116_v29  ;;  %12554 = vmatpush3.msra.mxu0 %v17103_v25  ;;  %19120 = vst [vmem:[#allocation85_spill] sm:$0xff] %v17466_v11  ;;  %v8284_v25 = vsub.f32 %v17438_v56, %v17456_v41  ;;  %v17545_v45 = vand.u32 4294901760, %v8109_v26 }
 0x559   : > { %12606 = vmatpush3.msra.mxu1 %v17116_v29  ;;  %12555 = vmatprep.subr.mxu0 %v17114_v44  ;;  %v8291_v29 = vsub.f32 %v17447_v53, %v17466_v11  ;;  %v17516_v12 = vand.u32 4294901760, %v17496_v15 }
 0x55a   : > { %12607 = vmatprep.subr.mxu1 %v17125_v20  ;;  %12556 = vmatpush3.msra.mxu0 %v17114_v44 }
 0x55b   : > { %12608 = vmatpush3.msra.mxu1 %v17125_v20  ;;  %12557 = vmatprep.subr.mxu0 %v17130_v33  ;;  %v8112_v20 = vld [vmem:[#allocation6 + $0x448] sm:$0xff]  ;;  %v8292_v14 = vand.u32 4294901760, %v8291_v29  ;;  %19126 = vst [vmem:[#allocation84_spill] sm:$0xff] %v17516_v12  ;;  %v8312_v59 = vsub.f32 %v17496_v15, %v17516_v12 }
 0x55c   : > { %12609 = vmatprep.subr.mxu1 %v17138_v40  ;;  %12558 = vmatpush3.msra.mxu0 %v17130_v33  ;;  %v17493_v33 = vand.u32 4294901760, %v17471_v4  ;;  %v17504_v48 = vand.u32 4294901760, %v8112_v20 }
 0x55d   : > { %12610 = vmatpush3.msra.mxu1 %v17138_v40  ;;  %12559 = vmatprep.subr.mxu0 %v17143_v51  ;;  %v12179_v44 = vpop.f32.mrf.mxu1  ;;  %v8285_v40 = vand.u32 4294901760, %v8284_v25  ;;  %v8313_v63 = vand.u32 4294901760, %v8312_v59  ;;  %v8107_v25 = vld [vmem:[#allocation6 + $0x420] sm:$0xff] }
 0x55e   : > { %12611 = vmatprep.subr.mxu1 %v17149_v52  ;;  %12560 = vmatpush3.msra.mxu0 %v17143_v51  ;;  %19122 = vst [vmem:[#allocation101_spill] sm:$0xff] %v17493_v33  ;;  %v8298_v51 = vsub.f32 %v17461_v17, %v17482_v43  ;;  %v17523_v36 = vsub.f32 %v8112_v20, %v17504_v48 }
 0x55f   : > { %12612 = vmatpush3.msra.mxu1 %v17149_v52  ;;  %12561 = vmatprep.subr.mxu0 %v17156_v60  ;;  %v8111_v52 = vld [vmem:[#allocation6 + $0x440] sm:$0xff] }
 0x560   : > { %12613 = vmatprep.subr.mxu1 %v17161_v16  ;;  %12562 = vmatpush3.msra.mxu0 %v17156_v60  ;;  %v6518_v60 = vpop.f32.mrf.mxu1  ;;  %v8299_v7 = vand.u32 4294901760, %v8298_v51  ;;  %v17543_v38 = vand.u32 4294901760, %v17523_v36  ;;  %v17569_v51 = vsub.f32 %v8109_v26, %v17545_v45 }
 0x561   : > { %12614 = vmatpush3.msra.mxu1 %v17161_v16  ;;  %12563 = vmatprep.subr.mxu0 %v17169_v62  ;;  %v17509_v16 = vsub.f32 %v8113_v30, %v17488_v27  ;;  %v17556_v30 = vand.u32 4294901760, %v8108_v19 }
 0x562   : > { %12615 = vmatprep.subr.mxu1 %v17174_v31  ;;  %12564 = vmatpush3.msra.mxu0 %v17169_v62  ;;  %v8305_v62 = vsub.f32 %v17471_v4, %v17493_v33  ;;  %v12182_v55 = vpop.f32.mrf.mxu1  ;;  %19132 = vst [vmem:[#allocation68_spill] sm:$0xff] %v17543_v38  ;;  %v8326_v20 = vsub.f32 %v17523_v36, %v17543_v38 }
 0x563   : > { %12616 = vmatpush3.msra.mxu1 %v17174_v31  ;;  %12617 = vmatprep.mubr.f32.mxu1 %v19123_v22  ;;  %v17519_v31 = vand.u32 4294901760, %v8111_v52  ;;  %v17527_v23 = vand.u32 4294901760, %v17509_v16  ;;  %v17582_v42 = vsub.f32 %v8108_v19, %v17556_v30 }
 0x564   : > { %12565 = vmatprep.subr.mxu0 %v19124_v6  ;;  %12618 = vmatmul.mubr.f32.vlgmr.msra.gmra.mxu1 %v19125_v8  ;;  %v8306_v1 = vand.u32 4294901760, %v8305_v62  ;;  %v6530_v47 = vpop.f32.mrf.mxu1 }
 0x565   : > { %12673 = vmatprep.subr.mxu1 %v8285_v40  ;;  %12566 = vmatpush3.msra.mxu0 %v19124_v6  ;;  %19129 = vst [vmem:[#allocation92_spill] sm:$0xff] %v17527_v23  ;;  %v17537_v21 = vsub.f32 %v8111_v52, %v17519_v31  ;;  %v8319_v3 = vsub.f32 %v17509_v16, %v17527_v23  ;;  %v8106_v52 = vld [vmem:[#allocation6 + $0x418] sm:$0xff]  ;;  %v17576_v6 = vand.u32 4294901760, %v17551_v13 }
 0x566   : > { %12620 = vmatprep.mubr.f32.mxu1 %v19127_v32  ;;  %12674 = vmatpush3.msra.mxu1 %v8285_v40  ;;  %v17566_v40 = vand.u32 4294901760, %v8094_v54  ;;  %v17590_v26 = vand.u32 4294901760, %v8106_v52 }
 0x567   : > { %12567 = vmatprep.subr.mxu0 %v19128_v10  ;;  %12675 = vmatprep.subr.mxu1 %v8292_v14  ;;  %19137 = vst [vmem:[#allocation41_spill] sm:$0xff] %v17576_v6  ;;  %v8340_v19 = vsub.f32 %v17551_v13, %v17576_v6 }
 0x568   : > { %12568 = vmatpush3.msra.mxu0 %v19128_v10  ;;  %12676 = vmatpush3.msra.mxu1 %v8292_v14  ;;  %v12135_v34 = vpop.f32.mrf.mxu0  ;;  %19136 = vst [vmem:[#allocation28_spill] sm:$0xff] %v17566_v40  ;;  %v17597_v59 = vsub.f32 %v8094_v54, %v17566_v40  ;;  %v17609_v54 = vand.u32 4294901760, %v17582_v42 }
 0x569   : > { %12569 = vmatprep.subr.mxu0 %v19130_v28  ;;  %12621 = vmatmul.mubr.f32.gmra.mxu1 %v19131_v37  ;;  %v17539_v9 = vadd.f32 %v12179_v44, %v12135_v34  ;;  %v17561_v44 = vand.u32 4294901760, %v17537_v21  ;;  %v8104_v34 = vld [vmem:[#allocation6 + $0x408] sm:$0xff] }
 0x56a   : > { %12677 = vmatprep.subr.mxu1 %v8299_v7  ;;  %12570 = vmatpush3.msra.mxu0 %v19130_v28  ;;  %v6297_v35 = vpop.f32.mrf.mxu0  ;;  %19139 = vst [vmem:[#allocation47_spill] sm:$0xff] %v17609_v54 }
 0x56b   : > { %12623 = vmatprep.mubr.f32.mxu1 %v19133_v0  ;;  %12678 = vmatpush3.msra.mxu1 %v8299_v7  ;;  %v17553_v2 = vadd.f32 %v6518_v60, %v6297_v35  ;;  %19135 = vst [vmem:[#allocation30_spill] sm:$0xff] %v17561_v44  ;;  %v12185_v60 = vpop.f32.mrf.mxu1  ;;  %v8105_v7 = vld [vmem:[#allocation6 + $0x410] sm:$0xff]  ;;  %v8333_v10 = vsub.f32 %v17537_v21, %v17561_v44 }
 0x56c   : > { %12571 = vmatprep.subr.mxu0 %v19134_v24  ;;  %12679 = vmatprep.subr.mxu1 %v8306_v1  ;;  %v17605_v35 = vand.u32 4294901760, %v8105_v7 }
 0x56d   : > { %12572 = vmatpush3.msra.mxu0 %v19134_v24  ;;  %12573 = vmatprep.mubr.f32.mxu0 %v19123_v22  ;;  %v12138_v29 = vpop.f32.mrf.mxu0  ;;  %v8320_v22 = vand.u32 4294901760, %v8319_v3  ;;  %v6542_v28 = vpop.f32.mrf.mxu1  ;;  %v8103_v24 = vld [vmem:[#allocation6 + $0x400] sm:$0xff] }
 0x56e   : > { %12680 = vmatpush3.msra.mxu1 %v8306_v1  ;;  %12574 = vmatmul.mubr.f32.vlgmr.msra.gmra.mxu0 %v19125_v8  ;;  %v17571_v14 = vadd.f32 %v12182_v55, %v12138_v29  ;;  %v17578_v8 = vand.u32 4294901760, %v8107_v25  ;;  %v8327_v1 = vand.u32 4294901760, %v8326_v20  ;;  %v8334_v29 = vand.u32 4294901760, %v8333_v10 }
 0x56f   : > { %12624 = vmatmul.mubr.f32.gmra.mxu1 %v17270_v49  ;;  %12629 = vmatprep.subr.mxu0 %v17425_v61  ;;  %v6317_v62 = vpop.f32.mrf.mxu0  ;;  %v17618_v20 = vand.u32 4294901760, %v8104_v34  ;;  %v8341_v10 = vand.u32 4294901760, %v8340_v19  ;;  %v17631_v6 = vsub.f32 %v8105_v7, %v17605_v35  ;;  %v17633_v44 = vand.u32 4294901760, %v8103_v24 }
 0x570   : > { %12681 = vmatprep.subr.mxu1 %v8313_v63  ;;  %12576 = vmatprep.mubr.f32.mxu0 %v19127_v32  ;;  %v17584_v55 = vadd.f32 %v6530_v47, %v6317_v62  ;;  %v17594_v32 = vand.u32 4294901760, %v17569_v51  ;;  %v17603_v47 = vsub.f32 %v8107_v25, %v17578_v8  ;;  %v17616_v25 = vsub.f32 %v8106_v52, %v17590_v26 }
 0x571   : > { %12626 = vmatprep.mubr.f32.mxu1 %v17277_v46  ;;  %12630 = vmatpush3.msra.mxu0 %v17425_v61  ;;  %v17644_v19 = vsub.f32 %v8104_v34, %v17618_v20  ;;  %v17656_v34 = vand.u32 4294901760, %v17631_v6 }
 0x572   : > { %12682 = vmatpush3.msra.mxu1 %v8313_v63  ;;  %12631 = vmatprep.subr.mxu0 %v17431_v57  ;;  %19138 = vst [vmem:[#allocation44_spill] sm:$0xff] %v17594_v32  ;;  %v17628_v52 = vand.u32 4294901760, %v17603_v47 }
 0x573   : > { %12683 = vmatprep.subr.mxu1 %v8320_v22  ;;  %12632 = vmatpush3.msra.mxu0 %v17431_v57  ;;  %v12141_v3 = vpop.f32.mrf.mxu0  ;;  %19142 = vst [vmem:[#allocation15_spill] sm:$0xff] %v17656_v34 }
 0x574   : > { %12684 = vmatpush3.msra.mxu1 %v8320_v22  ;;  %12577 = vmatmul.mubr.f32.gmra.mxu0 %v19131_v37  ;;  %v17611_v63 = vadd.f32 %v12185_v60, %v12141_v3  ;;  %v8347_v37 = vsub.f32 %v17569_v51, %v17594_v32  ;;  %v18543_v60 = vand.u32 4294901760, %v17597_v59  ;;  %v12188_v22 = vpop.f32.mrf.mxu1  ;;  %19140 = vst [vmem:[#allocation50_spill] sm:$0xff] %v17628_v52 }
 0x575   : > { %12627 = vmatmul.mubr.f32.gmra.mxu1 %v17294_v58  ;;  %12633 = vmatprep.subr.mxu0 %v17442_v18  ;;  %v6337_v62 = vpop.f32.mrf.mxu0  ;;  %v8361_v23 = vsub.f32 %v17603_v47, %v17628_v52 }
 0x576   : > { %12685 = vmatprep.subr.mxu1 %v8327_v1  ;;  %12579 = vmatprep.mubr.f32.mxu0 %v19133_v0  ;;  %v17624_v3 = vadd.f32 %v6542_v28, %v6337_v62  ;;  %v8354_v0 = vsub.f32 %v17582_v42, %v17609_v54  ;;  %v8348_v62 = vand.u32 4294901760, %v8347_v37  ;;  %v8203_v54 = vsub.f32 %v17597_v59, %v18543_v60  ;;  %v6554_v32 = vpop.f32.mrf.mxu1  ;;  %v8097_v60 = vld [vmem:[#allocation2 + $0x31] sm:$0xff] }
 0x577   : > { %12634 = vmatpush3.msra.mxu0 %v17442_v18  ;;  %12686 = vmatpush3.msra.mxu1 %v8327_v1  ;;  %v17641_v1 = vand.u32 4294901760, %v17616_v25 }
 0x578   : > { %12705 = vmatprep.mubr.f32.mxu1 %v17566_v40  ;;  %12635 = vmatprep.subr.mxu0 %v17451_v5  ;;  %v12144_v28 = vpop.f32.mrf.mxu0  ;;  %v8355_v37 = vand.u32 4294901760, %v8354_v0 }
 0x579   : > { %12687 = vmatprep.subr.mxu1 %v8334_v29  ;;  %12636 = vmatpush3.msra.mxu0 %v17451_v5  ;;  %19141 = vst [vmem:[#allocation71_spill] sm:$0xff] %v17641_v1  ;;  %v17646_v7 = vadd.f32 %v12188_v22, %v12144_v28  ;;  %v8368_v22 = vsub.f32 %v17616_v25, %v17641_v1  ;;  %v17669_v28 = vand.u32 4294901760, %v17644_v19 }
 0x57a   : > { %12688 = vmatpush3.msra.mxu1 %v8334_v29  ;;  %12580 = vmatmul.mubr.f32.gmra.mxu0 %v17270_v49  ;;  %v6357_v38 = vpop.f32.mrf.mxu0  ;;  %v17659_v29 = vsub.f32 %v8103_v24, %v17633_v44 }
 0x57b   : > { %12637 = vmatprep.subr.mxu0 %v17473_v39  ;;  %12689 = vmatprep.subr.mxu1 %v8341_v10  ;;  %v17661_v49 = vadd.f32 %v6554_v32, %v6357_v38  ;;  %19143 = vst [vmem:[#allocation81_spill] sm:$0xff] %v17669_v28  ;;  %v8204_v38 = vand.u32 4294901760, %v8203_v54  ;;  %v8375_v32 = vsub.f32 %v17631_v6, %v17656_v34  ;;  %v8096_v54 = vld [vmem:[#allocation2 + $0x29] sm:$0xff] }
 0x57c   : > { %12582 = vmatprep.mubr.f32.mxu0 %v17277_v46  ;;  %12638 = vmatpush3.msra.mxu0 %v17473_v39  ;;  %v8362_v46 = vand.u32 4294901760, %v8361_v23  ;;  %v17676_v24 = vand.u32 4294901760, %v17659_v29  ;;  %v8382_v0 = vsub.f32 %v17644_v19, %v17669_v28 }
 0x57d   : > { %12690 = vmatpush3.msra.mxu1 %v8341_v10  ;;  %12639 = vmatprep.subr.mxu0 %v17488_v27  ;;  %v8369_v10 = vand.u32 4294901760, %v8368_v22 }
 0x57e   : > { %12691 = vmatprep.subr.mxu1 %v8348_v62  ;;  %12640 = vmatpush3.msra.mxu0 %v17488_v27  ;;  %19144 = vst [vmem:[#allocation53_spill] sm:$0xff] %v17676_v24  ;;  %v8389_v23 = vsub.f32 %v17659_v29, %v17676_v24  ;;  %v8383_v22 = vand.u32 4294901760, %v8382_v0  ;;  %v17700_v0 = vand.u32 4294901760, %v8097_v60 }
 0x57f   : > { %12692 = vmatpush3.msra.mxu1 %v8348_v62  ;;  %12583 = vmatmul.mubr.f32.gmra.mxu0 %v17294_v58  ;;  %v8095_v62 = vld [vmem:[#allocation2 + $0x21] sm:$0xff]  ;;  %v8376_v58 = vand.u32 4294901760, %v8375_v32 }
 0x580   : > { %12641 = vmatprep.subr.mxu0 %v17504_v48  ;;  %12693 = vmatprep.subr.mxu1 %v8355_v37  ;;  %v8390_v32 = vand.u32 4294901760, %v8389_v23  ;;  %19147 = vst [vmem:[#allocation64_spill] sm:$0xff] %v17700_v0  ;;  %v8100_v23 = vld [vmem:[#allocation2 + $0x49] sm:$0xff] }
 0x581   : > { %12642 = vmatpush3.msra.mxu0 %v17504_v48  ;;  %12661 = vmatprep.mubr.f32.mxu0 %v8204_v38  ;;  %v17687_v38 = vand.u32 4294901760, %v8095_v62  ;;  %v17741_v43 = vand.u32 4294901760, %v8100_v23 }
 0x582   : > { %12694 = vmatpush3.msra.mxu1 %v8355_v37  ;;  %12643 = vmatprep.subr.mxu0 %v17519_v31  ;;  %v17691_v37 = vand.u32 4294901760, %v8096_v54 }
 0x583   : > { %12695 = vmatprep.subr.mxu1 %v8362_v46  ;;  %12644 = vmatpush3.msra.mxu0 %v17519_v31  ;;  %19145 = vst [vmem:[#allocation56_spill] sm:$0xff] %v17687_v38 }
 0x584   : > { %12696 = vmatpush3.msra.mxu1 %v8362_v46  ;;  %12645 = vmatprep.subr.mxu0 %v17529_v50  ;;  %19146 = vst [vmem:[#allocation59_spill] sm:$0xff] %v17691_v37  ;;  %v17696_v46 = vsub.f32 %v8095_v62, %v17687_v38  ;;  %v17703_v28 = vsub.f32 %v8096_v54, %v17691_v37 }
 0x585   : > { %12697 = vmatprep.subr.mxu1 %v8369_v10  ;;  %12646 = vmatpush3.msra.mxu0 %v17529_v50  ;;  %v12267_v24 = vpop.f32.mrf.mxu1  ;;  %v17715_v54 = vsub.f32 %v8097_v60, %v17700_v0 }
 0x586   : > { %12698 = vmatpush3.msra.mxu1 %v8369_v10  ;;  %12647 = vmatprep.subr.mxu0 %v17545_v45  ;;  %v8098_v10 = vld [vmem:[#allocation2 + $0x39] sm:$0xff] }
 0x587   : > { %12699 = vmatprep.subr.mxu1 %v8376_v58  ;;  %12648 = vmatpush3.msra.mxu0 %v17545_v45  ;;  %v17707_v62 = vand.u32 4294901760, %v8098_v10 }
 0x588   : > { %12700 = vmatpush3.msra.mxu1 %v8376_v58  ;;  %12649 = vmatprep.subr.mxu0 %v17556_v30  ;;  %v6802_v58 = vpop.f32.mrf.mxu1 }
 0x589   : > { %12701 = vmatprep.subr.mxu1 %v8383_v22  ;;  %12650 = vmatpush3.msra.mxu0 %v17556_v30  ;;  %19148 = vst [vmem:[#allocation14_spill] sm:$0xff] %v17707_v62  ;;  %v17729_v12 = vsub.f32 %v8098_v10, %v17707_v62 }
 0x58a   : > { %12702 = vmatpush3.msra.mxu1 %v8383_v22  ;;  %12651 = vmatprep.subr.mxu0 %v17578_v8  ;;  %v8099_v22 = vld [vmem:[#allocation2 + $0x41] sm:$0xff]  ;;  %v12270_v1 = vpop.f32.mrf.mxu1 }
 0x58b   : > { %12703 = vmatprep.subr.mxu1 %v8390_v32  ;;  %12652 = vmatpush3.msra.mxu0 %v17578_v8  ;;  %v17726_v52 = vand.u32 4294901760, %v8099_v22 }
 0x58c   : > { %12704 = vmatpush3.msra.mxu1 %v8390_v32  ;;  %12653 = vmatprep.subr.mxu0 %v17590_v26  ;;  %v8101_v32 = vld [vmem:[#allocation2 + $0x51] sm:$0xff] }
 0x58d   : > { %12706 = vmatmul.mubr.f32.vlgmr.msra.gmra.mxu1 %v17687_v38  ;;  %12761 = vmatprep.subr.mxu1 %v17425_v61  ;;  %v17746_v11 = vand.u32 4294901760, %v8101_v32 }
 0x58e   : > { %12654 = vmatpush3.msra.mxu0 %v17590_v26  ;;  %12708 = vmatprep.mubr.f32.mxu1 %v17691_v37  ;;  %v12223_v34 = vpop.f32.mrf.mxu0  ;;  %v19149_v37 = vand.u32 4294901760, %v17696_v46 }
 0x58f   : > { %12762 = vmatpush3.msra.mxu1 %v17425_v61  ;;  %12655 = vmatprep.subr.mxu0 %v17605_v35  ;;  %v6672_v38 = vadd.f32 %v12223_v34, %v17539_v9 }
 0x590   : > { %12763 = vmatprep.subr.mxu1 %v17431_v57  ;;  %12656 = vmatpush3.msra.mxu0 %v17605_v35  ;;  %v8213_v60 = vsub.f32 %v17696_v46, %v19149_v37  ;;  %v6664_v33 = vpop.f32.mrf.mxu0  ;;  %v19150_v37 = vand.u32 4294901760, %v17703_v28 }
 0x591   : > { %12764 = vmatpush3.msra.mxu1 %v17431_v57  ;;  %12657 = vmatprep.subr.mxu0 %v17618_v20  ;;  %v6665_v9 = vadd.f32 %v6664_v33, %v17553_v2  ;;  %v17734_v34 = vadd.f32 %v12267_v24, %v6672_v38  ;;  %v6818_v33 = vpop.f32.mrf.mxu1  ;;  %v17753_v38 = vsub.f32 %v8099_v22, %v17726_v52 }
 0x592   : > { %12709 = vmatmul.mubr.f32.gmra.mxu1 %v17700_v0  ;;  %12765 = vmatprep.subr.mxu1 %v17442_v18  ;;  %v8223_v40 = vsub.f32 %v17703_v28, %v19150_v37  ;;  %v8214_v24 = vand.u32 4294901760, %v8213_v60  ;;  %v17764_v22 = vsub.f32 %v8100_v23, %v17741_v43  ;;  %v17769_v37 = vsub.f32 %v8101_v32, %v17746_v11 }
 0x593   : > { %12658 = vmatpush3.msra.mxu0 %v17618_v20  ;;  %12711 = vmatprep.mubr.f32.mxu1 %v17707_v62  ;;  %v17748_v2 = vadd.f32 %v6802_v58, %v6665_v9  ;;  %v19151_v9 = vand.u32 4294901760, %v17715_v54 }
 0x594   : > { %12766 = vmatpush3.msra.mxu1 %v17442_v18  ;;  %12659 = vmatprep.subr.mxu0 %v17633_v44  ;;  %v12226_v10 = vpop.f32.mrf.mxu0  ;;  %v8224_v58 = vand.u32 4294901760, %v8223_v40  ;;  %v19152_v40 = vand.u32 4294901760, %v17729_v12 }
 0x595   : > { %12767 = vmatprep.subr.mxu1 %v17451_v5  ;;  %12660 = vmatpush3.msra.mxu0 %v17633_v44  ;;  %v6686_v62 = vadd.f32 %v12226_v10, %v17571_v14  ;;  %v8233_v60 = vsub.f32 %v17715_v54, %v19151_v9  ;;  %v12273_v14 = vpop.f32.mrf.mxu1  ;;  %v8252_v9 = vand.u32 4294901760, %v17753_v38 }
 0x596   : > { %12768 = vmatpush3.msra.mxu1 %v17451_v5  ;;  %12662 = vmatmul.mubr.f32.vlgmr.msra.gmra.mxu0 %v8214_v24  ;;  %v6678_v0 = vpop.f32.mrf.mxu0  ;;  %v8243_v23 = vsub.f32 %v17729_v12, %v19152_v40 }
 0x597   : > { %12712 = vmatmul.mubr.f32.gmra.mxu1 %v17726_v52  ;;  %12717 = vmatprep.subr.mxu0 %v17438_v56  ;;  %v6679_v10 = vadd.f32 %v6678_v0, %v17584_v55  ;;  %v17772_v24 = vadd.f32 %v12270_v1, %v6686_v62  ;;  %v8234_v55 = vand.u32 4294901760, %v8233_v60  ;;  %v8262_v1 = vand.u32 4294901760, %v17764_v22 }
 0x598   : > { %12769 = vmatprep.subr.mxu1 %v17473_v39  ;;  %12664 = vmatprep.mubr.f32.mxu0 %v8224_v58  ;;  %v8272_v62 = vand.u32 4294901760, %v17769_v37  ;;  %v6834_v58 = vpop.f32.mrf.mxu1 }
 0x599   : > { %12714 = vmatprep.mubr.f32.mxu1 %v17741_v43  ;;  %12718 = vmatpush3.msra.mxu0 %v17438_v56  ;;  %v17781_v32 = vadd.f32 %v6818_v33, %v6679_v10  ;;  %v8244_v56 = vand.u32 4294901760, %v8243_v23  ;;  %v8253_v33 = vsub.f32 %v17753_v38, %v8252_v9 }
 0x59a   : > { %12770 = vmatpush3.msra.mxu1 %v17473_v39  ;;  %12719 = vmatprep.subr.mxu0 %v17447_v53  ;;  %v12229_v0 = vpop.f32.mrf.mxu0  ;;  %v8273_v23 = vsub.f32 %v17769_v37, %v8272_v62 }
 0x59b   : > { %12771 = vmatprep.subr.mxu1 %v17488_v27  ;;  %12720 = vmatpush3.msra.mxu0 %v17447_v53  ;;  %v6700_v40 = vadd.f32 %v12229_v0, %v17611_v63  ;;  %v8263_v63 = vsub.f32 %v17764_v22, %v8262_v1 }
 0x59c   : > { %12772 = vmatpush3.msra.mxu1 %v17488_v27  ;;  %12665 = vmatmul.mubr.f32.gmra.mxu0 %v8234_v55  ;;  %v6692_v60 = vpop.f32.mrf.mxu0  ;;  %v12276_v55 = vpop.f32.mrf.mxu1 }
 0x59d   : > { %12715 = vmatmul.mubr.f32.gmra.mxu1 %v17746_v11  ;;  %12721 = vmatprep.subr.mxu0 %v17461_v17  ;;  %v6693_v53 = vadd.f32 %v6692_v60, %v17624_v3  ;;  %v17797_v10 = vadd.f32 %v12273_v14, %v6700_v40  ;;  %v19153_v14 = vand.u32 4294901760, %v17597_v59  ;;  %v8254_v40 = vand.u32 4294901760, %v8253_v33 }
 0x59e   : > { %12773 = vmatprep.subr.mxu1 %v17504_v48  ;;  %12667 = vmatprep.mubr.f32.mxu0 %v8244_v56  ;;  %v8264_v60 = vand.u32 4294901760, %v8263_v63  ;;  %v8274_v33 = vand.u32 4294901760, %v8273_v23 }
 0x59f   : > { %12722 = vmatpush3.msra.mxu0 %v17461_v17  ;;  %12774 = vmatpush3.msra.mxu1 %v17504_v48  ;;  %v12232_v0 = vpop.f32.mrf.mxu0  ;;  %v17808_v3 = vadd.f32 %v6834_v58, %v6693_v53 }
 0x5a0   : > { %12793 = vmatprep.mubr.f32.mxu1 %v19153_v14  ;;  %12723 = vmatprep.subr.mxu0 %v17471_v4  ;;  %v6714_v56 = vadd.f32 %v12232_v0, %v17646_v7  ;;  %v6850_v14 = vpop.f32.mrf.mxu1  ;;  %v19162_v0 = vld [vmem:[#allocation84_spill] sm:$0xff] }
 0x5a1   : > { %12775 = vmatprep.subr.mxu1 %v17519_v31  ;;  %12724 = vmatpush3.msra.mxu0 %v17471_v4  ;;  %v6706_v17 = vpop.f32.mrf.mxu0 }
 0x5a2   : > { %12776 = vmatpush3.msra.mxu1 %v17519_v31  ;;  %12668 = vmatmul.mubr.f32.gmra.mxu0 %v8254_v40  ;;  %v6707_v58 = vadd.f32 %v6706_v17, %v17661_v49  ;;  %v17818_v53 = vadd.f32 %v12276_v55, %v6714_v56  ;;  %v19170_v56 = vld [vmem:[#allocation71_spill] sm:$0xff] }
 0x5a3   : > { %12725 = vmatprep.subr.mxu0 %v17496_v15  ;;  %12777 = vmatprep.subr.mxu1 %v17529_v50  ;;  %v19172_v17 = vld [vmem:[#allocation59_spill] sm:$0xff] }
 0x5a4   : > { %12670 = vmatprep.mubr.f32.mxu0 %v8264_v60  ;;  %12726 = vmatpush3.msra.mxu0 %v17496_v15  ;;  %v17823_v7 = vadd.f32 %v6850_v14, %v6707_v58  ;;  %v19173_v60 = vld [vmem:[#allocation15_spill] sm:$0xff] }
 0x5a5   : > { %12778 = vmatpush3.msra.mxu1 %v17529_v50  ;;  %12727 = vmatprep.subr.mxu0 %v17509_v16 }
 0x5a6   : > { %12779 = vmatprep.subr.mxu1 %v17545_v45  ;;  %12728 = vmatpush3.msra.mxu0 %v17509_v16  ;;  %v19154_v16 = vand.u32 4294901760, %v17696_v46 }
 0x5a7   : > { %12780 = vmatpush3.msra.mxu1 %v17545_v45  ;;  %12671 = vmatmul.mubr.f32.gmra.mxu0 %v8274_v33  ;;  %v19174_v33 = vld [vmem:[#allocation81_spill] sm:$0xff] }
 0x5a8   : > { %12729 = vmatprep.subr.mxu0 %v17523_v36  ;;  %12781 = vmatprep.subr.mxu1 %v17556_v30 }
 0x5a9   : > { %12730 = vmatpush3.msra.mxu0 %v17523_v36  ;;  %12749 = vmatprep.mubr.f32.mxu0 %v17597_v59  ;;  %v19155_v36 = vand.u32 4294901760, %v17703_v28 }
 0x5aa   : > { %12782 = vmatpush3.msra.mxu1 %v17556_v30  ;;  %12731 = vmatprep.subr.mxu0 %v17537_v21 }
 0x5ab   : > { %12783 = vmatprep.subr.mxu1 %v17578_v8  ;;  %12732 = vmatpush3.msra.mxu0 %v17537_v21 }
 0x5ac   : > { %12784 = vmatpush3.msra.mxu1 %v17578_v8  ;;  %12733 = vmatprep.subr.mxu0 %v17551_v13 }
 0x5ad   : > { %12785 = vmatprep.subr.mxu1 %v17590_v26  ;;  %12734 = vmatpush3.msra.mxu0 %v17551_v13  ;;  %v12355_v4 = vpop.f32.mrf.mxu1 }
 0x5ae   : > { %12786 = vmatpush3.msra.mxu1 %v17590_v26  ;;  %12735 = vmatprep.subr.mxu0 %v17569_v51 }
 0x5af   : > { %12787 = vmatprep.subr.mxu1 %v17605_v35  ;;  %12736 = vmatpush3.msra.mxu0 %v17569_v51  ;;  %v7106_v15 = vpop.f32.mrf.mxu1 }
 0x5b0   : > { %12788 = vmatpush3.msra.mxu1 %v17605_v35  ;;  %12737 = vmatprep.subr.mxu0 %v17582_v42 }
 0x5b1   : > { %12789 = vmatprep.subr.mxu1 %v17618_v20  ;;  %12738 = vmatpush3.msra.mxu0 %v17582_v42 }
 0x5b2   : > { %12790 = vmatpush3.msra.mxu1 %v17618_v20  ;;  %12739 = vmatprep.subr.mxu0 %v17603_v47  ;;  %v12358_v13 = vpop.f32.mrf.mxu1 }
 0x5b3   : > { %12791 = vmatprep.subr.mxu1 %v17633_v44  ;;  %12740 = vmatpush3.msra.mxu0 %v17603_v47 }
 0x5b4   : > { %12792 = vmatpush3.msra.mxu1 %v17633_v44  ;;  %12741 = vmatprep.subr.mxu0 %v17616_v25 }
 0x5b5   : > { %12794 = vmatmul.mubr.f32.vlgmr.msra.gmra.mxu1 %v19154_v16  ;;  %12849 = vmatprep.subr.mxu1 %v17425_v61  ;;  %v19177_v16 = vld [vmem:[#allocation53_spill] sm:$0xff] }
 0x5b6   : > { %12742 = vmatpush3.msra.mxu0 %v17616_v25  ;;  %12796 = vmatprep.mubr.f32.mxu1 %v19155_v36  ;;  %v12311_v21 = vpop.f32.mrf.mxu0  ;;  %v19157_v25 = vand.u32 4294901760, %v17729_v12 }
 0x5b7   : > { %12850 = vmatpush3.msra.mxu1 %v17425_v61  ;;  %12743 = vmatprep.subr.mxu0 %v17631_v6  ;;  %v6984_v51 = vadd.f32 %v12311_v21, %v17734_v34  ;;  %v19156_v61 = vand.u32 4294901760, %v17715_v54 }
 0x5b8   : > { %12851 = vmatprep.subr.mxu1 %v17431_v57  ;;  %12744 = vmatpush3.msra.mxu0 %v17631_v6  ;;  %v6977_v42 = vpop.f32.mrf.mxu0  ;;  %v7118_v6 = vpop.f32.mrf.mxu1 }
 0x5b9   : > { %12852 = vmatpush3.msra.mxu1 %v17431_v57  ;;  %12745 = vmatprep.subr.mxu0 %v17644_v19  ;;  %v6978_v59 = vadd.f32 %v6977_v42, %v17748_v2  ;;  %v17870_v47 = vadd.f32 %v12355_v4, %v6984_v51 }
 0x5ba   : > { %12797 = vmatmul.mubr.f32.gmra.mxu1 %v19156_v61  ;;  %12853 = vmatprep.subr.mxu1 %v17442_v18 }
 0x5bb   : > { %12746 = vmatpush3.msra.mxu0 %v17644_v19  ;;  %12799 = vmatprep.mubr.f32.mxu1 %v19157_v25  ;;  %v17878_v49 = vadd.f32 %v7106_v15, %v6978_v59  ;;  %v19176_v15 = vld [vmem:[#allocation14_spill] sm:$0xff] }
 0x5bc   : > { %12854 = vmatpush3.msra.mxu1 %v17442_v18  ;;  %12747 = vmatprep.subr.mxu0 %v17659_v29  ;;  %v12314_v57 = vpop.f32.mrf.mxu0  ;;  %v12361_v18 = vpop.f32.mrf.mxu1 }
 0x5bd   : > { %12855 = vmatprep.subr.mxu1 %v17451_v5  ;;  %12748 = vmatpush3.msra.mxu0 %v17659_v29  ;;  %v6996_v34 = vadd.f32 %v12314_v57, %v17772_v24  ;;  %v19158_v29 = vld [vmem:[#allocation85_spill] sm:$0xff] }
 0x5be   : > { %12856 = vmatpush3.msra.mxu1 %v17451_v5  ;;  %12750 = vmatmul.mubr.f32.vlgmr.msra.gmra.mxu0 %v17696_v46  ;;  %v6989_v19 = vpop.f32.mrf.mxu0  ;;  %v7130_v24 = vpop.f32.mrf.mxu1 }
 0x5bf   : > { %12800 = vmatmul.mubr.f32.gmra.mxu1 %v8252_v9  ;;  %12805 = vmatprep.subr.mxu0 %v17456_v41  ;;  %v6990_v2 = vadd.f32 %v6989_v19, %v17781_v32  ;;  %v17891_v63 = vadd.f32 %v12358_v13, %v6996_v34 }
 0x5c0   : > { %12857 = vmatprep.subr.mxu1 %v17473_v39  ;;  %12752 = vmatprep.mubr.f32.mxu0 %v17703_v28 }
 0x5c1   : > { %12802 = vmatprep.mubr.f32.mxu1 %v8262_v1  ;;  %12806 = vmatpush3.msra.mxu0 %v17456_v41  ;;  %v17898_v5 = vadd.f32 %v7118_v6, %v6990_v2  ;;  %v19159_v41 = vld [vmem:[#allocation82_spill] sm:$0xff] }
 0x5c2   : > { %12858 = vmatpush3.msra.mxu1 %v17473_v39  ;;  %12807 = vmatprep.subr.mxu0 %v19158_v29  ;;  %v12317_v46 = vpop.f32.mrf.mxu0 }
 0x5c3   : > { %12859 = vmatprep.subr.mxu1 %v17488_v27  ;;  %12808 = vmatpush3.msra.mxu0 %v19158_v29  ;;  %v7008_v9 = vadd.f32 %v12317_v46, %v17797_v10  ;;  %v19160_v10 = vld [vmem:[#allocation28_spill] sm:$0xff] }
 0x5c4   : > { %12860 = vmatpush3.msra.mxu1 %v17488_v27  ;;  %12753 = vmatmul.mubr.f32.gmra.mxu0 %v17715_v54  ;;  %v7001_v28 = vpop.f32.mrf.mxu0  ;;  %v12364_v27 = vpop.f32.mrf.mxu1 }
 0x5c5   : > { %12803 = vmatmul.mubr.f32.gmra.mxu1 %v8272_v62  ;;  %12809 = vmatprep.subr.mxu0 %v19159_v41  ;;  %v7002_v39 = vadd.f32 %v7001_v28, %v17808_v3  ;;  %v17911_v32 = vadd.f32 %v12361_v18, %v7008_v9  ;;  %v19161_v62 = vld [vmem:[#allocation101_spill] sm:$0xff] }
 0x5c6   : > { %12861 = vmatprep.subr.mxu1 %v17504_v48  ;;  %12755 = vmatprep.mubr.f32.mxu0 %v17729_v12  ;;  %v7142_v3 = vpop.f32.mrf.mxu1 }
 0x5c7   : > { %12810 = vmatpush3.msra.mxu0 %v19159_v41  ;;  %12862 = vmatpush3.msra.mxu1 %v17504_v48  ;;  %v12320_v54 = vpop.f32.mrf.mxu0  ;;  %v17917_v1 = vadd.f32 %v7130_v24, %v7002_v39 }
 0x5c8   : > { %12881 = vmatprep.mubr.f32.mxu1 %v19160_v10  ;;  %12811 = vmatprep.subr.mxu0 %v19161_v62  ;;  %v7020_v23 = vadd.f32 %v12320_v54, %v17818_v53 }
 0x5c9   : > { %12863 = vmatprep.subr.mxu1 %v17519_v31  ;;  %12812 = vmatpush3.msra.mxu0 %v19161_v62  ;;  %v7013_v55 = vpop.f32.mrf.mxu0 }
 0x5ca   : > { %12864 = vmatpush3.msra.mxu1 %v17519_v31  ;;  %12756 = vmatmul.mubr.f32.gmra.mxu0 %v17753_v38  ;;  %v7014_v48 = vadd.f32 %v7013_v55, %v17823_v7  ;;  %v17927_v12 = vadd.f32 %v12364_v27, %v7020_v23  ;;  %v19163_v31 = vld [vmem:[#allocation92_spill] sm:$0xff] }
 0x5cb   : > { %12813 = vmatprep.subr.mxu0 %v19162_v0  ;;  %12865 = vmatprep.subr.mxu1 %v17529_v50  ;;  %v19164_v38 = vld [vmem:[#allocation68_spill] sm:$0xff] }
 0x5cc   : > { %12758 = vmatprep.mubr.f32.mxu0 %v17764_v22  ;;  %12814 = vmatpush3.msra.mxu0 %v19162_v0  ;;  %v17933_v40 = vadd.f32 %v7142_v3, %v7014_v48  ;;  %v19168_v22 = vld [vmem:[#allocation47_spill] sm:$0xff] }
 0x5cd   : > { %12866 = vmatpush3.msra.mxu1 %v17529_v50  ;;  %12815 = vmatprep.subr.mxu0 %v19163_v31  ;;  %v19165_v50 = vld [vmem:[#allocation30_spill] sm:$0xff] }
 0x5ce   : > { %12867 = vmatprep.subr.mxu1 %v17545_v45  ;;  %12816 = vmatpush3.msra.mxu0 %v19163_v31 }
 0x5cf   : > { %12868 = vmatpush3.msra.mxu1 %v17545_v45  ;;  %12759 = vmatmul.mubr.f32.gmra.mxu0 %v17769_v37  ;;  %v19166_v45 = vld [vmem:[#allocation41_spill] sm:$0xff]  ;;  %v19167_v37 = vld [vmem:[#allocation44_spill] sm:$0xff] }
 0x5d0   : > { %12817 = vmatprep.subr.mxu0 %v19164_v38  ;;  %12869 = vmatprep.subr.mxu1 %v17556_v30 }
 0x5d1   : > { %12818 = vmatpush3.msra.mxu0 %v19164_v38  ;;  %12837 = vmatprep.mubr.f32.mxu0 %v19160_v10 }
 0x5d2   : > { %12870 = vmatpush3.msra.mxu1 %v17556_v30  ;;  %12819 = vmatprep.subr.mxu0 %v19165_v50 }
 0x5d3   : > { %12871 = vmatprep.subr.mxu1 %v17578_v8  ;;  %12820 = vmatpush3.msra.mxu0 %v19165_v50 }
 0x5d4   : > { %12872 = vmatpush3.msra.mxu1 %v17578_v8  ;;  %12821 = vmatprep.subr.mxu0 %v19166_v45  ;;  %v12443_v30 = vpop.f32.mrf.mxu1  ;;  %v19169_v8 = vld [vmem:[#allocation50_spill] sm:$0xff] }
 0x5d5   : > { %12873 = vmatprep.subr.mxu1 %v17590_v26  ;;  %12822 = vmatpush3.msra.mxu0 %v19166_v45 }
 0x5d6   : > { %12874 = vmatpush3.msra.mxu1 %v17590_v26  ;;  %12823 = vmatprep.subr.mxu0 %v19167_v37  ;;  %v7460_v26 = vpop.f32.mrf.mxu1 }
 0x5d7   : > { %12875 = vmatprep.subr.mxu1 %v17605_v35  ;;  %12824 = vmatpush3.msra.mxu0 %v19167_v37 }
 0x5d8   : > { %12876 = vmatpush3.msra.mxu1 %v17605_v35  ;;  %12825 = vmatprep.subr.mxu0 %v19168_v22  ;;  %v19171_v35 = vld [vmem:[#allocation56_spill] sm:$0xff] }
 0x5d9   : > { %12877 = vmatprep.subr.mxu1 %v17618_v20  ;;  %12826 = vmatpush3.msra.mxu0 %v19168_v22  ;;  %v12446_v58 = vpop.f32.mrf.mxu1 }
 0x5da   : > { %12878 = vmatpush3.msra.mxu1 %v17618_v20  ;;  %12827 = vmatprep.subr.mxu0 %v19169_v8 }
 0x5db   : > { %12879 = vmatprep.subr.mxu1 %v17633_v44  ;;  %12828 = vmatpush3.msra.mxu0 %v19169_v8  ;;  %v7472_v36 = vpop.f32.mrf.mxu1 }
 0x5dc   : > { %12880 = vmatpush3.msra.mxu1 %v17633_v44  ;;  %12829 = vmatprep.subr.mxu0 %v19170_v56  ;;  %v19175_v44 = vld [vmem:[#allocation64_spill] sm:$0xff] }
 0x5dd   : > { %12882 = vmatmul.mubr.f32.vlgmr.msra.gmra.mxu1 %v19171_v35  ;;  %12830 = vmatpush3.msra.mxu0 %v19170_v56 }
 0x5de   : > { %12884 = vmatprep.mubr.f32.mxu1 %v19172_v17  ;;  %12831 = vmatprep.subr.mxu0 %v19173_v60  ;;  %v12399_v20 = vpop.f32.mrf.mxu0 }
 0x5df   : > { %12832 = vmatpush3.msra.mxu0 %v19173_v60  ;;  %v7250_v53 = vadd.f32 %v12399_v20, %v17870_v47  ;;  %v12449_v59 = vpop.f32.mrf.mxu1 }
 0x5e0   : > { %12833 = vmatprep.subr.mxu0 %v19174_v33  ;;  %v7239_v14 = vpop.f32.mrf.mxu0 }
 0x5e1   : > { %12885 = vmatmul.mubr.f32.gmra.mxu1 %v19175_v44  ;;  %12834 = vmatpush3.msra.mxu0 %v19174_v33  ;;  %v7240_v7 = vadd.f32 %v7239_v14, %v17878_v49  ;;  %v17977_v4 = vadd.f32 %v12443_v30, %v7250_v53  ;;  %v7484_v49 = vpop.f32.mrf.mxu1 }
 0x5e2   : > { %12887 = vmatprep.mubr.f32.mxu1 %v19176_v15  ;;  %12835 = vmatprep.subr.mxu0 %v19177_v16 }
 0x5e3   : > { %12836 = vmatpush3.msra.mxu0 %v19177_v16  ;;  %v17982_v21 = vadd.f32 %v7460_v26, %v7240_v7 }
 0x5e4   : > { %12838 = vmatmul.mubr.f32.vlgmr.msra.gmra.mxu0 %v19171_v35  ;;  %v12402_v13 = vpop.f32.mrf.mxu0 }
 0x5e5   : > { %12888 = vmatmul.mubr.f32.gmra.mxu1 %v17726_v52  ;;  %12840 = vmatprep.mubr.f32.mxu0 %v19172_v17  ;;  %v7270_v51 = vadd.f32 %v12402_v13, %v17891_v63  ;;  %v12452_v2 = vpop.f32.mrf.mxu1 }
 0x5e6   : > { %12890 = vmatprep.mubr.f32.mxu1 %v17741_v43  ;;  %v7259_v42 = vpop.f32.mrf.mxu0 }
 0x5e7   : > { %v7260_v47 = vadd.f32 %v7259_v42, %v17898_v5  ;;  %v17990_v61 = vadd.f32 %v12446_v58, %v7270_v51 }
 0x5e8   : > { %12841 = vmatmul.mubr.f32.gmra.mxu0 %v19175_v44 }
 0x5e9   : > { %12843 = vmatprep.mubr.f32.mxu0 %v19176_v15  ;;  %12891 = vmatmul.mubr.f32.gmra.mxu1 %v17746_v11  ;;  %v17995_v25 = vadd.f32 %v7472_v36, %v7260_v47 }
 0x5ea   : > { %v12405_v6 = vpop.f32.mrf.mxu0 }
 0x5eb   : > { %v7290_v57 = vadd.f32 %v12405_v6, %v17911_v32 }
 0x5ec   : > { %12844 = vmatmul.mubr.f32.gmra.mxu0 %v17726_v52  ;;  %v7279_v34 = vpop.f32.mrf.mxu0  ;;  %v7496_v52 = vpop.f32.mrf.mxu1 }
 0x5ed   : > { %12846 = vmatprep.mubr.f32.mxu0 %v17741_v43  ;;  %v7280_v19 = vadd.f32 %v7279_v34, %v17917_v1  ;;  %v18001_v18 = vadd.f32 %v12449_v59, %v7290_v57 }
 0x5ef   : > { %v12408_v63 = vpop.f32.mrf.mxu0  ;;  %v18003_v5 = vadd.f32 %v7484_v49, %v7280_v19 }
 0x5f0   : > { %12847 = vmatmul.mubr.f32.gmra.mxu0 %v17746_v11  ;;  %v7310_v29 = vadd.f32 %v12408_v63, %v17927_v12 }
 0x5f1   : > { %v7299_v46 = vpop.f32.mrf.mxu0 }
 0x5f2   : > { %v7300_v24 = vadd.f32 %v7299_v46, %v17933_v40  ;;  %v18008_v9 = vadd.f32 %v12452_v2, %v7310_v29 }
 0x5f4   : > { %v18010_v28 = vadd.f32 %v7496_v52, %v7300_v24 }
 0x5fc   : > { %v18012_v43 = vpop.f32.mrf.mxu1 }
 0x5fe   : > { %v18014_v41 = vpop.f32.mrf.mxu1 }
 0x601   : > { %v18016_v32 = vpop.f32.mrf.mxu1 }
 0x603   : > { %v18018_v54 = vpop.f32.mrf.mxu1 }
 0x606   : > { %v12487_v39 = vpop.f32.mrf.mxu0 }
 0x607   : > { %v18020_v1 = vpop.f32.mrf.mxu1 }
 0x608   : > { %v7606_v27 = vpop.f32.mrf.mxu0 }
 0x609   : > { %v18022_v62 = vpop.f32.mrf.mxu1 }
 0x60c   : > { %v12490_v11 = vpop.f32.mrf.mxu0 }
 0x60d   : > { %v18024_v55 = vpop.f32.mrf.mxu1 }
 0x60e   : > { %v7620_v10 = vpop.f32.mrf.mxu0 }
 0x60f   : > { %v18026_v12 = vpop.f32.mrf.mxu1 }
 0x612   : > { %v12493_v23 = vpop.f32.mrf.mxu0 }
 0x614   : > { %v7634_v48 = vpop.f32.mrf.mxu0 }
 0x617   : > { %v12496_v0 = vpop.f32.mrf.mxu0 }
 0x619   : > { %v7648_v40 = vpop.f32.mrf.mxu0 }
 0x624   : > { %v18028_v3 = vpop.f32.mrf.mxu1 }
 0x626   : > { %v18030_v31 = vpop.f32.mrf.mxu1 }
 0x629   : > { %v18032_v50 = vpop.f32.mrf.mxu1 }
 0x62a   : > { %19178 = vst [vmem:[#allocation74_spill] sm:$0xff] %v18032_v50  ;;  %v7642_v50 = vadd.f32 %v12493_v23, %v18001_v18 }
 0x62b   : > { %v18036_v37 = vpop.f32.mrf.mxu1 }
 0x62c   : > { %19179 = vst [vmem:[#allocation27_spill] sm:$0xff] %v18036_v37  ;;  %v7628_v37 = vadd.f32 %v12490_v11, %v17990_v61 }
 0x62e   : > { %v12575_v38 = vpop.f32.mrf.mxu0 }
 0x62f   : > { %v18040_v22 = vpop.f32.mrf.mxu1 }
 0x630   : > { %v18034_v45 = vpop.f32.mrf.mxu0  ;;  %19180 = vst [vmem:[#allocation17_spill] sm:$0xff] %v18040_v22 }
 0x631   : > { %v18044_v26 = vpop.f32.mrf.mxu1 }
 0x632   : > { %19181 = vst [vmem:[#allocation72_spill] sm:$0xff] %v18044_v26 }
 0x634   : > { %v18038_v30 = vpop.f32.mrf.mxu0 }
 0x635   : > { %v18048_v35 = vpop.f32.mrf.mxu1 }
 0x636   : > { %v18042_v8 = vpop.f32.mrf.mxu0  ;;  %19183 = vst [vmem:[#allocation99_spill] sm:$0xff] %v18048_v35 }
 0x637   : > { %v18052_v60 = vpop.f32.mrf.mxu1 }
 0x638   : > { %19185 = vst [vmem:[#allocation22_spill] sm:$0xff] %v18052_v60 }
 0x63a   : > { %v18046_v56 = vpop.f32.mrf.mxu0 }
 0x63b   : > { %19182 = vst [vmem:[#allocation83_spill] sm:$0xff] %v18046_v56 }
 0x63c   : > { %v18050_v17 = vpop.f32.mrf.mxu0 }
 0x63d   : > { %19184 = vst [vmem:[#allocation73_spill] sm:$0xff] %v18050_v17  ;;  %v7614_v17 = vadd.f32 %v12487_v39, %v17977_v4 }
 0x63f   : > { %v18054_v20 = vpop.f32.mrf.mxu0  ;;  %v7753_v4 = vadd.f32 %v18012_v43, %v7614_v17 }
 0x640   : > { %19186 = vst [vmem:[#allocation78_spill] sm:$0xff] %v18054_v20 }
 0x641   : > { %v18056_v53 = vpop.f32.mrf.mxu0  ;;  %v7926_v11 = vadd.f32 %v12575_v38, %v7753_v4 }
 0x642   : > { %19187 = vst [vmem:[#allocation77_spill] sm:$0xff] %v18056_v53 }
 0x64d   : > { %v12707_v58 = vpop.f32.mrf.mxu1 }
 0x64f   : > { %v8427_v33 = vpop.f32.mrf.mxu1 }
 0x652   : > { %v12710_v44 = vpop.f32.mrf.mxu1 }
 0x654   : > { %v8439_v15 = vpop.f32.mrf.mxu1 }
 0x656   : > { %v12663_v14 = vpop.f32.mrf.mxu0 }
 0x657   : > { %v12713_v36 = vpop.f32.mrf.mxu1 }
 0x658   : > { %v8206_v7 = vpop.f32.mrf.mxu0 }
 0x659   : > { %v8451_v51 = vpop.f32.mrf.mxu1 }
 0x65c   : > { %v12666_v16 = vpop.f32.mrf.mxu0 }
 0x65d   : > { %v18058_v59 = vpop.f32.mrf.mxu1 }
 0x65e   : > { %v8226_v13 = vpop.f32.mrf.mxu0  ;;  %19188 = vst [vmem:[#allocation79_spill] sm:$0xff] %v18058_v59  ;;  %v8428_v59 = vadd.f32 %v8427_v33, %v8206_v7 }
 0x65f   : > { %v18060_v6 = vpop.f32.mrf.mxu1 }
 0x660   : > { %19189 = vst [vmem:[#allocation102_spill] sm:$0xff] %v18060_v6  ;;  %v7607_v6 = vadd.f32 %v7606_v27, %v17982_v21  ;;  %v7649_v21 = vadd.f32 %v7648_v40, %v18010_v28  ;;  %v8446_v27 = vadd.f32 %v12710_v44, %v12666_v16  ;;  %v7785_v28 = vadd.f32 %v18020_v1, %v7642_v50 }
 0x662   : > { %v12669_v42 = vpop.f32.mrf.mxu0  ;;  %v7745_v39 = vadd.f32 %v18014_v41, %v7607_v6 }
 0x663   : > { %v8458_v17 = vadd.f32 %v12713_v36, %v12669_v42  ;;  %v19201_v42 = vld [vmem:[#allocation27_spill] sm:$0xff] }
 0x664   : > { %v8246_v47 = vpop.f32.mrf.mxu0  ;;  %v7920_v18 = vadd.f32 %v18034_v45, %v7745_v39 }
 0x666   : > { %v8049_v1 = vadd.f32 %v18030_v31, %v7920_v18 }
 0x667   : > { %v18062_v49 = vpop.f32.mrf.mxu0 }
 0x668   : > { %19190 = vst [vmem:[#allocation65_spill] sm:$0xff] %v18062_v49 }
 0x669   : > { %v18064_v34 = vpop.f32.mrf.mxu0 }
 0x66a   : > { %19191 = vst [vmem:[#allocation70_spill] sm:$0xff] %v18064_v34  ;;  %v8434_v34 = vadd.f32 %v12707_v58, %v12663_v14  ;;  %v8452_v14 = vadd.f32 %v8451_v51, %v8246_v47  ;;  %v19202_v47 = vld [vmem:[#allocation83_spill] sm:$0xff] }
 0x66b   : > { %v7950_v6 = vadd.f32 %v19202_v47, %v7785_v28 }
 0x66f   : > { %v19198_v7 = vld [vmem:[#allocation65_spill] sm:$0xff] }
 0x675   : > { %v12795_v57 = vpop.f32.mrf.mxu1 }
 0x677   : > { %v8711_v19 = vpop.f32.mrf.mxu1 }
 0x67a   : > { %v12798_v63 = vpop.f32.mrf.mxu1 }
 0x67c   : > { %v18066_v46 = vpop.f32.mrf.mxu1 }
 0x67d   : > { %19192 = vst [vmem:[#allocation24_spill] sm:$0xff] %v18066_v46  ;;  %v7621_v46 = vadd.f32 %v7620_v10, %v17995_v25  ;;  %v7769_v25 = vadd.f32 %v18016_v32, %v7628_v37  ;;  %v7793_v32 = vadd.f32 %v18026_v12, %v7649_v21  ;;  %v8055_v37 = vadd.f32 %v18028_v3, %v7926_v11  ;;  %v19199_v12 = vld [vmem:[#allocation79_spill] sm:$0xff]  ;;  %v18103_v3 = vld [vmem:[%s18201_s2 + $0x2] ss:$0 sm:$0xff] }
 0x67e   : > { %v12751_v2 = vpop.f32.mrf.mxu0 }
 0x67f   : > { %v18068_v52 = vpop.f32.mrf.mxu1  ;;  %v8581_v49 = vadd.f32 %v12751_v2, %v8434_v34  ;;  %v7761_v10 = vadd.f32 %v18018_v54, %v7621_v46  ;;  %v7938_v43 = vadd.f32 %v18038_v30, %v7769_v25  ;;  %v12955_v25 = vld [vmem:[%s13243_s23 + $0x8] sm:$0xff] }
 0x680   : > { %v8573_v29 = vpop.f32.mrf.mxu0  ;;  %19193 = vst [vmem:[#allocation21_spill] sm:$0xff] %v18068_v52 }
 0x681   : > { %v18070_v35 = vpop.f32.mrf.mxu1  ;;  %v8574_v61 = vadd.f32 %v8573_v29, %v8428_v59  ;;  %v7932_v45 = vadd.f32 %v18042_v8, %v7761_v10 }
 0x682   : > { %19194 = vst [vmem:[#allocation86_spill] sm:$0xff] %v18070_v35 }
 0x683   : > { %v8712_v38 = vadd.f32 %v8711_v19, %v8574_v61  ;;  %v8061_v59 = vadd.f32 %v19201_v42, %v7932_v45 }
 0x684   : > { %v12754_v24 = vpop.f32.mrf.mxu0  ;;  %v19200_v31 = vld [vmem:[#allocation24_spill] sm:$0xff] }
 0x685   : > { %v18072_v26 = vpop.f32.mrf.mxu1  ;;  %v8595_v23 = vadd.f32 %v12754_v24, %v8446_v27 }
 0x686   : > { %v8587_v60 = vpop.f32.mrf.mxu0  ;;  %19195 = vst [vmem:[#allocation94_spill] sm:$0xff] %v18072_v26  ;;  %v7635_v26 = vadd.f32 %v7634_v48, %v18003_v5  ;;  %v8440_v5 = vadd.f32 %v8439_v15, %v8226_v13 }
 0x687   : > { %v18074_v22 = vpop.f32.mrf.mxu1  ;;  %v19206_v21 = vld [vmem:[#allocation21_spill] sm:$0xff] }
 0x688   : > { %19196 = vst [vmem:[#allocation93_spill] sm:$0xff] %v18074_v22  ;;  %v7656_v22 = vadd.f32 %v12496_v0, %v18008_v9  ;;  %v8720_v9 = vadd.f32 %v12795_v57, %v8581_v49  ;;  %v7777_v41 = vadd.f32 %v18022_v62, %v7635_v26  ;;  %v8588_v40 = vadd.f32 %v8587_v60, %v8440_v5  ;;  %v19203_v49 = vld [vmem:[#allocation70_spill] sm:$0xff] }
 0x689   : > { %v8736_v26 = vadd.f32 %v12798_v63, %v8595_v23  ;;  %v8470_v60 = vadd.f32 %v19199_v12, %v19198_v7  ;;  %v19204_v57 = vld [vmem:[#allocation102_spill] sm:$0xff]  ;;  %v19208_v23 = vld [vmem:[#allocation17_spill] sm:$0xff] }
 0x68a   : > { %v12757_v53 = vpop.f32.mrf.mxu0  ;;  %v7801_v48 = vadd.f32 %v18024_v55, %v7656_v22  ;;  %v19197_v55 = vld [vmem:[#allocation74_spill] sm:$0xff] }
 0x68b   : > { %v8067_v22 = vadd.f32 %v19197_v55, %v7938_v43  ;;  %v8609_v15 = vadd.f32 %v12757_v53, %v8458_v17  ;;  %v8464_v53 = vadd.f32 %v19204_v57, %v19203_v49  ;;  %v19207_v61 = vld [vmem:[#allocation86_spill] sm:$0xff] }
 0x68c   : > { %v8601_v20 = vpop.f32.mrf.mxu0 }
 0x68d   : > { %v8602_v16 = vadd.f32 %v8601_v20, %v8452_v14  ;;  %v8752_v39 = vadd.f32 %v19206_v21, %v8609_v15  ;;  %v19210_v28 = vld [vmem:[#allocation94_spill] sm:$0xff]  ;;  %v19211_v14 = vld [vmem:[#allocation72_spill] sm:$0xff] }
 0x68e   : > { %v12962_v21 = vld [vmem:[%s13243_s23 + $0x30] sm:$0xff] }
 0x68f   : > { %v12760_v52 = vpop.f32.mrf.mxu0  ;;  %v8744_v11 = vadd.f32 %v19207_v61, %v8602_v16  ;;  %v19214_v16 = vld [vmem:[#allocation99_spill] sm:$0xff] }
 0x690   : > { %v8623_v20 = vadd.f32 %v12760_v52, %v8470_v60 }
 0x691   : > { %v8615_v58 = vpop.f32.mrf.mxu0 }
 0x692   : > { %v8616_v4 = vadd.f32 %v8615_v58, %v8464_v53 }
 0x69d   : > { %v12883_v56 = vpop.f32.mrf.mxu1 }
 0x69f   : > { %v9015_v35 = vpop.f32.mrf.mxu1 }
 0x6a1   : > { %v12886_v33 = vpop.f32.mrf.mxu1 }
 0x6a3   : > { %v9027_v44 = vpop.f32.mrf.mxu1 }
 0x6a4   : > { %v12839_v0 = vpop.f32.mrf.mxu0 }
 0x6a5   : > { %v8893_v54 = vadd.f32 %v12839_v0, %v8720_v9  ;;  %v12889_v34 = vpop.f32.mrf.mxu1  ;;  %v8079_v9 = vadd.f32 %v19208_v23, %v7950_v6  ;;  %v19215_v6 = vld [vmem:[#allocation22_spill] sm:$0xff] }
 0x6a6   : > { %v8886_v30 = vpop.f32.mrf.mxu0 }
 0x6a7   : > { %v9022_v50 = vadd.f32 %v12883_v56, %v8893_v54  ;;  %v8887_v62 = vadd.f32 %v8886_v30, %v8712_v38  ;;  %v8728_v56 = vadd.f32 %v19200_v31, %v8588_v40  ;;  %v9039_v0 = vpop.f32.mrf.mxu1  ;;  %v12956_v54 = vld [vmem:[%s13243_s23] sm:$0xff] }
 0x6a8   : > { %v12842_v8 = vpop.f32.mrf.mxu0 }
 0x6a9   : > { %v9062_v36 = vadd.f32 %v9022_v50, %v8055_v37  ;;  %v9016_v13 = vadd.f32 %v9015_v35, %v8887_v62  ;;  %v8905_v51 = vadd.f32 %v12842_v8, %v8736_v26  ;;  %v19205_v35 = vld [vmem:[#allocation73_spill] sm:$0xff]  ;;  %v12892_v55 = vpop.f32.mrf.mxu1 }
 0x6aa   : > { %v8898_v19 = vpop.f32.mrf.mxu0  ;;  %v7944_v24 = vadd.f32 %v19205_v35, %v7777_v41  ;;  %v8768_v41 = vadd.f32 %v19210_v28, %v8623_v20  ;;  %v12961_v35 = vld [vmem:[%s13243_s23 + $0x38] sm:$0xff] }
 0x6ab   : > { %v9078_v2 = vadd.f32 %v18103_v3, %v9062_v36  ;;  %v9061_v63 = vadd.f32 %v9016_v13, %v8049_v1  ;;  %v9034_v29 = vadd.f32 %v12886_v33, %v8905_v51  ;;  %v8899_v46 = vadd.f32 %v8898_v19, %v8728_v56  ;;  %v19209_v33 = vld [vmem:[#allocation78_spill] sm:$0xff]  ;;  %v19213_v1 = vld [vmem:[#allocation93_spill] sm:$0xff]  ;;  %v9051_v47 = vpop.f32.mrf.mxu1 }
 0x6ac   : > { %v12845_v27 = vpop.f32.mrf.mxu0  ;;  %v7962_v43 = vadd.f32 %v19209_v33, %v7801_v48  ;;  %v8073_v48 = vadd.f32 %v19211_v14, %v7944_v24  ;;  %v8760_v50 = vadd.f32 %v19213_v1, %v8616_v4 }
 0x6ad   : > { %v9086_v10 = vadd.f32 %v12955_v25, %v9078_v2  ;;  %v9077_v52 = vadd.f32 %v18103_v3, %v9061_v63  ;;  %v9064_v18 = vadd.f32 %v9034_v29, %v8067_v22  ;;  %v9028_v5 = vadd.f32 %v9027_v44, %v8899_v46  ;;  %v19212_v44 = vld [vmem:[#allocation77_spill] sm:$0xff]  ;;  %v12957_v22 = vld [vmem:[%s13243_s23 + $0x18] sm:$0xff]  ;;  %v12960_v2 = vld [vmem:[%s13243_s23 + $0x20] sm:$0xff] }
 0x6ae   : > { %v8917_v58 = vadd.f32 %v12845_v27, %v8752_v39  ;;  %v8910_v40 = vpop.f32.mrf.mxu0  ;;  %v7956_v30 = vadd.f32 %v19212_v44, %v7793_v32  ;;  %v8091_v8 = vadd.f32 %v19214_v16, %v7962_v43  ;;  %v12958_v32 = vld [vmem:[%s13243_s23 + $0x10] sm:$0xff] }
 0x6af   : > { %9094 = vst [vmem:[%s18121_s25 + $0x8] sm:$0xff] %v9086_v10  ;;  %v9085_v38 = vadd.f32 %v12956_v54, %v9077_v52  ;;  %v9080_v37 = vadd.f32 %v18103_v3, %v9064_v18  ;;  %v9063_v45 = vadd.f32 %v9028_v5, %v8061_v59  ;;  %v8911_v17 = vadd.f32 %v8910_v40, %v8744_v11 }
 0x6b0   : > { %v9046_v62 = vadd.f32 %v12889_v34, %v8917_v58  ;;  %v12848_v26 = vpop.f32.mrf.mxu0  ;;  %v8085_v49 = vadd.f32 %v19215_v6, %v7956_v30  ;;  %v12959_v34 = vld [vmem:[%s13243_s23 + $0x28] sm:$0xff] }
 0x6b1   : > { %9093 = vst [vmem:[%s18121_s25] sm:$0xff] %v9085_v38  ;;  %v9088_v7 = vadd.f32 %v12957_v22, %v9080_v37  ;;  %v9079_v12 = vadd.f32 %v18103_v3, %v9063_v45  ;;  %v9040_v60 = vadd.f32 %v9039_v0, %v8911_v17  ;;  %v8929_v15 = vadd.f32 %v12848_v26, %v8768_v41 }
 0x6b2   : > { %v9066_v36 = vadd.f32 %v9046_v62, %v8079_v9  ;;  %v8922_v13 = vpop.f32.mrf.mxu0 }
 0x6b3   : > { %9096 = vst [vmem:[%s18121_s25 + $0x18] sm:$0xff] %v9088_v7  ;;  %v9087_v51 = vadd.f32 %v12958_v32, %v9079_v12  ;;  %v9065_v31 = vadd.f32 %v9040_v60, %v8073_v48  ;;  %v9058_v56 = vadd.f32 %v12892_v55, %v8929_v15  ;;  %v8923_v42 = vadd.f32 %v8922_v13, %v8760_v50 }
 0x6b4   : > { %v9082_v59 = vadd.f32 %v18103_v3, %v9066_v36 }
 0x6b5   : > { %9095 = vst [vmem:[%s18121_s25 + $0x10] sm:$0xff] %v9087_v51  ;;  %v9081_v57 = vadd.f32 %v18103_v3, %v9065_v31  ;;  %v9068_v53 = vadd.f32 %v9058_v56, %v8091_v8  ;;  %v9052_v20 = vadd.f32 %v9051_v47, %v8923_v42 }
 0x6b6   : > { %v9090_v19 = vadd.f32 %v12959_v34, %v9082_v59 }
 0x6b7   : > { %v9089_v63 = vadd.f32 %v12960_v2, %v9081_v57  ;;  %v9084_v29 = vadd.f32 %v18103_v3, %v9068_v53  ;;  %v9067_v46 = vadd.f32 %v9052_v20, %v8085_v49 }
 0x6b8   : > { %9098 = vst [vmem:[%s18121_s25 + $0x28] sm:$0xff] %v9090_v19 }
 0x6b9   : > { %9097 = vst [vmem:[%s18121_s25 + $0x20] sm:$0xff] %v9089_v63  ;;  %v9092_v24 = vadd.f32 %v12961_v35, %v9084_v29  ;;  %v9083_v4 = vadd.f32 %v18103_v3, %v9067_v46 }
 0x6bb   : > { %9100 = vst [vmem:[%s18121_s25 + $0x38] sm:$0xff] %v9092_v24  ;;  %v9091_v39 = vadd.f32 %v12962_v21, %v9083_v4 }
 0x6bd   : > { %9099 = vst [vmem:[%s18121_s25 + $0x30] sm:$0xff] %v9091_v39 }
 0x6be   : > { %13030 = shalt.err (!%p13027_p0)
}
 0x6bf   : > { %s13031_s23 = scalar_lea.hbm %s18151_s10, 1024  ;;  %s13035_s28 = scalar_lea.hbm %s18202_s3, 2048 }
 0x6c0   : > { %p13032_p5 = scmp.ne.s32.totalorder %s18151_s10, %s13031_s23  ;;  %p13036_p4 = scmp.lt.s32.totalorder %s18151_s10, %s18202_s3 }
 0x6c1   : > { %p13037_p6 = scmp.lt.s32.totalorder %s13035_s28, %s13031_s23 }
 0x6c2   : > { %p13033_p2 = pnand %p13032_p5, %p19216_p11 }
 0x6c3   : > { %p13038_p8 = por %p13037_p6, %p13036_p4 }
 0x6c4   : > { %p13034_p1 = pneg %p13033_p2 }
 0x6c6   : > { %p13039_p3 = pnand %p13038_p8, %p13034_p1 }
 0x6c8   : > { %13042 = shalt.err (!%p13039_p3)
}
 0x6c9   : > { %s13093_s22 = smov 128   ;;  %s13094_s25 = smov 8  }
 0x6ca   : > { %12899 = dma.vmem_to_hbm [thread:$0]  (%p19216_p11), %s18153_s8, 1024, %s18151_s10, %s9102_s16, %s13093_s22, %s13093_s22, %s13094_s25  }
 0x6cb PF: > { %s9130_s4 = sand.u32 1, %s13073_s12   ;;  %p19217_p7 = scmp.ne.s32.totalorder %s18573_s19, 0 }
 0x6cc   : > { %p19218_p9 = scmp.ge.s32.totalorder %s13085_s15, 2  ;;  %s9131_s9 = scalar_lea.sflag [#allocation5], %s9130_s4 }
 0x6ce   : > { %p12910_p10 = pnand %p19218_p9, %p19217_p7 }
 0x6d0   : > { %p12911_p12 = pneg %p12910_p10 }
 0x6d2   : > { %13068 = dma.done.wait (%p12911_p12), %s9131_s9, 1024  }
 0x6d3   : > { %13070 = vsyncadd (%p12911_p12), %s9131_s9, 4294966272  ;;  %p17_p13 = scmp.ge.s32.totalorder %s13169_s24, 4   ;;  %s19219_s12 = smov %s13077_s13 }
 0x6d4   : > { %s19220_s13 = smov %s13081_s14  ;;  %s19221_s14 = smov %s13189_s5 }
 0x6d5   : > { %s19222_s15 = smov %s13169_s24  ;;  %19 = sbr.rel (!%p17_p13) target bundleno = 6 (0x6), region = 91 }
 0x6da   :  { %9136 = vsyncpa [#allocation4], 1 }
 0x6db   :  { %9138 = vsyncpa [#allocation4 + $0x1], 1 }
 0x6dc   :  { %9139 = vsyncpa [#allocation7], 1 }
 0x6dd   :  { %9140 = vsyncpa [#allocation5], 1 }
 0x6de   :  { %9142 = vsyncpa [#allocation5 + $0x1], 1 }

</bundles_post_ra>
